<compile_context>
chip_gen: v7x
topology: tpu7x:2x2x1
jax: 0.10.0
libtpu: 0.0.40
codegen_flags: <defaults>
</compile_context>

<pallas_src>
from functools import partial

import jax
import jax.numpy as jnp
import numpy as np
from jax import lax
from jax.experimental import pallas as pl
from jax.experimental.pallas import tpu as pltpu


# ----------------------------- Pallas kernels -------------------------------

def _conv_stage_kernel(x_ref, wb_ref, cb_ref, s_ref, b_ref, out_ref, *,
                       kd, kh, ho, wpc, pd, ph, pw):
    """One (batch, pooled-depth) tile of Conv3d+bias -> ReLU -> BN(eval) -> MaxPool3d.

    x_ref  : (Din, Hin, Win*Cin)   bf16  full-depth input slab of one batch element
    wb_ref : (kd*kh, Win*Cin, NB)  bf16  banded conv weights, NB = pw*Wp*Cout,
                                         columns grouped by W-pool phase
    cb_ref : (1, NB) f32  conv bias tiled per output column
    s_ref  : (1, NB) f32  folded BN scale (tiled)
    b_ref  : (1, NB) f32  folded BN bias  (tiled)
    out_ref: (1, Hp, Wp*Cout) bf16  pooled output for one pooled depth
    """
    dp = pl.program_id(1)
    # Input depth planes needed by this pooled output row (loaded once, reused).
    planes = [x_ref[dp * pd + t] for t in range(pd + kd - 1)]

    zd = None
    for r in range(pd):                      # conv-output depths in this pool window
        acc = None
        for i in range(kd):
            a = planes[r + i]                # (Hin, Win*Cin) bf16
            for j in range(kh):
                part = jnp.dot(a[j:j + ho, :], wb_ref[i * kh + j],
                               preferred_element_type=jnp.float32)
                acc = part if acc is None else acc + part
        z = jnp.maximum(acc + cb_ref[...], 0.0)        # conv bias + ReLU   (f32)
        z = z * s_ref[...] + b_ref[...]                # BatchNorm (inference, folded)
        zw = z[:, :wpc]                                # W max-pool: lane-slice maxima
        for q in range(1, pw):
            zw = jnp.maximum(zw, z[:, q * wpc:(q + 1) * wpc])
        zd = zw if zd is None else jnp.maximum(zd, zw)  # D max-pool
    hp = ho // ph
    u = zd[:hp * ph, :].reshape(hp, ph, wpc)            # H max-pool (minor dim kept)
    hm = u[:, 0, :]
    for q in range(1, ph):
        hm = jnp.maximum(hm, u[:, q, :])
    out_ref[0] = hm.astype(out_ref.dtype)


def _classifier_kernel(f_ref, w_ref, b_ref, o_ref):
    o_ref[...] = (jnp.dot(f_ref[...], w_ref[...],
                          preferred_element_type=jnp.float32) + b_ref[...])


# ------------------------------- wrappers ------------------------------------

def _build_banded_weights(wgt, win, pw_pool):
    """Expand (kd, kh, kw, cin, cout) taps into kd*kh banded GEMM operands of shape
    (win*cin, pw*wp*cout).  Output columns are grouped by W-pool phase q
    (w_out = wp_idx*pw + q) so the in-kernel W max-pool is a lane-slice maximum."""
    kd, kh, kw, cin, cout = wgt.shape
    wo = win - kw + 1
    wp = wo // pw_pool
    idx = jnp.arange(wo)
    blocks = []
    for i in range(kd):
        for j in range(kh):
            b = jnp.zeros((win, cin, wo, cout), jnp.float32)
            for k in range(kw):
                b = b.at[idx + k, :, idx, :].add(wgt[i, j, k][None, :, :])
            b = b[:, :, :wp * pw_pool, :]                       # crop (floor pooling)
            b = b.reshape(win, cin, wp, pw_pool, cout)
            b = jnp.transpose(b, (0, 1, 3, 2, 4))               # (win, cin, q, wp, cout)
            blocks.append(b.reshape(win * cin, pw_pool * wp * cout))
    return jnp.stack(blocks, axis=0).astype(jnp.bfloat16)


def conv_pool_stage(x, wgt, conv_b, bn_scale, bn_bias, pool):
    """x: (N, Din, Hin, Win*Cin) bf16.  Returns (N, Dp, Hp, Wp*Cout) bf16."""
    N, din, hin, wc = x.shape
    kd, kh, kw, cin, cout = wgt.shape
    assert wc % cin == 0
    win = wc // cin
    do, ho, wo = din - kd + 1, hin - kh + 1, win - kw + 1
    pd, ph, pw_ = pool
    dp_, hp_, wp_ = do // pd, ho // ph, wo // pw_
    wpc = wp_ * cout
    nb = pw_ * wpc                                        # GEMM output width

    wb = _build_banded_weights(wgt, win, pw_)             # (kd*kh, win*cin, nb) bf16
    cb_row = jnp.tile(conv_b.astype(jnp.float32), pw_ * wp_).reshape(1, nb)
    s_row = jnp.tile(bn_scale.astype(jnp.float32), pw_ * wp_).reshape(1, nb)
    b_row = jnp.tile(bn_bias.astype(jnp.float32), pw_ * wp_).reshape(1, nb)

    kernel = partial(_conv_stage_kernel, kd=kd, kh=kh, ho=ho,
                     wpc=wpc, pd=pd, ph=ph, pw=pw_)
    return pl.pallas_call(
        kernel,
        out_shape=jax.ShapeDtypeStruct((N, dp_, hp_, wpc), jnp.bfloat16),
        grid_spec=pltpu.PrefetchScalarGridSpec(
            num_scalar_prefetch=0,
            grid=(N, dp_),
            in_specs=[
                # whole-depth input slab per batch element; constant index map along
                # the pooled-depth axis -> fetched once per batch element.
                pl.BlockSpec((None, din, hin, wc), lambda n, d: (n, 0, 0, 0)),
                pl.BlockSpec((kd * kh, win * cin, nb), lambda n, d: (0, 0, 0)),
                pl.BlockSpec((1, nb), lambda n, d: (0, 0)),
                pl.BlockSpec((1, nb), lambda n, d: (0, 0)),
                pl.BlockSpec((1, nb), lambda n, d: (0, 0)),
            ],
            out_specs=pl.BlockSpec((None, 1, hp_, wpc), lambda n, d: (n, d, 0, 0)),
        ),
        compiler_params=pltpu.CompilerParams(
            dimension_semantics=("parallel", "arbitrary"),
            vmem_limit_bytes=32 * 1024 * 1024),
    )(x, wb, cb_row, s_row, b_row)


def classifier(feat, fc_w, fc_b):
    vmem = pl.BlockSpec(memory_space=pltpu.MemorySpace.VMEM)
    return pl.pallas_call(
        _classifier_kernel,
        out_shape=jax.ShapeDtypeStruct((feat.shape[0], fc_w.shape[1]), jnp.float32),
        in_specs=[vmem, vmem, vmem],
        out_specs=vmem,
    )(feat.astype(jnp.bfloat16), fc_w.astype(jnp.bfloat16),
      fc_b.reshape(1, -1).astype(jnp.float32))


def base_model_forward(x_ncdhw, params):
    """Pallas forward.  Flatten order of the final features is (D, H, W, C), which is
    equivalent to torch's (C, D, H, W) up to a fixed permutation of the (synthetic)
    classifier weight rows."""
    x = jnp.transpose(x_ncdhw, (0, 2, 3, 4, 1)).astype(jnp.bfloat16)   # NDHWC
    N, D, H, W, C = x.shape
    h = x.reshape(N, D, H, W * C)                       # lane-dense minor dim
    for st in params["stages"]:
        h = conv_pool_stage(h, st["w"], st["cb"], st["scale"], st["bias"], st["pool"])
    feat = h.reshape(N, -1)                             # (N, 512)
    assert feat.shape[1] == params["fc_w"].shape[0]
    return classifier(feat, params["fc_w"], params["fc_b"])


# ------------------------------ reference ------------------------------------

def ref_forward(x_ncdhw, params):
    """Plain-JAX reference with the same (bf16 matmul operands / f32 accumulate /
    bf16 inter-stage activations) numerics as the kernel path."""
    h = jnp.transpose(x_ncdhw, (0, 2, 3, 4, 1)).astype(jnp.bfloat16)
    for st in params["stages"]:
        y = lax.conv_general_dilated(
            h, st["w"].astype(jnp.bfloat16), (1, 1, 1), "VALID",
            dimension_numbers=("NDHWC", "DHWIO", "NDHWC"),
            preferred_element_type=jnp.float32)
        y = jnp.maximum(y + st["cb"], 0.0) * st["scale"] + st["bias"]
        pd, ph, pw = st["pool"]
        y = lax.reduce_window(y, -jnp.inf, lax.max,
                              (1, pd, ph, pw, 1), (1, pd, ph, pw, 1), "VALID")
        h = y.astype(jnp.bfloat16)
    feat = h.reshape(h.shape[0], -1)
    return (jnp.dot(feat, params["fc_w"].astype(jnp.bfloat16),
                    preferred_element_type=jnp.float32) + params["fc_b"])


# ------------------------------ parameters ------------------------------------

def fold_bn(gamma, beta, mean, var, eps=1e-5):
    scale = gamma / jnp.sqrt(var + eps)
    return scale, beta - mean * scale


def make_params(key, num_classes=5):
    layer_specs = [
        dict(cin=3, cout=8, k=(3, 3, 3), pool=(2, 2, 2)),
        dict(cin=8, cout=32, k=(2, 2, 2), pool=(2, 2, 2)),
        dict(cin=32, cout=64, k=(2, 2, 2), pool=(2, 2, 2)),
        dict(cin=64, cout=128, k=(2, 2, 2), pool=(1, 7, 7)),
    ]
    stages = []
    for idx, sp in enumerate(layer_specs):
        key, kw_, kb_ = jax.random.split(key, 3)
        kd, kh, kw = sp["k"]
        cin, cout = sp["cin"], sp["cout"]
        fan_in = cin * kd * kh * kw
        w = jax.random.normal(kw_, (kd, kh, kw, cin, cout), jnp.float32) / np.sqrt(fan_in)
        cb = 0.1 * jax.random.normal(kb_, (cout,), jnp.float32)
        c = jnp.arange(cout, dtype=jnp.float32)
        gamma = 1.0 + 0.05 * jnp.cos(c + idx)
        beta = 0.05 * jnp.sin(c - idx)
        mean = 0.02 * jnp.cos(2.0 * c + idx)
        var = 1.0 + 0.1 * jnp.sin(c) ** 2
        scale, bias = fold_bn(gamma, beta, mean, var)
        stages.append(dict(w=w, cb=cb, scale=scale, bias=bias, pool=sp["pool"]))
    key, kfw, kfb = jax.random.split(key, 3)
    fc_w = jax.random.normal(kfw, (512, num_classes), jnp.float32) / np.sqrt(512.0)
    fc_b = 0.1 * jax.random.normal(kfb, (num_classes,), jnp.float32)
    return dict(stages=stages, fc_w=fc_w, fc_b=fc_b)


# --------------------------------- main ---------------------------------------

if __name__ == "__main__":
    key = jax.random.PRNGKey(0)
    key, kx = jax.random.split(key)
    # Smallest input for which the module is consistent: flatten must yield exactly
    # 512 features for Linear(512, 5)  ->  (N, 3, 48, 72, 72).
    N, C, D, H, W = 2, 3, 48, 72, 72
    x = jax.random.normal(kx, (N, C, D, H, W), jnp.float32)
    params = make_params(key)

    out = jax.block_until_ready(base_model_forward(x, params))
    ref = jax.block_until_ready(ref_forward(x, params))

    # Both paths use bf16 matmul operands / bf16 inter-stage activations with f32
    # accumulation; remaining differences are accumulation order + bf16 re-rounding.
    np.testing.assert_allclose(np.asarray(out), np.asarray(ref), rtol=1e-2, atol=1e-2)
    print("KERNEL_OK")
</pallas_src>

<mosaic_0001>
module attributes {stable_mosaic.version = 11 : i64} {
  func.func @_conv_stage_kernel(%arg0: i32, %arg1: i32, %arg2: memref<1x48x72x216xbf16, #tpu.memory_space<vmem>>, %arg3: memref<9x216x560xbf16, #tpu.memory_space<vmem>>, %arg4: memref<1x560xf32, #tpu.memory_space<vmem>>, %arg5: memref<1x560xf32, #tpu.memory_space<vmem>>, %arg6: memref<1x560xf32, #tpu.memory_space<vmem>>, %arg7: memref<1x1x35x280xbf16, #tpu.memory_space<vmem>>) attributes {dimension_semantics = [#tpu.dimension_semantics<parallel>, #tpu.dimension_semantics<arbitrary>], iteration_bounds = array<i64: 2, 23>, scalar_prefetch = 0 : i64, scratch_operands = 0 : i64, tpu.core_type = #tpu.core_type<tc>, window_params = [{transform_indices = @transform_0, window_bounds = array<i64: 1, 48, 72, 216>}, {pipeline_mode = #tpu.pipeline_mode<synchronous>, transform_indices = @transform_1, window_bounds = array<i64: 9, 216, 560>}, {pipeline_mode = #tpu.pipeline_mode<synchronous>, transform_indices = @transform_2, window_bounds = array<i64: 1, 560>}, {pipeline_mode = #tpu.pipeline_mode<synchronous>, transform_indices = @transform_3, window_bounds = array<i64: 1, 560>}, {pipeline_mode = #tpu.pipeline_mode<synchronous>, transform_indices = @transform_4, window_bounds = array<i64: 1, 560>}, {transform_indices = @transform_5, window_bounds = array<i64: 1, 1, 35, 280>}]} {
    %c2_i32 = arith.constant 2 : i32
    %0 = arith.muli %arg1, %c2_i32 : i32
    %c0_i32 = arith.constant 0 : i32
    %1 = arith.addi %0, %c0_i32 : i32
    %c0 = arith.constant 0 : index
    %2 = arith.index_cast %1 : i32 to index
    %c0_0 = arith.constant 0 : index
    %c0_1 = arith.constant 0 : index
    %3 = vector.load %arg2[%c0, %2, %c0_0, %c0_1] : memref<1x48x72x216xbf16, #tpu.memory_space<vmem>>, vector<1x1x72x216xbf16>
    %4 = vector.shape_cast %3 : vector<1x1x72x216xbf16> to vector<72x216xbf16>
    %c2_i32_2 = arith.constant 2 : i32
    %5 = arith.muli %arg1, %c2_i32_2 : i32
    %c1_i32 = arith.constant 1 : i32
    %6 = arith.addi %5, %c1_i32 : i32
    %c0_3 = arith.constant 0 : index
    %7 = arith.index_cast %6 : i32 to index
    %c0_4 = arith.constant 0 : index
    %c0_5 = arith.constant 0 : index
    %8 = vector.load %arg2[%c0_3, %7, %c0_4, %c0_5] : memref<1x48x72x216xbf16, #tpu.memory_space<vmem>>, vector<1x1x72x216xbf16>
    %9 = vector.shape_cast %8 : vector<1x1x72x216xbf16> to vector<72x216xbf16>
    %c2_i32_6 = arith.constant 2 : i32
    %10 = arith.muli %arg1, %c2_i32_6 : i32
    %c2_i32_7 = arith.constant 2 : i32
    %11 = arith.addi %10, %c2_i32_7 : i32
    %c0_8 = arith.constant 0 : index
    %12 = arith.index_cast %11 : i32 to index
    %c0_9 = arith.constant 0 : index
    %c0_10 = arith.constant 0 : index
    %13 = vector.load %arg2[%c0_8, %12, %c0_9, %c0_10] : memref<1x48x72x216xbf16, #tpu.memory_space<vmem>>, vector<1x1x72x216xbf16>
    %14 = vector.shape_cast %13 : vector<1x1x72x216xbf16> to vector<72x216xbf16>
    %c2_i32_11 = arith.constant 2 : i32
    %15 = arith.muli %arg1, %c2_i32_11 : i32
    %c3_i32 = arith.constant 3 : i32
    %16 = arith.addi %15, %c3_i32 : i32
    %c0_12 = arith.constant 0 : index
    %17 = arith.index_cast %16 : i32 to index
    %c0_13 = arith.constant 0 : index
    %c0_14 = arith.constant 0 : index
    %18 = vector.load %arg2[%c0_12, %17, %c0_13, %c0_14] : memref<1x48x72x216xbf16, #tpu.memory_space<vmem>>, vector<1x1x72x216xbf16>
    %19 = vector.shape_cast %18 : vector<1x1x72x216xbf16> to vector<72x216xbf16>
    %20 = vector.extract_strided_slice %4 {offsets = [0, 0], sizes = [70, 216], strides = [1, 1]} : vector<72x216xbf16> to vector<70x216xbf16>
    %c0_15 = arith.constant 0 : index
    %c0_16 = arith.constant 0 : index
    %c0_17 = arith.constant 0 : index
    %21 = vector.load %arg3[%c0_15, %c0_16, %c0_17] : memref<9x216x560xbf16, #tpu.memory_space<vmem>>, vector<1x216x560xbf16>
    %22 = vector.shape_cast %21 : vector<1x216x560xbf16> to vector<216x560xbf16>
    %cst = arith.constant dense<0.000000e+00> : vector<70x560xf32>
    %23 = tpu.matmul %20, %22, %cst {dimension_numbers = #tpu.dot_dimension_numbers<[1], [0], [0], [1], [0, 0, 1, 1], [], []>} : vector<70x216xbf16>, vector<216x560xbf16>, vector<70x560xf32> -> vector<70x560xf32>
    %24 = vector.extract_strided_slice %4 {offsets = [1, 0], sizes = [70, 216], strides = [1, 1]} : vector<72x216xbf16> to vector<70x216xbf16>
    %c1 = arith.constant 1 : index
    %c0_18 = arith.constant 0 : index
    %c0_19 = arith.constant 0 : index
    %25 = vector.load %arg3[%c1, %c0_18, %c0_19] : memref<9x216x560xbf16, #tpu.memory_space<vmem>>, vector<1x216x560xbf16>
    %26 = vector.shape_cast %25 : vector<1x216x560xbf16> to vector<216x560xbf16>
    %cst_20 = arith.constant dense<0.000000e+00> : vector<70x560xf32>
    %27 = tpu.matmul %24, %26, %cst_20 {dimension_numbers = #tpu.dot_dimension_numbers<[1], [0], [0], [1], [0, 0, 1, 1], [], []>} : vector<70x216xbf16>, vector<216x560xbf16>, vector<70x560xf32> -> vector<70x560xf32>
    %28 = arith.addf %23, %27 : vector<70x560xf32>
    %29 = vector.extract_strided_slice %4 {offsets = [2, 0], sizes = [70, 216], strides = [1, 1]} : vector<72x216xbf16> to vector<70x216xbf16>
    %c2 = arith.constant 2 : index
    %c0_21 = arith.constant 0 : index
    %c0_22 = arith.constant 0 : index
    %30 = vector.load %arg3[%c2, %c0_21, %c0_22] : memref<9x216x560xbf16, #tpu.memory_space<vmem>>, vector<1x216x560xbf16>
    %31 = vector.shape_cast %30 : vector<1x216x560xbf16> to vector<216x560xbf16>
    %cst_23 = arith.constant dense<0.000000e+00> : vector<70x560xf32>
    %32 = tpu.matmul %29, %31, %cst_23 {dimension_numbers = #tpu.dot_dimension_numbers<[1], [0], [0], [1], [0, 0, 1, 1], [], []>} : vector<70x216xbf16>, vector<216x560xbf16>, vector<70x560xf32> -> vector<70x560xf32>
    %33 = arith.addf %28, %32 : vector<70x560xf32>
    %34 = vector.extract_strided_slice %9 {offsets = [0, 0], sizes = [70, 216], strides = [1, 1]} : vector<72x216xbf16> to vector<70x216xbf16>
    %c3 = arith.constant 3 : index
    %c0_24 = arith.constant 0 : index
    %c0_25 = arith.constant 0 : index
    %35 = vector.load %arg3[%c3, %c0_24, %c0_25] : memref<9x216x560xbf16, #tpu.memory_space<vmem>>, vector<1x216x560xbf16>
    %36 = vector.shape_cast %35 : vector<1x216x560xbf16> to vector<216x560xbf16>
    %cst_26 = arith.constant dense<0.000000e+00> : vector<70x560xf32>
    %37 = tpu.matmul %34, %36, %cst_26 {dimension_numbers = #tpu.dot_dimension_numbers<[1], [0], [0], [1], [0, 0, 1, 1], [], []>} : vector<70x216xbf16>, vector<216x560xbf16>, vector<70x560xf32> -> vector<70x560xf32>
    %38 = arith.addf %33, %37 : vector<70x560xf32>
    %39 = vector.extract_strided_slice %9 {offsets = [1, 0], sizes = [70, 216], strides = [1, 1]} : vector<72x216xbf16> to vector<70x216xbf16>
    %c4 = arith.constant 4 : index
    %c0_27 = arith.constant 0 : index
    %c0_28 = arith.constant 0 : index
    %40 = vector.load %arg3[%c4, %c0_27, %c0_28] : memref<9x216x560xbf16, #tpu.memory_space<vmem>>, vector<1x216x560xbf16>
    %41 = vector.shape_cast %40 : vector<1x216x560xbf16> to vector<216x560xbf16>
    %cst_29 = arith.constant dense<0.000000e+00> : vector<70x560xf32>
    %42 = tpu.matmul %39, %41, %cst_29 {dimension_numbers = #tpu.dot_dimension_numbers<[1], [0], [0], [1], [0, 0, 1, 1], [], []>} : vector<70x216xbf16>, vector<216x560xbf16>, vector<70x560xf32> -> vector<70x560xf32>
    %43 = arith.addf %38, %42 : vector<70x560xf32>
    %44 = vector.extract_strided_slice %9 {offsets = [2, 0], sizes = [70, 216], strides = [1, 1]} : vector<72x216xbf16> to vector<70x216xbf16>
    %c5 = arith.constant 5 : index
    %c0_30 = arith.constant 0 : index
    %c0_31 = arith.constant 0 : index
    %45 = vector.load %arg3[%c5, %c0_30, %c0_31] : memref<9x216x560xbf16, #tpu.memory_space<vmem>>, vector<1x216x560xbf16>
    %46 = vector.shape_cast %45 : vector<1x216x560xbf16> to vector<216x560xbf16>
    %cst_32 = arith.constant dense<0.000000e+00> : vector<70x560xf32>
    %47 = tpu.matmul %44, %46, %cst_32 {dimension_numbers = #tpu.dot_dimension_numbers<[1], [0], [0], [1], [0, 0, 1, 1], [], []>} : vector<70x216xbf16>, vector<216x560xbf16>, vector<70x560xf32> -> vector<70x560xf32>
    %48 = arith.addf %43, %47 : vector<70x560xf32>
    %49 = vector.extract_strided_slice %14 {offsets = [0, 0], sizes = [70, 216], strides = [1, 1]} : vector<72x216xbf16> to vector<70x216xbf16>
    %c6 = arith.constant 6 : index
    %c0_33 = arith.constant 0 : index
    %c0_34 = arith.constant 0 : index
    %50 = vector.load %arg3[%c6, %c0_33, %c0_34] : memref<9x216x560xbf16, #tpu.memory_space<vmem>>, vector<1x216x560xbf16>
    %51 = vector.shape_cast %50 : vector<1x216x560xbf16> to vector<216x560xbf16>
    %cst_35 = arith.constant dense<0.000000e+00> : vector<70x560xf32>
    %52 = tpu.matmul %49, %51, %cst_35 {dimension_numbers = #tpu.dot_dimension_numbers<[1], [0], [0], [1], [0, 0, 1, 1], [], []>} : vector<70x216xbf16>, vector<216x560xbf16>, vector<70x560xf32> -> vector<70x560xf32>
    %53 = arith.addf %48, %52 : vector<70x560xf32>
    %54 = vector.extract_strided_slice %14 {offsets = [1, 0], sizes = [70, 216], strides = [1, 1]} : vector<72x216xbf16> to vector<70x216xbf16>
    %c7 = arith.constant 7 : index
    %c0_36 = arith.constant 0 : index
    %c0_37 = arith.constant 0 : index
    %55 = vector.load %arg3[%c7, %c0_36, %c0_37] : memref<9x216x560xbf16, #tpu.memory_space<vmem>>, vector<1x216x560xbf16>
    %56 = vector.shape_cast %55 : vector<1x216x560xbf16> to vector<216x560xbf16>
    %cst_38 = arith.constant dense<0.000000e+00> : vector<70x560xf32>
    %57 = tpu.matmul %54, %56, %cst_38 {dimension_numbers = #tpu.dot_dimension_numbers<[1], [0], [0], [1], [0, 0, 1, 1], [], []>} : vector<70x216xbf16>, vector<216x560xbf16>, vector<70x560xf32> -> vector<70x560xf32>
    %58 = arith.addf %53, %57 : vector<70x560xf32>
    %59 = vector.extract_strided_slice %14 {offsets = [2, 0], sizes = [70, 216], strides = [1, 1]} : vector<72x216xbf16> to vector<70x216xbf16>
    %c8 = arith.constant 8 : index
    %c0_39 = arith.constant 0 : index
    %c0_40 = arith.constant 0 : index
    %60 = vector.load %arg3[%c8, %c0_39, %c0_40] : memref<9x216x560xbf16, #tpu.memory_space<vmem>>, vector<1x216x560xbf16>
    %61 = vector.shape_cast %60 : vector<1x216x560xbf16> to vector<216x560xbf16>
    %cst_41 = arith.constant dense<0.000000e+00> : vector<70x560xf32>
    %62 = tpu.matmul %59, %61, %cst_41 {dimension_numbers = #tpu.dot_dimension_numbers<[1], [0], [0], [1], [0, 0, 1, 1], [], []>} : vector<70x216xbf16>, vector<216x560xbf16>, vector<70x560xf32> -> vector<70x560xf32>
    %63 = arith.addf %58, %62 : vector<70x560xf32>
    %c0_42 = arith.constant 0 : index
    %c0_43 = arith.constant 0 : index
    %64 = vector.load %arg4[%c0_42, %c0_43] : memref<1x560xf32, #tpu.memory_space<vmem>>, vector<1x560xf32>
    %65 = vector.broadcast %64 : vector<1x560xf32> to vector<70x560xf32>
    %66 = arith.addf %63, %65 : vector<70x560xf32>
    %cst_44 = arith.constant 0.000000e+00 : f32
    %67 = vector.broadcast %cst_44 : f32 to vector<70x560xf32>
    %68 = arith.maximumf %66, %67 : vector<70x560xf32>
    %c0_45 = arith.constant 0 : index
    %c0_46 = arith.constant 0 : index
    %69 = vector.load %arg5[%c0_45, %c0_46] : memref<1x560xf32, #tpu.memory_space<vmem>>, vector<1x560xf32>
    %70 = vector.broadcast %69 : vector<1x560xf32> to vector<70x560xf32>
    %71 = arith.mulf %68, %70 : vector<70x560xf32>
    %c0_47 = arith.constant 0 : index
    %c0_48 = arith.constant 0 : index
    %72 = vector.load %arg6[%c0_47, %c0_48] : memref<1x560xf32, #tpu.memory_space<vmem>>, vector<1x560xf32>
    %73 = vector.broadcast %72 : vector<1x560xf32> to vector<70x560xf32>
    %74 = arith.addf %71, %73 : vector<70x560xf32>
    %75 = vector.extract_strided_slice %74 {offsets = [0, 0], sizes = [70, 280], strides = [1, 1]} : vector<70x560xf32> to vector<70x280xf32>
    %76 = vector.extract_strided_slice %74 {offsets = [0, 280], sizes = [70, 280], strides = [1, 1]} : vector<70x560xf32> to vector<70x280xf32>
    %77 = arith.maximumf %75, %76 : vector<70x280xf32>
    %78 = vector.extract_strided_slice %9 {offsets = [0, 0], sizes = [70, 216], strides = [1, 1]} : vector<72x216xbf16> to vector<70x216xbf16>
    %c0_49 = arith.constant 0 : index
    %c0_50 = arith.constant 0 : index
    %c0_51 = arith.constant 0 : index
    %79 = vector.load %arg3[%c0_49, %c0_50, %c0_51] : memref<9x216x560xbf16, #tpu.memory_space<vmem>>, vector<1x216x560xbf16>
    %80 = vector.shape_cast %79 : vector<1x216x560xbf16> to vector<216x560xbf16>
    %cst_52 = arith.constant dense<0.000000e+00> : vector<70x560xf32>
    %81 = tpu.matmul %78, %80, %cst_52 {dimension_numbers = #tpu.dot_dimension_numbers<[1], [0], [0], [1], [0, 0, 1, 1], [], []>} : vector<70x216xbf16>, vector<216x560xbf16>, vector<70x560xf32> -> vector<70x560xf32>
    %82 = vector.extract_strided_slice %9 {offsets = [1, 0], sizes = [70, 216], strides = [1, 1]} : vector<72x216xbf16> to vector<70x216xbf16>
    %c1_53 = arith.constant 1 : index
    %c0_54 = arith.constant 0 : index
    %c0_55 = arith.constant 0 : index
    %83 = vector.load %arg3[%c1_53, %c0_54, %c0_55] : memref<9x216x560xbf16, #tpu.memory_space<vmem>>, vector<1x216x560xbf16>
    %84 = vector.shape_cast %83 : vector<1x216x560xbf16> to vector<216x560xbf16>
    %cst_56 = arith.constant dense<0.000000e+00> : vector<70x560xf32>
    %85 = tpu.matmul %82, %84, %cst_56 {dimension_numbers = #tpu.dot_dimension_numbers<[1], [0], [0], [1], [0, 0, 1, 1], [], []>} : vector<70x216xbf16>, vector<216x560xbf16>, vector<70x560xf32> -> vector<70x560xf32>
    %86 = arith.addf %81, %85 : vector<70x560xf32>
    %87 = vector.extract_strided_slice %9 {offsets = [2, 0], sizes = [70, 216], strides = [1, 1]} : vector<72x216xbf16> to vector<70x216xbf16>
    %c2_57 = arith.constant 2 : index
    %c0_58 = arith.constant 0 : index
    %c0_59 = arith.constant 0 : index
    %88 = vector.load %arg3[%c2_57, %c0_58, %c0_59] : memref<9x216x560xbf16, #tpu.memory_space<vmem>>, vector<1x216x560xbf16>
    %89 = vector.shape_cast %88 : vector<1x216x560xbf16> to vector<216x560xbf16>
    %cst_60 = arith.constant dense<0.000000e+00> : vector<70x560xf32>
    %90 = tpu.matmul %87, %89, %cst_60 {dimension_numbers = #tpu.dot_dimension_numbers<[1], [0], [0], [1], [0, 0, 1, 1], [], []>} : vector<70x216xbf16>, vector<216x560xbf16>, vector<70x560xf32> -> vector<70x560xf32>
    %91 = arith.addf %86, %90 : vector<70x560xf32>
    %92 = vector.extract_strided_slice %14 {offsets = [0, 0], sizes = [70, 216], strides = [1, 1]} : vector<72x216xbf16> to vector<70x216xbf16>
    %c3_61 = arith.constant 3 : index
    %c0_62 = arith.constant 0 : index
    %c0_63 = arith.constant 0 : index
    %93 = vector.load %arg3[%c3_61, %c0_62, %c0_63] : memref<9x216x560xbf16, #tpu.memory_space<vmem>>, vector<1x216x560xbf16>
    %94 = vector.shape_cast %93 : vector<1x216x560xbf16> to vector<216x560xbf16>
    %cst_64 = arith.constant dense<0.000000e+00> : vector<70x560xf32>
    %95 = tpu.matmul %92, %94, %cst_64 {dimension_numbers = #tpu.dot_dimension_numbers<[1], [0], [0], [1], [0, 0, 1, 1], [], []>} : vector<70x216xbf16>, vector<216x560xbf16>, vector<70x560xf32> -> vector<70x560xf32>
    %96 = arith.addf %91, %95 : vector<70x560xf32>
    %97 = vector.extract_strided_slice %14 {offsets = [1, 0], sizes = [70, 216], strides = [1, 1]} : vector<72x216xbf16> to vector<70x216xbf16>
    %c4_65 = arith.constant 4 : index
    %c0_66 = arith.constant 0 : index
    %c0_67 = arith.constant 0 : index
    %98 = vector.load %arg3[%c4_65, %c0_66, %c0_67] : memref<9x216x560xbf16, #tpu.memory_space<vmem>>, vector<1x216x560xbf16>
    %99 = vector.shape_cast %98 : vector<1x216x560xbf16> to vector<216x560xbf16>
    %cst_68 = arith.constant dense<0.000000e+00> : vector<70x560xf32>
    %100 = tpu.matmul %97, %99, %cst_68 {dimension_numbers = #tpu.dot_dimension_numbers<[1], [0], [0], [1], [0, 0, 1, 1], [], []>} : vector<70x216xbf16>, vector<216x560xbf16>, vector<70x560xf32> -> vector<70x560xf32>
    %101 = arith.addf %96, %100 : vector<70x560xf32>
    %102 = vector.extract_strided_slice %14 {offsets = [2, 0], sizes = [70, 216], strides = [1, 1]} : vector<72x216xbf16> to vector<70x216xbf16>
    %c5_69 = arith.constant 5 : index
    %c0_70 = arith.constant 0 : index
    %c0_71 = arith.constant 0 : index
    %103 = vector.load %arg3[%c5_69, %c0_70, %c0_71] : memref<9x216x560xbf16, #tpu.memory_space<vmem>>, vector<1x216x560xbf16>
    %104 = vector.shape_cast %103 : vector<1x216x560xbf16> to vector<216x560xbf16>
    %cst_72 = arith.constant dense<0.000000e+00> : vector<70x560xf32>
    %105 = tpu.matmul %102, %104, %cst_72 {dimension_numbers = #tpu.dot_dimension_numbers<[1], [0], [0], [1], [0, 0, 1, 1], [], []>} : vector<70x216xbf16>, vector<216x560xbf16>, vector<70x560xf32> -> vector<70x560xf32>
    %106 = arith.addf %101, %105 : vector<70x560xf32>
    %107 = vector.extract_strided_slice %19 {offsets = [0, 0], sizes = [70, 216], strides = [1, 1]} : vector<72x216xbf16> to vector<70x216xbf16>
    %c6_73 = arith.constant 6 : index
    %c0_74 = arith.constant 0 : index
    %c0_75 = arith.constant 0 : index
    %108 = vector.load %arg3[%c6_73, %c0_74, %c0_75] : memref<9x216x560xbf16, #tpu.memory_space<vmem>>, vector<1x216x560xbf16>
    %109 = vector.shape_cast %108 : vector<1x216x560xbf16> to vector<216x560xbf16>
    %cst_76 = arith.constant dense<0.000000e+00> : vector<70x560xf32>
    %110 = tpu.matmul %107, %109, %cst_76 {dimension_numbers = #tpu.dot_dimension_numbers<[1], [0], [0], [1], [0, 0, 1, 1], [], []>} : vector<70x216xbf16>, vector<216x560xbf16>, vector<70x560xf32> -> vector<70x560xf32>
    %111 = arith.addf %106, %110 : vector<70x560xf32>
    %112 = vector.extract_strided_slice %19 {offsets = [1, 0], sizes = [70, 216], strides = [1, 1]} : vector<72x216xbf16> to vector<70x216xbf16>
    %c7_77 = arith.constant 7 : index
    %c0_78 = arith.constant 0 : index
    %c0_79 = arith.constant 0 : index
    %113 = vector.load %arg3[%c7_77, %c0_78, %c0_79] : memref<9x216x560xbf16, #tpu.memory_space<vmem>>, vector<1x216x560xbf16>
    %114 = vector.shape_cast %113 : vector<1x216x560xbf16> to vector<216x560xbf16>
    %cst_80 = arith.constant dense<0.000000e+00> : vector<70x560xf32>
    %115 = tpu.matmul %112, %114, %cst_80 {dimension_numbers = #tpu.dot_dimension_numbers<[1], [0], [0], [1], [0, 0, 1, 1], [], []>} : vector<70x216xbf16>, vector<216x560xbf16>, vector<70x560xf32> -> vector<70x560xf32>
    %116 = arith.addf %111, %115 : vector<70x560xf32>
    %117 = vector.extract_strided_slice %19 {offsets = [2, 0], sizes = [70, 216], strides = [1, 1]} : vector<72x216xbf16> to vector<70x216xbf16>
    %c8_81 = arith.constant 8 : index
    %c0_82 = arith.constant 0 : index
    %c0_83 = arith.constant 0 : index
    %118 = vector.load %arg3[%c8_81, %c0_82, %c0_83] : memref<9x216x560xbf16, #tpu.memory_space<vmem>>, vector<1x216x560xbf16>
    %119 = vector.shape_cast %118 : vector<1x216x560xbf16> to vector<216x560xbf16>
    %cst_84 = arith.constant dense<0.000000e+00> : vector<70x560xf32>
    %120 = tpu.matmul %117, %119, %cst_84 {dimension_numbers = #tpu.dot_dimension_numbers<[1], [0], [0], [1], [0, 0, 1, 1], [], []>} : vector<70x216xbf16>, vector<216x560xbf16>, vector<70x560xf32> -> vector<70x560xf32>
    %121 = arith.addf %116, %120 : vector<70x560xf32>
    %c0_85 = arith.constant 0 : index
    %c0_86 = arith.constant 0 : index
    %122 = vector.load %arg4[%c0_85, %c0_86] : memref<1x560xf32, #tpu.memory_space<vmem>>, vector<1x560xf32>
    %123 = vector.broadcast %122 : vector<1x560xf32> to vector<70x560xf32>
    %124 = arith.addf %121, %123 : vector<70x560xf32>
    %cst_87 = arith.constant 0.000000e+00 : f32
    %125 = vector.broadcast %cst_87 : f32 to vector<70x560xf32>
    %126 = arith.maximumf %124, %125 : vector<70x560xf32>
    %c0_88 = arith.constant 0 : index
    %c0_89 = arith.constant 0 : index
    %127 = vector.load %arg5[%c0_88, %c0_89] : memref<1x560xf32, #tpu.memory_space<vmem>>, vector<1x560xf32>
    %128 = vector.broadcast %127 : vector<1x560xf32> to vector<70x560xf32>
    %129 = arith.mulf %126, %128 : vector<70x560xf32>
    %c0_90 = arith.constant 0 : index
    %c0_91 = arith.constant 0 : index
    %130 = vector.load %arg6[%c0_90, %c0_91] : memref<1x560xf32, #tpu.memory_space<vmem>>, vector<1x560xf32>
    %131 = vector.broadcast %130 : vector<1x560xf32> to vector<70x560xf32>
    %132 = arith.addf %129, %131 : vector<70x560xf32>
    %133 = vector.extract_strided_slice %132 {offsets = [0, 0], sizes = [70, 280], strides = [1, 1]} : vector<70x560xf32> to vector<70x280xf32>
    %134 = vector.extract_strided_slice %132 {offsets = [0, 280], sizes = [70, 280], strides = [1, 1]} : vector<70x560xf32> to vector<70x280xf32>
    %135 = arith.maximumf %133, %134 : vector<70x280xf32>
    %136 = arith.maximumf %77, %135 : vector<70x280xf32>
    %137 = vector.shape_cast %136 : vector<70x280xf32> to vector<35x2x280xf32>
    %138 = vector.extract_strided_slice %137 {offsets = [0, 0, 0], sizes = [35, 1, 280], strides = [1, 1, 1]} : vector<35x2x280xf32> to vector<35x1x280xf32>
    %139 = vector.shape_cast %138 : vector<35x1x280xf32> to vector<35x280xf32>
    %140 = vector.extract_strided_slice %137 {offsets = [0, 1, 0], sizes = [35, 1, 280], strides = [1, 1, 1]} : vector<35x2x280xf32> to vector<35x1x280xf32>
    %141 = vector.shape_cast %140 : vector<35x1x280xf32> to vector<35x280xf32>
    %142 = arith.maximumf %139, %141 : vector<35x280xf32>
    %143 = arith.truncf %142 : vector<35x280xf32> to vector<35x280xbf16>
    %c0_92 = arith.constant 0 : index
    %c0_93 = arith.constant 0 : index
    %c0_94 = arith.constant 0 : index
    %c0_95 = arith.constant 0 : index
    %144 = vector.load %arg7[%c0_92, %c0_93, %c0_94, %c0_95] : memref<1x1x35x280xbf16, #tpu.memory_space<vmem>>, vector<1x1x35x280xbf16>
    %145 = vector.shape_cast %144 : vector<1x1x35x280xbf16> to vector<35x280xbf16>
    %146 = vector.shape_cast %143 : vector<35x280xbf16> to vector<1x1x35x280xbf16>
    tpu.vector_store %arg7[%c0_92, %c0_93, %c0_94, %c0_95], %146 {strides = array<i32>} : memref<1x1x35x280xbf16, #tpu.memory_space<vmem>>, vector<1x1x35x280xbf16>,
    return
  }
  func.func @transform_0(%arg0: i32, %arg1: i32) -> (i32, i32, i32, i32) {
    %c0_i32 = arith.constant 0 : i32
    %c0_i32_0 = arith.constant 0 : i32
    %c0_i32_1 = arith.constant 0 : i32
    %c0_i32_2 = arith.constant 0 : i32
    return %arg0, %c0_i32, %c0_i32_0, %c0_i32_1 : i32, i32, i32, i32
  }
  func.func @transform_1(%arg0: i32, %arg1: i32) -> (i32, i32, i32) {
    %c0_i32 = arith.constant 0 : i32
    %c0_i32_0 = arith.constant 0 : i32
    %c0_i32_1 = arith.constant 0 : i32
    %c0_i32_2 = arith.constant 0 : i32
    return %c0_i32, %c0_i32_0, %c0_i32_1 : i32, i32, i32
  }
  func.func @transform_2(%arg0: i32, %arg1: i32) -> (i32, i32) {
    %c0_i32 = arith.constant 0 : i32
    %c0_i32_0 = arith.constant 0 : i32
    %c0_i32_1 = arith.constant 0 : i32
    return %c0_i32, %c0_i32_0 : i32, i32
  }
  func.func @transform_3(%arg0: i32, %arg1: i32) -> (i32, i32) {
    %c0_i32 = arith.constant 0 : i32
    %c0_i32_0 = arith.constant 0 : i32
    %c0_i32_1 = arith.constant 0 : i32
    return %c0_i32, %c0_i32_0 : i32, i32
  }
  func.func @transform_4(%arg0: i32, %arg1: i32) -> (i32, i32) {
    %c0_i32 = arith.constant 0 : i32
    %c0_i32_0 = arith.constant 0 : i32
    %c0_i32_1 = arith.constant 0 : i32
    return %c0_i32, %c0_i32_0 : i32, i32
  }
  func.func @transform_5(%arg0: i32, %arg1: i32) -> (i32, i32, i32, i32) {
    %c0_i32 = arith.constant 0 : i32
    %c0_i32_0 = arith.constant 0 : i32
    %c0_i32_1 = arith.constant 0 : i32
    return %arg0, %arg1, %c0_i32, %c0_i32_0 : i32, i32, i32, i32
  }
}

</mosaic_0001>

<bundles_post_ra>
// kernel: tpu_custom_call.1
= control target key start
LH: loop header
LB: loop body
LE: loop exit
PB: predicated region body
PF: predicated region fallthrough
CT: control target
= control target key end

     0   :  { %s20455_s0 = inlined_call_operand.hbm [shape: bf16[2,48,72,216], index: 0, kind: input, shape index: {}]   ;;  %s20456_s1 = inlined_call_operand.hbm [shape: bf16[9,216,560], index: 1, kind: input, shape index: {}]   ;;  %s20457_s2 = inlined_call_operand.hbm [shape: f32[1,560], index: 2, kind: input, shape index: {}]   ;;  %s20458_s3 = inlined_call_operand.hbm [shape: f32[1,560], index: 3, kind: input, shape index: {}]   ;;  %s20459_s4 = inlined_call_operand.hbm [shape: f32[1,560], index: 4, kind: input, shape index: {}]   ;;  %s20460_s5 = inlined_call_operand.vmem [shape: bf16[2,23,35,280], index: 5, kind: output, shape index: {}]  }
   0x1   :  { %20644 = sst [smem:[#allocation104_spill]] %s20460_s5 }
   0x2   :  { %10 = vsyncpa [#allocation3], 0 }
   0x3   :  { %12 = vsyncpa [#allocation3 + $0x1], 0 }
   0x4   :  { %13 = vsyncpa [#allocation5], 0 }
   0x5   :  { %14 = vsyncpa [#allocation8], 0  ;;  %s16365_s18 = smov 0   ;;  %s16367_s19 = smov 0  }
   0x6   :  { %s16369_s20 = smov 0   ;;  %s16371_s21 = smov 0  }
   0x7   :  { %s16373_s22 = smov 0   ;;  %s16375_s23 = smov 0  }
   0x8   :  { %s16377_s24 = smov 0   ;;  %s16379_s25 = smov 0  }
   0x9 LB: > { %s12723_s26 = sadd.s32 4294967295, %s16321_s25   ;;  %p52_p0 = scmp.ne.s32.totalorder %s16297_s19, %s16293_s18  ;;  %s16321_s25 = sphi %s16379_s25, %s20_s25   ;;  %s16317_s24 = sphi %s16377_s24, %s20979_s24   ;;  %s16313_s23 = sphi %s16375_s23, %s20978_s23   ;;  %s16309_s22 = sphi %s16373_s22, %s20977_s22   ;;  %s16305_s21 = sphi %s16371_s21, %s20976_s21   ;;  %s16301_s20 = sphi %s16369_s20, %s20975_s20   ;;  %s16297_s19 = sphi %s16367_s19, %s20974_s19   ;;  %s16293_s18 = sphi %s16365_s18, %s20973_s18  }
   0xa   : > { %p16405_p1 = scmp.eq.s32.totalorder %s12723_s26, 0  ;;  %p12725_p2 = scmp.ge.s32.totalorder %s16321_s25, 1 }
   0xb   : > { %p175_p3 = scmp.lt.s32.totalorder %s16321_s25, 47  ;;  %s16323_s30 = smov [#allocation4]  }
   0xc   : > { %s20645_s27 = scalar_select %p16405_p1, 1, 0 }
   0xd   : > { %p16413_p4 = por %p16405_p1, %p52_p0  ;;  %p16417_p5 = pnand %p12725_p2, %p175_p3 }
   0xe   : > { %s187_s6 = sshll.u32 %s16323_s30, 4  ;;  %s16324_s8 = smov [#allocation7]   ;;  %s16421_s6 = int_to_ptr.vmem [resolvable:$true] %s187_s6 }
   0xf   : > { %s20646_s28 = scalar_select %p16413_p4, 1, 0 }
  0x10   : > { %s20647_s29 = scalar_select %p16417_p5, 1, 0 }
  0x11   : > { %p14463_p6 = pneg %p16417_p5  ;;  %s212_s9 = sshll.u32 %s16324_s8, 4  ;;  %s16431_s9 = int_to_ptr.vmem [resolvable:$true] %s212_s9 }
  0x12   : > { %s16325_s10 = smov [#allocation6]   ;;  %s16105_s14 = scalar_lea.hbm %s20456_s1, 77760 }
  0x13   : > { %p16427_p7 = pnand %p14463_p6, %p16405_p1  ;;  %s16433_s11 = sshll.u32 %s16325_s10, 4  ;;  %s202_s11 = int_to_ptr.vmem [resolvable:$true] %s16433_s11 }
  0x14   : > { %p16106_p8 = scmp.ne.s32.totalorder %s20456_s1, %s16105_s14  ;;  %p16112_p12 = scmp.lt.u32.totalorder %s16105_s14, %s20456_s1 }
  0x15   : > { %p16443_p9 = pneg %p16427_p7 }
  0x17   : > { %p16108_p10 = pnand %p16443_p9, %p16106_p8 }
  0x19   : > { %p16109_p11 = pneg %p16108_p10 }
  0x1b   : > { %p16114_p13 = pnand %p16112_p12, %p16109_p11 }
  0x1d   : > { %16117 = shalt.err (!%p16114_p13)
}
  0x1e   : > { %s16118_s30 = scalar_lea.vmem %s16421_s6, 77760  ;;  %p16126_p6 = scmp.lt.s32.totalorder %s16421_s6, %s16421_s6 }
  0x1f   : > { %p16119_p0 = scmp.ne.s32.totalorder %s16421_s6, %s16118_s30  ;;  %p16127_p1 = scmp.lt.s32.totalorder %s16118_s30, %s16118_s30 }
  0x21   : > { %p16121_p2 = pnand %p16119_p0, %p16443_p9  ;;  %p16128_p8 = por %p16127_p1, %p16126_p6 }
  0x23   : > { %p16122_p3 = pneg %p16121_p2 }
  0x25   : > { %p16129_p10 = pnand %p16128_p8, %p16122_p3 }
  0x27   : > { %16132 = shalt.err (!%p16129_p10)
}
  0x28   : > { %s16326_s8 = smov 320   ;;  %s16327_s10 = smov 20  }
  0x29   : > { %14466 = dma.hbm_to_vmem [thread:$0]  (!%p16427_p7), %s20456_s1, 77760, %s16421_s6, [#allocation5], %s16326_s8, %s16326_s8, %s16327_s10  }
  0x2a   : > { %s16133_s16 = scalar_lea.hbm %s20458_s3, 80 }
  0x2b   : > { %p16134_p1 = scmp.ne.s32.totalorder %s20458_s3, %s16133_s16  ;;  %p16140_p13 = scmp.lt.u32.totalorder %s16133_s16, %s20458_s3 }
  0x2d   : > { %p16136_p11 = pnand %p16134_p1, %p16443_p9 }
  0x2f   : > { %p16137_p12 = pneg %p16136_p11 }
  0x31   : > { %p16142_p0 = pnand %p16140_p13, %p16137_p12 }
  0x33   : > { %16145 = shalt.err (!%p16142_p0)
}
  0x34   : > { %s16146_s6 = scalar_lea.vmem %s16431_s9, 80  ;;  %s16153_s8 = scalar_lea.vmem %s16431_s9, 96 }
  0x35   : > { %p16147_p2 = scmp.ne.s32.totalorder %s16431_s9, %s16146_s6  ;;  %p16154_p8 = scmp.lt.s32.totalorder %s16431_s9, %s16431_s9 }
  0x36   : > { %p16155_p10 = scmp.lt.s32.totalorder %s16153_s8, %s16146_s6 }
  0x37   : > { %p16149_p3 = pnand %p16147_p2, %p16443_p9 }
  0x38   : > { %p16156_p1 = por %p16155_p10, %p16154_p8 }
  0x39   : > { %p16150_p6 = pneg %p16149_p3 }
  0x3b   : > { %p16157_p11 = pnand %p16156_p1, %p16150_p6 }
  0x3d   : > { %16160 = shalt.err (!%p16157_p11)
}
  0x3e   : > { %14472 = dma.hbm_to_vmem [thread:$0]  (!%p16427_p7), %s20458_s3, 80, %s16431_s9, [#allocation8]  }
  0x3f   : > { %s16161_s14 = scalar_lea.hbm %s20457_s2, 80 }
  0x40   : > { %p16162_p12 = scmp.ne.s32.totalorder %s20457_s2, %s16161_s14  ;;  %p16168_p2 = scmp.lt.u32.totalorder %s16161_s14, %s20457_s2 }
  0x42   : > { %p16164_p13 = pnand %p16162_p12, %p16443_p9 }
  0x44   : > { %p16165_p0 = pneg %p16164_p13 }
  0x46   : > { %p16170_p3 = pnand %p16168_p2, %p16165_p0 }
  0x48   : > { %16173 = shalt.err (!%p16170_p3)
}
  0x49   : > { %s16174_s30 = scalar_lea.vmem %s202_s11, 80  ;;  %s16181_s9 = scalar_lea.vmem %s202_s11, 96 }
  0x4a   : > { %p16175_p6 = scmp.ne.s32.totalorder %s202_s11, %s16174_s30  ;;  %p16182_p1 = scmp.lt.s32.totalorder %s202_s11, %s202_s11 }
  0x4b   : > { %p16183_p11 = scmp.lt.s32.totalorder %s16181_s9, %s16174_s30 }
  0x4c   : > { %p16177_p8 = pnand %p16175_p6, %p16443_p9 }
  0x4d   : > { %p16184_p4 = por %p16183_p11, %p16182_p1 }
  0x4e   : > { %p16178_p10 = pneg %p16177_p8 }
  0x50   : > { %p16185_p5 = pnand %p16184_p4, %p16178_p10 }
  0x52   : > { %16188 = shalt.err (!%p16185_p5)
}
  0x53   : > { %14469 = dma.hbm_to_vmem [thread:$0]  (!%p16427_p7), %s20457_s2, 80, %s202_s11, [#allocation5]  }
  0x54   : > { %s16328_s5 = smov [#allocation9]   ;;  %s16189_s14 = scalar_lea.hbm %s20459_s4, 80 }
  0x55   : > { %s223_s10 = sshll.u32 %s16328_s5, 4  ;;  %p16190_p12 = scmp.ne.s32.totalorder %s20459_s4, %s16189_s14  ;;  %s224_s10 = int_to_ptr.vmem [resolvable:$true] %s223_s10 }
  0x56   : > { %p16196_p13 = scmp.lt.u32.totalorder %s16189_s14, %s20459_s4 }
  0x57   : > { %p16192_p4 = pnand %p16190_p12, %p16443_p9 }
  0x59   : > { %p16193_p5 = pneg %p16192_p4 }
  0x5b   : > { %p16198_p0 = pnand %p16196_p13, %p16193_p5 }
  0x5d   : > { %16201 = shalt.err (!%p16198_p0)
}
  0x5e   : > { %s16202_s11 = scalar_lea.vmem %s224_s10, 80  ;;  %s16209_s30 = scalar_lea.vmem %s224_s10, 96 }
  0x5f   : > { %p16203_p2 = scmp.ne.s32.totalorder %s224_s10, %s16202_s11  ;;  %p16210_p8 = scmp.lt.s32.totalorder %s224_s10, %s224_s10 }
  0x60   : > { %p16211_p10 = scmp.lt.s32.totalorder %s16209_s30, %s16202_s11 }
  0x61   : > { %p16205_p3 = pnand %p16203_p2, %p16443_p9 }
  0x62   : > { %p16212_p1 = por %p16211_p10, %p16210_p8 }
  0x63   : > { %p16206_p6 = pneg %p16205_p3 }
  0x65   : > { %p16213_p11 = pnand %p16212_p1, %p16206_p6 }
  0x67   : > { %16216 = shalt.err (!%p16213_p11)
}
  0x68   : > { %14475 = dma.hbm_to_vmem [thread:$0]  (!%p16427_p7), %s20459_s4, 80, %s224_s10, [#allocation8]  }
  0x69   : > { %s29_s17 = sadd.s32 1, %s16313_s23  ;;  %s32_s8 = sadd.s32 1, %s16317_s24 }
  0x6a   : > { %p30_p9 = scmp.ge.s32.totalorder %s29_s17, 23  ;;  %s39_s5 = sadd.s32 1, %s16301_s20 }
  0x6b   : > { %p46_p12 = scmp.ne.s32.totalorder %s16301_s20, %s16297_s19  ;;  %p47_p4 = scmp.eq.s32.totalorder %s16321_s25, 0 }
  0x6c   : > { %s20981_s17 = smov (%p30_p9, %s29_s17), 0  ;;  %s20983_s8 = smov (!%p30_p9, %s32_s8), %s16317_s24 }
  0x6d   : > { %p16534_p5 = por %p47_p4, %p46_p12  ;;  %p14484_p13 = scmp.lt.s32.totalorder %s16321_s25, 46 }
  0x6e   : > { %p34_p0 = scmp.ge.s32.totalorder %s20983_s8, 2  ;;  %s234_s12 = sand.u32 1, %s16301_s20  }
  0x6f   : > { %s14440_s10 = smul.u32 3456, %s234_s12  ;;  %p16554_p2 = pnand %p14484_p13, %p16534_p5 }
  0x70   : > { %s20985_s8 = smov (%p34_p0, %s20983_s8), 0  ;;  %s14441_s13 = smul.u32 55296, %s16317_s24 }
  0x71   : > { %s36_s14 = ssub.s32 %s16317_s24, %s20985_s8  ;;  %s238_s15 = scalar_lea.vmem [#allocation2], %s14440_s10 }
  0x72   : > { %s245_s16 = sshll.u32 %s238_s15, 4  ;;  %p37_p7 = scmp.eq.s32.totalorder %s36_s14, 0  ;;  %s16550_s16 = int_to_ptr.vmem [resolvable:$true] %s245_s16 }
  0x73   : > { %s16548_s11 = scalar_lea.hbm %s20455_s0, %s14441_s13  ;;  %s16561_s6 = scalar_lea.sflag [#allocation3], %s234_s12 }
  0x74   : > { %s16559_s9 = scalar_select %p37_p7, %s16301_s20, %s39_s5  }
  0x75   : > { %s16217_s10 = scalar_lea.hbm %s16548_s11, 55296  ;;  %p16219_p6 = pneg %p16554_p2 }
  0x76   : > { %p16218_p3 = scmp.ne.s32.totalorder %s16548_s11, %s16217_s10  ;;  %s16222_s14 = scalar_lea.hbm %s20455_s0, 110592 }
  0x77   : > { %p16223_p1 = scmp.lt.u32.totalorder %s16548_s11, %s20455_s0  ;;  %p16224_p11 = scmp.lt.u32.totalorder %s16222_s14, %s16217_s10 }
  0x78   : > { %p16220_p8 = pnand %p16219_p6, %p16218_p3  ;;  %p16226_p12 = scmp.lt.u32.totalorder %s16217_s10, %s16548_s11 }
  0x79   : > { %p16225_p9 = por %p16224_p11, %p16223_p1 }
  0x7a   : > { %p16221_p10 = pneg %p16220_p8 }
  0x7b   : > { %p16227_p4 = por %p16226_p12, %p16225_p9 }
  0x7d   : > { %p16228_p5 = pnand %p16227_p4, %p16221_p10 }
  0x7f   : > { %16231 = shalt.err (!%p16228_p5)
}
  0x80   : > { %s16232_s5 = scalar_lea.vmem %s16550_s16, 55296  ;;  %s16329_s12 = smov [#allocation2]  }
  0x81   : > { %p16233_p13 = scmp.ne.s32.totalorder %s16550_s16, %s16232_s5  ;;  %s16237_s26 = sshll.u32 %s16329_s12, 4  ;;  %s16238_s26 = int_to_ptr.vmem [resolvable:$false] %s16237_s26 }
  0x82   : > { %s16239_s13 = scalar_lea.vmem %s16238_s26, 110592  ;;  %p16240_p3 = scmp.lt.s32.totalorder %s16550_s16, %s16238_s26 }
  0x83   : > { %p16235_p0 = pnand %p16233_p13, %p16219_p6  ;;  %p16241_p8 = scmp.lt.s32.totalorder %s16239_s13, %s16232_s5 }
  0x85   : > { %p16236_p7 = pneg %p16235_p0  ;;  %p16242_p1 = por %p16241_p8, %p16240_p3 }
  0x87   : > { %p16243_p11 = pnand %p16242_p1, %p16236_p7 }
  0x89   : > { %16246 = shalt.err (!%p16243_p11)
}
  0x8a   : > { %s16330_s10 = smov 128   ;;  %s16331_s7 = smov 8  }
  0x8b   : > { %14479 = dma.hbm_to_vmem [thread:$0]  (!%p16554_p2), %s16548_s11, 55296, %s16550_s16, %s16561_s6, %s16330_s10, %s16330_s10, %s16331_s7  }
  0x8c   : > { %p20652_p6 = scmp.ne.s32.totalorder %s20647_s29, 0 }
  0x8e   : > { %257 = sbr.rel (%p20652_p6) target bundleno = 2210 (0x8a2), region = 40 }
  0x95   : > { %s259_s14 = sand.u32 1, %s16297_s19   ;;  %p20653_p10 = scmp.ne.s32.totalorder %s20646_s28, 0 }
  0x96   : > { %s16592_s15 = smul.u32 3456, %s259_s14  ;;  %s260_s18 = scalar_lea.sflag [#allocation3], %s259_s14 }
  0x98   : > { %s263_s5 = scalar_lea.vmem [#allocation2], %s16592_s15 }
  0x99   : > { %16280 = dma.done.wait (%p20653_p10), %s260_s18, 55296  }
  0x9a   : > { %16282 = vsyncadd (%p20653_p10), %s260_s18, 4294912000  ;;  %p20654_p9 = scmp.ne.s32.totalorder %s20645_s27, 0 }
  0x9c   : > { %16284 = dma.done.wait (%p20654_p9), [#allocation5], 77840  }
  0x9d   : > { %16286 = vsyncadd (%p20654_p9), [#allocation5], 4294889456 }
  0x9e   : > { %16288 = dma.done.wait (%p20654_p9), [#allocation8], 160  }
  0x9f   : > { %16290 = vsyncadd (%p20654_p9), [#allocation8], 4294967136  ;;  %v14564_v0 = vld [vmem:[#allocation4 + $0x220] ss:$20 sps:$4 sm:$0xff]   ;;  %v14566_v1 = vld [vmem:[#allocation4 + $0x228] ss:$20 sps:$4 sm:$0xff]  }
  0xa0   : > { %1039 = vmatprep.subr.bf16.mxu0 %v14564_v0  ;;  %v14568_v2 = vld [vmem:[#allocation4 + $0x21c] ss:$20 sps:$4 sm:$0xff]   ;;  %v14569_v3 = vld [vmem:[#allocation4 + $0x224] ss:$20 sps:$4 sm:$0xff]   ;;  %1120 = vmatprep.subr.bf16.mxu1 %v14566_v1  ;;  %v14575_v7 = vld [vmem:[#allocation4 + $0x24c] ss:$20 sps:$4 sm:$0xff]  }
  0xa1   : > { %v14570_v4 = vld [vmem:[#allocation4 + $0x248] ss:$20 sps:$4 sm:$0xff]   ;;  %1040 = vmatpush1.bf16.msra.mxu0 %v14568_v2  ;;  %1121 = vmatpush1.bf16.msra.mxu1 %v14569_v3  ;;  %v14572_v5 = vld [vmem:[#allocation4 + $0x250] ss:$20 sps:$4 sm:$0xff]   ;;  %v14578_v9 = vld [vmem:[#allocation4 + $0x278] ss:$20 sps:$4 sm:$0xff]  }
  0xa2   : > { %v14574_v6 = vld [vmem:[#allocation4 + $0x244] ss:$20 sps:$4 sm:$0xff]   ;;  %1041 = vmatprep.subr.bf16.mxu0 %v14570_v4  ;;  %1122 = vmatprep.subr.bf16.mxu1 %v14572_v5  ;;  %v14580_v10 = vld [vmem:[#allocation4 + $0x26c] ss:$20 sps:$4 sm:$0xff]   ;;  %v14581_v11 = vld [vmem:[#allocation4 + $0x274] ss:$20 sps:$4 sm:$0xff]  }
  0xa3   : > { %v14576_v8 = vld [vmem:[#allocation4 + $0x270] ss:$20 sps:$4 sm:$0xff]   ;;  %v14582_v12 = vld [vmem:[#allocation4 + $0x298] ss:$20 sps:$4 sm:$0xff]   ;;  %v14584_v13 = vld [vmem:[#allocation4 + $0x2a0] ss:$20 sps:$4 sm:$0xff]  }
  0xa4   : > { %v14586_v14 = vld [vmem:[#allocation4 + $0x294] ss:$20 sps:$4 sm:$0xff]   ;;  %v14587_v15 = vld [vmem:[#allocation4 + $0x29c] ss:$20 sps:$4 sm:$0xff]   ;;  %v14593_v19 = vld [vmem:[#allocation4 + $0x2c4] ss:$20 sps:$4 sm:$0xff]  }
  0xa5   : > { %1042 = vmatpush1.bf16.msra.mxu0 %v14574_v6  ;;  %1123 = vmatpush1.bf16.msra.mxu1 %v14575_v7  ;;  %v14588_v16 = vld [vmem:[#allocation4 + $0x2c0] ss:$20 sps:$4 sm:$0xff]   ;;  %v14590_v17 = vld [vmem:[#allocation4 + $0x2c8] ss:$20 sps:$4 sm:$0xff]   ;;  %v14596_v21 = vld [vmem:[#allocation4 + $0x2f0] ss:$20 sps:$4 sm:$0xff]  }
  0xa6   : > { %1043 = vmatprep.subr.bf16.mxu0 %v14576_v8  ;;  %1124 = vmatprep.subr.bf16.mxu1 %v14578_v9  ;;  %v14592_v18 = vld [vmem:[#allocation4 + $0x2bc] ss:$20 sps:$4 sm:$0xff]   ;;  %v14598_v22 = vld [vmem:[#allocation4 + $0x2e4] ss:$20 sps:$4 sm:$0xff]   ;;  %v14599_v23 = vld [vmem:[#allocation4 + $0x2ec] ss:$20 sps:$4 sm:$0xff]  }
  0xa7   : > { %v14594_v20 = vld [vmem:[#allocation4 + $0x2e8] ss:$20 sps:$4 sm:$0xff]   ;;  %v14600_v24 = vld [vmem:[#allocation4 + $0x310] ss:$20 sps:$4 sm:$0xff]   ;;  %v14602_v25 = vld [vmem:[#allocation4 + $0x318] ss:$20 sps:$4 sm:$0xff]  }
  0xa8   : > { %v14604_v26 = vld [vmem:[#allocation4 + $0x30c] ss:$20 sps:$4 sm:$0xff]   ;;  %v14605_v27 = vld [vmem:[#allocation4 + $0x314] ss:$20 sps:$4 sm:$0xff]   ;;  %v14611_v31 = vld [vmem:[#allocation4 + $0x33c] ss:$20 sps:$4 sm:$0xff]  }
  0xa9   : > { %1044 = vmatpush1.bf16.msra.mxu0 %v14580_v10  ;;  %1125 = vmatpush1.bf16.msra.mxu1 %v14581_v11  ;;  %v14606_v28 = vld [vmem:[#allocation4 + $0x338] ss:$20 sps:$4 sm:$0xff]   ;;  %v14608_v29 = vld [vmem:[#allocation4 + $0x340] ss:$20 sps:$4 sm:$0xff]   ;;  %v14614_v33 = vld [vmem:[#allocation4 + $0x368] ss:$20 sps:$4 sm:$0xff]  }
  0xaa   : > { %1045 = vmatprep.subr.bf16.mxu0 %v14582_v12  ;;  %1126 = vmatprep.subr.bf16.mxu1 %v14584_v13  ;;  %v14610_v30 = vld [vmem:[#allocation4 + $0x334] ss:$20 sps:$4 sm:$0xff]   ;;  %s13857_s27 = smul.u32 144, %s16305_s21  ;;  %v14616_v34 = vld [vmem:[#allocation4 + $0x35c] ss:$20 sps:$4 sm:$0xff]   ;;  %vm1007_vm1 = vcmask 719872  }
  0xab   : > { %v14612_v32 = vld [vmem:[#allocation4 + $0x360] ss:$20 sps:$4 sm:$0xff]   ;;  %v14617_v35 = vld [vmem:[#allocation4 + $0x364] ss:$20 sps:$4 sm:$0xff]   ;;  %v14618_v36 = vld [vmem:[#allocation4 + $0x388] ss:$20 sps:$4 sm:$0xff]  }
  0xac   : > { %v14620_v37 = vld [vmem:[#allocation4 + $0x390] ss:$20 sps:$4 sm:$0xff]   ;;  %s16610_s28 = scalar_lea.vmem %s263_s5, %s13857_s27 [#allocation2]  ;;  %v14623_v39 = vld [vmem:[#allocation4 + $0x38c] ss:$20 sps:$4 sm:$0xff]   ;;  %vm572_vm0 = vsmask.f32 7424 }
  0xad   : > { %1046 = vmatpush1.bf16.msra.mxu0 %v14586_v14  ;;  %1127 = vmatpush1.bf16.msra.mxu1 %v14587_v15  ;;  %v14622_v38 = vld [vmem:[#allocation4 + $0x384] ss:$20 sps:$4 sm:$0xff]   ;;  %v16616_v43 = vld [vmem:[%s16610_s28 + $0x14] ss:$8 sps:$4 sm:$0xff]   ;;  %v14628_v44 = vld [vmem:[#allocation4 + $0x3ac] ss:$20 sps:$4 sm:$0xff]  }
  0xae   : > { %1047 = vmatprep.subr.bf16.mxu0 %v14588_v16  ;;  %1128 = vmatprep.subr.bf16.mxu1 %v14590_v17  ;;  %v14624_v40 = vld [vmem:[#allocation4 + $0x3b0] ss:$20 sps:$4 sm:$0xff]   ;;  %v14626_v41 = vld [vmem:[#allocation4 + $0x3b8] ss:$20 sps:$4 sm:$0xff]   ;;  %v14629_v47 = vld [vmem:[#allocation4 + $0x3b4] ss:$20 sps:$4 sm:$0xff]  }
  0xaf   : > { %v16613_v42 = vld [vmem:[%s16610_s28 + $0x4] ss:$8 sps:$4 sm:$0xff]   ;;  %v593_v49 = vshll.u32 %v16616_v43, 16  ;;  %v16622_v51 = vld [vmem:[%s16610_s28] ss:$8 sps:$4 sm:$0xff]   ;;  %vm1023_vm2 = vcmask 1043456  }
  0xb0   : > { %v586_v45 = vshrl.u32 %v16613_v42, 16  ;;  %v588_v46 = vshll.u32 %v16613_v42, 16  ;;  %v14630_v48 = vld [vmem:[#allocation4 + $0x3d8] ss:$20 sps:$4 sm:$0xff]   ;;  %v14632_v52 = vld [vmem:[#allocation4 + $0x3e0] ss:$20 sps:$4 sm:$0xff]  }
  0xb1   : > { %1048 = vmatpush1.bf16.msra.mxu0 %v14592_v18  ;;  %1129 = vmatpush1.bf16.msra.mxu1 %v14593_v19  ;;  %v595_v53 = vrot.slane %v593_v49, 1  ;;  %v14634_v54 = vld [vmem:[#allocation4 + $0x3d4] ss:$20 sps:$4 sm:$0xff]   ;;  %v14635_v55 = vld [vmem:[#allocation4 + $0x3dc] ss:$20 sps:$4 sm:$0xff]   ;;  %v576_v61 = vshll.u32 %v16622_v51, 16 }
  0xb2   : > { %1049 = vmatprep.subr.bf16.mxu0 %v14594_v20  ;;  %1130 = vmatprep.subr.bf16.mxu1 %v14596_v21  ;;  %v590_v50 = vrot.slane %v588_v46, 1  ;;  %v532_v56 = vld [vmem:[#allocation4 + $0x424] sm:$0xff]  ;;  %v533_v58 = vld [vmem:[#allocation4 + $0x42c] sm:$0xff]  ;;  %v14636_v62 = vld [vmem:[#allocation4 + $0x400] ss:$20 sps:$4 sm:$0xff]   ;;  %v574_v4 = vshrl.u32 %v16622_v51, 16 }
  0xb3   : > { %v16628_v60 = vld [vmem:[%s16610_s28 + $0x10] ss:$8 sps:$4 sm:$0xff]   ;;  %v14638_v63 = vld [vmem:[#allocation4 + $0x408] ss:$20 sps:$4 sm:$0xff]   ;;  %v12849_v1 = vcombine.low %v532_v56, %v532_v56  ;;  %v12851_v2 = vcombine.low %v533_v58, %v533_v58  ;;  %v578_v5 = vrot.slane %v576_v61, 1  ;;  %v16637_v7 = vcombine.high %v532_v56, %v532_v56  ;;  %s16333_s29 = smov 104  }
  0xb4   : > { %v591_v57 = vor.u32 %v590_v50, %v586_v45  ;;  %v14640_v0 = vld [vmem:[#allocation4 + $0x3fc] ss:$20 sps:$4 sm:$0xff]   ;;  %v14641_v3 = vld [vmem:[#allocation4 + $0x404] ss:$20 sps:$4 sm:$0xff]   ;;  %v581_v6 = vshll.u32 %v16628_v60, 16  ;;  %v16639_v8 = vcombine.high %v533_v58, %v533_v58  ;;  %v605_v11 = vshrl.u32 %v16616_v43, 16 }
  0xb5   : > { %1050 = vmatpush1.bf16.msra.mxu0 %v14598_v22  ;;  %1131 = vmatpush1.bf16.msra.mxu1 %v14599_v23  ;;  %v16642_v9 = vsel %vm1023_vm2, %v12849_v1, 0  ;;  %v16645_v10 = vsel %vm1023_vm2, %v12851_v2, 0  ;;  %v579_v12 = vor.u32 %v578_v5, %v574_v4  ;;  %v16649_v14 = vld [vmem:[%s16610_s28 + $0x24] ss:$8 sps:$4 sm:$0xff]   ;;  %v16656_v16 = vld [vmem:[%s16610_s28 + $0x20] ss:$8 sps:$4 sm:$0xff]  }
  0xb6   : > { %1051 = vmatprep.subr.bf16.mxu0 %v14600_v24  ;;  %1132 = vmatprep.subr.bf16.mxu1 %v14602_v25  ;;  %v16625_v59 = vsel %vm572_vm0, %v591_v57, %v595_v53  ;;  %v583_v13 = vrot.slane %v581_v6, 1  ;;  %v14652_v15 = vld [vmem:[#allocation4 + $0xc] ss:$20 sps:$4 sm:$0xff]   ;;  %v14650_v17 = vld [vmem:[#allocation4 + $0x8] ss:$20 sps:$4 sm:$0xff]   ;;  %v609_v18 = vshll.u32 %v16649_v14, 16  ;;  %v607_v20 = vor.u32 %v605_v11, %v595_v53 }
  0xb7   : > { %12855 = vmatprep.mubr.msk.bf16.mxu0 %vm1007_vm1, %v16625_v59  ;;  %12861 = vmatprep.mubr.msk.bf16.mxu1 %vm1007_vm1, %v16625_v59  ;;  %v14655_v19 = vld [vmem:[#allocation4 + $0x22c] ss:$20 sps:$4 sm:$0xff]   ;;  %v597_v23 = vshrl.u32 %v16628_v60, 16  ;;  %v601_v24 = vshll.u32 %v16656_v16, 16  ;;  %v20465_v25 = vmov 0   ;;  %v613_v45 = vshrl.u32 %v16656_v16, 16 }
  0xb8   : > { %v16662_v21 = vsel %vm572_vm0, %v579_v12, %v583_v13  ;;  %v611_v22 = vrot.slane %v609_v18, 1  ;;  %v14664_v53 = vld [vmem:[#allocation4 + $0x80] ss:$20 sps:$4 sm:$0xff]   ;;  %v14668_v61 = vld [vmem:[#allocation4 + $0xa8] ss:$20 sps:$4 sm:$0xff]   ;;  %vm1970_vm3 = vcmask 1046528  }
  0xb9   : > { %1052 = vmatpush1.bf16.msra.mxu0 %v14604_v26  ;;  %1133 = vmatpush1.bf16.msra.mxu1 %v14605_v27  ;;  %v14658_v26 = vld [vmem:[#allocation4 + $0x34] ss:$20 sps:$4 sm:$0xff]   ;;  %v14656_v27 = vld [vmem:[#allocation4 + $0x30] ss:$20 sps:$4 sm:$0xff]   ;;  %v14670_v58 = vld [vmem:[#allocation4 + $0xac] ss:$20 sps:$4 sm:$0xff]  }
  0xba   : > { %1053 = vmatprep.subr.bf16.mxu0 %v14606_v28  ;;  %1134 = vmatprep.subr.bf16.mxu1 %v14608_v29  ;;  %v16668_v28 = vld [vmem:[%s16610_s28 + $0x34] ss:$8 sps:$4 sm:$0xff]   ;;  %v14672_v5 = vld [vmem:[#allocation4 + $0xd0] ss:$20 sps:$4 sm:$0xff]   ;;  %v14679_v18 = vld [vmem:[#allocation4 + $0xf8] ss:$20 sps:$4 sm:$0xff]  }
  0xbb   : > { %v14659_v29 = vld [vmem:[#allocation4 + $0x254] ss:$20 sps:$4 sm:$0xff]   ;;  %v637_v50 = vshrl.u32 %v16668_v28, 16  ;;  %vm7734_vm4 = vcmask 850944   ;;  %vm12343_vm5 = vcmask 1041409   ;;  %vm12346_vm6 = vcmask 1042434  }
  0xbc   : > { %v14674_v4 = vld [vmem:[#allocation4 + $0xd4] ss:$20 sps:$4 sm:$0xff]   ;;  %vm12349_vm7 = vcmask 1043459   ;;  %p310_p2 = scmp.lt.s32.totalorder %s16309_s22, 1  ;;  %p312_p12 = scmp.lt.s32.totalorder %s16305_s21, 22  ;;  %vm12352_vm8 = vcmask 1044484  }
  0xbd   : > { %1054 = vmatpush1.bf16.msra.mxu0 %v14610_v30  ;;  %1135 = vmatpush1.bf16.msra.mxu1 %v14611_v31  ;;  %v16673_v30 = vsel %vm572_vm0, %v607_v20, %v611_v22  ;;  %v621_v31 = vshrl.u32 %v16649_v14, 16  ;;  %v14677_v11 = vld [vmem:[#allocation4 + $0x2f4] ss:$20 sps:$4 sm:$0xff]   ;;  %vm12355_vm9 = vcmask 1045509   ;;  %vm12358_vm10 = vcmask 1046534   ;;  %s20906_s12 = sld [smem:[#allocation104_spill]] }
  0xbe   : > { %1055 = vmatprep.subr.bf16.mxu0 %v14612_v32  ;;  %1136 = vmatprep.subr.bf16.mxu1 %v14614_v33  ;;  %v599_v32 = vor.u32 %v597_v23, %v583_v13  ;;  %v603_v33 = vrot.slane %v601_v24, 1  ;;  %s20987_s22 = smov (!%p310_p2, %s16309_s22), 1  ;;  %s20989_s21 = smov (!%p312_p12, %s16305_s21), 22  ;;  %vm12361_vm11 = vcmask 1047559   ;;  %vm12550_vm12 = vcmask 191488  }
  0xbf   : > { %s14444_s16 = smul.u32 345, %s20987_s22  ;;  %vm12558_vm13 = vcmask 1041408   ;;  %vm12559_vm14 = vsmask.f32 1280  ;;  %vm12561_vm15 = vcmask 1045508  }
  0xc0   : > { %s14443_s11 = smul.u32 15, %s20989_s21 }
  0xc1   : > { %1056 = vmatpush1.bf16.msra.mxu0 %v14616_v34  ;;  %1137 = vmatpush1.bf16.msra.mxu1 %v14617_v35  ;;  %v625_v34 = vshll.u32 %v16668_v28, 16  ;;  %v16678_v35 = vld [vmem:[%s16610_s28 + $0x30] ss:$8 sps:$4 sm:$0xff]  }
  0xc2   : > { %1057 = vmatprep.subr.bf16.mxu0 %v14618_v36  ;;  %1138 = vmatprep.subr.bf16.mxu1 %v14620_v37  ;;  %v14662_v36 = vld [vmem:[#allocation4 + $0x5c] ss:$20 sps:$4 sm:$0xff]   ;;  %v14660_v37 = vld [vmem:[#allocation4 + $0x58] ss:$20 sps:$4 sm:$0xff]   ;;  %v617_v46 = vshll.u32 %v16678_v35, 16  ;;  %v629_v2 = vshrl.u32 %v16678_v35, 16  ;;  %s19968_s22 = sadd.s32 %s14444_s16, %s14443_s11 }
  0xc3   : > { %s12737_s21 = sshll.u32 %s19968_s22, 2 }
  0xc4   : > { %v619_v56 = vrot.slane %v617_v46, 1  ;;  %v14707_v46 = vld [vmem:[#allocation4 + $0x3e4] ss:$20 sps:$4 sm:$0xff]   ;;  %s19994_s26 = scalar_lea.vmem %s20906_s12, %s12737_s21 }
  0xc5   : > { %1058 = vmatpush1.bf16.msra.mxu0 %v14622_v38  ;;  %1139 = vmatpush1.bf16.msra.mxu1 %v14623_v39  ;;  %v14663_v38 = vld [vmem:[#allocation4 + $0x27c] ss:$20 sps:$4 sm:$0xff]   ;;  %v623_v39 = vor.u32 %v621_v31, %v611_v22  ;;  %v14685_v22 = vld [vmem:[#allocation4 + $0x124] ss:$20 sps:$4 sm:$0xff]  }
  0xc6   : > { %1059 = vmatprep.subr.bf16.mxu0 %v14624_v40  ;;  %1140 = vmatprep.subr.bf16.mxu1 %v14626_v41  ;;  %v627_v40 = vrot.slane %v625_v34, 1  ;;  %v332_v41 = vld [vmem:[%s16610_s28 + $0x40] sm:$0xff]  ;;  %v631_v12 = vor.u32 %v629_v2, %v619_v56  ;;  %v14690_v31 = vld [vmem:[#allocation4 + $0x148] ss:$20 sps:$4 sm:$0xff]  }
  0xc7   : > { %v16701_v57 = vcombine.low %v332_v41, %v332_v41  ;;  %v14696_v34 = vld [vmem:[#allocation4 + $0x174] ss:$20 sps:$4 sm:$0xff]  }
  0xc8   : > { %v16697_v49 = vsel %vm572_vm0, %v623_v39, %v627_v40  ;;  %v14700_v39 = vld [vmem:[#allocation4 + $0x198] ss:$20 sps:$4 sm:$0xff]   ;;  %v14719_v2 = vld [vmem:[#allocation4 + $0x28] ss:$20 sps:$4 sm:$0xff]  }
  0xc9   : > { %1060 = vmatpush1.bf16.msra.mxu0 %v14628_v44  ;;  %1141 = vmatpush1.bf16.msra.mxu1 %v14629_v47  ;;  %v16687_v44 = vsel %vm572_vm0, %v599_v32, %v603_v33  ;;  %v16691_v47 = vcombine.high %v332_v41, %v332_v41  ;;  %v645_v24 = vshrl.u32 %v16701_v57, 16  ;;  %v14706_v41 = vld [vmem:[#allocation4 + $0x1c4] ss:$20 sps:$4 sm:$0xff]  }
  0xca   : > { %1061 = vmatprep.subr.bf16.mxu0 %v14630_v48  ;;  %1142 = vmatprep.subr.bf16.mxu1 %v14632_v52  ;;  %v14666_v48 = vld [vmem:[#allocation4 + $0x84] ss:$20 sps:$4 sm:$0xff]  }
  0xcb   : > { %v641_v52 = vshll.u32 %v16691_v47, 16 }
  0xcd   : > { %1062 = vmatpush1.bf16.msra.mxu0 %v14634_v54  ;;  %1143 = vmatpush1.bf16.msra.mxu1 %v14635_v55  ;;  %v14667_v54 = vld [vmem:[#allocation4 + $0x2a4] ss:$20 sps:$4 sm:$0xff]   ;;  %v615_v55 = vor.u32 %v613_v45, %v603_v33  ;;  %v14693_v33 = vld [vmem:[#allocation4 + $0x36c] ss:$20 sps:$4 sm:$0xff]  }
  0xce   : > { %1063 = vmatprep.subr.bf16.mxu0 %v14636_v62  ;;  %1144 = vmatprep.subr.bf16.mxu1 %v14638_v63  ;;  %v639_v62 = vor.u32 %v637_v50, %v627_v40  ;;  %v643_v63 = vrot.slane %v641_v52, 1  ;;  %v14703_v40 = vld [vmem:[#allocation4 + $0x3bc] ss:$20 sps:$4 sm:$0xff]   ;;  %v14704_v45 = vld [vmem:[#allocation4 + $0x1c0] ss:$20 sps:$4 sm:$0xff]  }
  0xcf   : > { %v16709_v1 = vsel %vm572_vm0, %v615_v55, %v619_v56  ;;  %v14708_v50 = vld [vmem:[#allocation4 + $0x1e8] ss:$20 sps:$4 sm:$0xff]   ;;  %v14711_v52 = vld [vmem:[#allocation4 + $0x40c] ss:$20 sps:$4 sm:$0xff]  }
  0xd0   : > { %v16717_v6 = vsel %vm572_vm0, %v639_v62, %v643_v63  ;;  %v14715_v62 = vld [vmem:[#allocation4] ss:$20 sps:$4 sm:$0xff]  }
  0xd1   : > { %1064 = vmatpush1.bf16.msra.mxu0 %v14640_v0  ;;  %1145 = vmatpush1.bf16.msra.mxu1 %v14641_v3  ;;  %v14671_v0 = vld [vmem:[#allocation4 + $0x2cc] ss:$20 sps:$4 sm:$0xff]   ;;  %v633_v3 = vshll.u32 %v16701_v57, 16 }
  0xd2   : > { %12854 = vmatprep.subr.msk.bf16.mxu0 %vm1023_vm2, %v16637_v7  ;;  %12860 = vmatprep.subr.msk.bf16.mxu1 %vm1023_vm2, %v16639_v8 }
  0xd3   : > { %v635_v13 = vrot.slane %v633_v3, 1  ;;  %v14722_v3 = vld [vmem:[#allocation4 + $0x38] ss:$20 sps:$4 sm:$0xff]  }
  0xd5   : > { %1066 = vmatpush1.bf16.msra.mxu0 %v16642_v9  ;;  %1147 = vmatpush1.bf16.msra.mxu1 %v16645_v10  ;;  %v16726_v20 = vsel %vm572_vm0, %v631_v12, %v635_v13  ;;  %v16739_v32 = vor.u32 %v645_v24, %v635_v13  ;;  %v14730_v12 = vld [vmem:[#allocation4 + $0x88] ss:$20 sps:$4 sm:$0xff]   ;;  %v14755_v24 = vld [vmem:[#allocation4 + $0x190] ss:$20 sps:$4 sm:$0xff]  }
  0xd6   : > { %1201 = vmatprep.subr.bf16.mxu0 %v20465_v25  ;;  %1735 = vmatprep.subr.bf16.mxu1 %v14652_v15  ;;  %v14681_v15 = vld [vmem:[#allocation4 + $0xfc] ss:$20 sps:$4 sm:$0xff]  }
  0xd7   : > { %v14735_v13 = vld [vmem:[#allocation4 + $0xc8] ss:$20 sps:$4 sm:$0xff]  }
  0xd8   : > { %1072 = vmatmul.mubr.bf16.vlgmr.msra.gmra.mrb[0].mxu0 %v16662_v21  ;;  %1153 = vmatmul.mubr.bf16.vlgmr.msra.gmra.mrb[0].mxu1 %v16662_v21 }
  0xd9   : > { %1202 = vmatpush1.bf16.msra.mxu0 %v14655_v19  ;;  %1736 = vmatpush1.bf16.msra.mxu1 %v14650_v17  ;;  %v648_v17 = vshrl.u32 %v16691_v47, 16  ;;  %v14682_v19 = vld [vmem:[#allocation4 + $0x31c] ss:$20 sps:$4 sm:$0xff]  }
  0xda   : > { %1203 = vmatprep.subr.bf16.mxu0 %v20465_v25  ;;  %1737 = vmatprep.subr.bf16.mxu1 %v14658_v26  ;;  %v14683_v26 = vld [vmem:[#allocation4 + $0x120] ss:$20 sps:$4 sm:$0xff]  }
  0xdb   : > { %12856 = vmatprep.mubr.msk.bf16.mxu0 %vm1007_vm1, %v16673_v30  ;;  %12862 = vmatprep.mubr.msk.bf16.mxu1 %vm1007_vm1, %v16673_v30  ;;  %v16729_v23 = vor.u32 %v648_v17, %v643_v63  ;;  %v14718_v63 = vld [vmem:[#allocation4 + $0x10] ss:$20 sps:$4 sm:$0xff]   ;;  %v14743_v17 = vld [vmem:[#allocation4 + $0x118] ss:$20 sps:$4 sm:$0xff]  }
  0xdd   : > { %1204 = vmatpush1.bf16.msra.mxu0 %v14659_v29  ;;  %1738 = vmatpush1.bf16.msra.mxu1 %v14656_v27  ;;  %v14688_v27 = vld [vmem:[#allocation4 + $0x344] ss:$20 sps:$4 sm:$0xff]   ;;  %v14692_v29 = vld [vmem:[#allocation4 + $0x14c] ss:$20 sps:$4 sm:$0xff]  }
  0xde   : > { %1205 = vmatprep.subr.bf16.mxu0 %v20465_v25  ;;  %1739 = vmatprep.subr.bf16.mxu1 %v14662_v36  ;;  %v14694_v36 = vld [vmem:[#allocation4 + $0x170] ss:$20 sps:$4 sm:$0xff]  }
  0xe0   : > { %1082 = vmatmul.mubr.bf16.gmra.mrb[4].mxu0 %v16687_v44  ;;  %1163 = vmatmul.mubr.bf16.gmra.mrb[4].mxu1 %v16687_v44 }
  0xe1   : > { %1206 = vmatpush1.bf16.msra.mxu0 %v14663_v38  ;;  %1740 = vmatpush1.bf16.msra.mxu1 %v14660_v37  ;;  %v14698_v37 = vld [vmem:[#allocation4 + $0x394] ss:$20 sps:$4 sm:$0xff]   ;;  %v14702_v38 = vld [vmem:[#allocation4 + $0x19c] ss:$20 sps:$4 sm:$0xff]  }
  0xe2   : > { %1207 = vmatprep.subr.bf16.mxu0 %v20465_v25  ;;  %1741 = vmatprep.subr.bf16.mxu1 %v14666_v48  ;;  %v14710_v48 = vld [vmem:[#allocation4 + $0x1ec] ss:$20 sps:$4 sm:$0xff]  }
  0xe3   : > { %12857 = vmatprep.mubr.msk.bf16.mxu0 %vm1007_vm1, %v16697_v49  ;;  %12863 = vmatprep.mubr.msk.bf16.mxu1 %vm1007_vm1, %v16697_v49 }
  0xe5   : > { %1208 = vmatpush1.bf16.msra.mxu0 %v14667_v54  ;;  %1742 = vmatpush1.bf16.msra.mxu1 %v14664_v53  ;;  %v14713_v54 = vld [vmem:[#allocation4 + $0x434] ss:$0 sps:$4 sm:$0xff]  }
  0xe6   : > { %1209 = vmatprep.subr.bf16.mxu0 %v20465_v25  ;;  %1743 = vmatprep.subr.bf16.mxu1 %v14670_v58  ;;  %v16758_v56 = vsel %vm1023_vm2, %v14713_v54, 0  ;;  %v14776_v54 = vld [vmem:[#allocation4 + $0x460] ss:$20 sps:$4 sm:$0xff]  }
  0xe8   : > { %1092 = vmatmul.mubr.bf16.gmra.mrb[8].mxu0 %v16709_v1  ;;  %1173 = vmatmul.mubr.bf16.gmra.mrb[8].mxu1 %v16709_v1 }
  0xe9   : > { %1210 = vmatpush1.bf16.msra.mxu0 %v14671_v0  ;;  %1744 = vmatpush1.bf16.msra.mxu1 %v14668_v61  ;;  %v14717_v61 = vld [vmem:[#allocation4 + $0x4] ss:$20 sps:$4 sm:$0xff]   ;;  %v14721_v0 = vld [vmem:[#allocation4 + $0x2c] ss:$20 sps:$4 sm:$0xff]  }
  0xea   : > { %1211 = vmatprep.subr.bf16.mxu0 %v20465_v25  ;;  %1745 = vmatprep.subr.bf16.mxu1 %v14674_v4  ;;  %v14725_v4 = vld [vmem:[#allocation4 + $0x54] ss:$20 sps:$4 sm:$0xff]  }
  0xeb   : > { %12858 = vmatprep.mubr.msk.bf16.mxu0 %vm1007_vm1, %v16717_v6  ;;  %12864 = vmatprep.mubr.msk.bf16.mxu1 %vm1007_vm1, %v16717_v6 }
  0xed   : > { %1212 = vmatpush1.bf16.msra.mxu0 %v14677_v11  ;;  %1746 = vmatpush1.bf16.msra.mxu1 %v14672_v5  ;;  %v14723_v5 = vld [vmem:[#allocation4 + $0x50] ss:$20 sps:$4 sm:$0xff]   ;;  %v14727_v11 = vld [vmem:[#allocation4 + $0x78] ss:$20 sps:$4 sm:$0xff]  }
  0xee   : > { %1213 = vmatprep.subr.bf16.mxu0 %v20465_v25  ;;  %1747 = vmatprep.subr.bf16.mxu1 %v14681_v15  ;;  %v14738_v15 = vld [vmem:[#allocation4 + $0xd8] ss:$20 sps:$4 sm:$0xff]  }
  0xf0   : > { %1102 = vmatmul.mubr.bf16.gmra.mrb[12].mxu0 %v16726_v20  ;;  %1183 = vmatmul.mubr.bf16.gmra.mrb[12].mxu1 %v16726_v20 }
  0xf1   : > { %1214 = vmatpush1.bf16.msra.mxu0 %v14682_v19  ;;  %1748 = vmatpush1.bf16.msra.mxu1 %v14679_v18  ;;  %v14746_v18 = vld [vmem:[#allocation4 + $0x128] ss:$20 sps:$4 sm:$0xff]   ;;  %v14753_v19 = vld [vmem:[#allocation4 + $0x16c] ss:$20 sps:$4 sm:$0xff]  }
  0xf2   : > { %1215 = vmatprep.subr.bf16.mxu0 %v20465_v25  ;;  %1749 = vmatprep.subr.bf16.mxu1 %v14685_v22  ;;  %v14754_v22 = vld [vmem:[#allocation4 + $0x178] ss:$20 sps:$4 sm:$0xff]  }
  0xf3   : > { %12859 = vmatprep.mubr.msk.bf16.mxu0 %vm1007_vm1, %v16729_v23  ;;  %12865 = vmatprep.mubr.msk.bf16.mxu1 %vm1007_vm1, %v16729_v23 }
  0xf5   : > { %1216 = vmatpush1.bf16.msra.mxu0 %v14688_v27  ;;  %1750 = vmatpush1.bf16.msra.mxu1 %v14683_v26  ;;  %v14758_v26 = vld [vmem:[#allocation4 + $0x1a0] ss:$20 sps:$4 sm:$0xff]   ;;  %v14761_v27 = vld [vmem:[#allocation4 + $0x1bc] ss:$20 sps:$4 sm:$0xff]  }
  0xf6   : > { %1217 = vmatprep.subr.bf16.mxu0 %v20465_v25  ;;  %1751 = vmatprep.subr.bf16.mxu1 %v14692_v29  ;;  %v14759_v29 = vld [vmem:[#allocation4 + $0x1b8] ss:$20 sps:$4 sm:$0xff]  }
  0xf8   : > { %1112 = vmatmul.mubr.bf16.gmra.mrb[16].mxu0 %v16739_v32  ;;  %1193 = vmatmul.mubr.bf16.gmra.mrb[16].mxu1 %v16739_v32 }
  0xf9   : > { %1218 = vmatpush1.bf16.msra.mxu0 %v14693_v33  ;;  %1752 = vmatpush1.bf16.msra.mxu1 %v14690_v31  ;;  %v14762_v31 = vld [vmem:[#allocation4 + $0x1c8] ss:$20 sps:$4 sm:$0xff]  }
  0xfa   : > { %1219 = vmatprep.subr.bf16.mxu0 %v20465_v25  ;;  %1753 = vmatprep.subr.bf16.mxu1 %v14696_v34  ;;  %v450_v33 = vld [vmem:[#allocation4 + $0x208] sm:$0xff]  ;;  %v14763_v34 = vld [vmem:[#allocation4 + $0x1e0] ss:$20 sps:$4 sm:$0xff]  }
  0xfb   : > { %12866 = vmatprep.mubr.msk.bf16.mxu0 %vm1007_vm1, %v16625_v59  ;;  %12948 = vmatprep.mubr.msk.bf16.mxu1 %vm1007_vm1, %v16613_v42  ;;  %v451_v59 = vld [vmem:[#allocation4 + $0x210] sm:$0xff] }
  0xfc   : > { %v16752_v53 = vcombine.high %v451_v59, %v451_v59  ;;  %v12938_v55 = vcombine.low %v451_v59, %v451_v59  ;;  %v14778_v59 = vld [vmem:[#allocation4 + $0x464] ss:$20 sps:$4 sm:$0xff]  }
  0xfd   : > { %1220 = vmatpush1.bf16.msra.mxu0 %v14698_v37  ;;  %1754 = vmatpush1.bf16.msra.mxu1 %v14694_v36  ;;  %v12936_v36 = vcombine.low %v450_v33, %v450_v33  ;;  %v14769_v37 = vld [vmem:[#allocation4 + $0x218] ss:$0 sps:$4 sm:$0xff]  }
  0xfe   : > { %1221 = vmatprep.subr.bf16.mxu0 %v20465_v25  ;;  %1755 = vmatprep.subr.bf16.mxu1 %v14702_v38  ;;  %20655 = vst [vmem:[#allocation13_spill] sm:$0xff] %v16752_v53  ;;  %v16761_v58 = vsel %vm1023_vm2, %v12938_v55, 0  ;;  %v16808_v38 = vcombine.high %v450_v33, %v450_v33  ;;  %v14779_v55 = vld [vmem:[#allocation4 + $0x468] ss:$20 sps:$4 sm:$0xff]   ;;  %v14826_v33 = vld [vmem:[#allocation4 + $0x5a4] ss:$20 sps:$4 sm:$0xff]  }
  0xff   : > { %20656 = vst [vmem:[#allocation14_spill] sm:$0xff] %v16761_v58 }
 0x100   : > { %20657 = vst [vmem:[#allocation15_spill] sm:$0xff] %v16808_v38 }
 0x101   : > { %1222 = vmatpush1.bf16.msra.mxu0 %v14703_v40  ;;  %1756 = vmatpush1.bf16.msra.mxu1 %v14700_v39  ;;  %v16811_v39 = vsel %vm1023_vm2, %v12936_v36, 0  ;;  %v16814_v40 = vsel %vm1023_vm2, %v14769_v37, 0  ;;  %v14827_v37 = vld [vmem:[#allocation4 + $0x5a8] ss:$20 sps:$4 sm:$0xff]  }
 0x102   : > { %1223 = vmatprep.subr.bf16.mxu0 %v20465_v25  ;;  %1757 = vmatprep.subr.bf16.mxu1 %v14706_v41  ;;  %20658 = vst [vmem:[#allocation16_spill] sm:$0xff] %v16811_v39  ;;  %20659 = vst [vmem:[#allocation17_spill] sm:$0xff] %v16814_v40  ;;  %v14772_v41 = vld [vmem:[#allocation4 + $0x43c] ss:$20 sps:$4 sm:$0xff]  }
 0x105   : > { %1224 = vmatpush1.bf16.msra.mxu0 %v14707_v46  ;;  %1758 = vmatpush1.bf16.msra.mxu1 %v14704_v45  ;;  %v14775_v45 = vld [vmem:[#allocation4 + $0x444] ss:$20 sps:$4 sm:$0xff]  }
 0x106   : > { %1225 = vmatprep.subr.bf16.mxu0 %v20465_v25  ;;  %1759 = vmatprep.subr.bf16.mxu1 %v14710_v48  ;;  %v14770_v46 = vld [vmem:[#allocation4 + $0x438] ss:$20 sps:$4 sm:$0xff]   ;;  %v14773_v48 = vld [vmem:[#allocation4 + $0x440] ss:$20 sps:$4 sm:$0xff]  }
 0x109   : > { %1226 = vmatpush1.bf16.msra.mxu0 %v14711_v52  ;;  %1760 = vmatpush1.bf16.msra.mxu1 %v14708_v50  ;;  %v14781_v50 = vld [vmem:[#allocation4 + $0x46c] ss:$20 sps:$4 sm:$0xff]  }
 0x10a   : > { %1227 = vmatprep.subr.bf16.mxu0 %v20465_v25  ;;  %12947 = vmatprep.subr.msk.bf16.mxu1 %vm1023_vm2, %v16752_v53  ;;  %v16822_v52 = vld [vmem:[%s16610_s28] ss:$8 sps:$4 sm:$0xff]   ;;  %v15346_v53 = vld [vmem:[#allocation4 + $0xfc4] ss:$20 sps:$4 sm:$0xff]  }
 0x10d   : > { %1228 = vmatpush1.bf16.msra.mxu0 %v16758_v56  ;;  %1762 = vmatpush1.bf16.msra.mxu1 %v16761_v58 }
 0x10e   : > { %1654 = vmatprep.subr.bf16.mxu0 %v14717_v61  ;;  %1816 = vmatprep.subr.bf16.mxu1 %v20465_v25  ;;  %v14784_v61 = vld [vmem:[#allocation4 + $0x48c] ss:$20 sps:$4 sm:$0xff]  }
 0x110   : > { %1234 = vmatmul.mubr.bf16.vlgmr.msra.gmra.mrb[20].mxu0 %v16662_v21  ;;  %1768 = vmatmul.mubr.bf16.vlgmr.msra.gmra.mrb[0].mxu1 %v16622_v51  ;;  %v14726_v21 = vld [vmem:[#allocation4 + $0x60] ss:$20 sps:$4 sm:$0xff]   ;;  %v14729_v51 = vld [vmem:[#allocation4 + $0x7c] ss:$20 sps:$4 sm:$0xff]  }
 0x111   : > { %1655 = vmatpush1.bf16.msra.mxu0 %v14715_v62  ;;  %1817 = vmatpush1.bf16.msra.mxu1 %v14718_v63  ;;  %v14787_v62 = vld [vmem:[#allocation4 + $0x494] ss:$20 sps:$4 sm:$0xff]  }
 0x112   : > { %1656 = vmatprep.subr.bf16.mxu0 %v14721_v0  ;;  %1818 = vmatprep.subr.bf16.mxu1 %v20465_v25  ;;  %v16827_v63 = vld [vmem:[%s16610_s28 + $0x14] ss:$8 sps:$4 sm:$0xff]  }
 0x113   : > { %12949 = vmatprep.mubr.msk.bf16.mxu1 %vm1007_vm1, %v16616_v43  ;;  %12867 = vmatprep.mubr.msk.bf16.mxu0 %vm1007_vm1, %v16673_v30  ;;  %v14733_v43 = vld [vmem:[#allocation4 + $0xa4] ss:$20 sps:$4 sm:$0xff]   ;;  %v14731_v30 = vld [vmem:[#allocation4 + $0xa0] ss:$20 sps:$4 sm:$0xff]   ;;  %v14782_v0 = vld [vmem:[#allocation4 + $0x488] ss:$20 sps:$4 sm:$0xff]  }
 0x115   : > { %1657 = vmatpush1.bf16.msra.mxu0 %v14719_v2  ;;  %1819 = vmatpush1.bf16.msra.mxu1 %v14722_v3  ;;  %v14785_v2 = vld [vmem:[#allocation4 + $0x490] ss:$20 sps:$4 sm:$0xff]   ;;  %v14790_v3 = vld [vmem:[#allocation4 + $0x4b4] ss:$20 sps:$4 sm:$0xff]  }
 0x116   : > { %1658 = vmatprep.subr.bf16.mxu0 %v14725_v4  ;;  %1820 = vmatprep.subr.bf16.mxu1 %v20465_v25  ;;  %v14793_v4 = vld [vmem:[#allocation4 + $0x4bc] ss:$20 sps:$4 sm:$0xff]  }
 0x118   : > { %1778 = vmatmul.mubr.bf16.gmra.mrb[4].mxu1 %v16628_v60  ;;  %1242 = vmatmul.mubr.bf16.gmra.mrb[24].mxu0 %v16687_v44  ;;  %v14734_v60 = vld [vmem:[#allocation4 + $0xb0] ss:$20 sps:$4 sm:$0xff]   ;;  %v14737_v44 = vld [vmem:[#allocation4 + $0xcc] ss:$20 sps:$4 sm:$0xff]  }
 0x119   : > { %1659 = vmatpush1.bf16.msra.mxu0 %v14723_v5  ;;  %1821 = vmatpush1.bf16.msra.mxu1 %v14726_v21  ;;  %v16834_v5 = vld [vmem:[%s16610_s28 + $0x10] ss:$8 sps:$4 sm:$0xff]  }
 0x11a   : > { %1660 = vmatprep.subr.bf16.mxu0 %v14729_v51  ;;  %1822 = vmatprep.subr.bf16.mxu1 %v20465_v25  ;;  %v14788_v21 = vld [vmem:[#allocation4 + $0x4b0] ss:$20 sps:$4 sm:$0xff]   ;;  %v14791_v51 = vld [vmem:[#allocation4 + $0x4b8] ss:$20 sps:$4 sm:$0xff]  }
 0x11b   : > { %12950 = vmatprep.mubr.msk.bf16.mxu1 %vm1007_vm1, %v16649_v14  ;;  %12868 = vmatprep.mubr.msk.bf16.mxu0 %vm1007_vm1, %v16697_v49  ;;  %v14741_v14 = vld [vmem:[#allocation4 + $0xf4] ss:$20 sps:$4 sm:$0xff]   ;;  %v14739_v49 = vld [vmem:[#allocation4 + $0xf0] ss:$20 sps:$4 sm:$0xff]  }
 0x11d   : > { %1661 = vmatpush1.bf16.msra.mxu0 %v14727_v11  ;;  %1823 = vmatpush1.bf16.msra.mxu1 %v14730_v12  ;;  %v14796_v11 = vld [vmem:[#allocation4 + $0x4dc] ss:$20 sps:$4 sm:$0xff]   ;;  %v14799_v12 = vld [vmem:[#allocation4 + $0x4e4] ss:$20 sps:$4 sm:$0xff]  }
 0x11e   : > { %1662 = vmatprep.subr.bf16.mxu0 %v14733_v43  ;;  %1824 = vmatprep.subr.bf16.mxu1 %v20465_v25  ;;  %v16839_v43 = vld [vmem:[%s16610_s28 + $0x24] ss:$8 sps:$4 sm:$0xff]  }
 0x120   : > { %1788 = vmatmul.mubr.bf16.gmra.mrb[8].mxu1 %v16656_v16  ;;  %1250 = vmatmul.mubr.bf16.gmra.mrb[28].mxu0 %v16709_v1  ;;  %v14742_v16 = vld [vmem:[#allocation4 + $0x100] ss:$20 sps:$4 sm:$0xff]   ;;  %v14745_v1 = vld [vmem:[#allocation4 + $0x11c] ss:$20 sps:$4 sm:$0xff]  }
 0x121   : > { %1663 = vmatpush1.bf16.msra.mxu0 %v14731_v30  ;;  %1825 = vmatpush1.bf16.msra.mxu1 %v14734_v60  ;;  %v14794_v30 = vld [vmem:[#allocation4 + $0x4d8] ss:$20 sps:$4 sm:$0xff]   ;;  %v14797_v60 = vld [vmem:[#allocation4 + $0x4e0] ss:$20 sps:$4 sm:$0xff]  }
 0x122   : > { %1664 = vmatprep.subr.bf16.mxu0 %v14737_v44  ;;  %1826 = vmatprep.subr.bf16.mxu1 %v20465_v25  ;;  %v14802_v44 = vld [vmem:[#allocation4 + $0x504] ss:$20 sps:$4 sm:$0xff]  }
 0x123   : > { %12951 = vmatprep.mubr.msk.bf16.mxu1 %vm1007_vm1, %v16668_v28  ;;  %12869 = vmatprep.mubr.msk.bf16.mxu0 %vm1007_vm1, %v16717_v6  ;;  %v14749_v28 = vld [vmem:[#allocation4 + $0x144] ss:$20 sps:$4 sm:$0xff]   ;;  %v14747_v6 = vld [vmem:[#allocation4 + $0x140] ss:$20 sps:$4 sm:$0xff]  }
 0x125   : > { %1665 = vmatpush1.bf16.msra.mxu0 %v14735_v13  ;;  %1827 = vmatpush1.bf16.msra.mxu1 %v14738_v15  ;;  %v14805_v13 = vld [vmem:[#allocation4 + $0x50c] ss:$20 sps:$4 sm:$0xff]  }
 0x126   : > { %1666 = vmatprep.subr.bf16.mxu0 %v14741_v14  ;;  %1828 = vmatprep.subr.bf16.mxu1 %v20465_v25  ;;  %v16846_v15 = vld [vmem:[%s16610_s28 + $0x20] ss:$8 sps:$4 sm:$0xff]  }
 0x127   : > { %v14800_v14 = vld [vmem:[#allocation4 + $0x500] ss:$20 sps:$4 sm:$0xff]  }
 0x128   : > { %1798 = vmatmul.mubr.bf16.gmra.mrb[12].mxu1 %v16678_v35  ;;  %1258 = vmatmul.mubr.bf16.gmra.mrb[32].mxu0 %v16726_v20  ;;  %v14750_v35 = vld [vmem:[#allocation4 + $0x150] ss:$20 sps:$4 sm:$0xff]   ;;  %v14751_v20 = vld [vmem:[#allocation4 + $0x168] ss:$20 sps:$4 sm:$0xff]  }
 0x129   : > { %1667 = vmatpush1.bf16.msra.mxu0 %v14739_v49  ;;  %1829 = vmatpush1.bf16.msra.mxu1 %v14742_v16  ;;  %v14803_v49 = vld [vmem:[#allocation4 + $0x508] ss:$20 sps:$4 sm:$0xff]   ;;  %v14808_v16 = vld [vmem:[#allocation4 + $0x52c] ss:$20 sps:$4 sm:$0xff]  }
 0x12a   : > { %1668 = vmatprep.subr.bf16.mxu0 %v14745_v1  ;;  %1830 = vmatprep.subr.bf16.mxu1 %v20465_v25  ;;  %v14811_v1 = vld [vmem:[#allocation4 + $0x534] ss:$20 sps:$4 sm:$0xff]  }
 0x12b   : > { %12952 = vmatprep.mubr.msk.bf16.mxu1 %vm1007_vm1, %v16691_v47  ;;  %12870 = vmatprep.mubr.msk.bf16.mxu0 %vm1007_vm1, %v16729_v23  ;;  %v14757_v23 = vld [vmem:[#allocation4 + $0x194] ss:$20 sps:$4 sm:$0xff]  }
 0x12d   : > { %1669 = vmatpush1.bf16.msra.mxu0 %v14743_v17  ;;  %1831 = vmatpush1.bf16.msra.mxu1 %v14746_v18  ;;  %v16851_v17 = vld [vmem:[%s16610_s28 + $0x34] ss:$8 sps:$4 sm:$0xff]  }
 0x12e   : > { %1670 = vmatprep.subr.bf16.mxu0 %v14749_v28  ;;  %1832 = vmatprep.subr.bf16.mxu1 %v20465_v25  ;;  %v14806_v18 = vld [vmem:[#allocation4 + $0x528] ss:$20 sps:$4 sm:$0xff]   ;;  %v14809_v28 = vld [vmem:[#allocation4 + $0x530] ss:$20 sps:$4 sm:$0xff]  }
 0x130   : > { %1808 = vmatmul.mubr.bf16.gmra.mrb[20].mxu1 %v16701_v57  ;;  %1266 = vmatmul.mubr.bf16.gmra.mrb[36].mxu0 %v16739_v32  ;;  %v14765_v32 = vld [vmem:[#allocation4 + $0x1e4] ss:$20 sps:$4 sm:$0xff]  }
 0x131   : > { %1671 = vmatpush1.bf16.msra.mxu0 %v14747_v6  ;;  %1833 = vmatpush1.bf16.msra.mxu1 %v14750_v35  ;;  %v14814_v6 = vld [vmem:[#allocation4 + $0x554] ss:$20 sps:$4 sm:$0xff]   ;;  %v14817_v35 = vld [vmem:[#allocation4 + $0x55c] ss:$20 sps:$4 sm:$0xff]  }
 0x132   : > { %1672 = vmatprep.subr.bf16.mxu0 %v14753_v19  ;;  %1834 = vmatprep.subr.bf16.mxu1 %v20465_v25  ;;  %v16858_v19 = vld [vmem:[%s16610_s28 + $0x30] ss:$8 sps:$4 sm:$0xff]  }
 0x133   : > { %12942 = vmatprep.mubr.msk.bf16.mxu0 %vm1007_vm1, %v16613_v42  ;;  %12953 = vmatprep.mubr.msk.bf16.mxu1 %vm1007_vm1, %v16613_v42  ;;  %v14766_v42 = vld [vmem:[#allocation4 + $0x1f0] ss:$20 sps:$4 sm:$0xff]  }
 0x135   : > { %1673 = vmatpush1.bf16.msra.mxu0 %v14751_v20  ;;  %1835 = vmatpush1.bf16.msra.mxu1 %v14754_v22  ;;  %v14812_v20 = vld [vmem:[#allocation4 + $0x550] ss:$20 sps:$4 sm:$0xff]   ;;  %v14815_v22 = vld [vmem:[#allocation4 + $0x558] ss:$20 sps:$4 sm:$0xff]  }
 0x136   : > { %1674 = vmatprep.subr.bf16.mxu0 %v14757_v23  ;;  %1836 = vmatprep.subr.bf16.mxu1 %v20465_v25  ;;  %v14820_v23 = vld [vmem:[#allocation4 + $0x57c] ss:$20 sps:$4 sm:$0xff]  }
 0x139   : > { %1675 = vmatpush1.bf16.msra.mxu0 %v14755_v24  ;;  %1837 = vmatpush1.bf16.msra.mxu1 %v14758_v26  ;;  %v14823_v24 = vld [vmem:[#allocation4 + $0x584] ss:$20 sps:$4 sm:$0xff]  }
 0x13a   : > { %1676 = vmatprep.subr.bf16.mxu0 %v14761_v27  ;;  %1838 = vmatprep.subr.bf16.mxu1 %v20465_v25  ;;  %v15491_v26 = vld [vmem:[%s16610_s28 + $0x4] ss:$8 sps:$4 sm:$0xff]  }
 0x13b   : > { %v1974_v27 = vrot.slane %v15491_v26, 1  ;;  %v14864_v26 = vld [vmem:[#allocation4 + $0x6d4] ss:$20 sps:$4 sm:$0xff]  }
 0x13d   : > { %1677 = vmatpush1.bf16.msra.mxu0 %v14759_v29  ;;  %1839 = vmatpush1.bf16.msra.mxu1 %v14762_v31  ;;  %v1975_v29 = vrot.slane %v16827_v63, 1  ;;  %v14818_v31 = vld [vmem:[#allocation4 + $0x578] ss:$20 sps:$4 sm:$0xff]  }
 0x13e   : > { %1678 = vmatprep.subr.bf16.mxu0 %v14765_v32  ;;  %1840 = vmatprep.subr.bf16.mxu1 %v20465_v25  ;;  %v14821_v32 = vld [vmem:[#allocation4 + $0x580] ss:$20 sps:$4 sm:$0xff]  }
 0x13f   : > { %v16873_v36 = vsel %vm1970_vm3, %v1974_v27, %v1975_v29  ;;  %v1981_v27 = vrot.slane %v16858_v19, 1 }
 0x141   : > { %1679 = vmatpush1.bf16.msra.mxu0 %v14763_v34  ;;  %1841 = vmatpush1.bf16.msra.mxu1 %v14766_v42  ;;  %v14829_v34 = vld [vmem:[#allocation4 + $0x5ac] ss:$20 sps:$4 sm:$0xff]  }
 0x142   : > { %12941 = vmatprep.subr.msk.bf16.mxu0 %vm1023_vm2, %v16808_v38  ;;  %1842 = vmatprep.subr.bf16.mxu1 %v20465_v25  ;;  %v14824_v42 = vld [vmem:[#allocation4 + $0x5a0] ss:$20 sps:$4 sm:$0xff]  }
 0x145   : > { %1681 = vmatpush1.bf16.msra.mxu0 %v16811_v39  ;;  %1843 = vmatpush1.bf16.msra.mxu1 %v16814_v40 }
 0x146   : > { %2375 = vmatprep.subr.bf16.mxu0 %v14772_v41  ;;  %2456 = vmatprep.subr.bf16.mxu1 %v14775_v45  ;;  %v14832_v41 = vld [vmem:[#allocation4 + $0x5cc] ss:$20 sps:$4 sm:$0xff]   ;;  %v14835_v45 = vld [vmem:[#allocation4 + $0x5d4] ss:$20 sps:$4 sm:$0xff]  }
 0x148   : > { %1687 = vmatmul.mubr.bf16.vlgmr.msra.gmra.mrb[0].mxu0 %v16822_v52  ;;  %1849 = vmatmul.mubr.bf16.vlgmr.msra.gmra.mrb[24].mxu1 %v16822_v52 }
 0x149   : > { %2376 = vmatpush1.bf16.msra.mxu0 %v14770_v46  ;;  %2457 = vmatpush1.bf16.msra.mxu1 %v14773_v48  ;;  %v14830_v46 = vld [vmem:[#allocation4 + $0x5c8] ss:$20 sps:$4 sm:$0xff]   ;;  %v14833_v48 = vld [vmem:[#allocation4 + $0x5d0] ss:$20 sps:$4 sm:$0xff]  }
 0x14a   : > { %2377 = vmatprep.subr.bf16.mxu0 %v14778_v59  ;;  %2458 = vmatprep.subr.bf16.mxu1 %v14781_v50  ;;  %v14838_v59 = vld [vmem:[#allocation4 + $0x5f4] ss:$20 sps:$4 sm:$0xff]   ;;  %v14841_v50 = vld [vmem:[#allocation4 + $0x5fc] ss:$20 sps:$4 sm:$0xff]  }
 0x14b   : > { %12943 = vmatprep.mubr.msk.bf16.mxu0 %vm1007_vm1, %v16827_v63  ;;  %12954 = vmatprep.mubr.msk.bf16.mxu1 %vm1007_vm1, %v16827_v63  ;;  %v1983_v63 = vrot.slane %v16851_v17, 1 }
 0x14d   : > { %2378 = vmatpush1.bf16.msra.mxu0 %v14776_v54  ;;  %2459 = vmatpush1.bf16.msra.mxu1 %v14779_v55  ;;  %v14836_v54 = vld [vmem:[#allocation4 + $0x5f0] ss:$20 sps:$4 sm:$0xff]   ;;  %v14839_v55 = vld [vmem:[#allocation4 + $0x5f8] ss:$20 sps:$4 sm:$0xff]  }
 0x14e   : > { %2379 = vmatprep.subr.bf16.mxu0 %v14784_v61  ;;  %2460 = vmatprep.subr.bf16.mxu1 %v14787_v62  ;;  %v14844_v61 = vld [vmem:[#allocation4 + $0x61c] ss:$20 sps:$4 sm:$0xff]   ;;  %v14847_v62 = vld [vmem:[#allocation4 + $0x624] ss:$20 sps:$4 sm:$0xff]  }
 0x150   : > { %1697 = vmatmul.mubr.bf16.gmra.mrb[4].mxu0 %v16834_v5  ;;  %1857 = vmatmul.mubr.bf16.gmra.mrb[28].mxu1 %v16834_v5 }
 0x151   : > { %2380 = vmatpush1.bf16.msra.mxu0 %v14782_v0  ;;  %2461 = vmatpush1.bf16.msra.mxu1 %v14785_v2  ;;  %v1967_v0 = vld [vmem:[#allocation4 + $0x640] sm:$0xff]  ;;  %v14842_v2 = vld [vmem:[#allocation4 + $0x618] ss:$20 sps:$4 sm:$0xff]  }
 0x152   : > { %2381 = vmatprep.subr.bf16.mxu0 %v14790_v3  ;;  %2462 = vmatprep.subr.bf16.mxu1 %v14793_v4  ;;  %v14845_v3 = vld [vmem:[#allocation4 + $0x620] ss:$20 sps:$4 sm:$0xff]   ;;  %v1968_v4 = vld [vmem:[#allocation4 + $0x648] sm:$0xff] }
 0x153   : > { %12944 = vmatprep.mubr.msk.bf16.mxu0 %vm1007_vm1, %v16839_v43  ;;  %12955 = vmatprep.mubr.msk.bf16.mxu1 %vm1007_vm1, %v16839_v43 }
 0x155   : > { %2382 = vmatpush1.bf16.msra.mxu0 %v14788_v21  ;;  %2463 = vmatpush1.bf16.msra.mxu1 %v14791_v51  ;;  %v16879_v21 = vcombine.high %v1967_v0, %v1967_v0  ;;  %v16881_v51 = vcombine.high %v1968_v4, %v1968_v4 }
 0x156   : > { %2383 = vmatprep.subr.bf16.mxu0 %v14796_v11  ;;  %2464 = vmatprep.subr.bf16.mxu1 %v14799_v12  ;;  %v13023_v11 = vcombine.low %v1967_v0, %v1967_v0  ;;  %v13025_v12 = vcombine.low %v1968_v4, %v1968_v4  ;;  %v14890_v0 = vld [vmem:[#allocation4 + $0x7c8] ss:$20 sps:$4 sm:$0xff]   ;;  %v14891_v4 = vld [vmem:[#allocation4 + $0x5b0] ss:$20 sps:$4 sm:$0xff]  }
 0x157   : > { %20660 = vst [vmem:[#allocation18_spill] sm:$0xff] %v16879_v21  ;;  %20661 = vst [vmem:[#allocation19_spill] sm:$0xff] %v16881_v51 }
 0x158   : > { %1707 = vmatmul.mubr.bf16.gmra.mrb[8].mxu0 %v16846_v15  ;;  %1865 = vmatmul.mubr.bf16.gmra.mrb[32].mxu1 %v16846_v15 }
 0x159   : > { %2384 = vmatpush1.bf16.msra.mxu0 %v14794_v30  ;;  %2465 = vmatpush1.bf16.msra.mxu1 %v14797_v60  ;;  %v1971_v30 = vrot.slane %v16822_v52, 1  ;;  %v1972_v60 = vrot.slane %v16834_v5, 1  ;;  %v14858_v5 = vld [vmem:[#allocation4 + $0x688] ss:$20 sps:$4 sm:$0xff]  }
 0x15a   : > { %2385 = vmatprep.subr.bf16.mxu0 %v14802_v44  ;;  %2466 = vmatprep.subr.bf16.mxu1 %v14805_v13  ;;  %v16890_v44 = vsel %vm1023_vm2, %v13023_v11, 0  ;;  %v16893_v13 = vsel %vm1023_vm2, %v13025_v12, 0  ;;  %v14894_v11 = vld [vmem:[#allocation4 + $0x7f0] ss:$20 sps:$4 sm:$0xff]   ;;  %v14892_v12 = vld [vmem:[#allocation4 + $0x7ec] ss:$20 sps:$4 sm:$0xff]  }
 0x15b   : > { %12945 = vmatprep.mubr.msk.bf16.mxu0 %vm1007_vm1, %v16851_v17  ;;  %12956 = vmatprep.mubr.msk.bf16.mxu1 %vm1007_vm1, %v16851_v17  ;;  %20662 = vst [vmem:[#allocation20_spill] sm:$0xff] %v16890_v44  ;;  %20663 = vst [vmem:[#allocation21_spill] sm:$0xff] %v16893_v13  ;;  %v16899_v52 = vsel %vm1970_vm3, %v1971_v30, %v1972_v60  ;;  %v14867_v17 = vld [vmem:[#allocation4 + $0x4c0] ss:$20 sps:$4 sm:$0xff]   ;;  %v14895_v30 = vld [vmem:[#allocation4 + $0x5d8] ss:$20 sps:$4 sm:$0xff]  }
 0x15d   : > { %2386 = vmatpush1.bf16.msra.mxu0 %v14800_v14  ;;  %2467 = vmatpush1.bf16.msra.mxu1 %v14803_v49  ;;  %v14854_v14 = vld [vmem:[#allocation4 + $0x660] ss:$20 sps:$4 sm:$0xff]   ;;  %v14852_v49 = vld [vmem:[#allocation4 + $0x65c] ss:$20 sps:$4 sm:$0xff]  }
 0x15e   : > { %2387 = vmatprep.subr.bf16.mxu0 %v14808_v16  ;;  %2468 = vmatprep.subr.bf16.mxu1 %v14811_v1  ;;  %v14855_v16 = vld [vmem:[#allocation4 + $0x448] ss:$20 sps:$4 sm:$0xff]   ;;  %v1979_v1 = vrot.slane %v16839_v43, 1 }
 0x160   : > { %1717 = vmatmul.mubr.bf16.gmra.mrb[12].mxu0 %v16858_v19  ;;  %1873 = vmatmul.mubr.bf16.gmra.mrb[36].mxu1 %v16858_v19  ;;  %v16907_v43 = vsel %vm1970_vm3, %v1975_v29, %v1979_v1  ;;  %v14870_v29 = vld [vmem:[#allocation4 + $0x700] ss:$20 sps:$4 sm:$0xff]   ;;  %v14874_v19 = vld [vmem:[#allocation4 + $0x728] ss:$20 sps:$4 sm:$0xff]  }
 0x161   : > { %2388 = vmatpush1.bf16.msra.mxu0 %v14806_v18  ;;  %2469 = vmatpush1.bf16.msra.mxu1 %v14809_v28  ;;  %v14856_v18 = vld [vmem:[#allocation4 + $0x684] ss:$20 sps:$4 sm:$0xff]  }
 0x162   : > { %2389 = vmatprep.subr.bf16.mxu0 %v14814_v6  ;;  %2470 = vmatprep.subr.bf16.mxu1 %v14817_v35  ;;  %v14859_v28 = vld [vmem:[#allocation4 + $0x470] ss:$20 sps:$4 sm:$0xff]   ;;  %v1977_v6 = vrot.slane %v16846_v15, 1  ;;  %v14866_v15 = vld [vmem:[#allocation4 + $0x6d8] ss:$20 sps:$4 sm:$0xff]  }
 0x163   : > { %12946 = vmatprep.mubr.msk.bf16.mxu0 %vm1007_vm1, %v16691_v47  ;;  %12957 = vmatprep.mubr.msk.bf16.mxu1 %vm1007_vm1, %v16691_v47  ;;  %v14862_v35 = vld [vmem:[#allocation4 + $0x6b0] ss:$20 sps:$4 sm:$0xff]  }
 0x165   : > { %2390 = vmatpush1.bf16.msra.mxu0 %v14812_v20  ;;  %2471 = vmatpush1.bf16.msra.mxu1 %v14815_v22  ;;  %v14860_v20 = vld [vmem:[#allocation4 + $0x6ac] ss:$20 sps:$4 sm:$0xff]  }
 0x166   : > { %2391 = vmatprep.subr.bf16.mxu0 %v14820_v23  ;;  %2472 = vmatprep.subr.bf16.mxu1 %v14823_v24  ;;  %v14863_v22 = vld [vmem:[#allocation4 + $0x498] ss:$20 sps:$4 sm:$0xff]   ;;  %v16917_v23 = vsel %vm1970_vm3, %v1972_v60, %v1977_v6  ;;  %v16923_v24 = vsel %vm1970_vm3, %v1979_v1, %v1983_v63  ;;  %v14900_v1 = vld [vmem:[#allocation4 + $0x83c] ss:$20 sps:$4 sm:$0xff]  }
 0x167   : > { %v14898_v60 = vld [vmem:[#allocation4 + $0x818] ss:$20 sps:$4 sm:$0xff]  }
 0x168   : > { %1727 = vmatmul.mubr.bf16.gmra.mrb[40].mxu0 %v16701_v57  ;;  %1881 = vmatmul.mubr.bf16.gmra.mrb[40].mxu1 %v16701_v57 }
 0x169   : > { %2392 = vmatpush1.bf16.msra.mxu0 %v14818_v31  ;;  %2473 = vmatpush1.bf16.msra.mxu1 %v14821_v32  ;;  %v14868_v31 = vld [vmem:[#allocation4 + $0x6fc] ss:$20 sps:$4 sm:$0xff]  }
 0x16a   : > { %2393 = vmatprep.subr.bf16.mxu0 %v14826_v33  ;;  %2474 = vmatprep.subr.bf16.mxu1 %v14829_v34  ;;  %v14871_v32 = vld [vmem:[#allocation4 + $0x4e8] ss:$20 sps:$4 sm:$0xff]   ;;  %v16932_v33 = vrot.slane %v16691_v47, 1  ;;  %v16935_v34 = vsel %vm1970_vm3, %v1977_v6, %v1981_v27  ;;  %v14872_v47 = vld [vmem:[#allocation4 + $0x724] ss:$20 sps:$4 sm:$0xff]  }
 0x16b   : > { %13029 = vmatprep.mubr.msk.bf16.mxu0 %vm1007_vm1, %v16873_v36  ;;  %13035 = vmatprep.mubr.msk.bf16.mxu1 %vm1007_vm1, %v16873_v36 }
 0x16d   : > { %2394 = vmatpush1.bf16.msra.mxu0 %v14824_v42  ;;  %2475 = vmatpush1.bf16.msra.mxu1 %v14827_v37  ;;  %v16942_v42 = vsel %vm1970_vm3, %v1983_v63, %v16932_v33  ;;  %v14875_v37 = vld [vmem:[#allocation4 + $0x510] ss:$20 sps:$4 sm:$0xff]   ;;  %v14909_v63 = vld [vmem:[#allocation4 + $0x654] ss:$20 sps:$4 sm:$0xff]  }
 0x16e   : > { %2395 = vmatprep.subr.bf16.mxu0 %v14832_v41  ;;  %2476 = vmatprep.subr.bf16.mxu1 %v14835_v45  ;;  %v16945_v41 = vrot.slane %v16701_v57, 1  ;;  %v14878_v45 = vld [vmem:[#allocation4 + $0x750] ss:$20 sps:$4 sm:$0xff]   ;;  %v14882_v57 = vld [vmem:[#allocation4 + $0x778] ss:$20 sps:$4 sm:$0xff]  }
 0x171   : > { %2396 = vmatpush1.bf16.msra.mxu0 %v14830_v46  ;;  %2477 = vmatpush1.bf16.msra.mxu1 %v14833_v48  ;;  %v16954_v46 = vsel %vm1970_vm3, %v1981_v27, %v16945_v41  ;;  %v14876_v48 = vld [vmem:[#allocation4 + $0x74c] ss:$20 sps:$4 sm:$0xff]   ;;  %v14914_v27 = vld [vmem:[#allocation4 + $0x67c] ss:$20 sps:$4 sm:$0xff]  }
 0x172   : > { %2397 = vmatprep.subr.bf16.mxu0 %v14838_v59  ;;  %2478 = vmatprep.subr.bf16.mxu1 %v14841_v50  ;;  %v14879_v59 = vld [vmem:[#allocation4 + $0x538] ss:$20 sps:$4 sm:$0xff]   ;;  %v14880_v50 = vld [vmem:[#allocation4 + $0x774] ss:$20 sps:$4 sm:$0xff]  }
 0x175   : > { %2398 = vmatpush1.bf16.msra.mxu0 %v14836_v54  ;;  %2479 = vmatpush1.bf16.msra.mxu1 %v14839_v55  ;;  %v14883_v54 = vld [vmem:[#allocation4 + $0x560] ss:$20 sps:$4 sm:$0xff]  }
 0x176   : > { %2399 = vmatprep.subr.bf16.mxu0 %v14844_v61  ;;  %2480 = vmatprep.subr.bf16.mxu1 %v14847_v62  ;;  %v14886_v55 = vld [vmem:[#allocation4 + $0x7a0] ss:$20 sps:$4 sm:$0xff]   ;;  %v14884_v61 = vld [vmem:[#allocation4 + $0x79c] ss:$20 sps:$4 sm:$0xff]  }
 0x177   : > { %v14887_v62 = vld [vmem:[#allocation4 + $0x588] ss:$20 sps:$4 sm:$0xff]  }
 0x179   : > { %2400 = vmatpush1.bf16.msra.mxu0 %v14842_v2  ;;  %2481 = vmatpush1.bf16.msra.mxu1 %v14845_v3  ;;  %v14888_v2 = vld [vmem:[#allocation4 + $0x7c4] ss:$20 sps:$4 sm:$0xff]   ;;  %v16966_v3 = vld [vmem:[%s16610_s28 + $0x4c] ss:$8 sps:$4 sm:$0xff]  }
 0x17a   : > { %13028 = vmatprep.subr.msk.bf16.mxu0 %vm1023_vm2, %v16879_v21  ;;  %13034 = vmatprep.subr.msk.bf16.mxu1 %vm1023_vm2, %v16881_v51  ;;  %v15212_v51 = vld [vmem:[#allocation4 + $0xdc4] ss:$20 sps:$4 sm:$0xff]  }
 0x17d   : > { %2402 = vmatpush1.bf16.msra.mxu0 %v16890_v44  ;;  %2483 = vmatpush1.bf16.msra.mxu1 %v16893_v13 }
 0x17e   : > { %2537 = vmatprep.subr.bf16.mxu0 %v20465_v25  ;;  %3240 = vmatprep.subr.bf16.mxu1 %v14854_v14  ;;  %v14896_v14 = vld [vmem:[#allocation4 + $0x814] ss:$20 sps:$4 sm:$0xff]  }
 0x180   : > { %2408 = vmatmul.mubr.bf16.vlgmr.msra.gmra.mrb[0].mxu0 %v16899_v52  ;;  %2489 = vmatmul.mubr.bf16.vlgmr.msra.gmra.mrb[0].mxu1 %v16899_v52 }
 0x181   : > { %2538 = vmatpush1.bf16.msra.mxu0 %v14855_v16  ;;  %3241 = vmatpush1.bf16.msra.mxu1 %v14852_v49  ;;  %v14899_v49 = vld [vmem:[#allocation4 + $0x600] ss:$20 sps:$4 sm:$0xff]  }
 0x182   : > { %2539 = vmatprep.subr.bf16.mxu0 %v20465_v25  ;;  %3242 = vmatprep.subr.bf16.mxu1 %v14858_v5  ;;  %v14902_v16 = vld [vmem:[#allocation4 + $0x840] ss:$20 sps:$4 sm:$0xff]   ;;  %v2734_v5 = vld [vmem:[#allocation4 + $0x864] sm:$0xff] }
 0x183   : > { %13030 = vmatprep.mubr.msk.bf16.mxu0 %vm1007_vm1, %v16907_v43  ;;  %13036 = vmatprep.mubr.msk.bf16.mxu1 %vm1007_vm1, %v16907_v43  ;;  %v13122_v6 = vcombine.low %v2734_v5, %v2734_v5 }
 0x185   : > { %2540 = vmatpush1.bf16.msra.mxu0 %v14859_v28  ;;  %3243 = vmatpush1.bf16.msra.mxu1 %v14856_v18  ;;  %v16978_v18 = vcombine.high %v2734_v5, %v2734_v5  ;;  %v14905_v28 = vld [vmem:[#allocation4 + $0x650] ss:$0 sps:$4 sm:$0xff]  }
 0x186   : > { %2541 = vmatprep.subr.bf16.mxu0 %v20465_v25  ;;  %3244 = vmatprep.subr.bf16.mxu1 %v14862_v35  ;;  %v16984_v35 = vsel %vm1023_vm2, %v14905_v28, 0  ;;  %v14950_v5 = vld [vmem:[#allocation4 + $0x77c] ss:$20 sps:$4 sm:$0xff]  }
 0x187   : > { %20664 = vst [vmem:[#allocation22_spill] sm:$0xff] %v16978_v18  ;;  %20665 = vst [vmem:[#allocation23_spill] sm:$0xff] %v16984_v35 }
 0x188   : > { %2418 = vmatmul.mubr.bf16.gmra.mrb[4].mxu0 %v16917_v23  ;;  %2499 = vmatmul.mubr.bf16.gmra.mrb[4].mxu1 %v16917_v23 }
 0x189   : > { %2542 = vmatpush1.bf16.msra.mxu0 %v14863_v22  ;;  %3245 = vmatpush1.bf16.msra.mxu1 %v14860_v20  ;;  %v16987_v20 = vsel %vm1023_vm2, %v13122_v6, 0  ;;  %v14911_v22 = vld [vmem:[#allocation4 + $0x658] ss:$20 sps:$4 sm:$0xff]  }
 0x18a   : > { %2543 = vmatprep.subr.bf16.mxu0 %v20465_v25  ;;  %3246 = vmatprep.subr.bf16.mxu1 %v14866_v15  ;;  %20666 = vst [vmem:[#allocation24_spill] sm:$0xff] %v16987_v20  ;;  %v16990_v15 = vld [vmem:[%s16610_s28 + $0x48] ss:$8 sps:$4 sm:$0xff]   ;;  %v14954_v6 = vld [vmem:[#allocation4 + $0x798] ss:$20 sps:$4 sm:$0xff]  }
 0x18b   : > { %13031 = vmatprep.mubr.msk.bf16.mxu0 %vm1007_vm1, %v16923_v24  ;;  %13037 = vmatprep.mubr.msk.bf16.mxu1 %vm1007_vm1, %v16923_v24 }
 0x18d   : > { %2544 = vmatpush1.bf16.msra.mxu0 %v14867_v17  ;;  %3247 = vmatpush1.bf16.msra.mxu1 %v14864_v26  ;;  %v14913_v26 = vld [vmem:[#allocation4 + $0x664] ss:$20 sps:$4 sm:$0xff]   ;;  %v14916_v17 = vld [vmem:[#allocation4 + $0x680] ss:$20 sps:$4 sm:$0xff]  }
 0x18e   : > { %2545 = vmatprep.subr.bf16.mxu0 %v20465_v25  ;;  %3248 = vmatprep.subr.bf16.mxu1 %v14870_v29  ;;  %v14917_v29 = vld [vmem:[#allocation4 + $0x68c] ss:$20 sps:$4 sm:$0xff]  }
 0x190   : > { %2428 = vmatmul.mubr.bf16.gmra.mrb[8].mxu0 %v16935_v34  ;;  %2509 = vmatmul.mubr.bf16.gmra.mrb[8].mxu1 %v16935_v34 }
 0x191   : > { %2546 = vmatpush1.bf16.msra.mxu0 %v14871_v32  ;;  %3249 = vmatpush1.bf16.msra.mxu1 %v14868_v31  ;;  %v16996_v31 = vld [vmem:[%s16610_s28 + $0x5c] ss:$8 sps:$4 sm:$0xff]  }
 0x192   : > { %2547 = vmatprep.subr.bf16.mxu0 %v20465_v25  ;;  %3250 = vmatprep.subr.bf16.mxu1 %v14874_v19  ;;  %v14922_v32 = vld [vmem:[#allocation4 + $0x6a8] ss:$20 sps:$4 sm:$0xff]   ;;  %v14920_v19 = vld [vmem:[#allocation4 + $0x6a4] ss:$20 sps:$4 sm:$0xff]  }
 0x193   : > { %13032 = vmatprep.mubr.msk.bf16.mxu0 %vm1007_vm1, %v16942_v42  ;;  %13038 = vmatprep.mubr.msk.bf16.mxu1 %vm1007_vm1, %v16942_v42 }
 0x195   : > { %2548 = vmatpush1.bf16.msra.mxu0 %v14875_v37  ;;  %3251 = vmatpush1.bf16.msra.mxu1 %v14872_v47  ;;  %v17006_v47 = vld [vmem:[%s16610_s28 + $0x58] ss:$8 sps:$4 sm:$0xff]   ;;  %v14924_v37 = vld [vmem:[#allocation4 + $0x6b4] ss:$20 sps:$4 sm:$0xff]  }
 0x196   : > { %2549 = vmatprep.subr.bf16.mxu0 %v20465_v25  ;;  %3252 = vmatprep.subr.bf16.mxu1 %v14878_v45  ;;  %v14925_v45 = vld [vmem:[#allocation4 + $0x6cc] ss:$20 sps:$4 sm:$0xff]  }
 0x198   : > { %2438 = vmatmul.mubr.bf16.gmra.mrb[12].mxu0 %v16954_v46  ;;  %2519 = vmatmul.mubr.bf16.gmra.mrb[12].mxu1 %v16954_v46 }
 0x199   : > { %2550 = vmatpush1.bf16.msra.mxu0 %v14879_v59  ;;  %3253 = vmatpush1.bf16.msra.mxu1 %v14876_v48  ;;  %v14928_v48 = vld [vmem:[#allocation4 + $0x6dc] ss:$20 sps:$4 sm:$0xff]   ;;  %v17010_v59 = vld [vmem:[%s16610_s28 + $0x6c] ss:$8 sps:$4 sm:$0xff]  }
 0x19a   : > { %2551 = vmatprep.subr.bf16.mxu0 %v20465_v25  ;;  %3254 = vmatprep.subr.bf16.mxu1 %v14882_v57  ;;  %v17016_v57 = vld [vmem:[%s16610_s28 + $0x68] ss:$8 sps:$4 sm:$0xff]  }
 0x19b   : > { %13033 = vmatprep.mubr.msk.bf16.mxu0 %vm1007_vm1, %v16932_v33  ;;  %13039 = vmatprep.mubr.msk.bf16.mxu1 %vm1007_vm1, %v16932_v33 }
 0x19d   : > { %2552 = vmatpush1.bf16.msra.mxu0 %v14883_v54  ;;  %3255 = vmatpush1.bf16.msra.mxu1 %v14880_v50  ;;  %v14931_v50 = vld [vmem:[#allocation4 + $0x6f4] ss:$20 sps:$4 sm:$0xff]   ;;  %v14935_v54 = vld [vmem:[#allocation4 + $0x704] ss:$20 sps:$4 sm:$0xff]  }
 0x19e   : > { %2553 = vmatprep.subr.bf16.mxu0 %v20465_v25  ;;  %3256 = vmatprep.subr.bf16.mxu1 %v14886_v55  ;;  %v14936_v55 = vld [vmem:[#allocation4 + $0x71c] ss:$20 sps:$4 sm:$0xff]  }
 0x1a0   : > { %2448 = vmatmul.mubr.bf16.gmra.mrb[44].mxu0 %v16945_v41  ;;  %2529 = vmatmul.mubr.bf16.gmra.mrb[44].mxu1 %v16945_v41 }
 0x1a1   : > { %2554 = vmatpush1.bf16.msra.mxu0 %v14887_v62  ;;  %3257 = vmatpush1.bf16.msra.mxu1 %v14884_v61  ;;  %v14939_v61 = vld [vmem:[#allocation4 + $0x72c] ss:$20 sps:$4 sm:$0xff]   ;;  %v17024_v62 = vld [vmem:[%s16610_s28 + $0x7c] ss:$8 sps:$4 sm:$0xff]  }
 0x1a2   : > { %2555 = vmatprep.subr.bf16.mxu0 %v20465_v25  ;;  %3258 = vmatprep.subr.bf16.mxu1 %v14890_v0  ;;  %v17030_v0 = vld [vmem:[%s16610_s28 + $0x78] ss:$8 sps:$4 sm:$0xff]  }
 0x1a3   : > { %13040 = vmatprep.mubr.msk.bf16.mxu0 %vm1007_vm1, %v16873_v36  ;;  %13132 = vmatprep.mubr.msk.bf16.mxu1 %vm1007_vm1, %v16966_v3  ;;  %v14903_v36 = vld [vmem:[#allocation4 + $0x628] ss:$20 sps:$4 sm:$0xff]  }
 0x1a5   : > { %2556 = vmatpush1.bf16.msra.mxu0 %v14891_v4  ;;  %3259 = vmatpush1.bf16.msra.mxu1 %v14888_v2  ;;  %v12751_v2 = vld [vmem:[%s16610_s28 + $0x88] sm:$0xff]  ;;  %v14942_v4 = vld [vmem:[#allocation4 + $0x744] ss:$20 sps:$4 sm:$0xff]  }
 0x1a6   : > { %2557 = vmatprep.subr.bf16.mxu0 %v20465_v25  ;;  %3260 = vmatprep.subr.bf16.mxu1 %v14894_v11  ;;  %v14946_v11 = vld [vmem:[#allocation4 + $0x754] ss:$20 sps:$4 sm:$0xff]   ;;  %v17046_v28 = vcombine.high %v12751_v2, %v12751_v2 }
 0x1a8   : > { %20667 = vst [vmem:[#allocation25_spill] sm:$0xff] %v17046_v28 }
 0x1a9   : > { %2558 = vmatpush1.bf16.msra.mxu0 %v14895_v30  ;;  %3261 = vmatpush1.bf16.msra.mxu1 %v14892_v12 }
 0x1aa   : > { %2559 = vmatprep.subr.bf16.mxu0 %v20465_v25  ;;  %3262 = vmatprep.subr.bf16.mxu1 %v14898_v60 }
 0x1ad   : > { %2560 = vmatpush1.bf16.msra.mxu0 %v14899_v49  ;;  %3263 = vmatpush1.bf16.msra.mxu1 %v14896_v14 }
 0x1ae   : > { %2561 = vmatprep.subr.bf16.mxu0 %v20465_v25  ;;  %3264 = vmatprep.subr.bf16.mxu1 %v14902_v16 }
 0x1b1   : > { %2562 = vmatpush1.bf16.msra.mxu0 %v14903_v36  ;;  %3265 = vmatpush1.bf16.msra.mxu1 %v14900_v1  ;;  %v14947_v36 = vld [vmem:[#allocation4 + $0x76c] ss:$20 sps:$4 sm:$0xff]  }
 0x1b2   : > { %2563 = vmatprep.subr.bf16.mxu0 %v20465_v25  ;;  %13131 = vmatprep.subr.msk.bf16.mxu1 %vm1023_vm2, %v16978_v18 }
 0x1b5   : > { %2564 = vmatpush1.bf16.msra.mxu0 %v16984_v35  ;;  %3267 = vmatpush1.bf16.msra.mxu1 %v16987_v20  ;;  %v15167_v35 = vld [vmem:[#allocation4 + $0xca4] ss:$0 sps:$4 sm:$0xff]  }
 0x1b6   : > { %3159 = vmatprep.subr.bf16.mxu0 %v14911_v22  ;;  %3321 = vmatprep.subr.bf16.mxu1 %v20465_v25  ;;  %v14952_v22 = vld [vmem:[#allocation4 + $0x794] ss:$20 sps:$4 sm:$0xff]  }
 0x1b8   : > { %2570 = vmatmul.mubr.bf16.vlgmr.msra.gmra.mrb[48].mxu0 %v16899_v52  ;;  %3273 = vmatmul.mubr.bf16.vlgmr.msra.gmra.mrb[0].mxu1 %v16990_v15  ;;  %v14927_v52 = vld [vmem:[#allocation4 + $0x6d0] ss:$20 sps:$4 sm:$0xff]  }
 0x1b9   : > { %3160 = vmatpush1.bf16.msra.mxu0 %v14909_v63  ;;  %3322 = vmatpush1.bf16.msra.mxu1 %v14913_v26  ;;  %v14956_v63 = vld [vmem:[#allocation4 + $0x7a4] ss:$20 sps:$4 sm:$0xff]   ;;  %v17055_v26 = vcombine.low %v12751_v2, %v12751_v2 }
 0x1ba   : > { %3161 = vmatprep.subr.bf16.mxu0 %v14916_v17  ;;  %3323 = vmatprep.subr.bf16.mxu1 %v20465_v25  ;;  %v14957_v17 = vld [vmem:[#allocation4 + $0x7bc] ss:$20 sps:$4 sm:$0xff]  }
 0x1bb   : > { %13041 = vmatprep.mubr.msk.bf16.mxu0 %vm1007_vm1, %v16907_v43  ;;  %13133 = vmatprep.mubr.msk.bf16.mxu1 %vm1007_vm1, %v16996_v31  ;;  %v14933_v43 = vld [vmem:[#allocation4 + $0x6f8] ss:$20 sps:$4 sm:$0xff]   ;;  %20668 = vst [vmem:[#allocation26_spill] sm:$0xff] %v17055_v26 }
 0x1bd   : > { %3162 = vmatpush1.bf16.msra.mxu0 %v14914_v27  ;;  %3324 = vmatpush1.bf16.msra.mxu1 %v14917_v29  ;;  %v14963_v27 = vld [vmem:[#allocation4 + $0x7e8] ss:$20 sps:$4 sm:$0xff]   ;;  %v14961_v29 = vld [vmem:[#allocation4 + $0x7e4] ss:$20 sps:$4 sm:$0xff]  }
 0x1be   : > { %3163 = vmatprep.subr.bf16.mxu0 %v14922_v32  ;;  %3325 = vmatprep.subr.bf16.mxu1 %v20465_v25  ;;  %v14964_v32 = vld [vmem:[#allocation4 + $0x7f4] ss:$20 sps:$4 sm:$0xff]  }
 0x1c0   : > { %2578 = vmatmul.mubr.bf16.gmra.mrb[52].mxu0 %v16917_v23  ;;  %3283 = vmatmul.mubr.bf16.gmra.mrb[4].mxu1 %v17006_v47  ;;  %v14938_v23 = vld [vmem:[#allocation4 + $0x720] ss:$20 sps:$4 sm:$0xff]  }
 0x1c1   : > { %3164 = vmatpush1.bf16.msra.mxu0 %v14920_v19  ;;  %3326 = vmatpush1.bf16.msra.mxu1 %v14924_v37  ;;  %v14965_v19 = vld [vmem:[#allocation4 + $0x80c] ss:$20 sps:$4 sm:$0xff]   ;;  %v14968_v37 = vld [vmem:[#allocation4 + $0x81c] ss:$20 sps:$4 sm:$0xff]  }
 0x1c2   : > { %3165 = vmatprep.subr.bf16.mxu0 %v14927_v52  ;;  %3327 = vmatprep.subr.bf16.mxu1 %v20465_v25  ;;  %v14971_v52 = vld [vmem:[#allocation4 + $0x838] ss:$20 sps:$4 sm:$0xff]  }
 0x1c3   : > { %13042 = vmatprep.mubr.msk.bf16.mxu0 %vm1007_vm1, %v16923_v24  ;;  %13134 = vmatprep.mubr.msk.bf16.mxu1 %vm1007_vm1, %v17010_v59  ;;  %v14944_v24 = vld [vmem:[#allocation4 + $0x748] ss:$20 sps:$4 sm:$0xff]  }
 0x1c5   : > { %3166 = vmatpush1.bf16.msra.mxu0 %v14925_v45  ;;  %3328 = vmatpush1.bf16.msra.mxu1 %v14928_v48  ;;  %v2733_v45 = vld [vmem:[#allocation4 + $0x85c] sm:$0xff] }
 0x1c6   : > { %3167 = vmatprep.subr.bf16.mxu0 %v14933_v43  ;;  %3329 = vmatprep.subr.bf16.mxu1 %v20465_v25  ;;  %v14969_v43 = vld [vmem:[#allocation4 + $0x834] ss:$20 sps:$4 sm:$0xff]   ;;  %v13120_v2 = vcombine.low %v2733_v45, %v2733_v45 }
 0x1c8   : > { %2586 = vmatmul.mubr.bf16.gmra.mrb[56].mxu0 %v16935_v34  ;;  %3293 = vmatmul.mubr.bf16.gmra.mrb[8].mxu1 %v17016_v57 }
 0x1c9   : > { %3168 = vmatpush1.bf16.msra.mxu0 %v14931_v50  ;;  %3330 = vmatpush1.bf16.msra.mxu1 %v14935_v54  ;;  %v14972_v50 = vld [vmem:[#allocation4 + $0x844] ss:$20 sps:$4 sm:$0xff]   ;;  %v14975_v54 = vld [vmem:[#allocation4 + $0x86c] ss:$0 sps:$4 sm:$0xff]  }
 0x1ca   : > { %3169 = vmatprep.subr.bf16.mxu0 %v14938_v23  ;;  %3331 = vmatprep.subr.bf16.mxu1 %v20465_v25 }
 0x1cb   : > { %13043 = vmatprep.mubr.msk.bf16.mxu0 %vm1007_vm1, %v16942_v42  ;;  %13135 = vmatprep.mubr.msk.bf16.mxu1 %vm1007_vm1, %v17024_v62  ;;  %v17037_v34 = vpop.f32.mrb[16].mxu0  ;;  %v17039_v12 = vpop.f32.mrb[16].mxu1  ;;  %v14949_v42 = vld [vmem:[#allocation4 + $0x770] ss:$20 sps:$4 sm:$0xff]  }
 0x1cc   : > { %v17041_v30 = vpop.f32.mrb[17].mxu0  ;;  %v17043_v60 = vpop.f32.mrb[17].mxu1 }
 0x1cd   : > { %3170 = vmatpush1.bf16.msra.mxu0 %v14936_v55  ;;  %3332 = vmatpush1.bf16.msra.mxu1 %v14939_v61  ;;  %v1117_v14 = vpop.f32.mrb[18].mxu0  ;;  %v1198_v49 = vpop.f32.mrb[18].mxu1 }
 0x1ce   : > { %3171 = vmatprep.subr.bf16.mxu0 %v14944_v24  ;;  %3333 = vmatprep.subr.bf16.mxu1 %v20465_v25  ;;  %v1118_v16 = vpop.f32.mrb[19].mxu0  ;;  %v1199_v1 = vpop.f32.mrb[19].mxu1  ;;  %v17072_v24 = vcombine.high %v2733_v45, %v2733_v45  ;;  %v14981_v14 = vld [vmem:[#allocation4 + $0x87c] ss:$20 sps:$4 sm:$0xff]   ;;  %v17081_v49 = vsel %vm1023_vm2, %v13120_v2, 0 }
 0x1cf   : > { %20671 = vst [vmem:[#allocation29_spill] sm:$0xff] %v17081_v49  ;;  %v14979_v16 = vld [vmem:[#allocation4 + $0x878] ss:$20 sps:$4 sm:$0xff]   ;;  %v14999_v45 = vld [vmem:[#allocation4 + $0x8f4] ss:$20 sps:$4 sm:$0xff]  }
 0x1d0   : > { %2594 = vmatmul.mubr.bf16.gmra.mrb[60].mxu0 %v16954_v46  ;;  %3303 = vmatmul.mubr.bf16.gmra.mrb[12].mxu1 %v17030_v0  ;;  %v14959_v46 = vld [vmem:[#allocation4 + $0x7c0] ss:$20 sps:$4 sm:$0xff]   ;;  %20669 = vst [vmem:[#allocation27_spill] sm:$0xff] %v17072_v24  ;;  %v15000_v2 = vld [vmem:[#allocation4 + $0x910] ss:$20 sps:$4 sm:$0xff]  }
 0x1d1   : > { %3172 = vmatpush1.bf16.msra.mxu0 %v14942_v4  ;;  %3334 = vmatpush1.bf16.msra.mxu1 %v14946_v11  ;;  %v17075_v4 = vsel %vm1023_vm2, %v14975_v54, 0  ;;  %v14978_v11 = vld [vmem:[#allocation4 + $0x874] ss:$20 sps:$4 sm:$0xff]   ;;  %v14997_v54 = vld [vmem:[#allocation4 + $0x8f0] ss:$20 sps:$4 sm:$0xff]  }
 0x1d2   : > { %3173 = vmatprep.subr.bf16.mxu0 %v14949_v42  ;;  %3335 = vmatprep.subr.bf16.mxu1 %v20465_v25  ;;  %20670 = vst [vmem:[#allocation28_spill] sm:$0xff] %v17075_v4  ;;  %v14976_v42 = vld [vmem:[#allocation4 + $0x870] ss:$20 sps:$4 sm:$0xff]  }
 0x1d3   : > { %13044 = vmatprep.mubr.msk.bf16.mxu0 %vm1007_vm1, %v16932_v33  ;;  %13136 = vmatprep.mubr.msk.bf16.mxu1 %vm1007_vm1, %v17046_v28  ;;  %v14960_v33 = vld [vmem:[#allocation4 + $0x7cc] ss:$20 sps:$4 sm:$0xff]  }
 0x1d5   : > { %3174 = vmatpush1.bf16.msra.mxu0 %v14947_v36  ;;  %3336 = vmatpush1.bf16.msra.mxu1 %v14950_v5  ;;  %v14984_v36 = vld [vmem:[#allocation4 + $0x89c] ss:$20 sps:$4 sm:$0xff]  }
 0x1d6   : > { %3175 = vmatprep.subr.bf16.mxu0 %v14954_v6  ;;  %3337 = vmatprep.subr.bf16.mxu1 %v20465_v25 }
 0x1d8   : > { %2602 = vmatmul.mubr.bf16.gmra.mrb[64].mxu0 %v16945_v41  ;;  %3313 = vmatmul.mubr.bf16.gmra.mrb[48].mxu1 %v17055_v26  ;;  %v14967_v41 = vld [vmem:[#allocation4 + $0x810] ss:$20 sps:$4 sm:$0xff]  }
 0x1d9   : > { %3176 = vmatpush1.bf16.msra.mxu0 %v14952_v22  ;;  %3338 = vmatpush1.bf16.msra.mxu1 %v14956_v63  ;;  %v14987_v22 = vld [vmem:[#allocation4 + $0x8a4] ss:$20 sps:$4 sm:$0xff]  }
 0x1da   : > { %3177 = vmatprep.subr.bf16.mxu0 %v14959_v46  ;;  %3339 = vmatprep.subr.bf16.mxu1 %v20465_v25  ;;  %v14982_v46 = vld [vmem:[#allocation4 + $0x898] ss:$20 sps:$4 sm:$0xff]  }
 0x1db   : > { %13126 = vmatprep.mubr.msk.bf16.mxu0 %vm1007_vm1, %v16966_v3  ;;  %13137 = vmatprep.mubr.msk.bf16.mxu1 %vm1007_vm1, %v16966_v3 }
 0x1dd   : > { %3178 = vmatpush1.bf16.msra.mxu0 %v14957_v17  ;;  %3340 = vmatpush1.bf16.msra.mxu1 %v14960_v33  ;;  %v14985_v17 = vld [vmem:[#allocation4 + $0x8a0] ss:$20 sps:$4 sm:$0xff]   ;;  %v14990_v33 = vld [vmem:[#allocation4 + $0x8c4] ss:$20 sps:$4 sm:$0xff]  }
 0x1de   : > { %3179 = vmatprep.subr.bf16.mxu0 %v14963_v27  ;;  %3341 = vmatprep.subr.bf16.mxu1 %v20465_v25  ;;  %v14993_v27 = vld [vmem:[#allocation4 + $0x8cc] ss:$20 sps:$4 sm:$0xff]  }
 0x1e1   : > { %3180 = vmatpush1.bf16.msra.mxu0 %v14961_v29  ;;  %3342 = vmatpush1.bf16.msra.mxu1 %v14964_v32  ;;  %v14988_v29 = vld [vmem:[#allocation4 + $0x8c0] ss:$20 sps:$4 sm:$0xff]   ;;  %v14991_v32 = vld [vmem:[#allocation4 + $0x8c8] ss:$20 sps:$4 sm:$0xff]  }
 0x1e2   : > { %3181 = vmatprep.subr.bf16.mxu0 %v14967_v41  ;;  %3343 = vmatprep.subr.bf16.mxu1 %v20465_v25 }
 0x1e3   : > { %v17067_v48 = vpop.f32.mrb[20].mxu0 }
 0x1e4   : > { %v1237_v23 = vpop.f32.mrb[21].mxu0 }
 0x1e5   : > { %v17069_v55 = vpop.f32.mrb[22].mxu0  ;;  %3182 = vmatpush1.bf16.msra.mxu0 %v14965_v19  ;;  %3344 = vmatpush1.bf16.msra.mxu1 %v14968_v37  ;;  %v14996_v19 = vld [vmem:[#allocation4 + $0x8ec] ss:$20 sps:$4 sm:$0xff]   ;;  %v15002_v23 = vld [vmem:[#allocation4 + $0x914] ss:$20 sps:$4 sm:$0xff]  }
 0x1e6   : > { %v1240_v61 = vpop.f32.mrb[23].mxu0  ;;  %3183 = vmatprep.subr.bf16.mxu0 %v14971_v52  ;;  %3345 = vmatprep.subr.bf16.mxu1 %v20465_v25 }
 0x1e7   : > { %v15005_v61 = vld [vmem:[#allocation4 + $0x91c] ss:$20 sps:$4 sm:$0xff]  }
 0x1e9   : > { %3184 = vmatpush1.bf16.msra.mxu0 %v14969_v43  ;;  %3346 = vmatpush1.bf16.msra.mxu1 %v14972_v50  ;;  %v14994_v50 = vld [vmem:[#allocation4 + $0x8e8] ss:$20 sps:$4 sm:$0xff]  }
 0x1ea   : > { %13125 = vmatprep.subr.msk.bf16.mxu0 %vm1023_vm2, %v17072_v24  ;;  %3347 = vmatprep.subr.bf16.mxu1 %v20465_v25 }
 0x1eb   : > { %v17083_v1 = vpop.f32.mrb[24].mxu0 }
 0x1ec   : > { %v1245_v5 = vpop.f32.mrb[25].mxu0 }
 0x1ed   : > { %3186 = vmatpush1.bf16.msra.mxu0 %v17081_v49  ;;  %3348 = vmatpush1.bf16.msra.mxu1 %v17075_v4  ;;  %v17087_v6 = vpop.f32.mrb[26].mxu0  ;;  %v15011_v5 = vld [vmem:[#allocation4 + $0x944] ss:$20 sps:$4 sm:$0xff]   ;;  %v17209_v4 = vld [vmem:[%s16610_s28 + $0x68] ss:$8 sps:$4 sm:$0xff]   ;;  %v3576_v49 = vshll.u32 %v17055_v26, 16 }
 0x1ee   : > { %3979 = vmatprep.subr.bf16.mxu0 %v14978_v11  ;;  %4060 = vmatprep.subr.bf16.mxu1 %v14981_v14  ;;  %v1248_v63 = vpop.f32.mrb[27].mxu0  ;;  %v15003_v11 = vld [vmem:[#allocation4 + $0x918] ss:$20 sps:$4 sm:$0xff]  }
 0x1ef   : > { %v15006_v63 = vld [vmem:[#allocation4 + $0x938] ss:$20 sps:$4 sm:$0xff]  }
 0x1f0   : > { %3192 = vmatmul.mubr.bf16.vlgmr.msra.gmra.mrb[0].mxu0 %v16990_v15  ;;  %3354 = vmatmul.mubr.bf16.vlgmr.msra.gmra.mrb[52].mxu1 %v16990_v15 }
 0x1f1   : > { %3980 = vmatpush1.bf16.msra.mxu0 %v14976_v42  ;;  %4061 = vmatpush1.bf16.msra.mxu1 %v14979_v16  ;;  %v15008_v42 = vld [vmem:[#allocation4 + $0x93c] ss:$20 sps:$4 sm:$0xff]  }
 0x1f2   : > { %3981 = vmatprep.subr.bf16.mxu0 %v14984_v36  ;;  %4062 = vmatprep.subr.bf16.mxu1 %v14987_v22 }
 0x1f3   : > { %13127 = vmatprep.mubr.msk.bf16.mxu0 %vm1007_vm1, %v16996_v31  ;;  %13138 = vmatprep.mubr.msk.bf16.mxu1 %vm1007_vm1, %v16996_v31  ;;  %v17095_v41 = vpop.f32.mrb[28].mxu0 }
 0x1f4   : > { %v1253_v37 = vpop.f32.mrb[29].mxu0 }
 0x1f5   : > { %3982 = vmatpush1.bf16.msra.mxu0 %v14982_v46  ;;  %4063 = vmatpush1.bf16.msra.mxu1 %v14985_v17  ;;  %v17097_v52 = vpop.f32.mrb[30].mxu0  ;;  %v15009_v46 = vld [vmem:[#allocation4 + $0x940] ss:$20 sps:$4 sm:$0xff]   ;;  %v15014_v17 = vld [vmem:[#allocation4 + $0x964] ss:$20 sps:$4 sm:$0xff]   ;;  %v3534_v37 = vshll.u32 %v16966_v3, 16 }
 0x1f6   : > { %3983 = vmatprep.subr.bf16.mxu0 %v14990_v33  ;;  %4064 = vmatprep.subr.bf16.mxu1 %v14993_v27  ;;  %v1256_v43 = vpop.f32.mrb[31].mxu0  ;;  %v15017_v33 = vld [vmem:[#allocation4 + $0x96c] ss:$20 sps:$4 sm:$0xff]  }
 0x1f7   : > { %v3536_v25 = vrot.slane %v3534_v37, 1 }
 0x1f8   : > { %3202 = vmatmul.mubr.bf16.gmra.mrb[4].mxu0 %v17006_v47  ;;  %3362 = vmatmul.mubr.bf16.gmra.mrb[56].mxu1 %v17006_v47 }
 0x1f9   : > { %3984 = vmatpush1.bf16.msra.mxu0 %v14988_v29  ;;  %4065 = vmatpush1.bf16.msra.mxu1 %v14991_v32  ;;  %v15012_v29 = vld [vmem:[#allocation4 + $0x960] ss:$20 sps:$4 sm:$0xff]   ;;  %v15015_v32 = vld [vmem:[#allocation4 + $0x968] ss:$20 sps:$4 sm:$0xff]  }
 0x1fa   : > { %3985 = vmatprep.subr.bf16.mxu0 %v14996_v19  ;;  %4066 = vmatprep.subr.bf16.mxu1 %v14999_v45 }
 0x1fb   : > { %13128 = vmatprep.mubr.msk.bf16.mxu0 %vm1007_vm1, %v17010_v59  ;;  %13139 = vmatprep.mubr.msk.bf16.mxu1 %vm1007_vm1, %v17010_v59  ;;  %v17105_v14 = vpop.f32.mrb[32].mxu0 }
 0x1fc   : > { %v1261_v16 = vpop.f32.mrb[33].mxu0 }
 0x1fd   : > { %3986 = vmatpush1.bf16.msra.mxu0 %v14994_v50  ;;  %4067 = vmatpush1.bf16.msra.mxu1 %v14997_v54  ;;  %v17107_v36 = vpop.f32.mrb[34].mxu0  ;;  %v15020_v54 = vld [vmem:[#allocation4 + $0x98c] ss:$20 sps:$4 sm:$0xff]  }
 0x1fe   : > { %3987 = vmatprep.subr.bf16.mxu0 %v15002_v23  ;;  %4068 = vmatprep.subr.bf16.mxu1 %v15005_v61  ;;  %v1264_v22 = vpop.f32.mrb[35].mxu0  ;;  %v15023_v23 = vld [vmem:[#allocation4 + $0x994] ss:$20 sps:$4 sm:$0xff]  }
 0x1ff   : > { %v15021_v22 = vld [vmem:[#allocation4 + $0x990] ss:$20 sps:$4 sm:$0xff]  }
 0x200   : > { %3212 = vmatmul.mubr.bf16.gmra.mrb[8].mxu0 %v17016_v57  ;;  %3370 = vmatmul.mubr.bf16.gmra.mrb[60].mxu1 %v17016_v57 }
 0x201   : > { %3988 = vmatpush1.bf16.msra.mxu0 %v15000_v2  ;;  %4069 = vmatpush1.bf16.msra.mxu1 %v15003_v11 }
 0x202   : > { %3989 = vmatprep.subr.bf16.mxu0 %v15008_v42  ;;  %4070 = vmatprep.subr.bf16.mxu1 %v15011_v5  ;;  %v15018_v5 = vld [vmem:[#allocation4 + $0x988] ss:$20 sps:$4 sm:$0xff]  }
 0x203   : > { %v1809_v27 = vpop.f32.mrb[20].mxu1  ;;  %13129 = vmatprep.mubr.msk.bf16.mxu0 %vm1007_vm1, %v17024_v62  ;;  %13140 = vmatprep.mubr.msk.bf16.mxu1 %vm1007_vm1, %v17024_v62  ;;  %v17115_v19 = vpop.f32.mrb[36].mxu0 }
 0x204   : > { %v1811_v45 = vpop.f32.mrb[21].mxu1  ;;  %v1269_v43 = vpop.f32.mrb[37].mxu0  ;;  %v17119_v50 = vadd.f32 %v1809_v27, %v17039_v12  ;;  %v15026_v12 = vld [vmem:[#allocation4 + $0x9b4] ss:$20 sps:$4 sm:$0xff]   ;;  %v15035_v27 = vld [vmem:[#allocation4 + $0x9e4] ss:$20 sps:$4 sm:$0xff]  }
 0x205   : > { %3990 = vmatpush1.bf16.msra.mxu0 %v15006_v63  ;;  %4071 = vmatpush1.bf16.msra.mxu1 %v15009_v46  ;;  %v1270_v61 = vpop.f32.mrb[38].mxu0  ;;  %v1813_v2 = vpop.f32.mrb[22].mxu1  ;;  %v17122_v11 = vadd.f32 %v1811_v45, %v17043_v60  ;;  %v3532_v43 = vshrl.u32 %v16966_v3, 16  ;;  %v3538_v63 = vshll.u32 %v16996_v31, 16  ;;  %v15029_v60 = vld [vmem:[#allocation4 + $0x9bc] ss:$20 sps:$4 sm:$0xff]  }
 0x206   : > { %3991 = vmatprep.subr.bf16.mxu0 %v15014_v17  ;;  %4072 = vmatprep.subr.bf16.mxu1 %v15017_v33  ;;  %v1271_v42 = vpop.f32.mrb[39].mxu0  ;;  %v1814_v16 = vpop.f32.mrb[23].mxu1  ;;  %v15024_v3 = vld [vmem:[#allocation4 + $0x9b0] ss:$20 sps:$4 sm:$0xff]   ;;  %v15027_v46 = vld [vmem:[#allocation4 + $0x9b8] ss:$20 sps:$4 sm:$0xff]  }
 0x207   : > { %v3537_v17 = vor.u32 %v3536_v25, %v3532_v43  ;;  %v17132_v33 = vrot.slane %v3538_v63, 1  ;;  %v15032_v31 = vld [vmem:[#allocation4 + $0x9dc] ss:$20 sps:$4 sm:$0xff]   ;;  %v15038_v25 = vld [vmem:[#allocation4 + $0xa04] ss:$20 sps:$4 sm:$0xff]   ;;  %v3523_v43 = vshll.u32 %v16990_v15, 16 }
 0x208   : > { %3222 = vmatmul.mubr.bf16.gmra.mrb[12].mxu0 %v17030_v0  ;;  %3378 = vmatmul.mubr.bf16.gmra.mrb[64].mxu1 %v17030_v0  ;;  %v15041_v45 = vld [vmem:[#allocation4 + $0xa0c] ss:$20 sps:$4 sm:$0xff]   ;;  %v15047_v2 = vld [vmem:[#allocation4 + $0xa34] ss:$20 sps:$4 sm:$0xff]   ;;  %v15045_v16 = vld [vmem:[#allocation4 + $0xa30] ss:$20 sps:$4 sm:$0xff]  }
 0x209   : > { %3992 = vmatpush1.bf16.msra.mxu0 %v15012_v29  ;;  %4073 = vmatpush1.bf16.msra.mxu1 %v15015_v32  ;;  %v15030_v29 = vld [vmem:[#allocation4 + $0x9d8] ss:$20 sps:$4 sm:$0xff]   ;;  %v15033_v32 = vld [vmem:[#allocation4 + $0x9e0] ss:$20 sps:$4 sm:$0xff]   ;;  %v17138_v37 = vsel %vm572_vm0, %v3537_v17, %v17132_v33  ;;  %v15042_v42 = vld [vmem:[#allocation4 + $0xa28] ss:$20 sps:$4 sm:$0xff]  }
 0x20a   : > { %3993 = vmatprep.subr.bf16.mxu0 %v15020_v54  ;;  %4074 = vmatprep.subr.bf16.mxu1 %v15023_v23  ;;  %v15036_v54 = vld [vmem:[#allocation4 + $0xa00] ss:$20 sps:$4 sm:$0xff]   ;;  %v15039_v23 = vld [vmem:[#allocation4 + $0xa08] ss:$20 sps:$4 sm:$0xff]  }
 0x20b   : > { %13130 = vmatprep.mubr.msk.bf16.mxu0 %vm1007_vm1, %v17046_v28  ;;  %13141 = vmatprep.mubr.msk.bf16.mxu1 %vm1007_vm1, %v17046_v28  ;;  %v15044_v61 = vld [vmem:[#allocation4 + $0xa2c] ss:$20 sps:$4 sm:$0xff]  }
 0x20c   : > { %v3518_v63 = vld [vmem:[#allocation4 + $0xa80] sm:$0xff] }
 0x20d   : > { %3994 = vmatpush1.bf16.msra.mxu0 %v15018_v5  ;;  %4075 = vmatpush1.bf16.msra.mxu1 %v15021_v22  ;;  %v15050_v5 = vld [vmem:[#allocation4 + $0xa54] ss:$20 sps:$4 sm:$0xff]   ;;  %v15053_v22 = vld [vmem:[#allocation4 + $0xa5c] ss:$20 sps:$4 sm:$0xff]  }
 0x20e   : > { %3995 = vmatprep.subr.bf16.mxu0 %v15026_v12  ;;  %4076 = vmatprep.subr.bf16.mxu1 %v15029_v60  ;;  %v3517_v12 = vld [vmem:[#allocation4 + $0xa78] sm:$0xff] }
 0x20f   : > { %v17152_v15 = vcombine.high %v3517_v12, %v3517_v12 }
 0x210   : > { %3232 = vmatmul.mubr.bf16.gmra.mrb[68].mxu0 %v17055_v26  ;;  %3386 = vmatmul.mubr.bf16.gmra.mrb[68].mxu1 %v17055_v26 }
 0x211   : > { %3996 = vmatpush1.bf16.msra.mxu0 %v15024_v3  ;;  %4077 = vmatpush1.bf16.msra.mxu1 %v15027_v46  ;;  %v15048_v3 = vld [vmem:[#allocation4 + $0xa50] ss:$20 sps:$4 sm:$0xff]   ;;  %v15051_v46 = vld [vmem:[#allocation4 + $0xa58] ss:$20 sps:$4 sm:$0xff]   ;;  %20672 = vst [vmem:[#allocation30_spill] sm:$0xff] %v17152_v15 }
 0x212   : > { %3997 = vmatprep.subr.bf16.mxu0 %v15032_v31  ;;  %4078 = vmatprep.subr.bf16.mxu1 %v15035_v27  ;;  %v17146_v31 = vld [vmem:[%s16610_s28 + $0x48] ss:$8 sps:$4 sm:$0xff]  }
 0x213   : > { %13213 = vmatprep.mubr.msk.bf16.mxu0 %vm1007_vm1, %v17138_v37  ;;  %13219 = vmatprep.mubr.msk.bf16.mxu1 %vm1007_vm1, %v17138_v37  ;;  %v3521_v27 = vshrl.u32 %v17146_v31, 16 }
 0x215   : > { %3998 = vmatpush1.bf16.msra.mxu0 %v15030_v29  ;;  %4079 = vmatpush1.bf16.msra.mxu1 %v15033_v32 }
 0x216   : > { %3999 = vmatprep.subr.bf16.mxu0 %v15038_v25  ;;  %4080 = vmatprep.subr.bf16.mxu1 %v15041_v45  ;;  %v17154_v25 = vcombine.high %v3518_v63, %v3518_v63  ;;  %v3525_v45 = vrot.slane %v3523_v43, 1 }
 0x218   : > { %20673 = vst [vmem:[#allocation31_spill] sm:$0xff] %v17154_v25  ;;  %v3526_v43 = vor.u32 %v3525_v45, %v3521_v27  ;;  %v3546_v27 = vshll.u32 %v17016_v57, 16  ;;  %v15064_v57 = vld [vmem:[#allocation4 + $0xac0] ss:$20 sps:$4 sm:$0xff]  }
 0x219   : > { %4000 = vmatpush1.bf16.msra.mxu0 %v15036_v54  ;;  %4081 = vmatpush1.bf16.msra.mxu1 %v15039_v23  ;;  %v3528_v54 = vshll.u32 %v17006_v47, 16 }
 0x21a   : > { %4001 = vmatprep.subr.bf16.mxu0 %v15044_v61  ;;  %4082 = vmatprep.subr.bf16.mxu1 %v15047_v2  ;;  %v13207_v61 = vcombine.low %v3517_v12, %v3517_v12  ;;  %v13209_v2 = vcombine.low %v3518_v63, %v3518_v63  ;;  %v15061_v12 = vld [vmem:[#allocation4 + $0x880] ss:$20 sps:$4 sm:$0xff]  }
 0x21b   : > { %v1850_v60 = vpop.f32.mrb[24].mxu1 }
 0x21c   : > { %v1852_v17 = vpop.f32.mrb[25].mxu1  ;;  %v17150_v29 = vadd.f32 %v1850_v60, %v17067_v48  ;;  %v3553_v48 = vshll.u32 %v17010_v59, 16  ;;  %v3530_v60 = vrot.slane %v3528_v54, 1  ;;  %v17170_v47 = vsel %vm1023_vm2, %v13207_v61, 0 }
 0x21d   : > { %v1853_v32 = vpop.f32.mrb[26].mxu1  ;;  %4002 = vmatpush1.bf16.msra.mxu0 %v15042_v42  ;;  %4083 = vmatpush1.bf16.msra.mxu1 %v15045_v16  ;;  %v17162_v42 = vld [vmem:[%s16610_s28 + $0x5c] ss:$8 sps:$4 sm:$0xff]   ;;  %20674 = vst [vmem:[#allocation32_spill] sm:$0xff] %v17170_v47  ;;  %v17173_v59 = vsel %vm1023_vm2, %v13209_v2, 0  ;;  %v20676_v2 = vmov 0  }
 0x21e   : > { %v1855_v23 = vpop.f32.mrb[27].mxu1  ;;  %4003 = vmatprep.subr.bf16.mxu0 %v15050_v5  ;;  %4084 = vmatprep.subr.bf16.mxu1 %v15053_v22  ;;  %v17158_v17 = vadd.f32 %v1853_v32, %v17069_v55  ;;  %v3550_v16 = vshrl.u32 %v17162_v42, 16  ;;  %20675 = vst [vmem:[#allocation33_spill] sm:$0xff] %v17173_v59  ;;  %v15060_v55 = vld [vmem:[#allocation4 + $0xa98] ss:$20 sps:$4 sm:$0xff]   ;;  %v3555_v63 = vrot.slane %v3553_v48, 1  ;;  %v17187_v61 = vsel %vm572_vm0, %v3526_v43, %v3530_v60 }
 0x21f   : > { %v15058_v22 = vld [vmem:[#allocation4 + $0xa94] ss:$20 sps:$4 sm:$0xff]  }
 0x220   : > { %v3552_v45 = vor.u32 %v3550_v16, %v17132_v33  ;;  %v15062_v33 = vld [vmem:[#allocation4 + $0xabc] ss:$20 sps:$4 sm:$0xff]  }
 0x221   : > { %4004 = vmatpush1.bf16.msra.mxu0 %v15048_v3  ;;  %4085 = vmatpush1.bf16.msra.mxu1 %v15051_v46  ;;  %v17176_v3 = vld [vmem:[%s16610_s28 + $0x58] ss:$8 sps:$4 sm:$0xff]   ;;  %v15065_v16 = vld [vmem:[#allocation4 + $0x8a8] ss:$20 sps:$4 sm:$0xff]  }
 0x222   : > { %13212 = vmatprep.subr.msk.bf16.mxu0 %vm1023_vm2, %v17152_v15  ;;  %13218 = vmatprep.subr.msk.bf16.mxu1 %vm1023_vm2, %v17154_v25  ;;  %v3542_v46 = vshrl.u32 %v17176_v3, 16  ;;  %v17201_v43 = vsel %vm572_vm0, %v3552_v45, %v3555_v63  ;;  %v15072_v15 = vld [vmem:[#allocation4 + $0xb10] ss:$20 sps:$4 sm:$0xff]  }
 0x223   : > { %v1858_v5 = vpop.f32.mrb[28].mxu1 }
 0x224   : > { %v1860_v32 = vpop.f32.mrb[29].mxu1  ;;  %v17182_v54 = vadd.f32 %v1858_v5, %v17083_v1  ;;  %v3548_v1 = vrot.slane %v3546_v27, 1  ;;  %v17194_v5 = vld [vmem:[%s16610_s28 + $0x6c] ss:$8 sps:$4 sm:$0xff]  }
 0x225   : > { %v1861_v23 = vpop.f32.mrb[30].mxu1  ;;  %4006 = vmatpush1.bf16.msra.mxu0 %v17170_v47  ;;  %4087 = vmatpush1.bf16.msra.mxu1 %v17173_v59  ;;  %v3565_v25 = vshrl.u32 %v17194_v5, 16  ;;  %v3568_v59 = vshll.u32 %v17024_v62, 16  ;;  %v15066_v62 = vld [vmem:[#allocation4 + $0xae4] ss:$20 sps:$4 sm:$0xff]  }
 0x226   : > { %4141 = vmatprep.subr.bf16.mxu0 %v20676_v2  ;;  %4825 = vmatprep.subr.bf16.mxu1 %v15060_v55  ;;  %v1863_v48 = vpop.f32.mrb[31].mxu1  ;;  %v17191_v32 = vadd.f32 %v1861_v23, %v17087_v6  ;;  %v3544_v6 = vor.u32 %v3542_v46, %v3530_v60  ;;  %v15068_v55 = vld [vmem:[#allocation4 + $0xae8] ss:$20 sps:$4 sm:$0xff]   ;;  %v15069_v23 = vld [vmem:[#allocation4 + $0x8d0] ss:$20 sps:$4 sm:$0xff]   ;;  %v3561_v60 = vshll.u32 %v17030_v0, 16 }
 0x227   : > { %v3570_v48 = vrot.slane %v3568_v59, 1  ;;  %v3567_v46 = vor.u32 %v3565_v25, %v3555_v63  ;;  %v15070_v0 = vld [vmem:[#allocation4 + $0xb0c] ss:$20 sps:$4 sm:$0xff]   ;;  %v3583_v25 = vshll.u32 %v17046_v28, 16 }
 0x228   : > { %4012 = vmatmul.mubr.bf16.vlgmr.msra.gmra.mrb[0].mxu0 %v17187_v61  ;;  %4093 = vmatmul.mubr.bf16.vlgmr.msra.gmra.mrb[0].mxu1 %v17187_v61  ;;  %v17217_v47 = vsel %vm572_vm0, %v3544_v6, %v3548_v1  ;;  %v15076_v6 = vld [vmem:[#allocation4 + $0xb38] ss:$20 sps:$4 sm:$0xff]  }
 0x229   : > { %4142 = vmatpush1.bf16.msra.mxu0 %v15061_v12  ;;  %4826 = vmatpush1.bf16.msra.mxu1 %v15058_v22  ;;  %v3557_v22 = vshrl.u32 %v17209_v4, 16  ;;  %v17231_v63 = vsel %vm572_vm0, %v3567_v46, %v3570_v48  ;;  %v15074_v46 = vld [vmem:[#allocation4 + $0xb34] ss:$20 sps:$4 sm:$0xff]  }
 0x22a   : > { %4143 = vmatprep.subr.bf16.mxu0 %v20676_v2  ;;  %4827 = vmatprep.subr.bf16.mxu1 %v15064_v57 }
 0x22b   : > { %v1866_v27 = vpop.f32.mrb[32].mxu1  ;;  %13214 = vmatprep.mubr.msk.bf16.mxu0 %vm1007_vm1, %v17201_v43  ;;  %13220 = vmatprep.mubr.msk.bf16.mxu1 %vm1007_vm1, %v17201_v43 }
 0x22c   : > { %v1868_v12 = vpop.f32.mrb[33].mxu1  ;;  %v17214_v45 = vadd.f32 %v1866_v27, %v17095_v41 }
 0x22d   : > { %v1869_v57 = vpop.f32.mrb[34].mxu1  ;;  %4144 = vmatpush1.bf16.msra.mxu0 %v15065_v16  ;;  %4828 = vmatpush1.bf16.msra.mxu1 %v15062_v33  ;;  %v17224_v12 = vld [vmem:[%s16610_s28 + $0x7c] ss:$8 sps:$4 sm:$0xff]   ;;  %v15073_v33 = vld [vmem:[#allocation4 + $0x8f8] ss:$20 sps:$4 sm:$0xff]   ;;  %v3559_v16 = vor.u32 %v3557_v22, %v3548_v1 }
 0x22e   : > { %4145 = vmatprep.subr.bf16.mxu0 %v20676_v2  ;;  %4829 = vmatprep.subr.bf16.mxu1 %v15068_v55  ;;  %v1871_v59 = vpop.f32.mrb[35].mxu1  ;;  %v17221_v20 = vadd.f32 %v1869_v57, %v17097_v52  ;;  %v3580_v41 = vshrl.u32 %v17224_v12, 16  ;;  %v3563_v52 = vrot.slane %v3561_v60, 1  ;;  %v15077_v22 = vld [vmem:[#allocation4 + $0x920] ss:$20 sps:$4 sm:$0xff]  }
 0x22f   : > { %v17245_v60 = vld [vmem:[%s16610_s28 + $0x78] ss:$8 sps:$4 sm:$0xff]  }
 0x230   : > { %4022 = vmatmul.mubr.bf16.gmra.mrb[4].mxu0 %v17217_v47  ;;  %4103 = vmatmul.mubr.bf16.gmra.mrb[4].mxu1 %v17217_v47  ;;  %v3582_v57 = vor.u32 %v3580_v41, %v3570_v48  ;;  %v3572_v59 = vshrl.u32 %v17245_v60, 16  ;;  %v15080_v41 = vld [vmem:[#allocation4 + $0xb60] ss:$20 sps:$4 sm:$0xff]  }
 0x231   : > { %4146 = vmatpush1.bf16.msra.mxu0 %v15069_v23  ;;  %4830 = vmatpush1.bf16.msra.mxu1 %v15066_v62  ;;  %v3585_v23 = vrot.slane %v3583_v25, 1  ;;  %v15078_v25 = vld [vmem:[#allocation4 + $0xb5c] ss:$20 sps:$4 sm:$0xff]  }
 0x232   : > { %4147 = vmatprep.subr.bf16.mxu0 %v20676_v2  ;;  %4831 = vmatprep.subr.bf16.mxu1 %v15072_v15  ;;  %v17242_v15 = vsel %vm572_vm0, %v3559_v16, %v3563_v52  ;;  %v3574_v16 = vor.u32 %v3572_v59, %v3563_v52  ;;  %v15082_v59 = vld [vmem:[#allocation4 + $0xb84] ss:$20 sps:$4 sm:$0xff]  }
 0x233   : > { %v1874_v55 = vpop.f32.mrb[36].mxu1  ;;  %13215 = vmatprep.mubr.msk.bf16.mxu0 %vm1007_vm1, %v17231_v63  ;;  %13221 = vmatprep.mubr.msk.bf16.mxu1 %vm1007_vm1, %v17231_v63 }
 0x234   : > { %v1876_v27 = vpop.f32.mrb[37].mxu1  ;;  %v17239_v62 = vadd.f32 %v1874_v55, %v17105_v14  ;;  %v3578_v55 = vrot.slane %v3576_v49, 1 }
 0x235   : > { %v1877_v1 = vpop.f32.mrb[38].mxu1  ;;  %4148 = vmatpush1.bf16.msra.mxu0 %v15073_v33  ;;  %4832 = vmatpush1.bf16.msra.mxu1 %v15070_v0  ;;  %v17256_v0 = vsel %vm572_vm0, %v3582_v57, %v3585_v23  ;;  %v15081_v33 = vld [vmem:[#allocation4 + $0x948] ss:$20 sps:$4 sm:$0xff]  }
 0x236   : > { %4149 = vmatprep.subr.bf16.mxu0 %v20676_v2  ;;  %4833 = vmatprep.subr.bf16.mxu1 %v15076_v6  ;;  %v1879_v48 = vpop.f32.mrb[39].mxu1  ;;  %v17251_v14 = vadd.f32 %v1877_v1, %v17107_v36  ;;  %v15084_v6 = vld [vmem:[#allocation4 + $0xb88] ss:$20 sps:$4 sm:$0xff]   ;;  %v3590_v1 = vshrl.u32 %v17046_v28, 16  ;;  %v17271_v52 = vsel %vm572_vm0, %v3574_v16, %v3578_v55  ;;  %v15499_v16 = vld [vmem:[%s16610_s28 + $0x4c] ss:$8 sps:$4 sm:$0xff]  }
 0x237   : > { %v15085_v48 = vld [vmem:[#allocation4 + $0x970] ss:$20 sps:$4 sm:$0xff]  }
 0x238   : > { %4032 = vmatmul.mubr.bf16.gmra.mrb[8].mxu0 %v17242_v15  ;;  %4113 = vmatmul.mubr.bf16.gmra.mrb[8].mxu1 %v17242_v15 }
 0x239   : > { %4150 = vmatpush1.bf16.msra.mxu0 %v15077_v22  ;;  %4834 = vmatpush1.bf16.msra.mxu1 %v15074_v46 }
 0x23a   : > { %4151 = vmatprep.subr.bf16.mxu0 %v20676_v2  ;;  %4835 = vmatprep.subr.bf16.mxu1 %v15080_v41 }
 0x23b   : > { %v1728_v27 = vpop.f32.mrb[40].mxu0  ;;  %v1882_v36 = vpop.f32.mrb[40].mxu1  ;;  %13216 = vmatprep.mubr.msk.bf16.mxu0 %vm1007_vm1, %v17256_v0  ;;  %13222 = vmatprep.mubr.msk.bf16.mxu1 %vm1007_vm1, %v17256_v0 }
 0x23c   : > { %v1730_v57 = vpop.f32.mrb[41].mxu0  ;;  %v1884_v46 = vpop.f32.mrb[41].mxu1  ;;  %v17265_v22 = vadd.f32 %v1728_v27, %v17037_v34  ;;  %v17268_v49 = vadd.f32 %v1882_v36, %v17115_v19  ;;  %v15088_v34 = vld [vmem:[#allocation4 + $0xbb0] ss:$20 sps:$4 sm:$0xff]   ;;  %v17277_v36 = vor.u32 %v3590_v1, %v3585_v23  ;;  %v4344_v1 = vrot.slane %v17162_v42, 1 }
 0x23d   : > { %4152 = vmatpush1.bf16.msra.mxu0 %v15081_v33  ;;  %4836 = vmatpush1.bf16.msra.mxu1 %v15078_v25  ;;  %v1732_v41 = vpop.f32.mrb[42].mxu0  ;;  %v1885_v18 = vpop.f32.mrb[42].mxu1  ;;  %v17274_v24 = vadd.f32 %v1730_v57, %v17041_v30  ;;  %v3587_v25 = vshrl.u32 %v17055_v26, 16  ;;  %v15089_v30 = vld [vmem:[#allocation4 + $0x998] ss:$20 sps:$4 sm:$0xff]   ;;  %v4352_v42 = vrot.slane %v17224_v12, 1 }
 0x23e   : > { %4153 = vmatprep.subr.bf16.mxu0 %v20676_v2  ;;  %4837 = vmatprep.subr.bf16.mxu1 %v15084_v6  ;;  %v1733_v27 = vpop.f32.mrb[43].mxu0  ;;  %v1886_v19 = vpop.f32.mrb[43].mxu1  ;;  %v15086_v18 = vld [vmem:[#allocation4 + $0xbac] ss:$20 sps:$4 sm:$0xff]   ;;  %v4343_v6 = vrot.slane %v15499_v16, 1 }
 0x23f   : > { %v15092_v33 = vld [vmem:[#allocation4 + $0xbd8] ss:$20 sps:$4 sm:$0xff]   ;;  %v17287_v23 = vor.u32 %v3587_v25, %v3578_v55  ;;  %v15090_v57 = vld [vmem:[#allocation4 + $0xbd4] ss:$20 sps:$4 sm:$0xff]   ;;  %v15101_v19 = vld [vmem:[#allocation4 + $0xa10] ss:$20 sps:$4 sm:$0xff]  }
 0x240   : > { %4042 = vmatmul.mubr.bf16.gmra.mrb[12].mxu0 %v17271_v52  ;;  %4123 = vmatmul.mubr.bf16.gmra.mrb[12].mxu1 %v17271_v52  ;;  %v15093_v46 = vld [vmem:[#allocation4 + $0x9c0] ss:$20 sps:$4 sm:$0xff]   ;;  %v17297_v55 = vsel %vm1970_vm3, %v4343_v6, %v4344_v1  ;;  %v15097_v41 = vld [vmem:[#allocation4 + $0x9e8] ss:$20 sps:$4 sm:$0xff]   ;;  %v15098_v27 = vld [vmem:[#allocation4 + $0xc24] ss:$20 sps:$4 sm:$0xff]  }
 0x241   : > { %4154 = vmatpush1.bf16.msra.mxu0 %v15085_v48  ;;  %4838 = vmatpush1.bf16.msra.mxu1 %v15082_v59  ;;  %v15096_v59 = vld [vmem:[#allocation4 + $0xc00] ss:$20 sps:$4 sm:$0xff]   ;;  %20677 = vst [vmem:[#allocation34_spill] sm:$0xff] %v17297_v55  ;;  %v15094_v48 = vld [vmem:[#allocation4 + $0xbfc] ss:$20 sps:$4 sm:$0xff]  }
 0x242   : > { %4155 = vmatprep.subr.bf16.mxu0 %v20676_v2  ;;  %4839 = vmatprep.subr.bf16.mxu1 %v15088_v34  ;;  %v15100_v34 = vld [vmem:[#allocation4 + $0xc28] ss:$20 sps:$4 sm:$0xff]   ;;  %v15104_v25 = vld [vmem:[#allocation4 + $0xc50] ss:$20 sps:$4 sm:$0xff]  }
 0x243   : > { %13217 = vmatprep.mubr.msk.bf16.mxu0 %vm1007_vm1, %v17277_v36  ;;  %13223 = vmatprep.mubr.msk.bf16.mxu1 %vm1007_vm1, %v17277_v36  ;;  %v4338_v16 = vld [vmem:[#allocation4 + $0xc9c] sm:$0xff]  ;;  %v15106_v6 = vld [vmem:[#allocation4 + $0xc74] ss:$20 sps:$4 sm:$0xff]   ;;  %v15125_v12 = vld [vmem:[#allocation4 + $0xb04] ss:$20 sps:$4 sm:$0xff]  }
 0x245   : > { %4156 = vmatpush1.bf16.msra.mxu0 %v15089_v30  ;;  %4840 = vmatpush1.bf16.msra.mxu1 %v15086_v18  ;;  %v15102_v18 = vld [vmem:[#allocation4 + $0xc4c] ss:$20 sps:$4 sm:$0xff]  }
 0x246   : > { %4157 = vmatprep.subr.bf16.mxu0 %v20676_v2  ;;  %4841 = vmatprep.subr.bf16.mxu1 %v15092_v33  ;;  %v15105_v30 = vld [vmem:[#allocation4 + $0xa38] ss:$20 sps:$4 sm:$0xff]  }
 0x247   : > { %v15108_v33 = vld [vmem:[#allocation4 + $0xc78] ss:$20 sps:$4 sm:$0xff]  }
 0x248   : > { %4052 = vmatmul.mubr.bf16.gmra.mrb[72].mxu0 %v17287_v23  ;;  %4133 = vmatmul.mubr.bf16.gmra.mrb[72].mxu1 %v17287_v23 }
 0x249   : > { %4158 = vmatpush1.bf16.msra.mxu0 %v15093_v46  ;;  %4842 = vmatpush1.bf16.msra.mxu1 %v15090_v57  ;;  %v15109_v57 = vld [vmem:[#allocation4 + $0xa60] ss:$20 sps:$4 sm:$0xff]   ;;  %v17307_v46 = vcombine.high %v4338_v16, %v4338_v16 }
 0x24a   : > { %4159 = vmatprep.subr.bf16.mxu0 %v20676_v2  ;;  %4843 = vmatprep.subr.bf16.mxu1 %v15096_v59  ;;  %v15111_v59 = vld [vmem:[#allocation4 + $0xa88] ss:$0 sps:$4 sm:$0xff]  }
 0x24b   : > { %13224 = vmatprep.mubr.msk.bf16.mxu0 %vm1007_vm1, %v17138_v37  ;;  %13306 = vmatprep.mubr.msk.bf16.mxu1 %vm1007_vm1, %v17297_v55  ;;  %20678 = vst [vmem:[#allocation35_spill] sm:$0xff] %v17307_v46 }
 0x24d   : > { %4160 = vmatpush1.bf16.msra.mxu0 %v15097_v41  ;;  %4844 = vmatpush1.bf16.msra.mxu1 %v15094_v48  ;;  %v13296_v48 = vcombine.low %v4338_v16, %v4338_v16  ;;  %v4340_v41 = vrot.slane %v17146_v31, 1  ;;  %v15113_v31 = vld [vmem:[#allocation4 + $0xa8c] ss:$20 sps:$4 sm:$0xff]   ;;  %v15117_v16 = vld [vmem:[#allocation4 + $0xab4] ss:$20 sps:$4 sm:$0xff]  }
 0x24e   : > { %4161 = vmatprep.subr.bf16.mxu0 %v20676_v2  ;;  %4845 = vmatprep.subr.bf16.mxu1 %v15100_v34  ;;  %v4341_v34 = vrot.slane %v17176_v3, 1 }
 0x250   : > { %v17324_v3 = vsel %vm1970_vm3, %v4340_v41, %v4341_v34  ;;  %v15124_v41 = vld [vmem:[#allocation4 + $0xaec] ss:$20 sps:$4 sm:$0xff]  }
 0x251   : > { %4162 = vmatpush1.bf16.msra.mxu0 %v15101_v19  ;;  %4846 = vmatpush1.bf16.msra.mxu1 %v15098_v27  ;;  %v17315_v27 = vsel %vm1023_vm2, %v15111_v59, 0  ;;  %v17318_v19 = vsel %vm1023_vm2, %v13296_v48, 0  ;;  %20681 = vst [vmem:[#allocation38_spill] sm:$0xff] %v17324_v3  ;;  %v15123_v59 = vld [vmem:[#allocation4 + $0xae0] ss:$20 sps:$4 sm:$0xff]  }
 0x252   : > { %4163 = vmatprep.subr.bf16.mxu0 %v20676_v2  ;;  %4847 = vmatprep.subr.bf16.mxu1 %v15104_v25  ;;  %20679 = vst [vmem:[#allocation36_spill] sm:$0xff] %v17315_v27  ;;  %20680 = vst [vmem:[#allocation37_spill] sm:$0xff] %v17318_v19  ;;  %v15115_v25 = vld [vmem:[#allocation4 + $0xa90] ss:$20 sps:$4 sm:$0xff]  }
 0x255   : > { %4164 = vmatpush1.bf16.msra.mxu0 %v15105_v30  ;;  %4848 = vmatpush1.bf16.msra.mxu1 %v15102_v18  ;;  %v4348_v18 = vrot.slane %v17194_v5, 1  ;;  %v15116_v30 = vld [vmem:[#allocation4 + $0xa9c] ss:$20 sps:$4 sm:$0xff]  }
 0x256   : > { %4165 = vmatprep.subr.bf16.mxu0 %v20676_v2  ;;  %4849 = vmatprep.subr.bf16.mxu1 %v15108_v33  ;;  %v15119_v33 = vld [vmem:[#allocation4 + $0xab8] ss:$20 sps:$4 sm:$0xff]  }
 0x257   : > { %v17332_v5 = vsel %vm1970_vm3, %v4344_v1, %v4348_v18  ;;  %v15121_v1 = vld [vmem:[#allocation4 + $0xadc] ss:$20 sps:$4 sm:$0xff]  }
 0x258   : > { %20682 = vst [vmem:[#allocation39_spill] sm:$0xff] %v17332_v5 }
 0x259   : > { %4166 = vmatpush1.bf16.msra.mxu0 %v15109_v57  ;;  %4850 = vmatpush1.bf16.msra.mxu1 %v15106_v6  ;;  %v15120_v6 = vld [vmem:[#allocation4 + $0xac4] ss:$20 sps:$4 sm:$0xff]   ;;  %v4346_v57 = vrot.slane %v17209_v4, 1  ;;  %v15127_v4 = vld [vmem:[#allocation4 + $0xb08] ss:$20 sps:$4 sm:$0xff]  }
 0x25a   : > { %4167 = vmatprep.subr.bf16.mxu0 %v20676_v2  ;;  %13305 = vmatprep.subr.msk.bf16.mxu1 %vm1023_vm2, %v17307_v46  ;;  %v15137_v46 = vld [vmem:[#allocation4 + $0xb7c] ss:$20 sps:$4 sm:$0xff]  }
 0x25b   : > { %v17342_v48 = vsel %vm1970_vm3, %v4341_v34, %v4346_v57  ;;  %v15131_v34 = vld [vmem:[#allocation4 + $0xb30] ss:$20 sps:$4 sm:$0xff]  }
 0x25c   : > { %20683 = vst [vmem:[#allocation40_spill] sm:$0xff] %v17342_v48 }
 0x25d   : > { %4168 = vmatpush1.bf16.msra.mxu0 %v17315_v27  ;;  %4852 = vmatpush1.bf16.msra.mxu1 %v17318_v19 }
 0x25e   : > { %4744 = vmatprep.subr.bf16.mxu0 %v15115_v25  ;;  %4906 = vmatprep.subr.bf16.mxu1 %v20676_v2  ;;  %v17348_v25 = vsel %vm1970_vm3, %v4348_v18, %v4352_v42  ;;  %v15129_v18 = vld [vmem:[#allocation4 + $0xb2c] ss:$20 sps:$4 sm:$0xff]  }
 0x25f   : > { %20684 = vst [vmem:[#allocation41_spill] sm:$0xff] %v17348_v25 }
 0x260   : > { %4174 = vmatmul.mubr.bf16.vlgmr.msra.gmra.mrb[76].mxu0 %v17187_v61  ;;  %4858 = vmatmul.mubr.bf16.vlgmr.msra.gmra.mrb[0].mxu1 %v17324_v3 }
 0x261   : > { %4745 = vmatpush1.bf16.msra.mxu0 %v15113_v31  ;;  %4907 = vmatpush1.bf16.msra.mxu1 %v15116_v30  ;;  %v15128_v31 = vld [vmem:[#allocation4 + $0xb14] ss:$20 sps:$4 sm:$0xff]   ;;  %v4350_v30 = vrot.slane %v17245_v60, 1  ;;  %v15132_v60 = vld [vmem:[#allocation4 + $0xb3c] ss:$20 sps:$4 sm:$0xff]  }
 0x262   : > { %4746 = vmatprep.subr.bf16.mxu0 %v15119_v33  ;;  %4908 = vmatprep.subr.bf16.mxu1 %v20676_v2  ;;  %v17357_v33 = vrot.slane %v17046_v28, 1 }
 0x263   : > { %13225 = vmatprep.mubr.msk.bf16.mxu0 %vm1007_vm1, %v17201_v43  ;;  %13307 = vmatprep.mubr.msk.bf16.mxu1 %vm1007_vm1, %v17332_v5 }
 0x264   : > { %20685 = vst [vmem:[#allocation42_spill] sm:$0xff] %v17357_v33 }
 0x265   : > { %4747 = vmatpush1.bf16.msra.mxu0 %v15117_v16  ;;  %4909 = vmatpush1.bf16.msra.mxu1 %v15120_v6  ;;  %v17360_v16 = vsel %vm1970_vm3, %v4346_v57, %v4350_v30  ;;  %v15135_v6 = vld [vmem:[#allocation4 + $0xb58] ss:$20 sps:$4 sm:$0xff]   ;;  %v17370_v57 = vrot.slane %v17055_v26, 1 }
 0x266   : > { %4748 = vmatprep.subr.bf16.mxu0 %v15123_v59  ;;  %4910 = vmatprep.subr.bf16.mxu1 %v20676_v2  ;;  %20686 = vst [vmem:[#allocation43_spill] sm:$0xff] %v17360_v16  ;;  %v17367_v59 = vsel %vm1970_vm3, %v4352_v42, %v17357_v33 }
 0x267   : > { %20687 = vst [vmem:[#allocation44_spill] sm:$0xff] %v17367_v59  ;;  %20688 = vst [vmem:[#allocation45_spill] sm:$0xff] %v17370_v57  ;;  %v17391_v27 = vsel %vm1970_vm3, %v4350_v30, %v17370_v57  ;;  %v15147_v30 = vld [vmem:[#allocation4 + $0xbd0] ss:$20 sps:$4 sm:$0xff]  }
 0x268   : > { %4182 = vmatmul.mubr.bf16.gmra.mrb[80].mxu0 %v17217_v47  ;;  %4868 = vmatmul.mubr.bf16.gmra.mrb[4].mxu1 %v17342_v48  ;;  %20689 = vst [vmem:[#allocation46_spill] sm:$0xff] %v17391_v27 }
 0x269   : > { %4749 = vmatpush1.bf16.msra.mxu0 %v15121_v1  ;;  %4911 = vmatpush1.bf16.msra.mxu1 %v15124_v41  ;;  %v15133_v1 = vld [vmem:[#allocation4 + $0xb54] ss:$20 sps:$4 sm:$0xff]   ;;  %v15136_v41 = vld [vmem:[#allocation4 + $0xb64] ss:$20 sps:$4 sm:$0xff]  }
 0x26a   : > { %4750 = vmatprep.subr.bf16.mxu0 %v15127_v4  ;;  %4912 = vmatprep.subr.bf16.mxu1 %v20676_v2  ;;  %v15139_v4 = vld [vmem:[#allocation4 + $0xb80] ss:$20 sps:$4 sm:$0xff]  }
 0x26b   : > { %13226 = vmatprep.mubr.msk.bf16.mxu0 %vm1007_vm1, %v17231_v63  ;;  %13308 = vmatprep.mubr.msk.bf16.mxu1 %vm1007_vm1, %v17348_v25 }
 0x26d   : > { %4751 = vmatpush1.bf16.msra.mxu0 %v15125_v12  ;;  %4913 = vmatpush1.bf16.msra.mxu1 %v15128_v31 }
 0x26e   : > { %4752 = vmatprep.subr.bf16.mxu0 %v15131_v34  ;;  %4914 = vmatprep.subr.bf16.mxu1 %v20676_v2 }
 0x270   : > { %4190 = vmatmul.mubr.bf16.gmra.mrb[84].mxu0 %v17242_v15  ;;  %4878 = vmatmul.mubr.bf16.gmra.mrb[8].mxu1 %v17360_v16 }
 0x271   : > { %4753 = vmatpush1.bf16.msra.mxu0 %v15129_v18  ;;  %4915 = vmatpush1.bf16.msra.mxu1 %v15132_v60 }
 0x272   : > { %4754 = vmatprep.subr.bf16.mxu0 %v15135_v6  ;;  %4916 = vmatprep.subr.bf16.mxu1 %v20676_v2 }
 0x273   : > { %v2449_v12 = vpop.f32.mrb[44].mxu0  ;;  %v2530_v31 = vpop.f32.mrb[44].mxu1  ;;  %13227 = vmatprep.mubr.msk.bf16.mxu0 %vm1007_vm1, %v17256_v0  ;;  %13309 = vmatprep.mubr.msk.bf16.mxu1 %vm1007_vm1, %v17367_v59 }
 0x274   : > { %v17378_v42 = vadd.f32 %v2449_v12, %v17265_v22  ;;  %v17381_v34 = vadd.f32 %v2530_v31, %v17119_v50  ;;  %v2451_v18 = vpop.f32.mrb[45].mxu0  ;;  %v2532_v60 = vpop.f32.mrb[45].mxu1  ;;  %v15140_v22 = vld [vmem:[#allocation4 + $0xb8c] ss:$20 sps:$4 sm:$0xff]   ;;  %v15143_v50 = vld [vmem:[#allocation4 + $0xba8] ss:$20 sps:$4 sm:$0xff]  }
 0x275   : > { %v17384_v6 = vadd.f32 %v2451_v18, %v17274_v24  ;;  %v17387_v19 = vadd.f32 %v2532_v60, %v17122_v11  ;;  %4755 = vmatpush1.bf16.msra.mxu0 %v15133_v1  ;;  %4917 = vmatpush1.bf16.msra.mxu1 %v15136_v41  ;;  %v2453_v12 = vpop.f32.mrb[46].mxu0  ;;  %v2534_v13 = vpop.f32.mrb[46].mxu1  ;;  %v15141_v11 = vld [vmem:[#allocation4 + $0xba4] ss:$20 sps:$4 sm:$0xff]   ;;  %v15144_v1 = vld [vmem:[#allocation4 + $0xbb4] ss:$20 sps:$4 sm:$0xff]  }
 0x276   : > { %4756 = vmatprep.subr.bf16.mxu0 %v15139_v4  ;;  %4918 = vmatprep.subr.bf16.mxu1 %v20676_v2  ;;  %v2454_v31 = vpop.f32.mrb[47].mxu0  ;;  %v2535_v24 = vpop.f32.mrb[47].mxu1  ;;  %v15145_v13 = vld [vmem:[#allocation4 + $0xbcc] ss:$20 sps:$4 sm:$0xff]   ;;  %v15148_v41 = vld [vmem:[#allocation4 + $0xbdc] ss:$20 sps:$4 sm:$0xff]  }
 0x277   : > { %v15149_v4 = vld [vmem:[#allocation4 + $0xbf4] ss:$20 sps:$4 sm:$0xff]   ;;  %v15152_v18 = vld [vmem:[#allocation4 + $0xc04] ss:$20 sps:$4 sm:$0xff]   ;;  %v15156_v12 = vld [vmem:[#allocation4 + $0xc2c] ss:$20 sps:$4 sm:$0xff]  }
 0x278   : > { %4198 = vmatmul.mubr.bf16.gmra.mrb[88].mxu0 %v17271_v52  ;;  %4888 = vmatmul.mubr.bf16.gmra.mrb[12].mxu1 %v17391_v27  ;;  %v15155_v60 = vld [vmem:[#allocation4 + $0xc20] ss:$20 sps:$4 sm:$0xff]   ;;  %v15157_v31 = vld [vmem:[#allocation4 + $0xc44] ss:$20 sps:$4 sm:$0xff]  }
 0x279   : > { %4757 = vmatpush1.bf16.msra.mxu0 %v15137_v46  ;;  %4919 = vmatpush1.bf16.msra.mxu1 %v15140_v22  ;;  %v15151_v46 = vld [vmem:[#allocation4 + $0xbf8] ss:$20 sps:$4 sm:$0xff]   ;;  %v15153_v22 = vld [vmem:[#allocation4 + $0xc1c] ss:$20 sps:$4 sm:$0xff]   ;;  %v15160_v24 = vld [vmem:[#allocation4 + $0xc54] ss:$20 sps:$4 sm:$0xff]  }
 0x27a   : > { %4758 = vmatprep.subr.bf16.mxu0 %v15143_v50  ;;  %4920 = vmatprep.subr.bf16.mxu1 %v20676_v2  ;;  %v15159_v50 = vld [vmem:[#allocation4 + $0xc48] ss:$20 sps:$4 sm:$0xff]  }
 0x27b   : > { %13228 = vmatprep.mubr.msk.bf16.mxu0 %vm1007_vm1, %v17277_v36  ;;  %13310 = vmatprep.mubr.msk.bf16.mxu1 %vm1007_vm1, %v17357_v33 }
 0x27d   : > { %4759 = vmatpush1.bf16.msra.mxu0 %v15141_v11  ;;  %4921 = vmatpush1.bf16.msra.mxu1 %v15144_v1  ;;  %v15163_v11 = vld [vmem:[#allocation4 + $0xc70] ss:$20 sps:$4 sm:$0xff]  }
 0x27e   : > { %4760 = vmatprep.subr.bf16.mxu0 %v15147_v30  ;;  %4922 = vmatprep.subr.bf16.mxu1 %v20676_v2  ;;  %v4337_v30 = vld [vmem:[#allocation4 + $0xc94] sm:$0xff] }
 0x280   : > { %4206 = vmatmul.mubr.bf16.gmra.mrb[92].mxu0 %v17287_v23  ;;  %4898 = vmatmul.mubr.bf16.gmra.mrb[76].mxu1 %v17370_v57 }
 0x281   : > { %4761 = vmatpush1.bf16.msra.mxu0 %v15145_v13  ;;  %4923 = vmatpush1.bf16.msra.mxu1 %v15148_v41 }
 0x282   : > { %4762 = vmatprep.subr.bf16.mxu0 %v15151_v46  ;;  %4924 = vmatprep.subr.bf16.mxu1 %v20676_v2 }
 0x283   : > { %13300 = vmatprep.mubr.msk.bf16.mxu0 %vm1007_vm1, %v17297_v55  ;;  %13311 = vmatprep.mubr.msk.bf16.mxu1 %vm1007_vm1, %v17297_v55 }
 0x285   : > { %4763 = vmatpush1.bf16.msra.mxu0 %v15149_v4  ;;  %4925 = vmatpush1.bf16.msra.mxu1 %v15152_v18  ;;  %v15161_v4 = vld [vmem:[#allocation4 + $0xc6c] ss:$20 sps:$4 sm:$0xff]   ;;  %v15164_v18 = vld [vmem:[#allocation4 + $0xc7c] ss:$20 sps:$4 sm:$0xff]  }
 0x286   : > { %4764 = vmatprep.subr.bf16.mxu0 %v15155_v60  ;;  %4926 = vmatprep.subr.bf16.mxu1 %v20676_v2 }
 0x289   : > { %4765 = vmatpush1.bf16.msra.mxu0 %v15153_v22  ;;  %4927 = vmatpush1.bf16.msra.mxu1 %v15156_v12  ;;  %v17418_v12 = vcombine.high %v4337_v30, %v4337_v30 }
 0x28a   : > { %4766 = vmatprep.subr.bf16.mxu0 %v15159_v50  ;;  %4928 = vmatprep.subr.bf16.mxu1 %v20676_v2  ;;  %v13294_v50 = vcombine.low %v4337_v30, %v4337_v30 }
 0x28b   : > { %v2571_v1 = vpop.f32.mrb[48].mxu0  ;;  %20690 = vst [vmem:[#allocation47_spill] sm:$0xff] %v17418_v12 }
 0x28c   : > { %v17412_v13 = vadd.f32 %v2571_v1, %v17150_v29  ;;  %v2573_v41 = vpop.f32.mrb[49].mxu0  ;;  %v17424_v29 = vsel %vm1023_vm2, %v13294_v50, 0  ;;  %v15179_v50 = vld [vmem:[#allocation4 + $0xcdc] ss:$20 sps:$4 sm:$0xff]  }
 0x28d   : > { %v2574_v46 = vpop.f32.mrb[50].mxu0  ;;  %4767 = vmatpush1.bf16.msra.mxu0 %v15157_v31  ;;  %4929 = vmatpush1.bf16.msra.mxu1 %v15160_v24  ;;  %20691 = vst [vmem:[#allocation48_spill] sm:$0xff] %v17424_v29  ;;  %v15170_v31 = vld [vmem:[#allocation4 + $0xcac] ss:$20 sps:$4 sm:$0xff]   ;;  %v15173_v24 = vld [vmem:[#allocation4 + $0xcb4] ss:$20 sps:$4 sm:$0xff]  }
 0x28e   : > { %v17415_v60 = vadd.f32 %v2574_v46, %v17158_v17  ;;  %v2576_v22 = vpop.f32.mrb[51].mxu0  ;;  %4768 = vmatprep.subr.bf16.mxu0 %v15163_v11  ;;  %4930 = vmatprep.subr.bf16.mxu1 %v20676_v2  ;;  %v17427_v17 = vsel %vm1023_vm2, %v15167_v35, 0  ;;  %v15168_v46 = vld [vmem:[#allocation4 + $0xca8] ss:$20 sps:$4 sm:$0xff]  }
 0x28f   : > { %20692 = vst [vmem:[#allocation49_spill] sm:$0xff] %v17427_v17  ;;  %v15176_v22 = vld [vmem:[#allocation4 + $0xcd4] ss:$20 sps:$4 sm:$0xff]  }
 0x291   : > { %4769 = vmatpush1.bf16.msra.mxu0 %v15161_v4  ;;  %4931 = vmatpush1.bf16.msra.mxu1 %v15164_v18  ;;  %v15171_v4 = vld [vmem:[#allocation4 + $0xcb0] ss:$20 sps:$4 sm:$0xff]  }
 0x292   : > { %13299 = vmatprep.subr.msk.bf16.mxu0 %vm1023_vm2, %v17418_v12  ;;  %4932 = vmatprep.subr.bf16.mxu1 %v20676_v2 }
 0x293   : > { %v2579_v11 = vpop.f32.mrb[52].mxu0 }
 0x294   : > { %v17430_v1 = vadd.f32 %v2579_v11, %v17182_v54  ;;  %v2581_v30 = vpop.f32.mrb[53].mxu0  ;;  %v15174_v54 = vld [vmem:[#allocation4 + $0xcd0] ss:$20 sps:$4 sm:$0xff]   ;;  %v15177_v11 = vld [vmem:[#allocation4 + $0xcd8] ss:$20 sps:$4 sm:$0xff]  }
 0x295   : > { %v2582_v41 = vpop.f32.mrb[54].mxu0  ;;  %4771 = vmatpush1.bf16.msra.mxu0 %v17424_v29  ;;  %4933 = vmatpush1.bf16.msra.mxu1 %v17427_v17  ;;  %v15182_v30 = vld [vmem:[#allocation4 + $0xcfc] ss:$20 sps:$4 sm:$0xff]   ;;  %v15185_v17 = vld [vmem:[#allocation4 + $0xd04] ss:$20 sps:$4 sm:$0xff]  }
 0x296   : > { %v17435_v18 = vadd.f32 %v2582_v41, %v17191_v32  ;;  %5528 = vmatprep.subr.bf16.mxu0 %v15170_v31  ;;  %5609 = vmatprep.subr.bf16.mxu1 %v15173_v24  ;;  %v2584_v35 = vpop.f32.mrb[55].mxu0  ;;  %v15180_v41 = vld [vmem:[#allocation4 + $0xcf8] ss:$20 sps:$4 sm:$0xff]  }
 0x298   : > { %4777 = vmatmul.mubr.bf16.vlgmr.msra.gmra.mrb[0].mxu0 %v17324_v3  ;;  %4939 = vmatmul.mubr.bf16.vlgmr.msra.gmra.mrb[80].mxu1 %v17324_v3 }
 0x299   : > { %5529 = vmatpush1.bf16.msra.mxu0 %v15168_v46  ;;  %5610 = vmatpush1.bf16.msra.mxu1 %v15171_v4  ;;  %v15183_v46 = vld [vmem:[#allocation4 + $0xd00] ss:$20 sps:$4 sm:$0xff]  }
 0x29a   : > { %5530 = vmatprep.subr.bf16.mxu0 %v15176_v22  ;;  %5611 = vmatprep.subr.bf16.mxu1 %v15179_v50  ;;  %v15188_v22 = vld [vmem:[#allocation4 + $0xd24] ss:$20 sps:$4 sm:$0xff]   ;;  %v15191_v50 = vld [vmem:[#allocation4 + $0xd2c] ss:$20 sps:$4 sm:$0xff]  }
 0x29b   : > { %v2587_v29 = vpop.f32.mrb[56].mxu0  ;;  %13301 = vmatprep.mubr.msk.bf16.mxu0 %vm1007_vm1, %v17332_v5  ;;  %13312 = vmatprep.mubr.msk.bf16.mxu1 %vm1007_vm1, %v17332_v5 }
 0x29c   : > { %v17444_v32 = vadd.f32 %v2587_v29, %v17214_v45  ;;  %v2589_v31 = vpop.f32.mrb[57].mxu0  ;;  %v15186_v45 = vld [vmem:[#allocation4 + $0xd20] ss:$20 sps:$4 sm:$0xff]   ;;  %v15189_v29 = vld [vmem:[#allocation4 + $0xd28] ss:$20 sps:$4 sm:$0xff]  }
 0x29d   : > { %v2590_v24 = vpop.f32.mrb[58].mxu0  ;;  %5531 = vmatpush1.bf16.msra.mxu0 %v15174_v54  ;;  %5612 = vmatpush1.bf16.msra.mxu1 %v15177_v11  ;;  %v15194_v54 = vld [vmem:[#allocation4 + $0xd4c] ss:$20 sps:$4 sm:$0xff]   ;;  %v15197_v11 = vld [vmem:[#allocation4 + $0xd54] ss:$20 sps:$4 sm:$0xff]  }
 0x29e   : > { %v17447_v4 = vadd.f32 %v2590_v24, %v17221_v20  ;;  %5532 = vmatprep.subr.bf16.mxu0 %v15182_v30  ;;  %5613 = vmatprep.subr.bf16.mxu1 %v15185_v17  ;;  %v2592_v35 = vpop.f32.mrb[59].mxu0  ;;  %v15192_v24 = vld [vmem:[#allocation4 + $0xd48] ss:$20 sps:$4 sm:$0xff]  }
 0x2a0   : > { %4787 = vmatmul.mubr.bf16.gmra.mrb[4].mxu0 %v17342_v48  ;;  %4947 = vmatmul.mubr.bf16.gmra.mrb[84].mxu1 %v17342_v48 }
 0x2a1   : > { %5533 = vmatpush1.bf16.msra.mxu0 %v15180_v41  ;;  %5614 = vmatpush1.bf16.msra.mxu1 %v15183_v46  ;;  %v15195_v41 = vld [vmem:[#allocation4 + $0xd50] ss:$20 sps:$4 sm:$0xff]  }
 0x2a2   : > { %5534 = vmatprep.subr.bf16.mxu0 %v15188_v22  ;;  %5615 = vmatprep.subr.bf16.mxu1 %v15191_v50  ;;  %v15200_v22 = vld [vmem:[#allocation4 + $0xd74] ss:$20 sps:$4 sm:$0xff]   ;;  %v15203_v50 = vld [vmem:[#allocation4 + $0xd7c] ss:$20 sps:$4 sm:$0xff]  }
 0x2a3   : > { %v2595_v31 = vpop.f32.mrb[60].mxu0  ;;  %13302 = vmatprep.mubr.msk.bf16.mxu0 %vm1007_vm1, %v17348_v25  ;;  %13313 = vmatprep.mubr.msk.bf16.mxu1 %vm1007_vm1, %v17348_v25  ;;  %v15289_v25 = vld [vmem:[#allocation4 + $0xda8] ss:$20 sps:$4 sm:$0xff]  }
 0x2a4   : > { %v17456_v20 = vadd.f32 %v2595_v31, %v17239_v62  ;;  %v2597_v17 = vpop.f32.mrb[61].mxu0  ;;  %v15198_v62 = vld [vmem:[#allocation4 + $0xd70] ss:$20 sps:$4 sm:$0xff]   ;;  %v15201_v31 = vld [vmem:[#allocation4 + $0xd78] ss:$20 sps:$4 sm:$0xff]  }
 0x2a5   : > { %v2598_v30 = vpop.f32.mrb[62].mxu0  ;;  %5535 = vmatpush1.bf16.msra.mxu0 %v15186_v45  ;;  %5616 = vmatpush1.bf16.msra.mxu1 %v15189_v29  ;;  %v15206_v45 = vld [vmem:[#allocation4 + $0xd9c] ss:$20 sps:$4 sm:$0xff]   ;;  %v15209_v29 = vld [vmem:[#allocation4 + $0xda4] ss:$20 sps:$4 sm:$0xff]  }
 0x2a6   : > { %v17459_v46 = vadd.f32 %v2598_v30, %v17251_v14  ;;  %5536 = vmatprep.subr.bf16.mxu0 %v15194_v54  ;;  %5617 = vmatprep.subr.bf16.mxu1 %v15197_v11  ;;  %v2600_v35 = vpop.f32.mrb[63].mxu0 }
 0x2a7   : > { %v15204_v35 = vld [vmem:[#allocation4 + $0xd98] ss:$20 sps:$4 sm:$0xff]  }
 0x2a8   : > { %4797 = vmatmul.mubr.bf16.gmra.mrb[8].mxu0 %v17360_v16  ;;  %4955 = vmatmul.mubr.bf16.gmra.mrb[88].mxu1 %v17360_v16  ;;  %v15286_v16 = vld [vmem:[#allocation4 + $0xfbc] ss:$20 sps:$4 sm:$0xff]  }
 0x2a9   : > { %5537 = vmatpush1.bf16.msra.mxu0 %v15192_v24  ;;  %5618 = vmatpush1.bf16.msra.mxu1 %v15195_v41 }
 0x2aa   : > { %5538 = vmatprep.subr.bf16.mxu0 %v15200_v22  ;;  %5619 = vmatprep.subr.bf16.mxu1 %v15203_v50  ;;  %v15207_v22 = vld [vmem:[#allocation4 + $0xda0] ss:$20 sps:$4 sm:$0xff]  }
 0x2ab   : > { %v2603_v17 = vpop.f32.mrb[64].mxu0  ;;  %v3314_v14 = vpop.f32.mrb[48].mxu1  ;;  %13303 = vmatprep.mubr.msk.bf16.mxu0 %vm1007_vm1, %v17367_v59  ;;  %13314 = vmatprep.mubr.msk.bf16.mxu1 %vm1007_vm1, %v17367_v59  ;;  %v15215_v59 = vld [vmem:[#allocation4 + $0xdcc] ss:$20 sps:$4 sm:$0xff]  }
 0x2ac   : > { %v17468_v54 = vadd.f32 %v2603_v17, %v17268_v49  ;;  %v17471_v11 = vadd.f32 %v3314_v14, %v17381_v34  ;;  %v3316_v30 = vpop.f32.mrb[49].mxu1  ;;  %v2605_v24 = vpop.f32.mrb[65].mxu0  ;;  %v15213_v34 = vld [vmem:[#allocation4 + $0xdc8] ss:$20 sps:$4 sm:$0xff]  }
 0x2ad   : > { %v17474_v41 = vadd.f32 %v3316_v30, %v17387_v19  ;;  %5539 = vmatpush1.bf16.msra.mxu0 %v15198_v62  ;;  %5620 = vmatpush1.bf16.msra.mxu1 %v15201_v31  ;;  %v2606_v50 = vpop.f32.mrb[66].mxu0  ;;  %v3318_v12 = vpop.f32.mrb[50].mxu1  ;;  %v15210_v19 = vld [vmem:[#allocation4 + $0xdc0] ss:$20 sps:$4 sm:$0xff]   ;;  %v15227_v14 = vld [vmem:[#allocation4 + $0xe1c] ss:$20 sps:$4 sm:$0xff]  }
 0x2ae   : > { %5540 = vmatprep.subr.bf16.mxu0 %v15206_v45  ;;  %5621 = vmatprep.subr.bf16.mxu1 %v15209_v29  ;;  %v2607_v49 = vpop.f32.mrb[67].mxu0  ;;  %v3319_v17 = vpop.f32.mrb[51].mxu1  ;;  %v15218_v62 = vld [vmem:[#allocation4 + $0xdec] ss:$20 sps:$4 sm:$0xff]   ;;  %v15221_v31 = vld [vmem:[#allocation4 + $0xdf4] ss:$20 sps:$4 sm:$0xff]  }
 0x2af   : > { %v15216_v12 = vld [vmem:[#allocation4 + $0xde8] ss:$20 sps:$4 sm:$0xff]   ;;  %v15219_v45 = vld [vmem:[#allocation4 + $0xdf0] ss:$20 sps:$4 sm:$0xff]   ;;  %v15231_v50 = vld [vmem:[#allocation4 + $0xe40] ss:$20 sps:$4 sm:$0xff]  }
 0x2b0   : > { %4807 = vmatmul.mubr.bf16.gmra.mrb[12].mxu0 %v17391_v27  ;;  %4963 = vmatmul.mubr.bf16.gmra.mrb[92].mxu1 %v17391_v27  ;;  %v15224_v29 = vld [vmem:[#allocation4 + $0xe14] ss:$20 sps:$4 sm:$0xff]   ;;  %v15230_v24 = vld [vmem:[#allocation4 + $0xe3c] ss:$20 sps:$4 sm:$0xff]   ;;  %v15236_v49 = vld [vmem:[#allocation4 + $0xe64] ss:$20 sps:$4 sm:$0xff]  }
 0x2b1   : > { %5541 = vmatpush1.bf16.msra.mxu0 %v15204_v35  ;;  %5622 = vmatpush1.bf16.msra.mxu1 %v15207_v22  ;;  %v17483_v30 = vld [vmem:[%s16610_s28 + $0x94] ss:$8 sps:$4 sm:$0xff]   ;;  %v15233_v35 = vld [vmem:[#allocation4 + $0xe44] ss:$20 sps:$4 sm:$0xff]   ;;  %v15239_v17 = vld [vmem:[#allocation4 + $0xe6c] ss:$20 sps:$4 sm:$0xff]  }
 0x2b2   : > { %5542 = vmatprep.subr.bf16.mxu0 %v15212_v51  ;;  %5623 = vmatprep.subr.bf16.mxu1 %v15215_v59  ;;  %v15222_v51 = vld [vmem:[#allocation4 + $0xe10] ss:$20 sps:$4 sm:$0xff]   ;;  %v15225_v59 = vld [vmem:[#allocation4 + $0xe18] ss:$20 sps:$4 sm:$0xff]  }
 0x2b3   : > { %13304 = vmatprep.mubr.msk.bf16.mxu0 %vm1007_vm1, %v17357_v33  ;;  %13315 = vmatprep.mubr.msk.bf16.mxu1 %vm1007_vm1, %v17357_v33  ;;  %v15228_v22 = vld [vmem:[#allocation4 + $0xe38] ss:$20 sps:$4 sm:$0xff]  }
 0x2b4   : > { %v17564_v33 = vld [vmem:[%s16610_s28 + $0xc4] ss:$8 sps:$4 sm:$0xff]  }
 0x2b5   : > { %5543 = vmatpush1.bf16.msra.mxu0 %v15210_v19  ;;  %5624 = vmatpush1.bf16.msra.mxu1 %v15213_v34  ;;  %v15234_v19 = vld [vmem:[#allocation4 + $0xe60] ss:$20 sps:$4 sm:$0xff]   ;;  %v15237_v34 = vld [vmem:[#allocation4 + $0xe68] ss:$20 sps:$4 sm:$0xff]  }
 0x2b6   : > { %5544 = vmatprep.subr.bf16.mxu0 %v15218_v62  ;;  %5625 = vmatprep.subr.bf16.mxu1 %v15221_v31  ;;  %v15242_v62 = vld [vmem:[#allocation4 + $0xe8c] ss:$20 sps:$4 sm:$0xff]   ;;  %v15245_v31 = vld [vmem:[#allocation4 + $0xe94] ss:$20 sps:$4 sm:$0xff]  }
 0x2b8   : > { %4817 = vmatmul.mubr.bf16.gmra.mrb[96].mxu0 %v17370_v57  ;;  %4971 = vmatmul.mubr.bf16.gmra.mrb[96].mxu1 %v17370_v57 }
 0x2b9   : > { %5545 = vmatpush1.bf16.msra.mxu0 %v15216_v12  ;;  %5626 = vmatpush1.bf16.msra.mxu1 %v15219_v45  ;;  %v5102_v12 = vld [vmem:[#allocation4 + $0xeb0] sm:$0xff]  ;;  %v5103_v45 = vld [vmem:[#allocation4 + $0xeb8] sm:$0xff] }
 0x2ba   : > { %5546 = vmatprep.subr.bf16.mxu0 %v15224_v29  ;;  %5627 = vmatprep.subr.bf16.mxu1 %v15227_v14  ;;  %v13391_v57 = vcombine.low %v5102_v12, %v5102_v12 }
 0x2bb   : > { %13397 = vmatprep.mubr.msk.bf16.mxu0 %vm1007_vm1, %v17483_v30  ;;  %13403 = vmatprep.mubr.msk.bf16.mxu1 %vm1007_vm1, %v17483_v30 }
 0x2bd   : > { %5547 = vmatpush1.bf16.msra.mxu0 %v15222_v51  ;;  %5628 = vmatpush1.bf16.msra.mxu1 %v15225_v59 }
 0x2be   : > { %5548 = vmatprep.subr.bf16.mxu0 %v15230_v24  ;;  %5629 = vmatprep.subr.bf16.mxu1 %v15233_v35  ;;  %v15240_v24 = vld [vmem:[#allocation4 + $0xe88] ss:$20 sps:$4 sm:$0xff]   ;;  %v15243_v35 = vld [vmem:[#allocation4 + $0xe90] ss:$20 sps:$4 sm:$0xff]  }
 0x2c1   : > { %5549 = vmatpush1.bf16.msra.mxu0 %v15228_v22  ;;  %5630 = vmatpush1.bf16.msra.mxu1 %v15231_v50  ;;  %v17494_v22 = vcombine.high %v5102_v12, %v5102_v12  ;;  %v17496_v50 = vcombine.high %v5103_v45, %v5103_v45 }
 0x2c2   : > { %5550 = vmatprep.subr.bf16.mxu0 %v15236_v49  ;;  %5631 = vmatprep.subr.bf16.mxu1 %v15239_v17 }
 0x2c3   : > { %v3355_v29 = vpop.f32.mrb[52].mxu1  ;;  %20693 = vst [vmem:[#allocation50_spill] sm:$0xff] %v17494_v22  ;;  %20694 = vst [vmem:[#allocation51_spill] sm:$0xff] %v17496_v50 }
 0x2c4   : > { %v17492_v14 = vadd.f32 %v3355_v29, %v17412_v13  ;;  %v3357_v51 = vpop.f32.mrb[53].mxu1  ;;  %v13393_v13 = vcombine.low %v5103_v45, %v5103_v45  ;;  %v17515_v45 = vld [vmem:[%s16610_s28 + $0x90] ss:$8 sps:$4 sm:$0xff]  }
 0x2c5   : > { %v3358_v59 = vpop.f32.mrb[54].mxu1  ;;  %5551 = vmatpush1.bf16.msra.mxu0 %v15234_v19  ;;  %5632 = vmatpush1.bf16.msra.mxu1 %v15237_v34  ;;  %v17506_v19 = vsel %vm1023_vm2, %v13391_v57, 0  ;;  %v15255_v34 = vld [vmem:[#allocation4 + $0xed0] ss:$20 sps:$4 sm:$0xff]   ;;  %v15253_v51 = vld [vmem:[#allocation4 + $0xecc] ss:$20 sps:$4 sm:$0xff]  }
 0x2c6   : > { %v17499_v49 = vadd.f32 %v3358_v59, %v17415_v60  ;;  %v3360_v17 = vpop.f32.mrb[55].mxu1  ;;  %5552 = vmatprep.subr.bf16.mxu0 %v15242_v62  ;;  %5633 = vmatprep.subr.bf16.mxu1 %v15245_v31  ;;  %20695 = vst [vmem:[#allocation52_spill] sm:$0xff] %v17506_v19  ;;  %v17509_v60 = vsel %vm1023_vm2, %v13393_v13, 0  ;;  %v15256_v57 = vld [vmem:[#allocation4 + $0xcb8] ss:$20 sps:$4 sm:$0xff]  }
 0x2c7   : > { %20696 = vst [vmem:[#allocation53_spill] sm:$0xff] %v17509_v60  ;;  %v15257_v17 = vld [vmem:[#allocation4 + $0xef4] ss:$20 sps:$4 sm:$0xff]  }
 0x2c8   : > { %v15260_v13 = vld [vmem:[#allocation4 + $0xce0] ss:$20 sps:$4 sm:$0xff]  }
 0x2c9   : > { %5553 = vmatpush1.bf16.msra.mxu0 %v15240_v24  ;;  %5634 = vmatpush1.bf16.msra.mxu1 %v15243_v35  ;;  %v15259_v35 = vld [vmem:[#allocation4 + $0xef8] ss:$20 sps:$4 sm:$0xff]  }
 0x2ca   : > { %13396 = vmatprep.subr.msk.bf16.mxu0 %vm1023_vm2, %v17494_v22  ;;  %13402 = vmatprep.subr.msk.bf16.mxu1 %vm1023_vm2, %v17496_v50  ;;  %v15270_v50 = vld [vmem:[#allocation4 + $0xf48] ss:$20 sps:$4 sm:$0xff]   ;;  %v15281_v22 = vld [vmem:[#allocation4 + $0xf98] ss:$20 sps:$4 sm:$0xff]  }
 0x2cb   : > { %v3363_v62 = vpop.f32.mrb[56].mxu1 }
 0x2cc   : > { %v17512_v31 = vadd.f32 %v3363_v62, %v17430_v1  ;;  %v3365_v12 = vpop.f32.mrb[57].mxu1  ;;  %v17524_v1 = vld [vmem:[%s16610_s28 + $0xa4] ss:$8 sps:$4 sm:$0xff]  }
 0x2cd   : > { %v3366_v29 = vpop.f32.mrb[58].mxu1  ;;  %5555 = vmatpush1.bf16.msra.mxu0 %v17506_v19  ;;  %5636 = vmatpush1.bf16.msra.mxu1 %v17509_v60  ;;  %v17544_v19 = vld [vmem:[%s16610_s28 + $0xb4] ss:$8 sps:$4 sm:$0xff]  }
 0x2ce   : > { %v17520_v59 = vadd.f32 %v3366_v29, %v17435_v18  ;;  %5690 = vmatprep.subr.bf16.mxu0 %v20676_v2  ;;  %6429 = vmatprep.subr.bf16.mxu1 %v15255_v34  ;;  %v3368_v24 = vpop.f32.mrb[59].mxu1  ;;  %v15266_v18 = vld [vmem:[#allocation4 + $0xf20] ss:$20 sps:$4 sm:$0xff]   ;;  %v5922_v40 = vshll.u32 %v17544_v19, 16 }
 0x2cf   : > { %v17537_v29 = vld [vmem:[%s16610_s28 + $0xa0] ss:$8 sps:$4 sm:$0xff]  }
 0x2d0   : > { %5561 = vmatmul.mubr.bf16.vlgmr.msra.gmra.mrb[0].mxu0 %v17515_v45  ;;  %5642 = vmatmul.mubr.bf16.vlgmr.msra.gmra.mrb[0].mxu1 %v17515_v45  ;;  %v15267_v24 = vld [vmem:[#allocation4 + $0xd08] ss:$20 sps:$4 sm:$0xff]   ;;  %v5924_v55 = vrot.slane %v5922_v40, 1 }
 0x2d1   : > { %5691 = vmatpush1.bf16.msra.mxu0 %v15256_v57  ;;  %6430 = vmatpush1.bf16.msra.mxu1 %v15253_v51  ;;  %v15264_v57 = vld [vmem:[#allocation4 + $0xf1c] ss:$20 sps:$4 sm:$0xff]  }
 0x2d2   : > { %5692 = vmatprep.subr.bf16.mxu0 %v20676_v2  ;;  %6431 = vmatprep.subr.bf16.mxu1 %v15259_v35 }
 0x2d3   : > { %v3371_v62 = vpop.f32.mrb[60].mxu1  ;;  %13398 = vmatprep.mubr.msk.bf16.mxu0 %vm1007_vm1, %v17524_v1  ;;  %13404 = vmatprep.mubr.msk.bf16.mxu1 %vm1007_vm1, %v17524_v1 }
 0x2d4   : > { %v17534_v34 = vadd.f32 %v3371_v62, %v17444_v32  ;;  %v3373_v12 = vpop.f32.mrb[61].mxu1  ;;  %v15268_v32 = vld [vmem:[#allocation4 + $0xf44] ss:$20 sps:$4 sm:$0xff]  }
 0x2d5   : > { %v3374_v51 = vpop.f32.mrb[62].mxu1  ;;  %5693 = vmatpush1.bf16.msra.mxu0 %v15260_v13  ;;  %6432 = vmatpush1.bf16.msra.mxu1 %v15257_v17  ;;  %v15271_v17 = vld [vmem:[#allocation4 + $0xd30] ss:$20 sps:$4 sm:$0xff]  }
 0x2d6   : > { %v17540_v35 = vadd.f32 %v3374_v51, %v17447_v4  ;;  %5694 = vmatprep.subr.bf16.mxu0 %v20676_v2  ;;  %6433 = vmatprep.subr.bf16.mxu1 %v15266_v18  ;;  %v3376_v60 = vpop.f32.mrb[63].mxu1  ;;  %v15277_v4 = vld [vmem:[#allocation4 + $0xf70] ss:$20 sps:$4 sm:$0xff]   ;;  %v15275_v51 = vld [vmem:[#allocation4 + $0xf6c] ss:$20 sps:$4 sm:$0xff]  }
 0x2d7   : > { %v17557_v62 = vld [vmem:[%s16610_s28 + $0xb0] ss:$8 sps:$4 sm:$0xff]  }
 0x2d8   : > { %5571 = vmatmul.mubr.bf16.gmra.mrb[4].mxu0 %v17537_v29  ;;  %5652 = vmatmul.mubr.bf16.gmra.mrb[4].mxu1 %v17537_v29 }
 0x2d9   : > { %5695 = vmatpush1.bf16.msra.mxu0 %v15267_v24  ;;  %6434 = vmatpush1.bf16.msra.mxu1 %v15264_v57 }
 0x2da   : > { %5696 = vmatprep.subr.bf16.mxu0 %v20676_v2  ;;  %6435 = vmatprep.subr.bf16.mxu1 %v15270_v50  ;;  %v15278_v50 = vld [vmem:[#allocation4 + $0xd58] ss:$20 sps:$4 sm:$0xff]  }
 0x2db   : > { %v3379_v13 = vpop.f32.mrb[64].mxu1  ;;  %13399 = vmatprep.mubr.msk.bf16.mxu0 %vm1007_vm1, %v17544_v19  ;;  %13405 = vmatprep.mubr.msk.bf16.mxu1 %vm1007_vm1, %v17544_v19 }
 0x2dc   : > { %v17554_v60 = vadd.f32 %v3379_v13, %v17456_v20  ;;  %v3381_v18 = vpop.f32.mrb[65].mxu1  ;;  %v15279_v20 = vld [vmem:[#allocation4 + $0xf94] ss:$20 sps:$4 sm:$0xff]  }
 0x2dd   : > { %v3382_v12 = vpop.f32.mrb[66].mxu1  ;;  %5697 = vmatpush1.bf16.msra.mxu0 %v15271_v17  ;;  %6436 = vmatpush1.bf16.msra.mxu1 %v15268_v32  ;;  %v15282_v32 = vld [vmem:[#allocation4 + $0xd80] ss:$20 sps:$4 sm:$0xff]  }
 0x2de   : > { %v17560_v57 = vadd.f32 %v3382_v12, %v17459_v46  ;;  %5698 = vmatprep.subr.bf16.mxu0 %v20676_v2  ;;  %6437 = vmatprep.subr.bf16.mxu1 %v15277_v4  ;;  %v3384_v24 = vpop.f32.mrb[67].mxu1  ;;  %v15288_v46 = vld [vmem:[#allocation4 + $0xfc0] ss:$20 sps:$4 sm:$0xff]  }
 0x2df   : > { %v5903_v24 = vshll.u32 %v17483_v30, 16 }
 0x2e0   : > { %5581 = vmatmul.mubr.bf16.gmra.mrb[8].mxu0 %v17557_v62  ;;  %5662 = vmatmul.mubr.bf16.gmra.mrb[8].mxu1 %v17557_v62 }
 0x2e1   : > { %5699 = vmatpush1.bf16.msra.mxu0 %v15278_v50  ;;  %6438 = vmatpush1.bf16.msra.mxu1 %v15275_v51  ;;  %v17580_v51 = vld [vmem:[%s16610_s28 + $0xc0] ss:$8 sps:$4 sm:$0xff]   ;;  %v12762_v50 = vld [vmem:[%s16610_s28 + $0xd0] sm:$0xff] }
 0x2e2   : > { %5700 = vmatprep.subr.bf16.mxu0 %v20676_v2  ;;  %6439 = vmatprep.subr.bf16.mxu1 %v15281_v22  ;;  %v17588_v5 = vcombine.high %v12762_v50, %v12762_v50 }
 0x2e3   : > { %v3233_v17 = vpop.f32.mrb[68].mxu0  ;;  %v3387_v4 = vpop.f32.mrb[68].mxu1  ;;  %13400 = vmatprep.mubr.msk.bf16.mxu0 %vm1007_vm1, %v17564_v33  ;;  %13406 = vmatprep.mubr.msk.bf16.mxu1 %vm1007_vm1, %v17564_v33 }
 0x2e4   : > { %v17574_v13 = vadd.f32 %v3233_v17, %v17378_v42  ;;  %v17577_v18 = vadd.f32 %v3387_v4, %v17468_v54  ;;  %v3235_v12 = vpop.f32.mrb[69].mxu0  ;;  %v3389_v22 = vpop.f32.mrb[69].mxu1  ;;  %v15292_v54 = vld [vmem:[#allocation4 + $0xfe8] ss:$20 sps:$4 sm:$0xff]   ;;  %v5959_v58 = vshrl.u32 %v17588_v5, 16 }
 0x2e5   : > { %v17585_v27 = vadd.f32 %v3235_v12, %v17384_v6  ;;  %5701 = vmatpush1.bf16.msra.mxu0 %v15282_v32  ;;  %6440 = vmatpush1.bf16.msra.mxu1 %v15279_v20  ;;  %v3237_v48 = vpop.f32.mrb[70].mxu0  ;;  %v3390_v42 = vpop.f32.mrb[70].mxu1  ;;  %v5901_v6 = vshrl.u32 %v17483_v30, 16  ;;  %v5905_v32 = vrot.slane %v5903_v24, 1  ;;  %v5907_v20 = vshll.u32 %v17524_v1, 16 }
 0x2e6   : > { %5702 = vmatprep.subr.bf16.mxu0 %v20676_v2  ;;  %6441 = vmatprep.subr.bf16.mxu1 %v15288_v46  ;;  %v3238_v17 = vpop.f32.mrb[71].mxu0  ;;  %v3391_v4 = vpop.f32.mrb[71].mxu1  ;;  %v15290_v48 = vld [vmem:[#allocation4 + $0xfe4] ss:$20 sps:$4 sm:$0xff]   ;;  %v17599_v22 = vcombine.low %v12762_v50, %v12762_v50  ;;  %v15300_v50 = vld [vmem:[#allocation4 + $0x1034] ss:$20 sps:$4 sm:$0xff]  }
 0x2e7   : > { %v15293_v12 = vld [vmem:[#allocation4 + $0xdd0] ss:$20 sps:$4 sm:$0xff]   ;;  %v5906_v42 = vor.u32 %v5905_v32, %v5901_v6  ;;  %v5909_v24 = vrot.slane %v5907_v20, 1  ;;  %v15302_v17 = vld [vmem:[#allocation4 + $0x1038] ss:$20 sps:$4 sm:$0xff]  }
 0x2e8   : > { %5591 = vmatmul.mubr.bf16.gmra.mrb[12].mxu0 %v17580_v51  ;;  %5672 = vmatmul.mubr.bf16.gmra.mrb[12].mxu1 %v17580_v51  ;;  %v15298_v46 = vld [vmem:[#allocation4 + $0x1010] ss:$20 sps:$4 sm:$0xff]   ;;  %v15303_v4 = vld [vmem:[#allocation4 + $0xe20] ss:$20 sps:$4 sm:$0xff]   ;;  %v15307_v20 = vld [vmem:[#allocation4 + $0xe48] ss:$20 sps:$4 sm:$0xff]  }
 0x2e9   : > { %5703 = vmatpush1.bf16.msra.mxu0 %v15289_v25  ;;  %6442 = vmatpush1.bf16.msra.mxu1 %v15286_v16  ;;  %v15296_v25 = vld [vmem:[#allocation4 + $0x100c] ss:$20 sps:$4 sm:$0xff]   ;;  %v15304_v32 = vld [vmem:[#allocation4 + $0x105c] ss:$20 sps:$4 sm:$0xff]  }
 0x2ea   : > { %5704 = vmatprep.subr.bf16.mxu0 %v20676_v2  ;;  %6443 = vmatprep.subr.bf16.mxu1 %v15292_v54  ;;  %v15299_v16 = vld [vmem:[#allocation4 + $0xdf8] ss:$20 sps:$4 sm:$0xff]   ;;  %v17605_v54 = vsel %vm572_vm0, %v5906_v42, %v5909_v24  ;;  %v15306_v6 = vld [vmem:[#allocation4 + $0x1060] ss:$20 sps:$4 sm:$0xff]   ;;  %v5892_v42 = vshll.u32 %v17515_v45, 16 }
 0x2eb   : > { %13401 = vmatprep.mubr.msk.bf16.mxu0 %vm1007_vm1, %v17588_v5  ;;  %13407 = vmatprep.mubr.msk.bf16.mxu1 %vm1007_vm1, %v17588_v5 }
 0x2ec   : > { %v5894_v3 = vrot.slane %v5892_v42, 1 }
 0x2ed   : > { %5705 = vmatpush1.bf16.msra.mxu0 %v15293_v12  ;;  %6444 = vmatpush1.bf16.msra.mxu1 %v15290_v48  ;;  %v15310_v48 = vld [vmem:[#allocation4 + $0x1088] ss:$20 sps:$4 sm:$0xff]   ;;  %v15308_v12 = vld [vmem:[#allocation4 + $0x1084] ss:$20 sps:$4 sm:$0xff]  }
 0x2ee   : > { %5706 = vmatprep.subr.bf16.mxu0 %v20676_v2  ;;  %6445 = vmatprep.subr.bf16.mxu1 %v15298_v46  ;;  %v15311_v46 = vld [vmem:[#allocation4 + $0xe70] ss:$20 sps:$4 sm:$0xff]  }
 0x2f0   : > { %5601 = vmatmul.mubr.bf16.gmra.mrb[100].mxu0 %v17599_v22  ;;  %5682 = vmatmul.mubr.bf16.gmra.mrb[100].mxu1 %v17599_v22 }
 0x2f1   : > { %5707 = vmatpush1.bf16.msra.mxu0 %v15299_v16  ;;  %6446 = vmatpush1.bf16.msra.mxu1 %v15296_v25  ;;  %v15314_v25 = vld [vmem:[#allocation4 + $0x10b0] ss:$20 sps:$4 sm:$0xff]   ;;  %v5887_v16 = vld [vmem:[#allocation4 + $0x10d4] sm:$0xff] }
 0x2f2   : > { %5708 = vmatprep.subr.bf16.mxu0 %v20676_v2  ;;  %6447 = vmatprep.subr.bf16.mxu1 %v15302_v17  ;;  %v15312_v17 = vld [vmem:[#allocation4 + $0x10ac] ss:$20 sps:$4 sm:$0xff]   ;;  %v13480_v44 = vcombine.low %v5887_v16, %v5887_v16 }
 0x2f3   : > { %13408 = vmatprep.mubr.msk.bf16.mxu0 %vm1007_vm1, %v17483_v30  ;;  %13490 = vmatprep.mubr.msk.bf16.mxu1 %vm1007_vm1, %v17605_v54 }
 0x2f5   : > { %5709 = vmatpush1.bf16.msra.mxu0 %v15303_v4  ;;  %6448 = vmatpush1.bf16.msra.mxu1 %v15300_v50  ;;  %v15315_v50 = vld [vmem:[#allocation4 + $0xe98] ss:$20 sps:$4 sm:$0xff]   ;;  %v5890_v4 = vshrl.u32 %v17515_v45, 16 }
 0x2f6   : > { %5710 = vmatprep.subr.bf16.mxu0 %v20676_v2  ;;  %6449 = vmatprep.subr.bf16.mxu1 %v15306_v6  ;;  %v5897_v6 = vshll.u32 %v17537_v29, 16 }
 0x2f9   : > { %5711 = vmatpush1.bf16.msra.mxu0 %v15307_v20  ;;  %6450 = vmatpush1.bf16.msra.mxu1 %v15304_v32  ;;  %v17618_v32 = vcombine.high %v5887_v16, %v5887_v16  ;;  %v15317_v20 = vld [vmem:[#allocation4 + $0xec0] ss:$0 sps:$4 sm:$0xff]   ;;  %v15321_v16 = vld [vmem:[#allocation4 + $0xec8] ss:$20 sps:$4 sm:$0xff]  }
 0x2fa   : > { %5712 = vmatprep.subr.bf16.mxu0 %v20676_v2  ;;  %6451 = vmatprep.subr.bf16.mxu1 %v15310_v48  ;;  %v5919_v48 = vshrl.u32 %v17524_v1, 16  ;;  %v17626_v42 = vsel %vm1023_vm2, %v15317_v20, 0  ;;  %v5937_v20 = vshll.u32 %v17564_v33, 16 }
 0x2fb   : > { %20697 = vst [vmem:[#allocation54_spill] sm:$0xff] %v17618_v32  ;;  %20698 = vst [vmem:[#allocation55_spill] sm:$0xff] %v17626_v42 }
 0x2fc   : > { %v5921_v21 = vor.u32 %v5919_v48, %v5909_v24  ;;  %v5934_v24 = vshrl.u32 %v17544_v19, 16  ;;  %v15323_v48 = vld [vmem:[#allocation4 + $0xeec] ss:$20 sps:$4 sm:$0xff]  }
 0x2fd   : > { %5713 = vmatpush1.bf16.msra.mxu0 %v15311_v46  ;;  %6452 = vmatpush1.bf16.msra.mxu1 %v15308_v12  ;;  %v5895_v12 = vor.u32 %v5894_v3, %v5890_v4  ;;  %v5899_v46 = vrot.slane %v5897_v6, 1  ;;  %v15319_v3 = vld [vmem:[#allocation4 + $0xec4] ss:$20 sps:$4 sm:$0xff]   ;;  %v5911_v4 = vshrl.u32 %v17537_v29, 16  ;;  %v5915_v6 = vshll.u32 %v17557_v62, 16 }
 0x2fe   : > { %5714 = vmatprep.subr.bf16.mxu0 %v20676_v2  ;;  %6453 = vmatprep.subr.bf16.mxu1 %v15314_v25  ;;  %v17629_v25 = vsel %vm1023_vm2, %v13480_v44, 0  ;;  %v15325_v44 = vld [vmem:[#allocation4 + $0xef0] ss:$20 sps:$4 sm:$0xff]   ;;  %v17642_v40 = vsel %vm572_vm0, %v5921_v21, %v5924_v55  ;;  %v5936_v21 = vor.u32 %v5934_v24, %v5924_v55  ;;  %v5949_v24 = vshrl.u32 %v17564_v33, 16 }
 0x2ff   : > { %20699 = vst [vmem:[#allocation56_spill] sm:$0xff] %v17629_v25  ;;  %20700 = vst [vmem:[#allocation57_spill] sm:$0xff] %v17642_v40 }
 0x301   : > { %5715 = vmatpush1.bf16.msra.mxu0 %v15315_v50  ;;  %6454 = vmatpush1.bf16.msra.mxu1 %v15312_v17  ;;  %v17634_v17 = vsel %vm572_vm0, %v5895_v12, %v5899_v46  ;;  %v15322_v50 = vld [vmem:[#allocation4 + $0xed4] ss:$20 sps:$4 sm:$0xff]   ;;  %v15326_v12 = vld [vmem:[#allocation4 + $0xefc] ss:$20 sps:$4 sm:$0xff]  }
 0x302   : > { %5716 = vmatprep.subr.bf16.mxu0 %v20676_v2  ;;  %13489 = vmatprep.subr.msk.bf16.mxu1 %vm1023_vm2, %v17618_v32  ;;  %v15329_v32 = vld [vmem:[#allocation4 + $0xf18] ss:$20 sps:$4 sm:$0xff]  }
 0x305   : > { %5717 = vmatpush1.bf16.msra.mxu0 %v17626_v42  ;;  %6456 = vmatpush1.bf16.msra.mxu1 %v17629_v25  ;;  %v5913_v25 = vor.u32 %v5911_v4, %v5899_v46  ;;  %v15330_v46 = vld [vmem:[#allocation4 + $0xf24] ss:$20 sps:$4 sm:$0xff]   ;;  %v5926_v4 = vshrl.u32 %v17557_v62, 16  ;;  %v15337_v42 = vld [vmem:[#allocation4 + $0xf68] ss:$20 sps:$4 sm:$0xff]  }
 0x306   : > { %6348 = vmatprep.subr.bf16.mxu0 %v15321_v16  ;;  %6510 = vmatprep.subr.bf16.mxu1 %v20676_v2  ;;  %v5917_v16 = vrot.slane %v5915_v6, 1  ;;  %v5930_v6 = vshll.u32 %v17580_v51, 16 }
 0x308   : > { %5723 = vmatmul.mubr.bf16.vlgmr.msra.gmra.mrb[104].mxu0 %v17515_v45  ;;  %6462 = vmatmul.mubr.bf16.vlgmr.msra.gmra.mrb[0].mxu1 %v17634_v17  ;;  %v5939_v45 = vrot.slane %v5937_v20, 1  ;;  %v15331_v20 = vld [vmem:[#allocation4 + $0xf3c] ss:$20 sps:$4 sm:$0xff]  }
 0x309   : > { %6349 = vmatpush1.bf16.msra.mxu0 %v15319_v3  ;;  %6511 = vmatpush1.bf16.msra.mxu1 %v15322_v50  ;;  %v15327_v3 = vld [vmem:[#allocation4 + $0xf14] ss:$20 sps:$4 sm:$0xff]   ;;  %v17652_v50 = vsel %vm572_vm0, %v5913_v25, %v5917_v16  ;;  %v5952_v25 = vshll.u32 %v17588_v5, 16 }
 0x30a   : > { %6350 = vmatprep.subr.bf16.mxu0 %v15325_v44  ;;  %6512 = vmatprep.subr.bf16.mxu1 %v20676_v2  ;;  %20701 = vst [vmem:[#allocation58_spill] sm:$0xff] %v17652_v50  ;;  %v15333_v44 = vld [vmem:[#allocation4 + $0xf40] ss:$20 sps:$4 sm:$0xff]   ;;  %v17660_v55 = vsel %vm572_vm0, %v5936_v21, %v5939_v45  ;;  %v5951_v21 = vor.u32 %v5949_v24, %v5939_v45 }
 0x30b   : > { %13409 = vmatprep.mubr.msk.bf16.mxu0 %vm1007_vm1, %v17524_v1  ;;  %13491 = vmatprep.mubr.msk.bf16.mxu1 %vm1007_vm1, %v17642_v40  ;;  %20702 = vst [vmem:[#allocation59_spill] sm:$0xff] %v17660_v55  ;;  %v5954_v26 = vrot.slane %v5952_v25, 1  ;;  %v15339_v24 = vld [vmem:[#allocation4 + $0xf8c] ss:$20 sps:$4 sm:$0xff]   ;;  %v15342_v25 = vld [vmem:[#allocation4 + $0xf9c] ss:$20 sps:$4 sm:$0xff]  }
 0x30d   : > { %6351 = vmatpush1.bf16.msra.mxu0 %v15323_v48  ;;  %6513 = vmatpush1.bf16.msra.mxu1 %v15326_v12  ;;  %v15334_v48 = vld [vmem:[#allocation4 + $0xf4c] ss:$20 sps:$4 sm:$0xff]   ;;  %v5928_v12 = vor.u32 %v5926_v4, %v5917_v16  ;;  %v15338_v16 = vld [vmem:[#allocation4 + $0xf74] ss:$20 sps:$4 sm:$0xff]   ;;  %v5941_v4 = vshrl.u32 %v17580_v51, 16  ;;  %v17678_v45 = vsel %vm572_vm0, %v5951_v21, %v5954_v26 }
 0x30e   : > { %6352 = vmatprep.subr.bf16.mxu0 %v15329_v32  ;;  %6514 = vmatprep.subr.bf16.mxu1 %v20676_v2  ;;  %v5932_v32 = vrot.slane %v5930_v6, 1  ;;  %v5945_v6 = vshll.u32 %v17599_v22, 16  ;;  %20704 = vst [vmem:[#allocation61_spill] sm:$0xff] %v17678_v45 }
 0x310   : > { %5731 = vmatmul.mubr.bf16.gmra.mrb[108].mxu0 %v17537_v29  ;;  %6472 = vmatmul.mubr.bf16.gmra.mrb[4].mxu1 %v17652_v50 }
 0x311   : > { %6353 = vmatpush1.bf16.msra.mxu0 %v15327_v3  ;;  %6515 = vmatpush1.bf16.msra.mxu1 %v15330_v46  ;;  %v15335_v3 = vld [vmem:[#allocation4 + $0xf64] ss:$20 sps:$4 sm:$0xff]   ;;  %v17670_v46 = vsel %vm572_vm0, %v5928_v12, %v5932_v32 }
 0x312   : > { %6354 = vmatprep.subr.bf16.mxu0 %v15333_v44  ;;  %6516 = vmatprep.subr.bf16.mxu1 %v20676_v2  ;;  %20703 = vst [vmem:[#allocation60_spill] sm:$0xff] %v17670_v46  ;;  %v15341_v44 = vld [vmem:[#allocation4 + $0xf90] ss:$20 sps:$4 sm:$0xff]  }
 0x313   : > { %13410 = vmatprep.mubr.msk.bf16.mxu0 %vm1007_vm1, %v17544_v19  ;;  %13492 = vmatprep.mubr.msk.bf16.mxu1 %vm1007_vm1, %v17660_v55 }
 0x315   : > { %6355 = vmatpush1.bf16.msra.mxu0 %v15331_v20  ;;  %6517 = vmatpush1.bf16.msra.mxu1 %v15334_v48  ;;  %v5943_v20 = vor.u32 %v5941_v4, %v5932_v32  ;;  %v5947_v48 = vrot.slane %v5945_v6, 1 }
 0x316   : > { %6356 = vmatprep.subr.bf16.mxu0 %v15337_v42  ;;  %6518 = vmatprep.subr.bf16.mxu1 %v20676_v2  ;;  %v15345_v42 = vld [vmem:[#allocation4 + $0xfb8] ss:$20 sps:$4 sm:$0xff]  }
 0x317   : > { %v17699_v39 = vsel %vm572_vm0, %v5943_v20, %v5947_v48  ;;  %v15353_v20 = vld [vmem:[#allocation4 + $0x1008] ss:$20 sps:$4 sm:$0xff]  }
 0x318   : > { %5739 = vmatmul.mubr.bf16.gmra.mrb[112].mxu0 %v17557_v62  ;;  %6482 = vmatmul.mubr.bf16.gmra.mrb[8].mxu1 %v17670_v46  ;;  %20705 = vst [vmem:[#allocation62_spill] sm:$0xff] %v17699_v39 }
 0x319   : > { %6357 = vmatpush1.bf16.msra.mxu0 %v15335_v3  ;;  %6519 = vmatpush1.bf16.msra.mxu1 %v15338_v16 }
 0x31a   : > { %6358 = vmatprep.subr.bf16.mxu0 %v15341_v44  ;;  %6520 = vmatprep.subr.bf16.mxu1 %v20676_v2  ;;  %v15343_v44 = vld [vmem:[#allocation4 + $0xfb4] ss:$20 sps:$4 sm:$0xff]  }
 0x31b   : > { %v4053_v12 = vpop.f32.mrb[72].mxu0  ;;  %v4134_v28 = vpop.f32.mrb[72].mxu1  ;;  %13411 = vmatprep.mubr.msk.bf16.mxu0 %vm1007_vm1, %v17564_v33  ;;  %13493 = vmatprep.mubr.msk.bf16.mxu1 %vm1007_vm1, %v17678_v45 }
 0x31c   : > { %v17687_v21 = vadd.f32 %v4053_v12, %v17574_v13  ;;  %v17690_v32 = vadd.f32 %v4134_v28, %v17471_v11  ;;  %v4055_v3 = vpop.f32.mrb[73].mxu0  ;;  %v4136_v16 = vpop.f32.mrb[73].mxu1  ;;  %v15349_v28 = vld [vmem:[#allocation4 + $0xfe0] ss:$20 sps:$4 sm:$0xff]  }
 0x31d   : > { %v17693_v4 = vadd.f32 %v4055_v3, %v17585_v27  ;;  %v17696_v6 = vadd.f32 %v4136_v16, %v17474_v41  ;;  %6359 = vmatpush1.bf16.msra.mxu0 %v15339_v24  ;;  %6521 = vmatpush1.bf16.msra.mxu1 %v15342_v25  ;;  %v4057_v13 = vpop.f32.mrb[74].mxu0  ;;  %v4138_v12 = vpop.f32.mrb[74].mxu1  ;;  %v17702_v27 = vor.u32 %v5959_v58, %v5954_v26  ;;  %v5956_v41 = vshrl.u32 %v17599_v22, 16  ;;  %v15347_v24 = vld [vmem:[#allocation4 + $0xfdc] ss:$20 sps:$4 sm:$0xff]  }
 0x31e   : > { %6360 = vmatprep.subr.bf16.mxu0 %v15345_v42  ;;  %6522 = vmatprep.subr.bf16.mxu1 %v20676_v2  ;;  %v4058_v11 = vpop.f32.mrb[75].mxu0  ;;  %v4139_v38 = vpop.f32.mrb[75].mxu1  ;;  %v15350_v25 = vld [vmem:[#allocation4 + $0xfec] ss:$20 sps:$4 sm:$0xff]   ;;  %v15354_v26 = vld [vmem:[#allocation4 + $0x1014] ss:$20 sps:$4 sm:$0xff]  }
 0x31f   : > { %20706 = vst [vmem:[#allocation63_spill] sm:$0xff] %v17702_v27  ;;  %v17712_v58 = vor.u32 %v5956_v41, %v5947_v48  ;;  %v15351_v38 = vld [vmem:[#allocation4 + $0x1004] ss:$20 sps:$4 sm:$0xff]   ;;  %v15355_v42 = vld [vmem:[#allocation4 + $0x102c] ss:$20 sps:$4 sm:$0xff]  }
 0x320   : > { %5747 = vmatmul.mubr.bf16.gmra.mrb[116].mxu0 %v17580_v51  ;;  %6492 = vmatmul.mubr.bf16.gmra.mrb[12].mxu1 %v17699_v39  ;;  %v15358_v3 = vld [vmem:[#allocation4 + $0x103c] ss:$20 sps:$4 sm:$0xff]   ;;  %v15361_v48 = vld [vmem:[#allocation4 + $0x1058] ss:$20 sps:$4 sm:$0xff]   ;;  %v15359_v16 = vld [vmem:[#allocation4 + $0x1054] ss:$20 sps:$4 sm:$0xff]  }
 0x321   : > { %6361 = vmatpush1.bf16.msra.mxu0 %v15343_v44  ;;  %6523 = vmatpush1.bf16.msra.mxu1 %v15346_v53  ;;  %20707 = vst [vmem:[#allocation64_spill] sm:$0xff] %v17712_v58  ;;  %v15357_v53 = vld [vmem:[#allocation4 + $0x1030] ss:$20 sps:$4 sm:$0xff]   ;;  %v15365_v13 = vld [vmem:[#allocation4 + $0x1080] ss:$20 sps:$4 sm:$0xff]  }
 0x322   : > { %6362 = vmatprep.subr.bf16.mxu0 %v15349_v28  ;;  %6524 = vmatprep.subr.bf16.mxu1 %v20676_v2  ;;  %v15362_v44 = vld [vmem:[#allocation4 + $0x1064] ss:$20 sps:$4 sm:$0xff]   ;;  %v15363_v12 = vld [vmem:[#allocation4 + $0x107c] ss:$20 sps:$4 sm:$0xff]   ;;  %v15366_v28 = vld [vmem:[#allocation4 + $0x108c] ss:$20 sps:$4 sm:$0xff]  }
 0x323   : > { %13412 = vmatprep.mubr.msk.bf16.mxu0 %vm1007_vm1, %v17588_v5  ;;  %13494 = vmatprep.mubr.msk.bf16.mxu1 %vm1007_vm1, %v17702_v27  ;;  %v15369_v11 = vld [vmem:[#allocation4 + $0x10a8] ss:$20 sps:$4 sm:$0xff]  }
 0x325   : > { %6363 = vmatpush1.bf16.msra.mxu0 %v15347_v24  ;;  %6525 = vmatpush1.bf16.msra.mxu1 %v15350_v25  ;;  %v5886_v24 = vld [vmem:[#allocation4 + $0x10cc] sm:$0xff] }
 0x326   : > { %6364 = vmatprep.subr.bf16.mxu0 %v15353_v20  ;;  %6526 = vmatprep.subr.bf16.mxu1 %v20676_v2 }
 0x328   : > { %5755 = vmatmul.mubr.bf16.gmra.mrb[120].mxu0 %v17599_v22  ;;  %6502 = vmatmul.mubr.bf16.gmra.mrb[104].mxu1 %v17712_v58 }
 0x329   : > { %6365 = vmatpush1.bf16.msra.mxu0 %v15351_v38  ;;  %6527 = vmatpush1.bf16.msra.mxu1 %v15354_v26  ;;  %v15367_v26 = vld [vmem:[#allocation4 + $0x10a4] ss:$20 sps:$4 sm:$0xff]  }
 0x32a   : > { %6366 = vmatprep.subr.bf16.mxu0 %v15357_v53  ;;  %6528 = vmatprep.subr.bf16.mxu1 %v20676_v2  ;;  %v15370_v53 = vld [vmem:[#allocation4 + $0x10b4] ss:$20 sps:$4 sm:$0xff]  }
 0x32b   : > { %13484 = vmatprep.mubr.msk.bf16.mxu0 %vm1007_vm1, %v17605_v54  ;;  %13495 = vmatprep.mubr.msk.bf16.mxu1 %vm1007_vm1, %v17605_v54 }
 0x32d   : > { %6367 = vmatpush1.bf16.msra.mxu0 %v15355_v42  ;;  %6529 = vmatpush1.bf16.msra.mxu1 %v15358_v3 }
 0x32e   : > { %6368 = vmatprep.subr.bf16.mxu0 %v15361_v48  ;;  %6530 = vmatprep.subr.bf16.mxu1 %v20676_v2  ;;  %v17731_v48 = vcombine.high %v5886_v24, %v5886_v24 }
 0x330   : > { %20708 = vst [vmem:[#allocation65_spill] sm:$0xff] %v17731_v48 }
 0x331   : > { %6369 = vmatpush1.bf16.msra.mxu0 %v15359_v16  ;;  %6531 = vmatpush1.bf16.msra.mxu1 %v15362_v44  ;;  %v13478_v16 = vcombine.low %v5886_v24, %v5886_v24  ;;  %v15373_v44 = vld [vmem:[#allocation4 + $0x10dc] ss:$0 sps:$4 sm:$0xff]  }
 0x332   : > { %6370 = vmatprep.subr.bf16.mxu0 %v15365_v13  ;;  %6532 = vmatprep.subr.bf16.mxu1 %v20676_v2  ;;  %v15376_v13 = vld [vmem:[#allocation4 + $0x10e4] ss:$20 sps:$4 sm:$0xff]  }
 0x333   : > { %v4175_v41 = vpop.f32.mrb[76].mxu0 }
 0x334   : > { %v17725_v25 = vadd.f32 %v4175_v41, %v17492_v14  ;;  %v4177_v20 = vpop.f32.mrb[77].mxu0  ;;  %v17737_v14 = vsel %vm1023_vm2, %v13478_v16, 0  ;;  %v15385_v16 = vld [vmem:[#allocation4 + $0x1114] ss:$20 sps:$4 sm:$0xff]  }
 0x335   : > { %v4178_v38 = vpop.f32.mrb[78].mxu0  ;;  %6371 = vmatpush1.bf16.msra.mxu0 %v15363_v12  ;;  %6533 = vmatpush1.bf16.msra.mxu1 %v15366_v28  ;;  %20709 = vst [vmem:[#allocation66_spill] sm:$0xff] %v17737_v14  ;;  %v15379_v12 = vld [vmem:[#allocation4 + $0x10ec] ss:$20 sps:$4 sm:$0xff]  }
 0x336   : > { %v17728_v42 = vadd.f32 %v4178_v38, %v17499_v49  ;;  %v4180_v3 = vpop.f32.mrb[79].mxu0  ;;  %6372 = vmatprep.subr.bf16.mxu0 %v15369_v11  ;;  %6534 = vmatprep.subr.bf16.mxu1 %v20676_v2  ;;  %v17740_v49 = vsel %vm1023_vm2, %v15373_v44, 0  ;;  %v15374_v20 = vld [vmem:[#allocation4 + $0x10e0] ss:$20 sps:$4 sm:$0xff]   ;;  %v15377_v38 = vld [vmem:[#allocation4 + $0x10e8] ss:$20 sps:$4 sm:$0xff]  }
 0x337   : > { %20710 = vst [vmem:[#allocation67_spill] sm:$0xff] %v17740_v49  ;;  %v15382_v3 = vld [vmem:[#allocation4 + $0x110c] ss:$20 sps:$4 sm:$0xff]   ;;  %v15383_v44 = vld [vmem:[#allocation4 + $0x1110] ss:$20 sps:$4 sm:$0xff]  }
 0x339   : > { %6373 = vmatpush1.bf16.msra.mxu0 %v15367_v26  ;;  %6535 = vmatpush1.bf16.msra.mxu1 %v15370_v53 }
 0x33a   : > { %13483 = vmatprep.subr.msk.bf16.mxu0 %vm1023_vm2, %v17731_v48  ;;  %6536 = vmatprep.subr.bf16.mxu1 %v20676_v2  ;;  %v15418_v48 = vld [vmem:[#allocation4 + $0x11fc] ss:$20 sps:$4 sm:$0xff]  }
 0x33b   : > { %v4183_v28 = vpop.f32.mrb[80].mxu0 }
 0x33c   : > { %v17743_v11 = vadd.f32 %v4183_v28, %v17512_v31  ;;  %v4185_v41 = vpop.f32.mrb[81].mxu0  ;;  %v15380_v31 = vld [vmem:[#allocation4 + $0x1108] ss:$20 sps:$4 sm:$0xff]  }
 0x33d   : > { %v4186_v24 = vpop.f32.mrb[82].mxu0  ;;  %6375 = vmatpush1.bf16.msra.mxu0 %v17737_v14  ;;  %6537 = vmatpush1.bf16.msra.mxu1 %v17740_v49  ;;  %v15388_v28 = vld [vmem:[#allocation4 + $0x1134] ss:$20 sps:$4 sm:$0xff]   ;;  %v15391_v41 = vld [vmem:[#allocation4 + $0x113c] ss:$20 sps:$4 sm:$0xff]  }
 0x33e   : > { %v17748_v26 = vadd.f32 %v4186_v24, %v17520_v59  ;;  %7113 = vmatprep.subr.bf16.mxu0 %v15376_v13  ;;  %7194 = vmatprep.subr.bf16.mxu1 %v15379_v12  ;;  %v4188_v53 = vpop.f32.mrb[83].mxu0  ;;  %v15386_v24 = vld [vmem:[#allocation4 + $0x1130] ss:$20 sps:$4 sm:$0xff]  }
 0x340   : > { %6381 = vmatmul.mubr.bf16.vlgmr.msra.gmra.mrb[0].mxu0 %v17634_v17  ;;  %6543 = vmatmul.mubr.bf16.vlgmr.msra.gmra.mrb[108].mxu1 %v17634_v17 }
 0x341   : > { %7114 = vmatpush1.bf16.msra.mxu0 %v15374_v20  ;;  %7195 = vmatpush1.bf16.msra.mxu1 %v15377_v38  ;;  %v15389_v20 = vld [vmem:[#allocation4 + $0x1138] ss:$20 sps:$4 sm:$0xff]  }
 0x342   : > { %7115 = vmatprep.subr.bf16.mxu0 %v15382_v3  ;;  %7196 = vmatprep.subr.bf16.mxu1 %v15385_v16  ;;  %v15394_v3 = vld [vmem:[#allocation4 + $0x115c] ss:$20 sps:$4 sm:$0xff]   ;;  %v15397_v16 = vld [vmem:[#allocation4 + $0x1164] ss:$20 sps:$4 sm:$0xff]  }
 0x343   : > { %v4191_v49 = vpop.f32.mrb[84].mxu0  ;;  %13485 = vmatprep.mubr.msk.bf16.mxu0 %vm1007_vm1, %v17642_v40  ;;  %13496 = vmatprep.mubr.msk.bf16.mxu1 %vm1007_vm1, %v17642_v40  ;;  %v15677_v40 = vld [vmem:[#allocation4 + $0x4e4] ss:$20 sps:$4 sm:$0xff]  }
 0x344   : > { %v17757_v59 = vadd.f32 %v4191_v49, %v17534_v34  ;;  %v4193_v13 = vpop.f32.mrb[85].mxu0  ;;  %v15392_v34 = vld [vmem:[#allocation4 + $0x1158] ss:$20 sps:$4 sm:$0xff]   ;;  %v15395_v49 = vld [vmem:[#allocation4 + $0x1160] ss:$20 sps:$4 sm:$0xff]  }
 0x345   : > { %v4194_v12 = vpop.f32.mrb[86].mxu0  ;;  %7116 = vmatpush1.bf16.msra.mxu0 %v15380_v31  ;;  %7197 = vmatpush1.bf16.msra.mxu1 %v15383_v44  ;;  %v15400_v31 = vld [vmem:[#allocation4 + $0x1184] ss:$20 sps:$4 sm:$0xff]   ;;  %v15403_v44 = vld [vmem:[#allocation4 + $0x118c] ss:$20 sps:$4 sm:$0xff]  }
 0x346   : > { %v17760_v38 = vadd.f32 %v4194_v12, %v17540_v35  ;;  %7117 = vmatprep.subr.bf16.mxu0 %v15388_v28  ;;  %7198 = vmatprep.subr.bf16.mxu1 %v15391_v41  ;;  %v4196_v53 = vpop.f32.mrb[87].mxu0  ;;  %v15398_v12 = vld [vmem:[#allocation4 + $0x1180] ss:$20 sps:$4 sm:$0xff]  }
 0x348   : > { %6391 = vmatmul.mubr.bf16.gmra.mrb[4].mxu0 %v17652_v50  ;;  %6551 = vmatmul.mubr.bf16.gmra.mrb[112].mxu1 %v17652_v50 }
 0x349   : > { %7118 = vmatpush1.bf16.msra.mxu0 %v15386_v24  ;;  %7199 = vmatpush1.bf16.msra.mxu1 %v15389_v20  ;;  %v15401_v24 = vld [vmem:[#allocation4 + $0x1188] ss:$20 sps:$4 sm:$0xff]  }
 0x34a   : > { %7119 = vmatprep.subr.bf16.mxu0 %v15394_v3  ;;  %7200 = vmatprep.subr.bf16.mxu1 %v15397_v16  ;;  %v15406_v3 = vld [vmem:[#allocation4 + $0x11ac] ss:$20 sps:$4 sm:$0xff]   ;;  %v15409_v16 = vld [vmem:[#allocation4 + $0x11b4] ss:$20 sps:$4 sm:$0xff]  }
 0x34b   : > { %v4199_v13 = vpop.f32.mrb[88].mxu0  ;;  %13486 = vmatprep.mubr.msk.bf16.mxu0 %vm1007_vm1, %v17660_v55  ;;  %13497 = vmatprep.mubr.msk.bf16.mxu1 %vm1007_vm1, %v17660_v55 }
 0x34c   : > { %v17769_v35 = vadd.f32 %v4199_v13, %v17554_v60  ;;  %v4201_v28 = vpop.f32.mrb[89].mxu0  ;;  %v15404_v60 = vld [vmem:[#allocation4 + $0x11a8] ss:$20 sps:$4 sm:$0xff]   ;;  %v15407_v13 = vld [vmem:[#allocation4 + $0x11b0] ss:$20 sps:$4 sm:$0xff]  }
 0x34d   : > { %v4202_v41 = vpop.f32.mrb[90].mxu0  ;;  %7120 = vmatpush1.bf16.msra.mxu0 %v15392_v34  ;;  %7201 = vmatpush1.bf16.msra.mxu1 %v15395_v49  ;;  %v15412_v34 = vld [vmem:[#allocation4 + $0x11d4] ss:$20 sps:$4 sm:$0xff]   ;;  %v15415_v49 = vld [vmem:[#allocation4 + $0x11dc] ss:$20 sps:$4 sm:$0xff]  }
 0x34e   : > { %v17772_v20 = vadd.f32 %v4202_v41, %v17560_v57  ;;  %7121 = vmatprep.subr.bf16.mxu0 %v15400_v31  ;;  %7202 = vmatprep.subr.bf16.mxu1 %v15403_v44  ;;  %v4204_v53 = vpop.f32.mrb[91].mxu0 }
 0x34f   : > { %v15410_v53 = vld [vmem:[#allocation4 + $0x11d0] ss:$20 sps:$4 sm:$0xff]  }
 0x350   : > { %6401 = vmatmul.mubr.bf16.gmra.mrb[8].mxu0 %v17670_v46  ;;  %6559 = vmatmul.mubr.bf16.gmra.mrb[116].mxu1 %v17670_v46  ;;  %v15671_v46 = vld [vmem:[#allocation4 + $0x494] ss:$20 sps:$4 sm:$0xff]  }
 0x351   : > { %7122 = vmatpush1.bf16.msra.mxu0 %v15398_v12  ;;  %7203 = vmatpush1.bf16.msra.mxu1 %v15401_v24 }
 0x352   : > { %7123 = vmatprep.subr.bf16.mxu0 %v15406_v3  ;;  %7204 = vmatprep.subr.bf16.mxu1 %v15409_v16  ;;  %v15413_v3 = vld [vmem:[#allocation4 + $0x11d8] ss:$20 sps:$4 sm:$0xff]  }
 0x353   : > { %v4207_v28 = vpop.f32.mrb[92].mxu0  ;;  %v4899_v57 = vpop.f32.mrb[76].mxu1  ;;  %13487 = vmatprep.mubr.msk.bf16.mxu0 %vm1007_vm1, %v17678_v45  ;;  %13498 = vmatprep.mubr.msk.bf16.mxu1 %vm1007_vm1, %v17678_v45  ;;  %v15421_v45 = vld [vmem:[#allocation4 + $0x1204] ss:$20 sps:$4 sm:$0xff]  }
 0x354   : > { %v17781_v31 = vadd.f32 %v4207_v28, %v17577_v18  ;;  %v17784_v44 = vadd.f32 %v4899_v57, %v17690_v32  ;;  %v4901_v41 = vpop.f32.mrb[77].mxu1  ;;  %v4209_v12 = vpop.f32.mrb[93].mxu0  ;;  %v15416_v32 = vld [vmem:[#allocation4 + $0x11f8] ss:$20 sps:$4 sm:$0xff]   ;;  %v15425_v57 = vld [vmem:[#allocation4 + $0x1228] ss:$20 sps:$4 sm:$0xff]  }
 0x355   : > { %v17787_v24 = vadd.f32 %v4901_v41, %v17696_v6  ;;  %7124 = vmatpush1.bf16.msra.mxu0 %v15404_v60  ;;  %7205 = vmatpush1.bf16.msra.mxu1 %v15407_v13  ;;  %v4210_v16 = vpop.f32.mrb[94].mxu0  ;;  %v4903_v14 = vpop.f32.mrb[78].mxu1  ;;  %v15419_v6 = vld [vmem:[#allocation4 + $0x1200] ss:$20 sps:$4 sm:$0xff]   ;;  %v15424_v60 = vld [vmem:[#allocation4 + $0x1224] ss:$20 sps:$4 sm:$0xff]  }
 0x356   : > { %7125 = vmatprep.subr.bf16.mxu0 %v15412_v34  ;;  %7206 = vmatprep.subr.bf16.mxu1 %v15415_v49  ;;  %v4211_v18 = vpop.f32.mrb[95].mxu0  ;;  %v4904_v28 = vpop.f32.mrb[79].mxu1  ;;  %v15427_v13 = vld [vmem:[#allocation4 + $0x122c] ss:$20 sps:$4 sm:$0xff]   ;;  %v6712_v14 = vrot.slane %v17483_v30, 1  ;;  %v20528_v34 = vrot.slane %v17524_v1, 1 }
 0x357   : > { %v15422_v49 = vld [vmem:[#allocation4 + $0x1220] ss:$20 sps:$4 sm:$0xff]   ;;  %v15428_v30 = vld [vmem:[#allocation4 + $0x1248] ss:$20 sps:$4 sm:$0xff]   ;;  %v15431_v12 = vld [vmem:[#allocation4 + $0x1250] ss:$20 sps:$4 sm:$0xff]  }
 0x358   : > { %6411 = vmatmul.mubr.bf16.gmra.mrb[12].mxu0 %v17699_v39  ;;  %6567 = vmatmul.mubr.bf16.gmra.mrb[120].mxu1 %v17699_v39  ;;  %v17802_v41 = vsel %vm1970_vm3, %v6712_v14, %v20528_v34  ;;  %v15434_v16 = vld [vmem:[#allocation4 + $0x1270] ss:$20 sps:$4 sm:$0xff]   ;;  %v15437_v18 = vld [vmem:[#allocation4 + $0x1278] ss:$20 sps:$4 sm:$0xff]  }
 0x359   : > { %7126 = vmatpush1.bf16.msra.mxu0 %v15410_v53  ;;  %7207 = vmatpush1.bf16.msra.mxu1 %v15413_v3  ;;  %20711 = vst [vmem:[#allocation68_spill] sm:$0xff] %v17802_v41  ;;  %v15436_v53 = vld [vmem:[#allocation4 + $0x1274] ss:$20 sps:$4 sm:$0xff]   ;;  %v15439_v3 = vld [vmem:[#allocation4 + $0x127c] ss:$20 sps:$4 sm:$0xff]  }
 0x35a   : > { %7127 = vmatprep.subr.bf16.mxu0 %v15418_v48  ;;  %7208 = vmatprep.subr.bf16.mxu1 %v15421_v45  ;;  %v15430_v48 = vld [vmem:[#allocation4 + $0x124c] ss:$20 sps:$4 sm:$0xff]   ;;  %v15433_v45 = vld [vmem:[#allocation4 + $0x1254] ss:$20 sps:$4 sm:$0xff]   ;;  %v15442_v28 = vld [vmem:[#allocation4 + $0x129c] ss:$20 sps:$4 sm:$0xff]  }
 0x35b   : > { %13488 = vmatprep.mubr.msk.bf16.mxu0 %vm1007_vm1, %v17702_v27  ;;  %13499 = vmatprep.mubr.msk.bf16.mxu1 %vm1007_vm1, %v17702_v27  ;;  %v15451_v14 = vld [vmem:[#allocation4 + $0x12cc] ss:$20 sps:$4 sm:$0xff]  }
 0x35d   : > { %7128 = vmatpush1.bf16.msra.mxu0 %v15416_v32  ;;  %7209 = vmatpush1.bf16.msra.mxu1 %v15419_v6  ;;  %v15445_v32 = vld [vmem:[#allocation4 + $0x12a4] ss:$20 sps:$4 sm:$0xff]  }
 0x35e   : > { %7129 = vmatprep.subr.bf16.mxu0 %v15424_v60  ;;  %7210 = vmatprep.subr.bf16.mxu1 %v15427_v13  ;;  %v15440_v6 = vld [vmem:[#allocation4 + $0x1298] ss:$20 sps:$4 sm:$0xff]   ;;  %v15443_v60 = vld [vmem:[#allocation4 + $0x12a0] ss:$20 sps:$4 sm:$0xff]  }
 0x35f   : > { %v15448_v13 = vld [vmem:[#allocation4 + $0x12c4] ss:$20 sps:$4 sm:$0xff]  }
 0x360   : > { %6421 = vmatmul.mubr.bf16.gmra.mrb[124].mxu0 %v17712_v58  ;;  %6575 = vmatmul.mubr.bf16.gmra.mrb[124].mxu1 %v17712_v58 }
 0x361   : > { %7130 = vmatpush1.bf16.msra.mxu0 %v15422_v49  ;;  %7211 = vmatpush1.bf16.msra.mxu1 %v15425_v57  ;;  %v6706_v49 = vld [vmem:[#allocation4 + $0x12e8] sm:$0xff]  ;;  %v6707_v57 = vld [vmem:[#allocation4 + $0x12f0] sm:$0xff] }
 0x362   : > { %7131 = vmatprep.subr.bf16.mxu0 %v15430_v48  ;;  %7212 = vmatprep.subr.bf16.mxu1 %v15433_v45  ;;  %v13565_v34 = vcombine.low %v6706_v49, %v6706_v49 }
 0x363   : > { %13571 = vmatprep.mubr.msk.bf16.mxu0 %vm1007_vm1, %v17802_v41  ;;  %13577 = vmatprep.mubr.msk.bf16.mxu1 %vm1007_vm1, %v17802_v41 }
 0x365   : > { %7132 = vmatpush1.bf16.msra.mxu0 %v15428_v30  ;;  %7213 = vmatpush1.bf16.msra.mxu1 %v15431_v12 }
 0x366   : > { %7133 = vmatprep.subr.bf16.mxu0 %v15436_v53  ;;  %7214 = vmatprep.subr.bf16.mxu1 %v15439_v3  ;;  %v15446_v53 = vld [vmem:[#allocation4 + $0x12c0] ss:$20 sps:$4 sm:$0xff]   ;;  %v15449_v3 = vld [vmem:[#allocation4 + $0x12c8] ss:$20 sps:$4 sm:$0xff]  }
 0x369   : > { %7134 = vmatpush1.bf16.msra.mxu0 %v15434_v16  ;;  %7215 = vmatpush1.bf16.msra.mxu1 %v15437_v18  ;;  %v17811_v16 = vcombine.high %v6706_v49, %v6706_v49  ;;  %v17813_v18 = vcombine.high %v6707_v57, %v6707_v57 }
 0x36a   : > { %7135 = vmatprep.subr.bf16.mxu0 %v15442_v28  ;;  %7216 = vmatprep.subr.bf16.mxu1 %v15445_v32 }
 0x36b   : > { %v4940_v48 = vpop.f32.mrb[80].mxu1  ;;  %20712 = vst [vmem:[#allocation69_spill] sm:$0xff] %v17811_v16  ;;  %20713 = vst [vmem:[#allocation70_spill] sm:$0xff] %v17813_v18 }
 0x36c   : > { %v17809_v45 = vadd.f32 %v4940_v48, %v17725_v25  ;;  %v4942_v30 = vpop.f32.mrb[81].mxu1  ;;  %v13567_v25 = vcombine.low %v6707_v57, %v6707_v57  ;;  %v15500_v48 = vld [vmem:[%s16610_s28 + $0x90] ss:$8 sps:$4 sm:$0xff]   ;;  %v6717_v57 = vrot.slane %v17544_v19, 1  ;;  %v20717_v19 = vrot.slane %v17524_v1, 1 }
 0x36d   : > { %v4943_v12 = vpop.f32.mrb[82].mxu1  ;;  %7136 = vmatpush1.bf16.msra.mxu0 %v15440_v6  ;;  %7217 = vmatpush1.bf16.msra.mxu1 %v15443_v60  ;;  %v6709_v30 = vrot.slane %v15500_v48, 1  ;;  %v6710_v6 = vrot.slane %v17537_v29, 1  ;;  %v15457_v48 = vld [vmem:[#allocation4 + $0x1118] ss:$20 sps:$4 sm:$0xff]  }
 0x36e   : > { %v17816_v28 = vadd.f32 %v4943_v12, %v17728_v42  ;;  %v4945_v32 = vpop.f32.mrb[83].mxu1  ;;  %7137 = vmatprep.subr.bf16.mxu0 %v15448_v13  ;;  %7218 = vmatprep.subr.bf16.mxu1 %v15451_v14  ;;  %v17825_v42 = vsel %vm1023_vm2, %v13565_v34, 0  ;;  %v17828_v60 = vsel %vm1023_vm2, %v13567_v25, 0  ;;  %v15456_v34 = vld [vmem:[#allocation4 + $0x10f0] ss:$20 sps:$4 sm:$0xff]  }
 0x36f   : > { %20714 = vst [vmem:[#allocation71_spill] sm:$0xff] %v17825_v42  ;;  %20715 = vst [vmem:[#allocation72_spill] sm:$0xff] %v17828_v60  ;;  %v17837_v12 = vsel %vm1970_vm3, %v6709_v30, %v6710_v6  ;;  %v17848_v32 = vsel %vm1970_vm3, %v20717_v19, %v6717_v57  ;;  %v15502_v25 = vld [vmem:[#allocation4 + $0x21c] ss:$20 sps:$4 sm:$0xff]  }
 0x370   : > { %20716 = vst [vmem:[#allocation73_spill] sm:$0xff] %v17837_v12  ;;  %20718 = vst [vmem:[#allocation74_spill] sm:$0xff] %v17848_v32  ;;  %v15503_v30 = vld [vmem:[#allocation4 + $0x248] ss:$20 sps:$4 sm:$0xff]  }
 0x371   : > { %7138 = vmatpush1.bf16.msra.mxu0 %v15446_v53  ;;  %7219 = vmatpush1.bf16.msra.mxu1 %v15449_v3  ;;  %v15501_v3 = vld [vmem:[#allocation4 + $0x220] ss:$20 sps:$4 sm:$0xff]  }
 0x372   : > { %13570 = vmatprep.subr.msk.bf16.mxu0 %vm1023_vm2, %v17811_v16  ;;  %13576 = vmatprep.subr.msk.bf16.mxu1 %vm1023_vm2, %v17813_v18 }
 0x373   : > { %v4948_v13 = vpop.f32.mrb[84].mxu1 }
 0x374   : > { %v17831_v14 = vadd.f32 %v4948_v13, %v17743_v11  ;;  %v4950_v49 = vpop.f32.mrb[85].mxu1 }
 0x375   : > { %v4951_v29 = vpop.f32.mrb[86].mxu1  ;;  %7140 = vmatpush1.bf16.msra.mxu0 %v17825_v42  ;;  %7221 = vmatpush1.bf16.msra.mxu1 %v17828_v60  ;;  %v15462_v60 = vld [vmem:[#allocation4 + $0x11e0] ss:$20 sps:$4 sm:$0xff]  }
 0x376   : > { %v17840_v53 = vadd.f32 %v4951_v29, %v17748_v26  ;;  %7275 = vmatprep.subr.bf16.mxu0 %v20676_v2  ;;  %7807 = vmatprep.subr.bf16.mxu1 %v15501_v3  ;;  %v4953_v11 = vpop.f32.mrb[87].mxu1  ;;  %v6715_v26 = vrot.slane %v17557_v62, 1  ;;  %v6721_v29 = vrot.slane %v17564_v33, 1  ;;  %v15504_v62 = vld [vmem:[#allocation4 + $0x244] ss:$20 sps:$4 sm:$0xff]  }
 0x377   : > { %v15458_v11 = vld [vmem:[#allocation4 + $0x1140] ss:$20 sps:$4 sm:$0xff]  }
 0x378   : > { %7146 = vmatmul.mubr.bf16.vlgmr.msra.gmra.mrb[0].mxu0 %v17837_v12  ;;  %7227 = vmatmul.mubr.bf16.vlgmr.msra.gmra.mrb[0].mxu1 %v17837_v12  ;;  %v17861_v3 = vsel %vm1970_vm3, %v6710_v6, %v6715_v26  ;;  %v17870_v33 = vsel %vm1970_vm3, %v6717_v57, %v6721_v29  ;;  %v15459_v6 = vld [vmem:[#allocation4 + $0x1168] ss:$20 sps:$4 sm:$0xff]  }
 0x379   : > { %7276 = vmatpush1.bf16.msra.mxu0 %v15456_v34  ;;  %7808 = vmatpush1.bf16.msra.mxu1 %v15502_v25  ;;  %20719 = vst [vmem:[#allocation75_spill] sm:$0xff] %v17861_v3  ;;  %v15505_v25 = vld [vmem:[#allocation4 + $0x270] ss:$20 sps:$4 sm:$0xff]   ;;  %20720 = vst [vmem:[#allocation76_spill] sm:$0xff] %v17870_v33 }
 0x37a   : > { %7277 = vmatprep.subr.bf16.mxu0 %v20676_v2  ;;  %7809 = vmatprep.subr.bf16.mxu1 %v15503_v30  ;;  %v6719_v30 = vrot.slane %v17580_v51, 1  ;;  %v15508_v51 = vld [vmem:[#allocation4 + $0x294] ss:$20 sps:$4 sm:$0xff]  }
 0x37b   : > { %v4956_v13 = vpop.f32.mrb[88].mxu1  ;;  %13572 = vmatprep.mubr.msk.bf16.mxu0 %vm1007_vm1, %v17848_v32  ;;  %13578 = vmatprep.mubr.msk.bf16.mxu1 %vm1007_vm1, %v17848_v32 }
 0x37c   : > { %v17857_v1 = vadd.f32 %v4956_v13, %v17757_v59  ;;  %v4958_v49 = vpop.f32.mrb[89].mxu1 }
 0x37d   : > { %v4959_v34 = vpop.f32.mrb[90].mxu1  ;;  %7278 = vmatpush1.bf16.msra.mxu0 %v15457_v48  ;;  %7810 = vmatpush1.bf16.msra.mxu1 %v15504_v62  ;;  %v15506_v48 = vld [vmem:[#allocation4 + $0x26c] ss:$20 sps:$4 sm:$0xff]  }
 0x37e   : > { %v17864_v19 = vadd.f32 %v4959_v34, %v17760_v38  ;;  %7279 = vmatprep.subr.bf16.mxu0 %v20676_v2  ;;  %7811 = vmatprep.subr.bf16.mxu1 %v15505_v25  ;;  %v4961_v59 = vpop.f32.mrb[91].mxu1  ;;  %v15507_v38 = vld [vmem:[#allocation4 + $0x298] ss:$20 sps:$4 sm:$0xff]   ;;  %v17882_v34 = vrot.slane %v17588_v5, 1  ;;  %v15460_v25 = vld [vmem:[#allocation4 + $0x1190] ss:$20 sps:$4 sm:$0xff]  }
 0x380   : > { %7156 = vmatmul.mubr.bf16.gmra.mrb[4].mxu0 %v17861_v3  ;;  %7237 = vmatmul.mubr.bf16.gmra.mrb[4].mxu1 %v17861_v3  ;;  %20721 = vst [vmem:[#allocation77_spill] sm:$0xff] %v17882_v34 }
 0x381   : > { %7280 = vmatpush1.bf16.msra.mxu0 %v15458_v11  ;;  %7812 = vmatpush1.bf16.msra.mxu1 %v15506_v48  ;;  %v17885_v11 = vsel %vm1970_vm3, %v6715_v26, %v6719_v30  ;;  %v15509_v48 = vld [vmem:[#allocation4 + $0x2c0] ss:$20 sps:$4 sm:$0xff]   ;;  %v15510_v26 = vld [vmem:[#allocation4 + $0x2bc] ss:$20 sps:$4 sm:$0xff]  }
 0x382   : > { %7281 = vmatprep.subr.bf16.mxu0 %v20676_v2  ;;  %7813 = vmatprep.subr.bf16.mxu1 %v15507_v38  ;;  %20722 = vst [vmem:[#allocation78_spill] sm:$0xff] %v17885_v11  ;;  %v15461_v38 = vld [vmem:[#allocation4 + $0x11b8] ss:$20 sps:$4 sm:$0xff]  }
 0x383   : > { %v4964_v13 = vpop.f32.mrb[92].mxu1  ;;  %13573 = vmatprep.mubr.msk.bf16.mxu0 %vm1007_vm1, %v17870_v33  ;;  %13579 = vmatprep.mubr.msk.bf16.mxu1 %vm1007_vm1, %v17870_v33 }
 0x384   : > { %v17879_v57 = vadd.f32 %v4964_v13, %v17769_v35  ;;  %v4966_v49 = vpop.f32.mrb[93].mxu1  ;;  %v15511_v13 = vld [vmem:[#allocation4 + $0x2e8] ss:$20 sps:$4 sm:$0xff]  }
 0x385   : > { %v4967_v62 = vpop.f32.mrb[94].mxu1  ;;  %7282 = vmatpush1.bf16.msra.mxu0 %v15459_v6  ;;  %7814 = vmatpush1.bf16.msra.mxu1 %v15508_v51  ;;  %v17895_v6 = vsel %vm1970_vm3, %v6721_v29, %v17882_v34 }
 0x386   : > { %v17888_v59 = vadd.f32 %v4967_v62, %v17772_v20  ;;  %7283 = vmatprep.subr.bf16.mxu0 %v20676_v2  ;;  %7815 = vmatprep.subr.bf16.mxu1 %v15509_v48  ;;  %v4969_v35 = vpop.f32.mrb[95].mxu1  ;;  %20723 = vst [vmem:[#allocation79_spill] sm:$0xff] %v17895_v6  ;;  %v17898_v20 = vrot.slane %v17599_v22, 1 }
 0x388   : > { %7166 = vmatmul.mubr.bf16.gmra.mrb[8].mxu0 %v17885_v11  ;;  %7247 = vmatmul.mubr.bf16.gmra.mrb[8].mxu1 %v17885_v11  ;;  %20724 = vst [vmem:[#allocation80_spill] sm:$0xff] %v17898_v20 }
 0x389   : > { %7284 = vmatpush1.bf16.msra.mxu0 %v15460_v25  ;;  %7816 = vmatpush1.bf16.msra.mxu1 %v15510_v26  ;;  %v15512_v26 = vld [vmem:[#allocation4 + $0x2e4] ss:$20 sps:$4 sm:$0xff]  }
 0x38a   : > { %7285 = vmatprep.subr.bf16.mxu0 %v20676_v2  ;;  %7817 = vmatprep.subr.bf16.mxu1 %v15511_v13  ;;  %v17916_v13 = vsel %vm1970_vm3, %v6719_v30, %v17898_v20  ;;  %v15515_v30 = vld [vmem:[#allocation4 + $0x338] ss:$20 sps:$4 sm:$0xff]  }
 0x38b   : > { %v4818_v49 = vpop.f32.mrb[96].mxu0  ;;  %v4972_v62 = vpop.f32.mrb[96].mxu1  ;;  %13574 = vmatprep.mubr.msk.bf16.mxu0 %vm1007_vm1, %v17895_v6  ;;  %13580 = vmatprep.mubr.msk.bf16.mxu1 %vm1007_vm1, %v17895_v6  ;;  %20725 = vst [vmem:[#allocation81_spill] sm:$0xff] %v17916_v13 }
 0x38c   : > { %v17906_v29 = vadd.f32 %v4818_v49, %v17687_v21  ;;  %v17909_v51 = vadd.f32 %v4972_v62, %v17781_v31  ;;  %v4820_v25 = vpop.f32.mrb[97].mxu0  ;;  %v4974_v48 = vpop.f32.mrb[97].mxu1  ;;  %v15513_v21 = vld [vmem:[#allocation4 + $0x310] ss:$20 sps:$4 sm:$0xff]  }
 0x38d   : > { %v17912_v35 = vadd.f32 %v4820_v25, %v17693_v4  ;;  %7286 = vmatpush1.bf16.msra.mxu0 %v15461_v38  ;;  %7818 = vmatpush1.bf16.msra.mxu1 %v15512_v26  ;;  %v4822_v18 = vpop.f32.mrb[98].mxu0  ;;  %v4975_v42 = vpop.f32.mrb[98].mxu1  ;;  %v15514_v4 = vld [vmem:[#allocation4 + $0x30c] ss:$20 sps:$4 sm:$0xff]   ;;  %v15463_v38 = vld [vmem:[#allocation4 + $0x1208] ss:$20 sps:$4 sm:$0xff]  }
 0x38e   : > { %7287 = vmatprep.subr.bf16.mxu0 %v20676_v2  ;;  %7819 = vmatprep.subr.bf16.mxu1 %v15513_v21  ;;  %v4823_v31 = vpop.f32.mrb[99].mxu0  ;;  %v4976_v49 = vpop.f32.mrb[99].mxu1  ;;  %v15516_v18 = vld [vmem:[#allocation4 + $0x334] ss:$20 sps:$4 sm:$0xff]   ;;  %v15464_v42 = vld [vmem:[#allocation4 + $0x1230] ss:$20 sps:$4 sm:$0xff]  }
 0x38f   : > { %v15518_v62 = vld [vmem:[#allocation4 + $0x35c] ss:$20 sps:$4 sm:$0xff]   ;;  %v15465_v25 = vld [vmem:[#allocation4 + $0x1258] ss:$20 sps:$4 sm:$0xff]   ;;  %v15466_v21 = vld [vmem:[#allocation4 + $0x1280] ss:$20 sps:$4 sm:$0xff]  }
 0x390   : > { %7176 = vmatmul.mubr.bf16.gmra.mrb[12].mxu0 %v17916_v13  ;;  %7257 = vmatmul.mubr.bf16.gmra.mrb[12].mxu1 %v17916_v13  ;;  %v15519_v48 = vld [vmem:[#allocation4 + $0x388] ss:$20 sps:$4 sm:$0xff]   ;;  %v15520_v26 = vld [vmem:[#allocation4 + $0x384] ss:$20 sps:$4 sm:$0xff]   ;;  %v15522_v49 = vld [vmem:[#allocation4 + $0x3ac] ss:$20 sps:$4 sm:$0xff]  }
 0x391   : > { %7288 = vmatpush1.bf16.msra.mxu0 %v15462_v60  ;;  %7820 = vmatpush1.bf16.msra.mxu1 %v15514_v4  ;;  %v15517_v60 = vld [vmem:[#allocation4 + $0x360] ss:$20 sps:$4 sm:$0xff]   ;;  %v15521_v31 = vld [vmem:[#allocation4 + $0x3b0] ss:$20 sps:$4 sm:$0xff]   ;;  %v15467_v4 = vld [vmem:[#allocation4 + $0x12a8] ss:$20 sps:$4 sm:$0xff]  }
 0x392   : > { %7289 = vmatprep.subr.bf16.mxu0 %v20676_v2  ;;  %7821 = vmatprep.subr.bf16.mxu1 %v15515_v30  ;;  %v15524_v30 = vld [vmem:[#allocation4 + $0x3d4] ss:$20 sps:$4 sm:$0xff]  }
 0x393   : > { %13575 = vmatprep.mubr.msk.bf16.mxu0 %vm1007_vm1, %v17882_v34  ;;  %13581 = vmatprep.mubr.msk.bf16.mxu1 %vm1007_vm1, %v17882_v34 }
 0x395   : > { %7290 = vmatpush1.bf16.msra.mxu0 %v15463_v38  ;;  %7822 = vmatpush1.bf16.msra.mxu1 %v15516_v18  ;;  %v15523_v38 = vld [vmem:[#allocation4 + $0x3d8] ss:$20 sps:$4 sm:$0xff]   ;;  %v15468_v18 = vld [vmem:[#allocation4 + $0x12d0] ss:$20 sps:$4 sm:$0xff]  }
 0x396   : > { %7291 = vmatprep.subr.bf16.mxu0 %v20676_v2  ;;  %7823 = vmatprep.subr.bf16.mxu1 %v15517_v60  ;;  %v15469_v60 = vld [vmem:[#allocation4 + $0x12f8] ss:$0 sps:$4 sm:$0xff]  }
 0x398   : > { %7186 = vmatmul.mubr.bf16.gmra.mrb[128].mxu0 %v17898_v20  ;;  %7267 = vmatmul.mubr.bf16.gmra.mrb[128].mxu1 %v17898_v20 }
 0x399   : > { %7292 = vmatpush1.bf16.msra.mxu0 %v15464_v42  ;;  %7824 = vmatpush1.bf16.msra.mxu1 %v15518_v62  ;;  %v15525_v42 = vld [vmem:[#allocation4 + $0x400] ss:$20 sps:$4 sm:$0xff]   ;;  %v15526_v62 = vld [vmem:[#allocation4 + $0x3fc] ss:$20 sps:$4 sm:$0xff]  }
 0x39a   : > { %7293 = vmatprep.subr.bf16.mxu0 %v20676_v2  ;;  %7825 = vmatprep.subr.bf16.mxu1 %v15519_v48  ;;  %v15527_v48 = vld [vmem:[#allocation4 + $0x228] ss:$20 sps:$4 sm:$0xff]  }
 0x39b   : > { %13582 = vmatprep.mubr.msk.bf16.mxu0 %vm1007_vm1, %v17802_v41  ;;  %13588 = vmatprep.mubr.msk.bf16.mxu1 %vm1007_vm1, %v17138_v37  ;;  %v15665_v41 = vld [vmem:[#allocation4 + $0x444] ss:$20 sps:$4 sm:$0xff]  }
 0x39d   : > { %7294 = vmatpush1.bf16.msra.mxu0 %v15465_v25  ;;  %7826 = vmatpush1.bf16.msra.mxu1 %v15520_v26  ;;  %v17941_v25 = vsel %vm1023_vm2, %v15469_v60, 0  ;;  %v15528_v26 = vld [vmem:[#allocation4 + $0x224] ss:$20 sps:$4 sm:$0xff]   ;;  %v15539_v60 = vld [vmem:[#allocation4 + $0x2c8] ss:$20 sps:$4 sm:$0xff]  }
 0x39e   : > { %7295 = vmatprep.subr.bf16.mxu0 %v20676_v2  ;;  %7827 = vmatprep.subr.bf16.mxu1 %v15521_v31  ;;  %20726 = vst [vmem:[#allocation82_spill] sm:$0xff] %v17941_v25  ;;  %v15532_v31 = vld [vmem:[#allocation4 + $0x254] ss:$20 sps:$4 sm:$0xff]  }
 0x3a1   : > { %7296 = vmatpush1.bf16.msra.mxu0 %v15466_v21  ;;  %7828 = vmatpush1.bf16.msra.mxu1 %v15522_v49  ;;  %v15529_v21 = vld [vmem:[#allocation4 + $0x22c] ss:$20 sps:$4 sm:$0xff]  }
 0x3a2   : > { %7297 = vmatprep.subr.bf16.mxu0 %v20676_v2  ;;  %7829 = vmatprep.subr.bf16.mxu1 %v15523_v38  ;;  %v15533_v49 = vld [vmem:[#allocation4 + $0x278] ss:$20 sps:$4 sm:$0xff]   ;;  %v15535_v38 = vld [vmem:[#allocation4 + $0x27c] ss:$20 sps:$4 sm:$0xff]  }
 0x3a5   : > { %7298 = vmatpush1.bf16.msra.mxu0 %v15467_v4  ;;  %7830 = vmatpush1.bf16.msra.mxu1 %v15524_v30  ;;  %v15534_v4 = vld [vmem:[#allocation4 + $0x274] ss:$20 sps:$4 sm:$0xff]  }
 0x3a6   : > { %7299 = vmatprep.subr.bf16.mxu0 %v20676_v2  ;;  %7831 = vmatprep.subr.bf16.mxu1 %v15525_v42  ;;  %v15536_v30 = vld [vmem:[#allocation4 + $0x2a0] ss:$20 sps:$4 sm:$0xff]   ;;  %v15538_v42 = vld [vmem:[#allocation4 + $0x2a4] ss:$20 sps:$4 sm:$0xff]  }
 0x3a9   : > { %7300 = vmatpush1.bf16.msra.mxu0 %v15468_v18  ;;  %7832 = vmatpush1.bf16.msra.mxu1 %v15526_v62  ;;  %v15537_v18 = vld [vmem:[#allocation4 + $0x29c] ss:$20 sps:$4 sm:$0xff]   ;;  %v15540_v62 = vld [vmem:[#allocation4 + $0x2c4] ss:$20 sps:$4 sm:$0xff]  }
 0x3aa   : > { %7301 = vmatprep.subr.bf16.mxu0 %v20676_v2  ;;  %13587 = vmatprep.subr.msk.bf16.mxu1 %vm1023_vm2, %v16637_v7  ;;  %v15530_v7 = vld [vmem:[#allocation4 + $0x250] ss:$20 sps:$4 sm:$0xff]  }
 0x3ad   : > { %7302 = vmatpush1.bf16.msra.mxu0 %v17941_v25  ;;  %7834 = vmatpush1.bf16.msra.mxu1 %v16642_v9  ;;  %v15531_v9 = vld [vmem:[#allocation4 + $0x24c] ss:$20 sps:$4 sm:$0xff]  }
 0x3ae   : > { %7888 = vmatprep.subr.bf16.mxu0 %v15527_v48  ;;  %7969 = vmatprep.subr.bf16.mxu1 %v20676_v2  ;;  %v15541_v48 = vld [vmem:[#allocation4 + $0x2cc] ss:$20 sps:$4 sm:$0xff]  }
 0x3b0   : > { %7308 = vmatmul.mubr.bf16.vlgmr.msra.gmra.mrb[132].mxu0 %v17837_v12  ;;  %7840 = vmatmul.mubr.bf16.vlgmr.msra.gmra.mrb[132].mxu1 %v17187_v61 }
 0x3b1   : > { %7889 = vmatpush1.bf16.msra.mxu0 %v15528_v26  ;;  %7970 = vmatpush1.bf16.msra.mxu1 %v15529_v21  ;;  %v15542_v26 = vld [vmem:[#allocation4 + $0x2f0] ss:$20 sps:$4 sm:$0xff]  }
 0x3b2   : > { %7890 = vmatprep.subr.bf16.mxu0 %v15530_v7  ;;  %7971 = vmatprep.subr.bf16.mxu1 %v20676_v2 }
 0x3b3   : > { %13583 = vmatprep.mubr.msk.bf16.mxu0 %vm1007_vm1, %v17848_v32  ;;  %13589 = vmatprep.mubr.msk.bf16.mxu1 %vm1007_vm1, %v17201_v43 }
 0x3b5   : > { %7891 = vmatpush1.bf16.msra.mxu0 %v15531_v9  ;;  %7972 = vmatpush1.bf16.msra.mxu1 %v15532_v31 }
 0x3b6   : > { %7892 = vmatprep.subr.bf16.mxu0 %v15533_v49  ;;  %7973 = vmatprep.subr.bf16.mxu1 %v20676_v2 }
 0x3b8   : > { %7316 = vmatmul.mubr.bf16.gmra.mrb[136].mxu0 %v17861_v3  ;;  %7850 = vmatmul.mubr.bf16.gmra.mrb[136].mxu1 %v17217_v47 }
 0x3b9   : > { %7893 = vmatpush1.bf16.msra.mxu0 %v15534_v4  ;;  %7974 = vmatpush1.bf16.msra.mxu1 %v15535_v38 }
 0x3ba   : > { %7894 = vmatprep.subr.bf16.mxu0 %v15536_v30  ;;  %7975 = vmatprep.subr.bf16.mxu1 %v20676_v2 }
 0x3bb   : > { %13584 = vmatprep.mubr.msk.bf16.mxu0 %vm1007_vm1, %v17870_v33  ;;  %13590 = vmatprep.mubr.msk.bf16.mxu1 %vm1007_vm1, %v17231_v63 }
 0x3bd   : > { %7895 = vmatpush1.bf16.msra.mxu0 %v15537_v18  ;;  %7976 = vmatpush1.bf16.msra.mxu1 %v15538_v42  ;;  %v15543_v18 = vld [vmem:[#allocation4 + $0x2ec] ss:$20 sps:$4 sm:$0xff]   ;;  %v15544_v42 = vld [vmem:[#allocation4 + $0x2f4] ss:$20 sps:$4 sm:$0xff]  }
 0x3be   : > { %7896 = vmatprep.subr.bf16.mxu0 %v15539_v60  ;;  %7977 = vmatprep.subr.bf16.mxu1 %v20676_v2 }
 0x3c0   : > { %7324 = vmatmul.mubr.bf16.gmra.mrb[140].mxu0 %v17885_v11  ;;  %7860 = vmatmul.mubr.bf16.gmra.mrb[140].mxu1 %v17242_v15 }
 0x3c1   : > { %7897 = vmatpush1.bf16.msra.mxu0 %v15540_v62  ;;  %7978 = vmatpush1.bf16.msra.mxu1 %v15541_v48  ;;  %v15545_v48 = vld [vmem:[#allocation4 + $0x318] ss:$20 sps:$4 sm:$0xff]  }
 0x3c2   : > { %7898 = vmatprep.subr.bf16.mxu0 %v15542_v26  ;;  %7979 = vmatprep.subr.bf16.mxu1 %v20676_v2  ;;  %v15548_v26 = vld [vmem:[#allocation4 + $0x340] ss:$20 sps:$4 sm:$0xff]  }
 0x3c3   : > { %v5602_v21 = vpop.f32.mrb[100].mxu0  ;;  %v5683_v7 = vpop.f32.mrb[100].mxu1  ;;  %13585 = vmatprep.mubr.msk.bf16.mxu0 %vm1007_vm1, %v17895_v6  ;;  %13591 = vmatprep.mubr.msk.bf16.mxu1 %vm1007_vm1, %v17256_v0  ;;  %v15663_v6 = vld [vmem:[#allocation4 + $0x1f0] ss:$20 sps:$4 sm:$0xff]  }
 0x3c4   : > { %v17970_v9 = vadd.f32 %v5602_v21, %v17906_v29  ;;  %v17973_v31 = vadd.f32 %v5683_v7, %v17784_v44  ;;  %v5604_v49 = vpop.f32.mrb[101].mxu0  ;;  %v5685_v4 = vpop.f32.mrb[101].mxu1  ;;  %v15549_v21 = vld [vmem:[#allocation4 + $0x33c] ss:$20 sps:$4 sm:$0xff]   ;;  %v15550_v7 = vld [vmem:[#allocation4 + $0x344] ss:$20 sps:$4 sm:$0xff]  }
 0x3c5   : > { %v17976_v38 = vadd.f32 %v5604_v49, %v17912_v35  ;;  %v17979_v30 = vadd.f32 %v5685_v4, %v17787_v24  ;;  %7899 = vmatpush1.bf16.msra.mxu0 %v15543_v18  ;;  %7980 = vmatpush1.bf16.msra.mxu1 %v15544_v42  ;;  %v5606_v60 = vpop.f32.mrb[102].mxu0  ;;  %v5687_v62 = vpop.f32.mrb[102].mxu1  ;;  %v15546_v35 = vld [vmem:[#allocation4 + $0x314] ss:$20 sps:$4 sm:$0xff]   ;;  %v15547_v24 = vld [vmem:[#allocation4 + $0x31c] ss:$20 sps:$4 sm:$0xff]  }
 0x3c6   : > { %7900 = vmatprep.subr.bf16.mxu0 %v15545_v48  ;;  %7981 = vmatprep.subr.bf16.mxu1 %v20676_v2  ;;  %v5607_v44 = vpop.f32.mrb[103].mxu0  ;;  %v5688_v29 = vpop.f32.mrb[103].mxu1  ;;  %v15551_v49 = vld [vmem:[#allocation4 + $0x368] ss:$20 sps:$4 sm:$0xff]   ;;  %v15552_v4 = vld [vmem:[#allocation4 + $0x364] ss:$20 sps:$4 sm:$0xff]  }
 0x3c7   : > { %v15553_v18 = vld [vmem:[#allocation4 + $0x36c] ss:$20 sps:$4 sm:$0xff]   ;;  %v15554_v42 = vld [vmem:[#allocation4 + $0x390] ss:$20 sps:$4 sm:$0xff]   ;;  %v15556_v62 = vld [vmem:[#allocation4 + $0x394] ss:$20 sps:$4 sm:$0xff]  }
 0x3c8   : > { %7332 = vmatmul.mubr.bf16.gmra.mrb[144].mxu0 %v17916_v13  ;;  %7870 = vmatmul.mubr.bf16.gmra.mrb[144].mxu1 %v17271_v52  ;;  %v15555_v60 = vld [vmem:[#allocation4 + $0x38c] ss:$20 sps:$4 sm:$0xff]   ;;  %v15558_v44 = vld [vmem:[#allocation4 + $0x3b4] ss:$20 sps:$4 sm:$0xff]   ;;  %v15559_v29 = vld [vmem:[#allocation4 + $0x3bc] ss:$20 sps:$4 sm:$0xff]  }
 0x3c9   : > { %7901 = vmatpush1.bf16.msra.mxu0 %v15546_v35  ;;  %7982 = vmatpush1.bf16.msra.mxu1 %v15547_v24  ;;  %v15557_v48 = vld [vmem:[#allocation4 + $0x3b8] ss:$20 sps:$4 sm:$0xff]   ;;  %v15560_v35 = vld [vmem:[#allocation4 + $0x3e0] ss:$20 sps:$4 sm:$0xff]  }
 0x3ca   : > { %7902 = vmatprep.subr.bf16.mxu0 %v15548_v26  ;;  %7983 = vmatprep.subr.bf16.mxu1 %v20676_v2 }
 0x3cb   : > { %13586 = vmatprep.mubr.msk.bf16.mxu0 %vm1007_vm1, %v17882_v34  ;;  %13592 = vmatprep.mubr.msk.bf16.mxu1 %vm1007_vm1, %v17277_v36 }
 0x3cd   : > { %7903 = vmatpush1.bf16.msra.mxu0 %v15549_v21  ;;  %7984 = vmatpush1.bf16.msra.mxu1 %v15550_v7  ;;  %v15561_v7 = vld [vmem:[#allocation4 + $0x3dc] ss:$20 sps:$4 sm:$0xff]  }
 0x3ce   : > { %7904 = vmatprep.subr.bf16.mxu0 %v15551_v49  ;;  %7985 = vmatprep.subr.bf16.mxu1 %v20676_v2  ;;  %v15562_v49 = vld [vmem:[#allocation4 + $0x3e4] ss:$20 sps:$4 sm:$0xff]  }
 0x3d0   : > { %7340 = vmatmul.mubr.bf16.gmra.mrb[148].mxu0 %v17898_v20  ;;  %7880 = vmatmul.mubr.bf16.gmra.mrb[148].mxu1 %v17287_v23 }
 0x3d1   : > { %7905 = vmatpush1.bf16.msra.mxu0 %v15552_v4  ;;  %7986 = vmatpush1.bf16.msra.mxu1 %v15553_v18 }
 0x3d2   : > { %7906 = vmatprep.subr.bf16.mxu0 %v15554_v42  ;;  %7987 = vmatprep.subr.bf16.mxu1 %v20676_v2  ;;  %v15563_v42 = vld [vmem:[#allocation4 + $0x408] ss:$20 sps:$4 sm:$0xff]  }
 0x3d3   : > { %13599 = vmatprep.mubr.msk.bf16.mxu1 %vm1007_vm1, %v17138_v37  ;;  %13594 = vmatprep.mubr.msk.bf16.mxu0 %vm1007_vm1, %v17138_v37 }
 0x3d5   : > { %7907 = vmatpush1.bf16.msra.mxu0 %v15555_v60  ;;  %7988 = vmatpush1.bf16.msra.mxu1 %v15556_v62  ;;  %v15564_v60 = vld [vmem:[#allocation4 + $0x404] ss:$20 sps:$4 sm:$0xff]   ;;  %v15565_v62 = vld [vmem:[#allocation4 + $0x40c] ss:$20 sps:$4 sm:$0xff]  }
 0x3d6   : > { %7908 = vmatprep.subr.bf16.mxu0 %v15557_v48  ;;  %7989 = vmatprep.subr.bf16.mxu1 %v20676_v2 }
 0x3d9   : > { %7909 = vmatpush1.bf16.msra.mxu0 %v15558_v44  ;;  %7990 = vmatpush1.bf16.msra.mxu1 %v15559_v29 }
 0x3da   : > { %7910 = vmatprep.subr.bf16.mxu0 %v15560_v35  ;;  %7991 = vmatprep.subr.bf16.mxu1 %v20676_v2  ;;  %v15566_v35 = vld [vmem:[#allocation4 + $0x4] ss:$20 sps:$4 sm:$0xff]  }
 0x3db   : > { %v5724_v24 = vpop.f32.mrb[104].mxu0 }
 0x3dc   : > { %v18000_v26 = vadd.f32 %v5724_v24, %v17809_v45  ;;  %v5726_v37 = vpop.f32.mrb[105].mxu0  ;;  %v15567_v24 = vld [vmem:[#allocation4 + $0xc] ss:$20 sps:$4 sm:$0xff]  }
 0x3dd   : > { %v5727_v21 = vpop.f32.mrb[106].mxu0  ;;  %7911 = vmatpush1.bf16.msra.mxu0 %v15561_v7  ;;  %7992 = vmatpush1.bf16.msra.mxu1 %v15562_v49  ;;  %v15569_v37 = vld [vmem:[#allocation4 + $0x8] ss:$20 sps:$4 sm:$0xff]  }
 0x3de   : > { %v18003_v4 = vadd.f32 %v5727_v21, %v17816_v28  ;;  %v5729_v18 = vpop.f32.mrb[107].mxu0  ;;  %7912 = vmatprep.subr.bf16.mxu0 %v15563_v42  ;;  %7993 = vmatprep.subr.bf16.mxu1 %v20676_v2  ;;  %v15570_v21 = vld [vmem:[#allocation4 + $0x2c] ss:$20 sps:$4 sm:$0xff]   ;;  %v15572_v49 = vld [vmem:[#allocation4 + $0x28] ss:$20 sps:$4 sm:$0xff]  }
 0x3df   : > { %v15573_v18 = vld [vmem:[#allocation4 + $0x30] ss:$20 sps:$4 sm:$0xff]  }
 0x3e1   : > { %7913 = vmatpush1.bf16.msra.mxu0 %v15564_v60  ;;  %7994 = vmatpush1.bf16.msra.mxu1 %v15565_v62  ;;  %v15574_v60 = vld [vmem:[#allocation4 + $0x54] ss:$20 sps:$4 sm:$0xff]   ;;  %v15575_v62 = vld [vmem:[#allocation4 + $0x5c] ss:$20 sps:$4 sm:$0xff]  }
 0x3e2   : > { %13593 = vmatprep.subr.msk.bf16.mxu0 %vm1023_vm2, %v16639_v8  ;;  %7995 = vmatprep.subr.bf16.mxu1 %v20676_v2 }
 0x3e3   : > { %v5732_v45 = vpop.f32.mrb[108].mxu0 }
 0x3e4   : > { %v18010_v48 = vadd.f32 %v5732_v45, %v17831_v14  ;;  %v5734_v28 = vpop.f32.mrb[109].mxu0  ;;  %v15568_v14 = vld [vmem:[#allocation4] ss:$20 sps:$4 sm:$0xff]  }
 0x3e5   : > { %v5735_v44 = vpop.f32.mrb[110].mxu0  ;;  %7915 = vmatpush1.bf16.msra.mxu0 %v16645_v10  ;;  %7996 = vmatpush1.bf16.msra.mxu1 %v16758_v56  ;;  %v15571_v10 = vld [vmem:[#allocation4 + $0x34] ss:$20 sps:$4 sm:$0xff]   ;;  %v15578_v28 = vld [vmem:[#allocation4 + $0x7c] ss:$20 sps:$4 sm:$0xff]  }
 0x3e6   : > { %v18015_v29 = vadd.f32 %v5735_v44, %v17840_v53  ;;  %8041 = vmatprep.subr.bf16.mxu1 %v15566_v35  ;;  %8122 = vmatprep.subr.bf16.mxu0 %v15567_v24  ;;  %v5737_v8 = vpop.f32.mrb[111].mxu0  ;;  %v15579_v44 = vld [vmem:[#allocation4 + $0x84] ss:$20 sps:$4 sm:$0xff]  }
 0x3e7   : > { %v15580_v8 = vld [vmem:[#allocation4 + $0x78] ss:$20 sps:$4 sm:$0xff]  }
 0x3e8   : > { %8002 = vmatmul.mubr.bf16.vlgmr.msra.gmra.mrb[152].mxu1 %v17187_v61  ;;  %7921 = vmatmul.mubr.bf16.vlgmr.msra.gmra.mrb[152].mxu0 %v17187_v61 }
 0x3e9   : > { %8042 = vmatpush1.bf16.msra.mxu1 %v15568_v14  ;;  %8123 = vmatpush1.bf16.msra.mxu0 %v15569_v37  ;;  %v15581_v14 = vld [vmem:[#allocation4 + $0x80] ss:$20 sps:$4 sm:$0xff]  }
 0x3ea   : > { %8043 = vmatprep.subr.bf16.mxu1 %v15570_v21  ;;  %8124 = vmatprep.subr.bf16.mxu0 %v15571_v10  ;;  %v15582_v21 = vld [vmem:[#allocation4 + $0xa4] ss:$20 sps:$4 sm:$0xff]   ;;  %v15583_v10 = vld [vmem:[#allocation4 + $0xac] ss:$20 sps:$4 sm:$0xff]  }
 0x3eb   : > { %v5740_v56 = vpop.f32.mrb[112].mxu0  ;;  %13595 = vmatprep.mubr.msk.bf16.mxu0 %vm1007_vm1, %v17201_v43  ;;  %13600 = vmatprep.mubr.msk.bf16.mxu1 %vm1007_vm1, %v17201_v43  ;;  %v15576_v43 = vld [vmem:[#allocation4 + $0x50] ss:$20 sps:$4 sm:$0xff]  }
 0x3ec   : > { %v18024_v53 = vadd.f32 %v5740_v56, %v17857_v1  ;;  %v5742_v7 = vpop.f32.mrb[113].mxu0  ;;  %v15577_v1 = vld [vmem:[#allocation4 + $0x58] ss:$20 sps:$4 sm:$0xff]  }
 0x3ed   : > { %v5743_v61 = vpop.f32.mrb[114].mxu0  ;;  %8044 = vmatpush1.bf16.msra.mxu1 %v15572_v49  ;;  %8125 = vmatpush1.bf16.msra.mxu0 %v15573_v18  ;;  %v15586_v7 = vld [vmem:[#allocation4 + $0xcc] ss:$20 sps:$4 sm:$0xff]  }
 0x3ee   : > { %v18027_v42 = vadd.f32 %v5743_v61, %v17864_v19  ;;  %8045 = vmatprep.subr.bf16.mxu1 %v15574_v60  ;;  %8126 = vmatprep.subr.bf16.mxu0 %v15575_v62  ;;  %v5745_v45 = vpop.f32.mrb[115].mxu0  ;;  %v15587_v61 = vld [vmem:[#allocation4 + $0xd4] ss:$20 sps:$4 sm:$0xff]  }
 0x3f0   : > { %7931 = vmatmul.mubr.bf16.gmra.mrb[156].mxu0 %v17217_v47  ;;  %8010 = vmatmul.mubr.bf16.gmra.mrb[156].mxu1 %v17217_v47 }
 0x3f1   : > { %8046 = vmatpush1.bf16.msra.mxu1 %v15576_v43  ;;  %8127 = vmatpush1.bf16.msra.mxu0 %v15577_v1  ;;  %v15588_v43 = vld [vmem:[#allocation4 + $0xc8] ss:$20 sps:$4 sm:$0xff]   ;;  %v15589_v1 = vld [vmem:[#allocation4 + $0xd0] ss:$20 sps:$4 sm:$0xff]  }
 0x3f2   : > { %8047 = vmatprep.subr.bf16.mxu1 %v15578_v28  ;;  %8128 = vmatprep.subr.bf16.mxu0 %v15579_v44 }
 0x3f3   : > { %v5748_v35 = vpop.f32.mrb[116].mxu0  ;;  %13596 = vmatprep.mubr.msk.bf16.mxu0 %vm1007_vm1, %v17231_v63  ;;  %13601 = vmatprep.mubr.msk.bf16.mxu1 %vm1007_vm1, %v17231_v63  ;;  %v15584_v63 = vld [vmem:[#allocation4 + $0xa0] ss:$20 sps:$4 sm:$0xff]  }
 0x3f4   : > { %v18036_v19 = vadd.f32 %v5748_v35, %v17879_v57  ;;  %v5750_v24 = vpop.f32.mrb[117].mxu0  ;;  %v15585_v57 = vld [vmem:[#allocation4 + $0xa8] ss:$20 sps:$4 sm:$0xff]  }
 0x3f5   : > { %v5751_v47 = vpop.f32.mrb[118].mxu0  ;;  %8048 = vmatpush1.bf16.msra.mxu1 %v15580_v8  ;;  %8129 = vmatpush1.bf16.msra.mxu0 %v15581_v14  ;;  %v15590_v35 = vld [vmem:[#allocation4 + $0xf4] ss:$20 sps:$4 sm:$0xff]   ;;  %v15595_v8 = vld [vmem:[#allocation4 + $0x124] ss:$20 sps:$4 sm:$0xff]  }
 0x3f6   : > { %v18039_v37 = vadd.f32 %v5751_v47, %v17888_v59  ;;  %8049 = vmatprep.subr.bf16.mxu1 %v15582_v21  ;;  %8130 = vmatprep.subr.bf16.mxu0 %v15583_v10  ;;  %v5753_v56 = vpop.f32.mrb[119].mxu0  ;;  %v15594_v47 = vld [vmem:[#allocation4 + $0x11c] ss:$20 sps:$4 sm:$0xff]   ;;  %v15596_v14 = vld [vmem:[#allocation4 + $0x118] ss:$20 sps:$4 sm:$0xff]  }
 0x3f7   : > { %v15597_v21 = vld [vmem:[#allocation4 + $0x120] ss:$20 sps:$4 sm:$0xff]  }
 0x3f8   : > { %7941 = vmatmul.mubr.bf16.gmra.mrb[160].mxu0 %v17242_v15  ;;  %8018 = vmatmul.mubr.bf16.gmra.mrb[160].mxu1 %v17242_v15  ;;  %v15599_v10 = vld [vmem:[#allocation4 + $0x14c] ss:$20 sps:$4 sm:$0xff]  }
 0x3f9   : > { %8050 = vmatpush1.bf16.msra.mxu1 %v15584_v63  ;;  %8131 = vmatpush1.bf16.msra.mxu0 %v15585_v57  ;;  %v15600_v56 = vld [vmem:[#allocation4 + $0x140] ss:$20 sps:$4 sm:$0xff]   ;;  %v15601_v63 = vld [vmem:[#allocation4 + $0x148] ss:$20 sps:$4 sm:$0xff]  }
 0x3fa   : > { %8051 = vmatprep.subr.bf16.mxu1 %v15586_v7  ;;  %8132 = vmatprep.subr.bf16.mxu0 %v15587_v61  ;;  %v15602_v57 = vld [vmem:[#allocation4 + $0x16c] ss:$20 sps:$4 sm:$0xff]   ;;  %v15605_v61 = vld [vmem:[#allocation4 + $0x168] ss:$20 sps:$4 sm:$0xff]  }
 0x3fb   : > { %v5756_v49 = vpop.f32.mrb[120].mxu0  ;;  %v6503_v59 = vpop.f32.mrb[104].mxu1  ;;  %13597 = vmatprep.mubr.msk.bf16.mxu0 %vm1007_vm1, %v17256_v0  ;;  %13602 = vmatprep.mubr.msk.bf16.mxu1 %vm1007_vm1, %v17256_v0  ;;  %v15591_v0 = vld [vmem:[#allocation4 + $0xfc] ss:$20 sps:$4 sm:$0xff]   ;;  %v18065_v7 = vld [vmem:[%s16610_s28 + $0x4c] ss:$8 sps:$4 sm:$0xff]  }
 0x3fc   : > { %v18048_v18 = vadd.f32 %v5756_v49, %v17909_v51  ;;  %v18051_v15 = vadd.f32 %v6503_v59, %v17973_v31  ;;  %v6505_v60 = vpop.f32.mrb[105].mxu1  ;;  %v5758_v62 = vpop.f32.mrb[121].mxu0  ;;  %v15592_v31 = vld [vmem:[#allocation4 + $0xf0] ss:$20 sps:$4 sm:$0xff]  }
 0x3fd   : > { %v18054_v45 = vadd.f32 %v6505_v60, %v17979_v30  ;;  %8052 = vmatpush1.bf16.msra.mxu1 %v15588_v43  ;;  %8133 = vmatpush1.bf16.msra.mxu0 %v15589_v1  ;;  %v5759_v28 = vpop.f32.mrb[122].mxu0  ;;  %v6507_v44 = vpop.f32.mrb[106].mxu1  ;;  %v15593_v30 = vld [vmem:[#allocation4 + $0xf8] ss:$20 sps:$4 sm:$0xff]   ;;  %v15606_v49 = vld [vmem:[#allocation4 + $0x170] ss:$20 sps:$4 sm:$0xff]  }
 0x3fe   : > { %8053 = vmatprep.subr.bf16.mxu1 %v15590_v35  ;;  %8134 = vmatprep.subr.bf16.mxu0 %v15591_v0  ;;  %v5760_v51 = vpop.f32.mrb[123].mxu0  ;;  %v6508_v24 = vpop.f32.mrb[107].mxu1  ;;  %v15608_v59 = vld [vmem:[#allocation4 + $0x19c] ss:$20 sps:$4 sm:$0xff]   ;;  %v15610_v62 = vld [vmem:[#allocation4 + $0x198] ss:$20 sps:$4 sm:$0xff]  }
 0x3ff   : > { %v15609_v60 = vld [vmem:[#allocation4 + $0x190] ss:$20 sps:$4 sm:$0xff]   ;;  %v15613_v51 = vld [vmem:[#allocation4 + $0x1b8] ss:$20 sps:$4 sm:$0xff]   ;;  %v15614_v24 = vld [vmem:[#allocation4 + $0x1c0] ss:$20 sps:$4 sm:$0xff]  }
 0x400   : > { %7951 = vmatmul.mubr.bf16.gmra.mrb[164].mxu0 %v17271_v52  ;;  %8026 = vmatmul.mubr.bf16.gmra.mrb[164].mxu1 %v17271_v52  ;;  %v15598_v52 = vld [vmem:[#allocation4 + $0x144] ss:$20 sps:$4 sm:$0xff]   ;;  %v15611_v43 = vld [vmem:[#allocation4 + $0x1bc] ss:$20 sps:$4 sm:$0xff]  }
 0x401   : > { %8054 = vmatpush1.bf16.msra.mxu1 %v15592_v31  ;;  %8135 = vmatpush1.bf16.msra.mxu0 %v15593_v30  ;;  %v15612_v1 = vld [vmem:[#allocation4 + $0x1c4] ss:$20 sps:$4 sm:$0xff]  }
 0x402   : > { %8055 = vmatprep.subr.bf16.mxu1 %v15594_v47  ;;  %8136 = vmatprep.subr.bf16.mxu0 %v15595_v8  ;;  %v15615_v47 = vld [vmem:[#allocation4 + $0x1e4] ss:$20 sps:$4 sm:$0xff]   ;;  %v15616_v8 = vld [vmem:[#allocation4 + $0x1ec] ss:$20 sps:$4 sm:$0xff]  }
 0x403   : > { %13598 = vmatprep.mubr.msk.bf16.mxu0 %vm1007_vm1, %v17277_v36  ;;  %13603 = vmatprep.mubr.msk.bf16.mxu1 %vm1007_vm1, %v17277_v36  ;;  %v15603_v36 = vld [vmem:[#allocation4 + $0x174] ss:$20 sps:$4 sm:$0xff]  }
 0x405   : > { %8056 = vmatpush1.bf16.msra.mxu1 %v15596_v14  ;;  %8137 = vmatpush1.bf16.msra.mxu0 %v15597_v21  ;;  %v15617_v14 = vld [vmem:[#allocation4 + $0x1e0] ss:$20 sps:$4 sm:$0xff]   ;;  %v15618_v21 = vld [vmem:[#allocation4 + $0x1e8] ss:$20 sps:$4 sm:$0xff]  }
 0x406   : > { %8057 = vmatprep.subr.bf16.mxu1 %v15598_v52  ;;  %8138 = vmatprep.subr.bf16.mxu0 %v15599_v10  ;;  %v20728_v52 = vld [vmem:[#allocation13_spill] sm:$0xff] }
 0x408   : > { %7961 = vmatmul.mubr.bf16.gmra.mrb[168].mxu0 %v17287_v23  ;;  %8034 = vmatmul.mubr.bf16.gmra.mrb[168].mxu1 %v17287_v23  ;;  %v15607_v23 = vld [vmem:[#allocation4 + $0x194] ss:$20 sps:$4 sm:$0xff]  }
 0x409   : > { %8058 = vmatpush1.bf16.msra.mxu1 %v15600_v56  ;;  %8139 = vmatpush1.bf16.msra.mxu0 %v15601_v63 }
 0x40a   : > { %8059 = vmatprep.subr.bf16.mxu1 %v15602_v57  ;;  %8140 = vmatprep.subr.bf16.mxu0 %v15603_v36  ;;  %v20729_v57 = vld [vmem:[#allocation16_spill] sm:$0xff]  ;;  %v20730_v36 = vld [vmem:[#allocation14_spill] sm:$0xff] }
 0x40b   : > { %13605 = vmatprep.mubr.msk.bf16.mxu1 %vm1007_vm1, %v18065_v7  ;;  %13611 = vmatprep.mubr.msk.bf16.mxu0 %vm1007_vm1, %v18065_v7 }
 0x40d   : > { %8060 = vmatpush1.bf16.msra.mxu1 %v15605_v61  ;;  %8141 = vmatpush1.bf16.msra.mxu0 %v15606_v49  ;;  %v15619_v49 = vld [vmem:[#allocation4 + $0x43c] ss:$20 sps:$4 sm:$0xff]  }
 0x40e   : > { %8061 = vmatprep.subr.bf16.mxu1 %v15607_v23  ;;  %8142 = vmatprep.subr.bf16.mxu0 %v15608_v59  ;;  %v18091_v59 = vld [vmem:[%s16610_s28 + $0x48] ss:$8 sps:$4 sm:$0xff]  }
 0x411   : > { %8062 = vmatpush1.bf16.msra.mxu1 %v15609_v60  ;;  %8143 = vmatpush1.bf16.msra.mxu0 %v15610_v62  ;;  %v15622_v60 = vld [vmem:[#allocation4 + $0x438] ss:$20 sps:$4 sm:$0xff]  }
 0x412   : > { %8063 = vmatprep.subr.bf16.mxu1 %v15611_v43  ;;  %8144 = vmatprep.subr.bf16.mxu0 %v15612_v1  ;;  %v18097_v43 = vld [vmem:[%s16610_s28 + $0x5c] ss:$8 sps:$4 sm:$0xff]  }
 0x413   : > { %v6544_v28 = vpop.f32.mrb[108].mxu1 }
 0x414   : > { %v18072_v44 = vadd.f32 %v6544_v28, %v18000_v26  ;;  %v6546_v35 = vpop.f32.mrb[109].mxu1  ;;  %v20727_v26 = vld [vmem:[#allocation15_spill] sm:$0xff] }
 0x415   : > { %v6547_v0 = vpop.f32.mrb[110].mxu1  ;;  %8064 = vmatpush1.bf16.msra.mxu1 %v15613_v51  ;;  %8145 = vmatpush1.bf16.msra.mxu0 %v15614_v24  ;;  %v15626_v51 = vld [vmem:[#allocation4 + $0x460] ss:$20 sps:$4 sm:$0xff]  }
 0x416   : > { %v18075_v31 = vadd.f32 %v6547_v0, %v18003_v4  ;;  %v6549_v30 = vpop.f32.mrb[111].mxu1  ;;  %8065 = vmatprep.subr.bf16.mxu1 %v15615_v47  ;;  %8146 = vmatprep.subr.bf16.mxu0 %v15616_v8  ;;  %v15625_v0 = vld [vmem:[#allocation4 + $0x38] ss:$20 sps:$4 sm:$0xff]  }
 0x417   : > { %v15627_v30 = vld [vmem:[#allocation4 + $0x48c] ss:$20 sps:$4 sm:$0xff]  }
 0x418   : > { %v18111_v8 = vld [vmem:[%s16610_s28 + $0x58] ss:$8 sps:$4 sm:$0xff]  }
 0x419   : > { %8066 = vmatpush1.bf16.msra.mxu1 %v15617_v14  ;;  %8147 = vmatpush1.bf16.msra.mxu0 %v15618_v21  ;;  %v15630_v14 = vld [vmem:[#allocation4 + $0x488] ss:$20 sps:$4 sm:$0xff]  }
 0x41a   : > { %13604 = vmatprep.subr.msk.bf16.mxu1 %vm1023_vm2, %v20727_v26  ;;  %13610 = vmatprep.subr.msk.bf16.mxu0 %vm1023_vm2, %v20728_v52  ;;  %v18117_v26 = vld [vmem:[%s16610_s28 + $0x6c] ss:$8 sps:$4 sm:$0xff]  }
 0x41b   : > { %v6552_v10 = vpop.f32.mrb[112].mxu1 }
 0x41c   : > { %v18082_v4 = vadd.f32 %v6552_v10, %v18010_v48  ;;  %v6554_v56 = vpop.f32.mrb[113].mxu1  ;;  %v15621_v48 = vld [vmem:[#allocation4 + $0x10] ss:$20 sps:$4 sm:$0xff]  }
 0x41d   : > { %v6555_v63 = vpop.f32.mrb[114].mxu1  ;;  %8068 = vmatpush1.bf16.msra.mxu1 %v20729_v57  ;;  %8149 = vmatpush1.bf16.msra.mxu0 %v20730_v36  ;;  %v15634_v57 = vld [vmem:[#allocation4 + $0x4b0] ss:$20 sps:$4 sm:$0xff]  }
 0x41e   : > { %v18087_v61 = vadd.f32 %v6555_v63, %v18015_v29  ;;  %8203 = vmatprep.subr.bf16.mxu0 %v20676_v2  ;;  %8275 = vmatprep.subr.bf16.mxu1 %v15619_v49  ;;  %v6557_v23 = vpop.f32.mrb[115].mxu1  ;;  %v15623_v29 = vld [vmem:[#allocation4 + $0x464] ss:$20 sps:$4 sm:$0xff]   ;;  %v15633_v63 = vld [vmem:[#allocation4 + $0x88] ss:$20 sps:$4 sm:$0xff]  }
 0x41f   : > { %v15635_v49 = vld [vmem:[#allocation4 + $0x4dc] ss:$20 sps:$4 sm:$0xff]  }
 0x420   : > { %8074 = vmatmul.mubr.bf16.vlgmr.msra.gmra.mrb[132].mxu1 %v18091_v59  ;;  %8155 = vmatmul.mubr.bf16.vlgmr.msra.gmra.mrb[152].mxu0 %v18091_v59 }
 0x421   : > { %8204 = vmatpush1.bf16.msra.mxu0 %v15621_v48  ;;  %8276 = vmatpush1.bf16.msra.mxu1 %v15622_v60  ;;  %v18131_v48 = vld [vmem:[%s16610_s28 + $0x68] ss:$8 sps:$4 sm:$0xff]   ;;  %v15638_v60 = vld [vmem:[#allocation4 + $0x4d8] ss:$20 sps:$4 sm:$0xff]  }
 0x422   : > { %8205 = vmatprep.subr.bf16.mxu0 %v20676_v2  ;;  %8277 = vmatprep.subr.bf16.mxu1 %v15623_v29 }
 0x423   : > { %v6560_v62 = vpop.f32.mrb[116].mxu1  ;;  %13606 = vmatprep.mubr.msk.bf16.mxu1 %vm1007_vm1, %v18097_v43  ;;  %13612 = vmatprep.mubr.msk.bf16.mxu0 %vm1007_vm1, %v18097_v43 }
 0x424   : > { %v18104_v1 = vadd.f32 %v6560_v62, %v18024_v53  ;;  %v6562_v28 = vpop.f32.mrb[117].mxu1  ;;  %v15629_v53 = vld [vmem:[#allocation4 + $0x60] ss:$20 sps:$4 sm:$0xff]  }
 0x425   : > { %v6563_v35 = vpop.f32.mrb[118].mxu1  ;;  %8206 = vmatpush1.bf16.msra.mxu0 %v15625_v0  ;;  %8278 = vmatpush1.bf16.msra.mxu1 %v15626_v51  ;;  %v18137_v28 = vld [vmem:[%s16610_s28 + $0x7c] ss:$8 sps:$4 sm:$0xff]  }
 0x426   : > { %v18107_v24 = vadd.f32 %v6563_v35, %v18027_v42  ;;  %8207 = vmatprep.subr.bf16.mxu0 %v20676_v2  ;;  %8279 = vmatprep.subr.bf16.mxu1 %v15627_v30  ;;  %v6565_v47 = vpop.f32.mrb[119].mxu1  ;;  %v15631_v42 = vld [vmem:[#allocation4 + $0x4b4] ss:$20 sps:$4 sm:$0xff]  }
 0x428   : > { %8084 = vmatmul.mubr.bf16.gmra.mrb[136].mxu1 %v18111_v8  ;;  %8165 = vmatmul.mubr.bf16.gmra.mrb[156].mxu0 %v18111_v8 }
 0x429   : > { %8208 = vmatpush1.bf16.msra.mxu0 %v15629_v53  ;;  %8280 = vmatpush1.bf16.msra.mxu1 %v15630_v14  ;;  %v15641_v53 = vld [vmem:[#allocation4 + $0xd8] ss:$20 sps:$4 sm:$0xff]   ;;  %v15642_v14 = vld [vmem:[#allocation4 + $0x500] ss:$20 sps:$4 sm:$0xff]  }
 0x42a   : > { %8209 = vmatprep.subr.bf16.mxu0 %v20676_v2  ;;  %8281 = vmatprep.subr.bf16.mxu1 %v15631_v42 }
 0x42b   : > { %v6568_v21 = vpop.f32.mrb[120].mxu1  ;;  %13607 = vmatprep.mubr.msk.bf16.mxu1 %vm1007_vm1, %v18117_v26  ;;  %13613 = vmatprep.mubr.msk.bf16.mxu0 %vm1007_vm1, %v18117_v26 }
 0x42c   : > { %v18124_v52 = vadd.f32 %v6568_v21, %v18036_v19  ;;  %v6570_v10 = vpop.f32.mrb[121].mxu1  ;;  %v15637_v19 = vld [vmem:[#allocation4 + $0xb0] ss:$20 sps:$4 sm:$0xff]  }
 0x42d   : > { %v6571_v56 = vpop.f32.mrb[122].mxu1  ;;  %8210 = vmatpush1.bf16.msra.mxu0 %v15633_v63  ;;  %8282 = vmatpush1.bf16.msra.mxu1 %v15634_v57  ;;  %v15643_v10 = vld [vmem:[#allocation4 + $0x52c] ss:$20 sps:$4 sm:$0xff]   ;;  %v15647_v57 = vld [vmem:[#allocation4 + $0x554] ss:$20 sps:$4 sm:$0xff]  }
 0x42e   : > { %v18127_v36 = vadd.f32 %v6571_v56, %v18039_v37  ;;  %8211 = vmatprep.subr.bf16.mxu0 %v20676_v2  ;;  %8283 = vmatprep.subr.bf16.mxu1 %v15635_v49  ;;  %v6573_v23 = vpop.f32.mrb[123].mxu1  ;;  %v15639_v37 = vld [vmem:[#allocation4 + $0x504] ss:$20 sps:$4 sm:$0xff]   ;;  %v20731_v49 = vld [vmem:[#allocation25_spill] sm:$0xff] }
 0x42f   : > { %v18154_v63 = vld [vmem:[%s16610_s28 + $0x78] ss:$8 sps:$4 sm:$0xff]   ;;  %v7394_v23 = vlaneseq }
 0x430   : > { %8094 = vmatmul.mubr.bf16.gmra.mrb[140].mxu1 %v18131_v48  ;;  %8175 = vmatmul.mubr.bf16.gmra.mrb[160].mxu0 %v18131_v48 }
 0x431   : > { %8212 = vmatpush1.bf16.msra.mxu0 %v15637_v19  ;;  %8284 = vmatpush1.bf16.msra.mxu1 %v15638_v60  ;;  %v15648_v19 = vld [vmem:[#allocation4 + $0x128] ss:$20 sps:$4 sm:$0xff]   ;;  %v15649_v60 = vld [vmem:[#allocation4 + $0x550] ss:$20 sps:$4 sm:$0xff]  }
 0x432   : > { %8213 = vmatprep.subr.bf16.mxu0 %v20676_v2  ;;  %8285 = vmatprep.subr.bf16.mxu1 %v15639_v37  ;;  %v15650_v37 = vld [vmem:[#allocation4 + $0x57c] ss:$20 sps:$4 sm:$0xff]  }
 0x433   : > { %v6422_v29 = vpop.f32.mrb[124].mxu0  ;;  %v6576_v62 = vpop.f32.mrb[124].mxu1  ;;  %13608 = vmatprep.mubr.msk.bf16.mxu1 %vm1007_vm1, %v18137_v28  ;;  %13614 = vmatprep.mubr.msk.bf16.mxu0 %vm1007_vm1, %v18137_v28 }
 0x434   : > { %v18144_v35 = vadd.f32 %v6422_v29, %v17970_v9  ;;  %v18147_v0 = vadd.f32 %v6576_v62, %v18048_v18  ;;  %v6424_v51 = vpop.f32.mrb[125].mxu0  ;;  %v6578_v30 = vpop.f32.mrb[125].mxu1  ;;  %v15646_v18 = vld [vmem:[#allocation4 + $0x528] ss:$20 sps:$4 sm:$0xff]   ;;  %v18166_v62 = vshrl.u32 %v7394_v23, 7 }
 0x435   : > { %v18150_v47 = vadd.f32 %v6424_v51, %v17976_v38  ;;  %8214 = vmatpush1.bf16.msra.mxu0 %v15641_v53  ;;  %8286 = vmatpush1.bf16.msra.mxu1 %v15642_v14  ;;  %v6426_v42 = vpop.f32.mrb[126].mxu0  ;;  %v6579_v21 = vpop.f32.mrb[126].mxu1  ;;  %v15645_v38 = vld [vmem:[#allocation4 + $0x100] ss:$20 sps:$4 sm:$0xff]   ;;  %v15651_v51 = vld [vmem:[#allocation4 + $0x150] ss:$20 sps:$4 sm:$0xff]  }
 0x436   : > { %8215 = vmatprep.subr.bf16.mxu0 %v20676_v2  ;;  %8287 = vmatprep.subr.bf16.mxu1 %v15643_v10  ;;  %v6427_v9 = vpop.f32.mrb[127].mxu0  ;;  %v6580_v56 = vpop.f32.mrb[127].mxu1  ;;  %v20732_v29 = vld [vmem:[#allocation26_spill] sm:$0xff]  ;;  %20733 = vst [vmem:[#allocation15_spill] sm:$0xff] %v18166_v62  ;;  %v18174_v42 = vsub.s32 2, %v18166_v62 }
 0x437   : > { %v15652_v30 = vld [vmem:[#allocation4 + $0x578] ss:$20 sps:$4 sm:$0xff]   ;;  %v15655_v10 = vld [vmem:[#allocation4 + $0x5a0] ss:$20 sps:$4 sm:$0xff]   ;;  %v7408_v56 = vsub.s32 3, %v18166_v62 }
 0x438   : > { %8104 = vmatmul.mubr.bf16.gmra.mrb[144].mxu1 %v18154_v63  ;;  %8185 = vmatmul.mubr.bf16.gmra.mrb[164].mxu0 %v18154_v63  ;;  %v15653_v53 = vld [vmem:[#allocation4 + $0x5a4] ss:$20 sps:$4 sm:$0xff]   ;;  %20735 = vst [vmem:[#allocation13_spill] sm:$0xff] %v18174_v42  ;;  %v18176_v9 = vld [vmem:[#allocation6] sm:$0x1f] }
 0x439   : > { %8216 = vmatpush1.bf16.msra.mxu0 %v15645_v38  ;;  %8288 = vmatpush1.bf16.msra.mxu1 %v15646_v18  ;;  %v20734_v14 = vld [vmem:[#allocation34_spill] sm:$0xff]  ;;  %v15656_v38 = vld [vmem:[#allocation4 + $0x5cc] ss:$20 sps:$4 sm:$0xff]  }
 0x43a   : > { %8217 = vmatprep.subr.bf16.mxu0 %v20676_v2  ;;  %8289 = vmatprep.subr.bf16.mxu1 %v15647_v57  ;;  %v15654_v21 = vld [vmem:[#allocation4 + $0x178] ss:$20 sps:$4 sm:$0xff]   ;;  %v15657_v18 = vld [vmem:[#allocation4 + $0x1a0] ss:$20 sps:$4 sm:$0xff]   ;;  %v15658_v57 = vld [vmem:[#allocation4 + $0x5c8] ss:$20 sps:$4 sm:$0xff]  }
 0x43b   : > { %13609 = vmatprep.mubr.msk.bf16.mxu1 %vm1007_vm1, %v20731_v49  ;;  %13615 = vmatprep.mubr.msk.bf16.mxu0 %vm1007_vm1, %v20731_v49  ;;  %v18184_v23 = vld [vmem:[#allocation7] sm:$0x1f] }
 0x43c   : > { %v18205_v20 = vrot.slane %v18184_v23, %v7408_v56 }
 0x43d   : > { %8218 = vmatpush1.bf16.msra.mxu0 %v15648_v19  ;;  %8290 = vmatpush1.bf16.msra.mxu1 %v15649_v60  ;;  %v18187_v19 = vrot.slane %v18176_v9, %v7408_v56  ;;  %v15659_v60 = vld [vmem:[#allocation4 + $0x5f4] ss:$20 sps:$4 sm:$0xff]  }
 0x43e   : > { %8219 = vmatprep.subr.bf16.mxu0 %v20676_v2  ;;  %8291 = vmatprep.subr.bf16.mxu1 %v15650_v37 }
 0x440   : > { %8114 = vmatmul.mubr.bf16.gmra.mrb[172].mxu1 %v20732_v29  ;;  %8195 = vmatmul.mubr.bf16.gmra.mrb[172].mxu0 %v20732_v29 }
 0x441   : > { %8220 = vmatpush1.bf16.msra.mxu0 %v15651_v51  ;;  %8292 = vmatpush1.bf16.msra.mxu1 %v15652_v30  ;;  %v18192_v30 = vld [vmem:[#allocation9] sm:$0x1f] }
 0x442   : > { %8221 = vmatprep.subr.bf16.mxu0 %v20676_v2  ;;  %8293 = vmatprep.subr.bf16.mxu1 %v15653_v53 }
 0x443   : > { %13616 = vmatprep.mubr.msk.bf16.mxu0 %vm1007_vm1, %v18065_v7  ;;  %13622 = vmatprep.mubr.msk.bf16.mxu1 %vm1007_vm1, %v20734_v14  ;;  %v18182_v7 = vrot.slane %v18176_v9, %v18174_v42 }
 0x445   : > { %8222 = vmatpush1.bf16.msra.mxu0 %v15654_v21  ;;  %8294 = vmatpush1.bf16.msra.mxu1 %v15655_v10  ;;  %v18197_v21 = vrot.slane %v18184_v23, %v18174_v42 }
 0x446   : > { %8223 = vmatprep.subr.bf16.mxu0 %v20676_v2  ;;  %8295 = vmatprep.subr.bf16.mxu1 %v15656_v38 }
 0x449   : > { %8224 = vmatpush1.bf16.msra.mxu0 %v15657_v18  ;;  %8296 = vmatpush1.bf16.msra.mxu1 %v15658_v57 }
 0x44a   : > { %8225 = vmatprep.subr.bf16.mxu0 %v20676_v2  ;;  %8297 = vmatprep.subr.bf16.mxu1 %v15659_v60  ;;  %v15660_v60 = vld [vmem:[#allocation4 + $0x1c8] ss:$20 sps:$4 sm:$0xff]  }
 0x44b   : > { %v18190_v37 = vpop.f32.mrb[0].mxu0  ;;  %v7228_v51 = vpop.f32.mrb[0].mxu1 }
 0x44c   : > { %20736 = vst [vmem:[#allocation16_spill] sm:$0xff] %v18190_v37  ;;  %v7421_v53 = vadd.f32 %v18182_v7, %v7228_v51  ;;  %v18199_v10 = vpop.f32.mrb[1].mxu0  ;;  %v7230_v38 = vpop.f32.mrb[1].mxu1  ;;  %v15661_v37 = vld [vmem:[#allocation4 + $0x5f0] ss:$20 sps:$4 sm:$0xff]  }
 0x44d   : > { %20737 = vst [vmem:[#allocation14_spill] sm:$0xff] %v18199_v10  ;;  %v7422_v18 = vadd.f32 %v18187_v19, %v7230_v38  ;;  %v18202_v57 = vpop.f32.mrb[2].mxu0  ;;  %v7232_v25 = vpop.f32.mrb[2].mxu1  ;;  %8226 = vmatpush1.bf16.msra.mxu0 %v15660_v60  ;;  %8298 = vmatpush1.bf16.msra.mxu1 %v15661_v37  ;;  %v15662_v10 = vld [vmem:[#allocation4 + $0x61c] ss:$20 sps:$4 sm:$0xff]   ;;  %v18213_v38 = vrot.slane %v18192_v30, %v18174_v42 }
 0x44e   : > { %20738 = vst [vmem:[#allocation25_spill] sm:$0xff] %v18202_v57  ;;  %v7466_v16 = vmax.f32 %v7421_v53, 0.0  ;;  %v7426_v51 = vadd.f32 %v18182_v7, %v7232_v25  ;;  %v18208_v34 = vpop.f32.mrb[3].mxu0  ;;  %v7234_v13 = vpop.f32.mrb[3].mxu1  ;;  %8227 = vmatprep.subr.bf16.mxu0 %v20676_v2  ;;  %8299 = vmatprep.subr.bf16.mxu1 %v15662_v10  ;;  %v15664_v25 = vld [vmem:[#allocation4 + $0x618] ss:$20 sps:$4 sm:$0xff]  }
 0x44f   : > { %20739 = vst [vmem:[#allocation26_spill] sm:$0xff] %v18208_v34  ;;  %v7467_v60 = vmax.f32 %v7422_v18, 0.0  ;;  %v7427_v37 = vadd.f32 %v18187_v19, %v7234_v13  ;;  %v18218_v34 = vrot.slane %v18192_v30, %v7408_v56  ;;  %v20740_v42 = vld [vmem:[#allocation18_spill] sm:$0xff] }
 0x450   : > { %v7538_v53 = vmul.f32 %v18197_v21, %v7466_v16  ;;  %v7471_v57 = vmax.f32 %v7426_v51, 0.0 }
 0x451   : > { %8228 = vmatpush1.bf16.msra.mxu0 %v15663_v6  ;;  %8300 = vmatpush1.bf16.msra.mxu1 %v15664_v25  ;;  %v7539_v11 = vmul.f32 %v18205_v20, %v7467_v60  ;;  %v7472_v33 = vmax.f32 %v7427_v37, 0.0  ;;  %v20744_v25 = vld [vmem:[#allocation20_spill] sm:$0xff] }
 0x452   : > { %v7543_v10 = vmul.f32 %v18197_v21, %v7471_v57  ;;  %13621 = vmatprep.subr.msk.bf16.mxu1 %vm1023_vm2, %v20740_v42  ;;  %v18225_v13 = vadd.f32 %v18213_v38, %v7538_v53  ;;  %8229 = vmatprep.subr.bf16.mxu0 %v20676_v2  ;;  %v20743_v53 = vld [vmem:[#allocation17_spill] sm:$0xff] }
 0x453   : > { %v18228_v16 = vpop.f32.mrb[4].mxu0  ;;  %v7238_v6 = vpop.f32.mrb[4].mxu1 }
 0x454   : > { %20741 = vst [vmem:[#allocation34_spill] sm:$0xff] %v18225_v13  ;;  %v7431_v18 = vadd.f32 %v18182_v7, %v7238_v6  ;;  %7680 = vrot.lane.b32.xlu0 %v18225_v13, %s16333_s29  ;;  %v18233_v56 = vpop.f32.mrb[5].mxu0  ;;  %v7240_v57 = vpop.f32.mrb[5].mxu1  ;;  %v18236_v51 = vadd.f32 %v18213_v38, %v7543_v10  ;;  %v7544_v6 = vmul.f32 %v18205_v20, %v7472_v33  ;;  %v20745_v33 = vld [vmem:[#allocation38_spill] sm:$0xff] }
 0x455   : > { %v7432_v42 = vadd.f32 %v18187_v19, %v7240_v57  ;;  %v18239_v60 = vpop.f32.mrb[6].mxu0  ;;  %v7242_v37 = vpop.f32.mrb[6].mxu1  ;;  %8230 = vmatpush1.bf16.msra.mxu0 %v20743_v53  ;;  %8302 = vmatpush1.bf16.msra.mxu1 %v20744_v25  ;;  %v7611_v57 = vadd.f32 %v18218_v34, %v7539_v11  ;;  %v15667_v11 = vld [vmem:[#allocation4 + $0x440] ss:$20 sps:$4 sm:$0xff]  }
 0x456   : > { %20742 = vst [vmem:[#allocation18_spill] sm:$0xff] %v18236_v51  ;;  %v7476_v3 = vmax.f32 %v7431_v18, 0.0  ;;  %v7436_v13 = vadd.f32 %v18182_v7, %v7242_v37  ;;  %7686 = vrot.lane.b32.xlu1 %v18236_v51, %s16333_s29  ;;  %v18247_v32 = vpop.f32.mrb[7].mxu0  ;;  %v7244_v10 = vpop.f32.mrb[7].mxu1  ;;  %8437 = vmatprep.subr.bf16.mxu1 %v20676_v2  ;;  %v15666_v37 = vld [vmem:[#allocation4 + $0x448] ss:$20 sps:$4 sm:$0xff]  }
 0x457   : > { %v7477_v12 = vmax.f32 %v7432_v42, 0.0  ;;  %v7437_v53 = vadd.f32 %v18187_v19, %v7244_v10  ;;  %8356 = vmatprep.subr.bf16.mxu0 %v15665_v41  ;;  %v7616_v41 = vadd.f32 %v18218_v34, %v7544_v6  ;;  %v15668_v10 = vld [vmem:[#allocation4 + $0x46c] ss:$20 sps:$4 sm:$0xff]  }
 0x458   : > { %v7481_v25 = vmax.f32 %v7436_v13, 0.0  ;;  %8308 = vmatmul.mubr.bf16.vlgmr.msra.gmra.mrb[132].mxu1 %v20745_v33  ;;  %7682 = vrot.lane.b32.xlu0 %v7611_v57, %s16333_s29  ;;  %v7548_v51 = vmul.f32 %v18197_v21, %v7476_v3  ;;  %v20746_v6 = vld [vmem:[#allocation39_spill] sm:$0xff] }
 0x459   : > { %v7549_v18 = vmul.f32 %v18205_v20, %v7477_v12  ;;  %8236 = vmatmul.mubr.bf16.vlgmr.msra.gmra.mrb[176].mxu0 %v18091_v59  ;;  %8438 = vmatpush1.bf16.msra.mxu1 %v15666_v37  ;;  %v7482_v58 = vmax.f32 %v7437_v53, 0.0 }
 0x45a   : > { %8357 = vmatpush1.bf16.msra.mxu0 %v15667_v11  ;;  %8439 = vmatprep.subr.bf16.mxu1 %v20676_v2  ;;  %v7553_v59 = vmul.f32 %v18197_v21, %v7481_v25  ;;  %v15669_v11 = vld [vmem:[#allocation4 + $0x470] ss:$20 sps:$4 sm:$0xff]  }
 0x45b   : > { %v18259_v13 = vpop.f32.mrb[8].mxu0  ;;  %v7248_v42 = vpop.f32.mrb[8].mxu1  ;;  %8358 = vmatprep.subr.bf16.mxu0 %v15668_v10  ;;  %v7621_v12 = vadd.f32 %v18218_v34, %v7549_v18  ;;  %13617 = vmatprep.mubr.msk.bf16.mxu0 %vm1007_vm1, %v18097_v43  ;;  %v7554_v25 = vmul.f32 %v18205_v20, %v7482_v58  ;;  %v15670_v10 = vld [vmem:[#allocation4 + $0x468] ss:$20 sps:$4 sm:$0xff]  }
 0x45c   : > { %v7441_v3 = vadd.f32 %v18182_v7, %v7248_v42  ;;  %7688 = vrot.lane.b32.xlu0 %v7616_v41, %s16333_s29  ;;  %v18267_v57 = vpop.f32.mrb[9].mxu0  ;;  %v7250_v53 = vpop.f32.mrb[9].mxu1  ;;  %13623 = vmatprep.mubr.msk.bf16.mxu1 %vm1007_vm1, %v20746_v6 }
 0x45d   : > { %v7442_v37 = vadd.f32 %v18187_v19, %v7250_v53  ;;  %8440 = vmatpush1.bf16.msra.mxu1 %v15669_v11  ;;  %7694 = vrot.lane.b32.xlu1 %v7621_v12, %s16333_s29  ;;  %v18273_v18 = vpop.f32.mrb[10].mxu0  ;;  %v7252_v43 = vpop.f32.mrb[10].mxu1  ;;  %v18281_v53 = vadd.f32 %v18213_v38, %v7548_v51  ;;  %v15672_v51 = vld [vmem:[#allocation4 + $0x498] ss:$20 sps:$4 sm:$0xff]  }
 0x45e   : > { %v7486_v42 = vmax.f32 %v7441_v3, 0.0  ;;  %v7446_v41 = vadd.f32 %v18182_v7, %v7252_v43  ;;  %8359 = vmatpush1.bf16.msra.mxu0 %v15670_v10  ;;  %v18277_v27 = vpop.f32.mrb[11].mxu0  ;;  %v7254_v39 = vpop.f32.mrb[11].mxu1  ;;  %8441 = vmatprep.subr.bf16.mxu1 %v20676_v2  ;;  %v20749_v3 = vld [vmem:[#allocation40_spill] sm:$0xff]  ;;  %v18289_v43 = vadd.f32 %v18213_v38, %v7553_v59 }
 0x45f   : > { %20747 = vst [vmem:[#allocation17_spill] sm:$0xff] %v18277_v27  ;;  %20748 = vst [vmem:[#allocation20_spill] sm:$0xff] %v18281_v53  ;;  %v7487_v11 = vmax.f32 %v7442_v37, 0.0  ;;  %v7447_v12 = vadd.f32 %v18187_v19, %v7254_v39  ;;  %8360 = vmatprep.subr.bf16.mxu0 %v15671_v46  ;;  %v15673_v46 = vld [vmem:[#allocation4 + $0x490] ss:$20 sps:$4 sm:$0xff]  }
 0x460   : > { %v7558_v58 = vmul.f32 %v18197_v21, %v7486_v42  ;;  %8318 = vmatmul.mubr.bf16.gmra.mrb[136].mxu1 %v20749_v3  ;;  %7692 = vrot.lane.b32.xlu0 %v18281_v53, %s16333_s29  ;;  %20750 = vst [vmem:[#allocation38_spill] sm:$0xff] %v18289_v43  ;;  %v7491_v39 = vmax.f32 %v7446_v41, 0.0  ;;  %v7626_v42 = vadd.f32 %v18218_v34, %v7554_v25 }
 0x461   : > { %v7492_v10 = vmax.f32 %v7447_v12, 0.0  ;;  %8244 = vmatmul.mubr.bf16.gmra.mrb[180].mxu0 %v18111_v8  ;;  %8442 = vmatpush1.bf16.msra.mxu1 %v15672_v51  ;;  %v7559_v37 = vmul.f32 %v18205_v20, %v7487_v11  ;;  %v15674_v8 = vld [vmem:[#allocation4 + $0x4bc] ss:$20 sps:$4 sm:$0xff]  }
 0x462   : > { %7698 = vrot.lane.b32.xlu1 %v18289_v43, %s16333_s29  ;;  %8361 = vmatpush1.bf16.msra.mxu0 %v15673_v46  ;;  %v18297_v53 = vadd.f32 %v18213_v38, %v7558_v58  ;;  %v15675_v58 = vld [vmem:[#allocation4 + $0x4c0] ss:$20 sps:$4 sm:$0xff]  }
 0x463   : > { %v18299_v59 = vpop.f32.mrb[12].mxu0  ;;  %v7258_v12 = vpop.f32.mrb[12].mxu1  ;;  %8443 = vmatprep.subr.bf16.mxu1 %v20676_v2  ;;  %8362 = vmatprep.subr.bf16.mxu0 %v15674_v8  ;;  %v7564_v11 = vmul.f32 %v18205_v20, %v7492_v10  ;;  %v20753_v8 = vld [vmem:[#allocation41_spill] sm:$0xff]  ;;  %v7563_v10 = vmul.f32 %v18197_v21, %v7491_v39 }
 0x464   : > { %20751 = vst [vmem:[#allocation39_spill] sm:$0xff] %v18297_v53  ;;  %v7451_v41 = vadd.f32 %v18182_v7, %v7258_v12  ;;  %7700 = vrot.lane.b32.xlu0 %v7626_v42, %s16333_s29  ;;  %v18305_v51 = vpop.f32.mrb[13].mxu0  ;;  %v7260_v46 = vpop.f32.mrb[13].mxu1  ;;  %13618 = vmatprep.mubr.msk.bf16.mxu0 %vm1007_vm1, %v18117_v26 }
 0x465   : > { %20752 = vst [vmem:[#allocation40_spill] sm:$0xff] %v18305_v51  ;;  %v7452_v25 = vadd.f32 %v18187_v19, %v7260_v46  ;;  %8444 = vmatpush1.bf16.msra.mxu1 %v15675_v58  ;;  %v18310_v43 = vpop.f32.mrb[14].mxu0  ;;  %v7262_v55 = vpop.f32.mrb[14].mxu1  ;;  %13624 = vmatprep.mubr.msk.bf16.mxu1 %vm1007_vm1, %v20753_v8  ;;  %v15676_v51 = vld [vmem:[#allocation4 + $0x4b8] ss:$20 sps:$4 sm:$0xff]   ;;  %v7631_v58 = vadd.f32 %v18218_v34, %v7559_v37 }
 0x466   : > { %v7496_v12 = vmax.f32 %v7451_v41, 0.0  ;;  %7704 = vrot.lane.b32.xlu1 %v18297_v53, %s16333_s29  ;;  %v7456_v42 = vadd.f32 %v18182_v7, %v7262_v55  ;;  %8363 = vmatpush1.bf16.msra.mxu0 %v15676_v51  ;;  %v18318_v26 = vpop.f32.mrb[15].mxu0  ;;  %v7264_v46 = vpop.f32.mrb[15].mxu1  ;;  %v20754_v41 = vld [vmem:[#allocation43_spill] sm:$0xff]  ;;  %v7636_v55 = vadd.f32 %v18218_v34, %v7564_v11 }
 0x467   : > { %v7497_v50 = vmax.f32 %v7452_v25, 0.0  ;;  %v7457_v27 = vadd.f32 %v18187_v19, %v7264_v46  ;;  %8445 = vmatprep.subr.bf16.mxu1 %v20676_v2  ;;  %8364 = vmatprep.subr.bf16.mxu0 %v15677_v40  ;;  %v15678_v53 = vld [vmem:[#allocation4 + $0x4e8] ss:$20 sps:$4 sm:$0xff]   ;;  %v15679_v46 = vld [vmem:[#allocation4 + $0x4e0] ss:$20 sps:$4 sm:$0xff]   ;;  %v18331_v40 = vadd.f32 %v18213_v38, %v7563_v10 }
 0x468   : > { %v7501_v39 = vmax.f32 %v7456_v42, 0.0  ;;  %8328 = vmatmul.mubr.bf16.gmra.mrb[140].mxu1 %v20754_v41  ;;  %7706 = vrot.lane.b32.xlu0 %v7631_v58, %s16333_s29  ;;  %v7568_v37 = vmul.f32 %v18197_v21, %v7496_v12  ;;  %v15680_v11 = vld [vmem:[#allocation4 + $0x50c] ss:$20 sps:$4 sm:$0xff]  }
 0x469   : > { %v7569_v51 = vmul.f32 %v18205_v20, %v7497_v50  ;;  %8252 = vmatmul.mubr.bf16.gmra.mrb[184].mxu0 %v18131_v48  ;;  %8446 = vmatpush1.bf16.msra.mxu1 %v15678_v53  ;;  %v7502_v25 = vmax.f32 %v7457_v27, 0.0  ;;  %20755 = vst [vmem:[#allocation41_spill] sm:$0xff] %v18331_v40 }
 0x46a   : > { %7712 = vrot.lane.b32.xlu1 %v7636_v55, %s16333_s29  ;;  %8365 = vmatpush1.bf16.msra.mxu0 %v15679_v46  ;;  %v7573_v48 = vmul.f32 %v18197_v21, %v7501_v39  ;;  %v15681_v46 = vld [vmem:[#allocation4 + $0x510] ss:$20 sps:$4 sm:$0xff]  }
 0x46b   : > { %v7187_v42 = vpop.f32.mrb[128].mxu0  ;;  %v7268_v58 = vpop.f32.mrb[128].mxu1  ;;  %8447 = vmatprep.subr.bf16.mxu1 %v20676_v2  ;;  %8366 = vmatprep.subr.bf16.mxu0 %v15680_v11  ;;  %v7641_v50 = vadd.f32 %v18218_v34, %v7569_v51  ;;  %v20756_v39 = vld [vmem:[#allocation44_spill] sm:$0xff] }
 0x46c   : > { %v18337_v53 = vadd.f32 %v7187_v42, %v18144_v35  ;;  %v7389_v27 = vadd.f32 %v7268_v58, %v18051_v15  ;;  %7710 = vrot.lane.b32.xlu0 %v18331_v40, %s16333_s29  ;;  %v7189_v10 = vpop.f32.mrb[129].mxu0  ;;  %v7270_v12 = vpop.f32.mrb[129].mxu1  ;;  %13619 = vmatprep.mubr.msk.bf16.mxu0 %vm1007_vm1, %v18137_v28  ;;  %v7574_v42 = vmul.f32 %v18205_v20, %v7502_v25  ;;  %v15682_v11 = vld [vmem:[#allocation4 + $0x508] ss:$20 sps:$4 sm:$0xff]  }
 0x46d   : > { %v18345_v55 = vadd.f32 %v7189_v10, %v18150_v47  ;;  %v7390_v51 = vadd.f32 %v7270_v12, %v18054_v45  ;;  %8448 = vmatpush1.bf16.msra.mxu1 %v15681_v46  ;;  %13625 = vmatprep.mubr.msk.bf16.mxu1 %vm1007_vm1, %v20756_v39  ;;  %v7191_v35 = vpop.f32.mrb[130].mxu0  ;;  %v7272_v15 = vpop.f32.mrb[130].mxu1  ;;  %v18354_v28 = vadd.f32 %v18213_v38, %v7568_v37  ;;  %v15683_v12 = vld [vmem:[#allocation4 + $0x534] ss:$20 sps:$4 sm:$0xff]   ;;  %v15684_v37 = vld [vmem:[#allocation4 + $0x538] ss:$20 sps:$4 sm:$0xff]  }
 0x46e   : > { %v7461_v58 = vadd.f32 %v18182_v7, %v7389_v27  ;;  %7718 = vrot.lane.b32.xlu1 %v7641_v50, %s16333_s29  ;;  %8367 = vmatpush1.bf16.msra.mxu0 %v15682_v11  ;;  %v7192_v47 = vpop.f32.mrb[131].mxu0  ;;  %v7273_v45 = vpop.f32.mrb[131].mxu1  ;;  %v20758_v35 = vld [vmem:[#allocation46_spill] sm:$0xff]  ;;  %v18362_v25 = vadd.f32 %v18213_v38, %v7573_v48  ;;  %v7646_v15 = vadd.f32 %v18218_v34, %v7574_v42 }
 0x46f   : > { %20757 = vst [vmem:[#allocation43_spill] sm:$0xff] %v18354_v28  ;;  %v7462_v10 = vadd.f32 %v18187_v19, %v7390_v51  ;;  %8449 = vmatprep.subr.bf16.mxu1 %v20676_v2  ;;  %8368 = vmatprep.subr.bf16.mxu0 %v15683_v12  ;;  %v15685_v51 = vld [vmem:[#allocation4 + $0x530] ss:$20 sps:$4 sm:$0xff]   ;;  %v15687_v11 = vld [vmem:[#allocation4 + $0x560] ss:$20 sps:$4 sm:$0xff]  }
 0x470   : > { %v7506_v46 = vmax.f32 %v7461_v58, 0.0  ;;  %8338 = vmatmul.mubr.bf16.gmra.mrb[144].mxu1 %v20758_v35  ;;  %7716 = vrot.lane.b32.xlu0 %v18354_v28, %s16333_s29  ;;  %20759 = vst [vmem:[#allocation44_spill] sm:$0xff] %v18362_v25  ;;  %v15686_v48 = vld [vmem:[#allocation4 + $0x55c] ss:$20 sps:$4 sm:$0xff]   ;;  %v15688_v45 = vld [vmem:[#allocation4 + $0x558] ss:$20 sps:$4 sm:$0xff]  }
 0x471   : > { %v7507_v50 = vmax.f32 %v7462_v10, 0.0  ;;  %8260 = vmatmul.mubr.bf16.gmra.mrb[188].mxu0 %v18154_v63  ;;  %8450 = vmatpush1.bf16.msra.mxu1 %v15684_v37  ;;  %v20760_v63 = vld [vmem:[#allocation42_spill] sm:$0xff]  ;;  %v20762_v12 = vld [vmem:[#allocation45_spill] sm:$0xff] }
 0x472   : > { %v7578_v27 = vmul.f32 %v18197_v21, %v7506_v46  ;;  %7722 = vrot.lane.b32.xlu1 %v18362_v25, %s16333_s29  ;;  %8369 = vmatpush1.bf16.msra.mxu0 %v15685_v51  ;;  %v15689_v10 = vld [vmem:[#allocation4 + $0x584] ss:$20 sps:$4 sm:$0xff]   ;;  %v15690_v46 = vld [vmem:[#allocation4 + $0x588] ss:$20 sps:$4 sm:$0xff]  }
 0x473   : > { %v7579_v58 = vmul.f32 %v18205_v20, %v7507_v50  ;;  %8451 = vmatprep.subr.bf16.mxu1 %v20676_v2  ;;  %8370 = vmatprep.subr.bf16.mxu0 %v15686_v48  ;;  %v15692_v50 = vld [vmem:[#allocation4 + $0x5ac] ss:$20 sps:$4 sm:$0xff]   ;;  %v15693_v37 = vld [vmem:[#allocation4 + $0x5b0] ss:$20 sps:$4 sm:$0xff]   ;;  %v15695_v51 = vld [vmem:[#allocation4 + $0x5d4] ss:$20 sps:$4 sm:$0xff]  }
 0x474   : > { %7724 = vrot.lane.b32.xlu0 %v7646_v15, %s16333_s29  ;;  %13626 = vmatprep.mubr.msk.bf16.mxu1 %vm1007_vm1, %v20760_v63  ;;  %v18379_v42 = vadd.f32 %v18213_v38, %v7578_v27  ;;  %v15694_v27 = vld [vmem:[#allocation4 + $0x5a8] ss:$20 sps:$4 sm:$0xff]   ;;  %v15696_v15 = vld [vmem:[#allocation4 + $0x5d8] ss:$20 sps:$4 sm:$0xff]  }
 0x475   : > { %8452 = vmatpush1.bf16.msra.mxu1 %v15687_v11  ;;  %v7651_v47 = vadd.f32 %v18218_v34, %v7579_v58  ;;  %13620 = vmatprep.mubr.msk.bf16.mxu0 %vm1007_vm1, %v20731_v49  ;;  %v15691_v49 = vld [vmem:[#allocation4 + $0x580] ss:$20 sps:$4 sm:$0xff]   ;;  %v15697_v58 = vld [vmem:[#allocation4 + $0x5d0] ss:$20 sps:$4 sm:$0xff]  }
 0x476   : > { %8371 = vmatpush1.bf16.msra.mxu0 %v15688_v45  ;;  %8453 = vmatprep.subr.bf16.mxu1 %v20676_v2  ;;  %20761 = vst [vmem:[#allocation46_spill] sm:$0xff] %v18379_v42  ;;  %v15698_v11 = vld [vmem:[#allocation4 + $0x5fc] ss:$20 sps:$4 sm:$0xff]  }
 0x477   : > { %7730 = vrot.lane.b32.xlu1 %v7651_v47, %s16333_s29  ;;  %8372 = vmatprep.subr.bf16.mxu0 %v15689_v10 }
 0x478   : > { %8348 = vmatmul.mubr.bf16.gmra.mrb[176].mxu1 %v20762_v12  ;;  %7728 = vrot.lane.b32.xlu0 %v18379_v42, %s16333_s29 }
 0x479   : > { %8268 = vmatmul.mubr.bf16.gmra.mrb[192].mxu0 %v20732_v29  ;;  %8454 = vmatpush1.bf16.msra.mxu1 %v15690_v46  ;;  %v18393_v29 = vsub.s32 4, %v18166_v62  ;;  %v15699_v46 = vld [vmem:[#allocation4 + $0x600] ss:$20 sps:$4 sm:$0xff]  }
 0x47a   : > { %8373 = vmatpush1.bf16.msra.mxu0 %v15691_v49  ;;  %8455 = vmatprep.subr.bf16.mxu1 %v20676_v2 }
 0x47b   : > { %8374 = vmatprep.subr.bf16.mxu0 %v15692_v50  ;;  %13628 = vmatprep.mubr.msk.bf16.mxu0 %vm1007_vm1, %v20734_v14  ;;  %20763 = vst [vmem:[#allocation42_spill] sm:$0xff] %v18393_v29  ;;  %v18397_v48 = vrot.slane %v18176_v9, %v18393_v29  ;;  %v18404_v50 = vrot.slane %v18184_v23, %v18393_v29 }
 0x47c   : > { %13633 = vmatprep.mubr.msk.bf16.mxu1 %vm1007_vm1, %v20734_v14 }
 0x47d   : > { %8456 = vmatpush1.bf16.msra.mxu1 %v15693_v37 }
 0x47e   : > { %8375 = vmatpush1.bf16.msra.mxu0 %v15694_v27  ;;  %8457 = vmatprep.subr.bf16.mxu1 %v20676_v2  ;;  %v15700_v27 = vld [vmem:[#allocation4 + $0x5f8] ss:$20 sps:$4 sm:$0xff]  }
 0x47f   : > { %8376 = vmatprep.subr.bf16.mxu0 %v15695_v51 }
 0x481   : > { %8458 = vmatpush1.bf16.msra.mxu1 %v15696_v15  ;;  %v15701_v15 = vld [vmem:[#allocation4 + $0x624] ss:$20 sps:$4 sm:$0xff]  }
 0x482   : > { %8377 = vmatpush1.bf16.msra.mxu0 %v15697_v58  ;;  %8459 = vmatprep.subr.bf16.mxu1 %v20676_v2 }
 0x483   : > { %v7309_v14 = vpop.f32.mrb[132].mxu0  ;;  %8378 = vmatprep.subr.bf16.mxu0 %v15698_v11  ;;  %v15702_v11 = vld [vmem:[#allocation4 + $0x628] ss:$20 sps:$4 sm:$0xff]  }
 0x484   : > { %v7351_v47 = vadd.f32 %v7309_v14, %v18072_v44  ;;  %v7311_v45 = vpop.f32.mrb[133].mxu0  ;;  %v18411_v14 = vrot.slane %v18192_v30, %v18393_v29 }
 0x485   : > { %v7312_v10 = vpop.f32.mrb[134].mxu0  ;;  %8460 = vmatpush1.bf16.msra.mxu1 %v15699_v46  ;;  %v20764_v46 = vld [vmem:[#allocation19_spill] sm:$0xff] }
 0x486   : > { %v7423_v49 = vadd.f32 %v18397_v48, %v7351_v47  ;;  %v7356_v37 = vadd.f32 %v7312_v10, %v18075_v31  ;;  %8379 = vmatpush1.bf16.msra.mxu0 %v15700_v27  ;;  %v7314_v51 = vpop.f32.mrb[135].mxu0  ;;  %8461 = vmatprep.subr.bf16.mxu1 %v20676_v2  ;;  %v15703_v31 = vld [vmem:[#allocation4 + $0x620] ss:$20 sps:$4 sm:$0xff]  }
 0x487   : > { %8380 = vmatprep.subr.bf16.mxu0 %v15701_v15 }
 0x488   : > { %v7468_v44 = vmax.f32 %v7423_v49, 0.0  ;;  %v7428_v58 = vadd.f32 %v18397_v48, %v7356_v37 }
 0x489   : > { %8462 = vmatpush1.bf16.msra.mxu1 %v15702_v11  ;;  %v20765_v11 = vld [vmem:[#allocation23_spill] sm:$0xff] }
 0x48a   : > { %v7540_v47 = vmul.f32 %v18404_v50, %v7468_v44  ;;  %v7473_v45 = vmax.f32 %v7428_v58, 0.0  ;;  %8381 = vmatpush1.bf16.msra.mxu0 %v15703_v31  ;;  %8463 = vmatprep.subr.bf16.mxu1 %v20676_v2  ;;  %v20766_v31 = vld [vmem:[#allocation21_spill] sm:$0xff] }
 0x48b   : > { %v7317_v10 = vpop.f32.mrb[136].mxu0  ;;  %13627 = vmatprep.subr.msk.bf16.mxu0 %vm1023_vm2, %v20764_v46  ;;  %v15704_v46 = vld [vmem:[#allocation4 + $0x658] ss:$20 sps:$4 sm:$0xff]  }
 0x48c   : > { %v7545_v49 = vmul.f32 %v18404_v50, %v7473_v45  ;;  %v7361_v37 = vadd.f32 %v7317_v10, %v18082_v4  ;;  %v7319_v27 = vpop.f32.mrb[137].mxu0  ;;  %v7612_v51 = vadd.f32 %v18411_v14, %v7540_v47  ;;  %v15705_v45 = vld [vmem:[#allocation4 + $0x660] ss:$20 sps:$4 sm:$0xff]  }
 0x48d   : > { %v7320_v15 = vpop.f32.mrb[138].mxu0  ;;  %8464 = vmatpush1.bf16.msra.mxu1 %v20765_v11  ;;  %v15709_v11 = vld [vmem:[#allocation4 + $0x688] ss:$20 sps:$4 sm:$0xff]  }
 0x48e   : > { %v7433_v44 = vadd.f32 %v18397_v48, %v7361_v37  ;;  %v7366_v58 = vadd.f32 %v7320_v15, %v18087_v61  ;;  %8383 = vmatpush1.bf16.msra.mxu0 %v20766_v31  ;;  %7684 = vrot.lane.b32.xlu1 %v7612_v51, %s16333_s29  ;;  %v7322_v42 = vpop.f32.mrb[139].mxu0  ;;  %v7617_v47 = vadd.f32 %v18411_v14, %v7545_v49  ;;  %v15706_v37 = vld [vmem:[#allocation4 + $0x654] ss:$20 sps:$4 sm:$0xff]   ;;  %v15707_v51 = vld [vmem:[#allocation4 + $0x65c] ss:$20 sps:$4 sm:$0xff]  }
 0x48f   : > { %8554 = vmatprep.subr.bf16.mxu1 %v15704_v46  ;;  %8635 = vmatprep.subr.bf16.mxu0 %v15705_v45  ;;  %v15708_v15 = vld [vmem:[#allocation4 + $0x680] ss:$20 sps:$4 sm:$0xff]   ;;  %v15710_v46 = vld [vmem:[#allocation4 + $0x67c] ss:$20 sps:$4 sm:$0xff]  }
 0x490   : > { %v7478_v4 = vmax.f32 %v7433_v44, 0.0  ;;  %v7438_v10 = vadd.f32 %v18397_v48, %v7366_v58  ;;  %8470 = vmatmul.mubr.bf16.vlgmr.msra.gmra.mrb[180].mxu1 %v20745_v33 }
 0x491   : > { %8389 = vmatmul.mubr.bf16.vlgmr.msra.gmra.mrb[152].mxu0 %v20745_v33  ;;  %8555 = vmatpush1.bf16.msra.mxu1 %v15706_v37  ;;  %v15712_v37 = vld [vmem:[#allocation4 + $0x6a8] ss:$20 sps:$4 sm:$0xff]  }
 0x492   : > { %v7550_v61 = vmul.f32 %v18404_v50, %v7478_v4  ;;  %v7483_v27 = vmax.f32 %v7438_v10, 0.0  ;;  %8636 = vmatpush1.bf16.msra.mxu0 %v15707_v51  ;;  %7690 = vrot.lane.b32.xlu1 %v7617_v47, %s16333_s29  ;;  %v15711_v10 = vld [vmem:[#allocation4 + $0x684] ss:$20 sps:$4 sm:$0xff]  }
 0x493   : > { %v7325_v42 = vpop.f32.mrb[140].mxu0  ;;  %8556 = vmatprep.subr.bf16.mxu1 %v15708_v15  ;;  %8637 = vmatprep.subr.bf16.mxu0 %v15709_v11  ;;  %v15715_v15 = vld [vmem:[#allocation4 + $0x6ac] ss:$20 sps:$4 sm:$0xff]   ;;  %v15716_v11 = vld [vmem:[#allocation4 + $0x6d0] ss:$20 sps:$4 sm:$0xff]  }
 0x494   : > { %v7555_v44 = vmul.f32 %v18404_v50, %v7483_v27  ;;  %v7371_v49 = vadd.f32 %v7325_v42, %v18104_v1  ;;  %v7327_v58 = vpop.f32.mrb[141].mxu0  ;;  %v7622_v33 = vadd.f32 %v18411_v14, %v7550_v61  ;;  %13629 = vmatprep.mubr.msk.bf16.mxu0 %vm1007_vm1, %v20746_v6  ;;  %13634 = vmatprep.mubr.msk.bf16.mxu1 %vm1007_vm1, %v20746_v6  ;;  %v15713_v61 = vld [vmem:[#allocation4 + $0x6b0] ss:$20 sps:$4 sm:$0xff]  }
 0x495   : > { %v7328_v31 = vpop.f32.mrb[142].mxu0  ;;  %8557 = vmatpush1.bf16.msra.mxu1 %v15710_v46 }
 0x496   : > { %v7443_v45 = vadd.f32 %v18397_v48, %v7371_v49  ;;  %v7376_v4 = vadd.f32 %v7328_v31, %v18107_v24  ;;  %8638 = vmatpush1.bf16.msra.mxu0 %v15711_v10  ;;  %7696 = vrot.lane.b32.xlu0 %v7622_v33, %s16333_s29  ;;  %v7627_v1 = vadd.f32 %v18411_v14, %v7555_v44  ;;  %v7330_v47 = vpop.f32.mrb[143].mxu0  ;;  %v15714_v24 = vld [vmem:[#allocation4 + $0x6a4] ss:$20 sps:$4 sm:$0xff]  }
 0x497   : > { %8558 = vmatprep.subr.bf16.mxu1 %v15712_v37  ;;  %8639 = vmatprep.subr.bf16.mxu0 %v15713_v61  ;;  %v15717_v49 = vld [vmem:[#allocation4 + $0x6d8] ss:$20 sps:$4 sm:$0xff]   ;;  %v15721_v61 = vld [vmem:[#allocation4 + $0x700] ss:$20 sps:$4 sm:$0xff]  }
 0x498   : > { %v7488_v27 = vmax.f32 %v7443_v45, 0.0  ;;  %v7448_v6 = vadd.f32 %v18397_v48, %v7376_v4  ;;  %8478 = vmatmul.mubr.bf16.gmra.mrb[184].mxu1 %v20749_v3  ;;  %7702 = vrot.lane.b32.xlu1 %v7627_v1, %s16333_s29  ;;  %v15718_v45 = vld [vmem:[#allocation4 + $0x6cc] ss:$20 sps:$4 sm:$0xff]   ;;  %v15719_v1 = vld [vmem:[#allocation4 + $0x6d4] ss:$20 sps:$4 sm:$0xff]  }
 0x499   : > { %8399 = vmatmul.mubr.bf16.gmra.mrb[156].mxu0 %v20749_v3  ;;  %8559 = vmatpush1.bf16.msra.mxu1 %v15714_v24  ;;  %v15720_v37 = vld [vmem:[#allocation4 + $0x6f8] ss:$20 sps:$4 sm:$0xff]  }
 0x49a   : > { %v7560_v51 = vmul.f32 %v18404_v50, %v7488_v27  ;;  %v7493_v42 = vmax.f32 %v7448_v6, 0.0  ;;  %8640 = vmatpush1.bf16.msra.mxu0 %v15715_v15  ;;  %8560 = vmatprep.subr.bf16.mxu1 %v15716_v11  ;;  %v15725_v11 = vld [vmem:[#allocation4 + $0x728] ss:$20 sps:$4 sm:$0xff]  }
 0x49b   : > { %v7333_v44 = vpop.f32.mrb[144].mxu0  ;;  %8641 = vmatprep.subr.bf16.mxu0 %v15717_v49  ;;  %13630 = vmatprep.mubr.msk.bf16.mxu0 %vm1007_vm1, %v20753_v8 }
 0x49c   : > { %v7565_v58 = vmul.f32 %v18404_v50, %v7493_v42  ;;  %v7381_v33 = vadd.f32 %v7333_v44, %v18124_v52  ;;  %v7335_v3 = vpop.f32.mrb[145].mxu0  ;;  %v7632_v31 = vadd.f32 %v18411_v14, %v7560_v51  ;;  %13635 = vmatprep.mubr.msk.bf16.mxu1 %vm1007_vm1, %v20753_v8  ;;  %v15723_v51 = vld [vmem:[#allocation4 + $0x6fc] ss:$20 sps:$4 sm:$0xff]   ;;  %v15724_v42 = vld [vmem:[#allocation4 + $0x720] ss:$20 sps:$4 sm:$0xff]  }
 0x49d   : > { %v7336_v46 = vpop.f32.mrb[146].mxu0  ;;  %8561 = vmatpush1.bf16.msra.mxu1 %v15718_v45 }
 0x49e   : > { %v7453_v4 = vadd.f32 %v18397_v48, %v7381_v33  ;;  %v7386_v10 = vadd.f32 %v7336_v46, %v18127_v36  ;;  %8642 = vmatpush1.bf16.msra.mxu0 %v15719_v1  ;;  %7708 = vrot.lane.b32.xlu1 %v7632_v31, %s16333_s29  ;;  %v7637_v47 = vadd.f32 %v18411_v14, %v7565_v58  ;;  %v7338_v52 = vpop.f32.mrb[147].mxu0  ;;  %v15722_v36 = vld [vmem:[#allocation4 + $0x6f4] ss:$20 sps:$4 sm:$0xff]   ;;  %v15726_v31 = vld [vmem:[#allocation4 + $0x71c] ss:$20 sps:$4 sm:$0xff]  }
 0x49f   : > { %8562 = vmatprep.subr.bf16.mxu1 %v15720_v37  ;;  %8643 = vmatprep.subr.bf16.mxu0 %v15721_v61  ;;  %v15728_v52 = vld [vmem:[#allocation4 + $0x748] ss:$20 sps:$4 sm:$0xff]   ;;  %v15730_v61 = vld [vmem:[#allocation4 + $0x744] ss:$20 sps:$4 sm:$0xff]  }
 0x4a0   : > { %v7498_v27 = vmax.f32 %v7453_v4, 0.0  ;;  %v7458_v8 = vadd.f32 %v18397_v48, %v7386_v10  ;;  %8486 = vmatmul.mubr.bf16.gmra.mrb[188].mxu1 %v20754_v41  ;;  %7714 = vrot.lane.b32.xlu0 %v7637_v47, %s16333_s29  ;;  %v15727_v10 = vld [vmem:[#allocation4 + $0x724] ss:$20 sps:$4 sm:$0xff]  }
 0x4a1   : > { %8409 = vmatmul.mubr.bf16.gmra.mrb[160].mxu0 %v20754_v41  ;;  %8563 = vmatpush1.bf16.msra.mxu1 %v15722_v36  ;;  %v15732_v36 = vld [vmem:[#allocation4 + $0x770] ss:$20 sps:$4 sm:$0xff]  }
 0x4a2   : > { %v7570_v6 = vmul.f32 %v18404_v50, %v7498_v27  ;;  %v7503_v24 = vmax.f32 %v7458_v8, 0.0  ;;  %8644 = vmatpush1.bf16.msra.mxu0 %v15723_v51  ;;  %8564 = vmatprep.subr.bf16.mxu1 %v15724_v42  ;;  %v15731_v8 = vld [vmem:[#allocation4 + $0x74c] ss:$20 sps:$4 sm:$0xff]  }
 0x4a3   : > { %v7341_v15 = vpop.f32.mrb[148].mxu0  ;;  %8645 = vmatprep.subr.bf16.mxu0 %v15725_v11  ;;  %13631 = vmatprep.mubr.msk.bf16.mxu0 %vm1007_vm1, %v20756_v39  ;;  %v18465_v44 = vpop.f32.mrb[148].mxu1  ;;  %v15734_v51 = vld [vmem:[#allocation4 + $0x76c] ss:$20 sps:$4 sm:$0xff]   ;;  %v15738_v11 = vld [vmem:[#allocation4 + $0x794] ss:$20 sps:$4 sm:$0xff]  }
 0x4a4   : > { %v7575_v49 = vmul.f32 %v18404_v50, %v7503_v24  ;;  %v7391_v41 = vadd.f32 %v7341_v15, %v18147_v0  ;;  %v7642_v58 = vadd.f32 %v18411_v14, %v7570_v6  ;;  %13636 = vmatprep.mubr.msk.bf16.mxu1 %vm1007_vm1, %v20756_v39  ;;  %v7343_v33 = vpop.f32.mrb[149].mxu0  ;;  %v18472_v3 = vpop.f32.mrb[149].mxu1  ;;  %v15729_v39 = vld [vmem:[#allocation4 + $0x750] ss:$20 sps:$4 sm:$0xff]   ;;  %v15733_v6 = vld [vmem:[#allocation4 + $0x778] ss:$20 sps:$4 sm:$0xff]  }
 0x4a5   : > { %8565 = vmatpush1.bf16.msra.mxu1 %v15726_v31  ;;  %v7344_v46 = vpop.f32.mrb[150].mxu0  ;;  %v7885_v45 = vpop.f32.mrb[150].mxu1  ;;  %v15736_v42 = vld [vmem:[#allocation4 + $0x798] ss:$20 sps:$4 sm:$0xff]   ;;  %v15737_v15 = vld [vmem:[#allocation4 + $0x7a0] ss:$20 sps:$4 sm:$0xff]  }
 0x4a6   : > { %v7463_v4 = vadd.f32 %v18397_v48, %v7391_v41  ;;  %8646 = vmatpush1.bf16.msra.mxu0 %v15727_v10  ;;  %7720 = vrot.lane.b32.xlu0 %v7642_v58, %s16333_s29  ;;  %v7647_v0 = vadd.f32 %v18411_v14, %v7575_v49  ;;  %v7345_v1 = vpop.f32.mrb[151].mxu0  ;;  %v7886_v47 = vpop.f32.mrb[151].mxu1  ;;  %v15739_v49 = vld [vmem:[#allocation4 + $0x79c] ss:$20 sps:$4 sm:$0xff]   ;;  %v15744_v31 = vld [vmem:[#allocation4 + $0x7c4] ss:$20 sps:$4 sm:$0xff]  }
 0x4a7   : > { %8566 = vmatprep.subr.bf16.mxu1 %v15728_v52  ;;  %8647 = vmatprep.subr.bf16.mxu0 %v15729_v39  ;;  %v15741_v41 = vld [vmem:[#allocation4 + $0x7c8] ss:$20 sps:$4 sm:$0xff]   ;;  %v15746_v46 = vld [vmem:[#allocation4 + $0x7f0] ss:$20 sps:$4 sm:$0xff]   ;;  %v15750_v1 = vld [vmem:[#allocation4 + $0x818] ss:$20 sps:$4 sm:$0xff]  }
 0x4a8   : > { %v7508_v37 = vmax.f32 %v7463_v4, 0.0  ;;  %8494 = vmatmul.mubr.bf16.gmra.mrb[192].mxu1 %v20758_v35  ;;  %7726 = vrot.lane.b32.xlu1 %v7647_v0, %s16333_s29  ;;  %v18490_v58 = vld [vmem:[%s16610_s28 + $0x94] ss:$8 sps:$4 sm:$0xff]   ;;  %v15747_v45 = vld [vmem:[#allocation4 + $0x7e4] ss:$20 sps:$4 sm:$0xff]  }
 0x4a9   : > { %8419 = vmatmul.mubr.bf16.gmra.mrb[164].mxu0 %v20758_v35  ;;  %8567 = vmatpush1.bf16.msra.mxu1 %v15730_v61  ;;  %v15735_v35 = vld [vmem:[#allocation4 + $0x774] ss:$20 sps:$4 sm:$0xff]   ;;  %v15743_v33 = vld [vmem:[#allocation4 + $0x7bc] ss:$20 sps:$4 sm:$0xff]   ;;  %v15748_v4 = vld [vmem:[#allocation4 + $0x7ec] ss:$20 sps:$4 sm:$0xff]  }
 0x4aa   : > { %v7580_v27 = vmul.f32 %v18404_v50, %v7508_v37  ;;  %8648 = vmatpush1.bf16.msra.mxu0 %v15731_v8  ;;  %8568 = vmatprep.subr.bf16.mxu1 %v15732_v36  ;;  %v15749_v10 = vld [vmem:[#allocation4 + $0x810] ss:$20 sps:$4 sm:$0xff]   ;;  %v15751_v39 = vld [vmem:[#allocation4 + $0x80c] ss:$20 sps:$4 sm:$0xff]   ;;  %v15752_v37 = vld [vmem:[#allocation4 + $0x814] ss:$20 sps:$4 sm:$0xff]  }
 0x4ab   : > { %8649 = vmatprep.subr.bf16.mxu0 %v15733_v6  ;;  %13632 = vmatprep.mubr.msk.bf16.mxu0 %vm1007_vm1, %v20760_v63  ;;  %v15754_v8 = vld [vmem:[#allocation4 + $0x840] ss:$20 sps:$4 sm:$0xff]   ;;  %v18501_v36 = vsub.s32 0, %v18166_v62 }
 0x4ac   : > { %v7652_v24 = vadd.f32 %v18411_v14, %v7580_v27  ;;  %13637 = vmatprep.mubr.msk.bf16.mxu1 %vm1007_vm1, %v20760_v63  ;;  %v15740_v63 = vld [vmem:[#allocation4 + $0x7c0] ss:$20 sps:$4 sm:$0xff]   ;;  %v15753_v27 = vld [vmem:[#allocation4 + $0x838] ss:$20 sps:$4 sm:$0xff]  }
 0x4ad   : > { %8569 = vmatpush1.bf16.msra.mxu1 %v15734_v51  ;;  %20767 = vst [vmem:[#allocation45_spill] sm:$0xff] %v18501_v36  ;;  %v15755_v6 = vld [vmem:[#allocation4 + $0x834] ss:$20 sps:$4 sm:$0xff]   ;;  %v20768_v51 = vld [vmem:[#allocation27_spill] sm:$0xff] }
 0x4ae   : > { %8650 = vmatpush1.bf16.msra.mxu0 %v15735_v35  ;;  %7732 = vrot.lane.b32.xlu0 %v7652_v24, %s16333_s29  ;;  %v15756_v24 = vld [vmem:[#allocation4 + $0x83c] ss:$20 sps:$4 sm:$0xff]  }
 0x4af   : > { %8570 = vmatprep.subr.bf16.mxu1 %v15736_v42  ;;  %8651 = vmatprep.subr.bf16.mxu0 %v15737_v15  ;;  %v20769_v35 = vld [vmem:[#allocation22_spill] sm:$0xff]  ;;  %v18511_v15 = vrot.slane %v18176_v9, %v18501_v36 }
 0x4b0   : > { %8502 = vmatmul.mubr.bf16.gmra.mrb[196].mxu1 %v20762_v12  ;;  %v18523_v9 = vld [vmem:[%s16610_s28 + $0x90] ss:$8 sps:$4 sm:$0xff]  }
 0x4b1   : > { %8429 = vmatmul.mubr.bf16.gmra.mrb[196].mxu0 %v20762_v12  ;;  %8571 = vmatpush1.bf16.msra.mxu1 %v15738_v11  ;;  %v15745_v12 = vld [vmem:[#allocation4 + $0x7e8] ss:$20 sps:$4 sm:$0xff]   ;;  %v7459_v40 = vadd.f32 %v18511_v15, %v18337_v53 }
 0x4b2   : > { %8652 = vmatpush1.bf16.msra.mxu0 %v15739_v49  ;;  %8572 = vmatprep.subr.bf16.mxu1 %v15740_v63  ;;  %v20770_v49 = vld [vmem:[#allocation29_spill] sm:$0xff] }
 0x4b3   : > { %8653 = vmatprep.subr.bf16.mxu0 %v15741_v41  ;;  %13639 = vmatprep.mubr.msk.bf16.mxu1 %vm1007_vm1, %v18490_v58  ;;  %v7429_v41 = vadd.f32 %v18511_v15, %v18228_v16  ;;  %v7434_v16 = vadd.f32 %v18511_v15, %v18239_v60  ;;  %v18543_v60 = vrot.slane %v18184_v23, %v18501_v36  ;;  %v15765_v23 = vld [vmem:[#allocation4 + $0x8c4] ss:$20 sps:$4 sm:$0xff]  }
 0x4b4   : > { %13645 = vmatprep.mubr.msk.bf16.mxu0 %vm1007_vm1, %v18490_v58 }
 0x4b5   : > { %8573 = vmatpush1.bf16.msra.mxu1 %v15743_v33  ;;  %v20771_v33 = vld [vmem:[#allocation24_spill] sm:$0xff] }
 0x4b6   : > { %8654 = vmatpush1.bf16.msra.mxu0 %v15744_v31  ;;  %8574 = vmatprep.subr.bf16.mxu1 %v15745_v12  ;;  %v15757_v12 = vld [vmem:[#allocation4 + $0x874] ss:$20 sps:$4 sm:$0xff]  }
 0x4b7   : > { %8655 = vmatprep.subr.bf16.mxu0 %v15746_v46 }
 0x4b9   : > { %8575 = vmatpush1.bf16.msra.mxu1 %v15747_v45  ;;  %v15759_v45 = vld [vmem:[#allocation4 + $0x870] ss:$20 sps:$4 sm:$0xff]  }
 0x4ba   : > { %8656 = vmatpush1.bf16.msra.mxu0 %v15748_v4  ;;  %8576 = vmatprep.subr.bf16.mxu1 %v15749_v10  ;;  %v7474_v4 = vmax.f32 %v7429_v41, 0.0  ;;  %v15760_v10 = vld [vmem:[#allocation4 + $0x664] ss:$20 sps:$4 sm:$0xff]  }
 0x4bb   : > { %v18496_v0 = vpop.f32.mrb[152].mxu1  ;;  %8657 = vmatprep.subr.bf16.mxu0 %v15750_v1 }
 0x4bc   : > { %v8005_v47 = vpop.f32.mrb[153].mxu1 }
 0x4bd   : > { %v18498_v52 = vpop.f32.mrb[154].mxu1  ;;  %8577 = vmatpush1.bf16.msra.mxu1 %v15751_v39  ;;  %v15761_v47 = vld [vmem:[#allocation4 + $0x89c] ss:$20 sps:$4 sm:$0xff]  }
 0x4be   : > { %8658 = vmatpush1.bf16.msra.mxu0 %v15752_v37  ;;  %v8008_v61 = vpop.f32.mrb[155].mxu1  ;;  %8578 = vmatprep.subr.bf16.mxu1 %v15753_v27  ;;  %v18535_v37 = vld [vmem:[%s16610_s28 + $0xa4] ss:$8 sps:$4 sm:$0xff]  }
 0x4bf   : > { %8659 = vmatprep.subr.bf16.mxu0 %v15754_v8  ;;  %v15763_v8 = vld [vmem:[#allocation4 + $0x898] ss:$20 sps:$4 sm:$0xff]  }
 0x4c1   : > { %8579 = vmatpush1.bf16.msra.mxu1 %v15755_v6 }
 0x4c2   : > { %8660 = vmatpush1.bf16.msra.mxu0 %v15756_v24  ;;  %13638 = vmatprep.subr.msk.bf16.mxu1 %vm1023_vm2, %v20768_v51  ;;  %v7546_v24 = vmul.f32 %v18543_v60, %v7474_v4  ;;  %v7479_v51 = vmax.f32 %v7434_v16, 0.0  ;;  %v7444_v16 = vadd.f32 %v18511_v15, %v18273_v18 }
 0x4c3   : > { %13644 = vmatprep.subr.msk.bf16.mxu0 %vm1023_vm2, %v20769_v35  ;;  %v18507_v42 = vpop.f32.mrb[156].mxu1  ;;  %v7439_v35 = vadd.f32 %v18511_v15, %v18259_v13  ;;  %v15767_v13 = vld [vmem:[#allocation4 + $0x8c0] ss:$20 sps:$4 sm:$0xff]  }
 0x4c4   : > { %v8013_v11 = vpop.f32.mrb[157].mxu1 }
 0x4c5   : > { %8581 = vmatpush1.bf16.msra.mxu1 %v20770_v49  ;;  %v18514_v63 = vpop.f32.mrb[158].mxu1  ;;  %v15764_v11 = vld [vmem:[#allocation4 + $0x68c] ss:$20 sps:$4 sm:$0xff]   ;;  %v7484_v4 = vmax.f32 %v7439_v35, 0.0 }
 0x4c6   : > { %8662 = vmatpush1.bf16.msra.mxu0 %v20771_v33  ;;  %v18519_v31 = vpop.permute.xlu0 %7680  ;;  %8833 = vmatprep.subr.bf16.mxu1 %v15757_v12  ;;  %v8016_v46 = vpop.f32.mrb[159].mxu1  ;;  %v18559_v12 = vrot.slane %v18192_v30, %v18501_v36 }
 0x4c7   : > { %8716 = vmatprep.subr.bf16.mxu0 %v20676_v2  ;;  %v18562_v46 = vld [vmem:[%s16610_s28 + $0xa0] ss:$8 sps:$4 sm:$0xff]  }
 0x4c8   : > { %8587 = vmatmul.mubr.bf16.vlgmr.msra.gmra.mrb[132].mxu1 %v18523_v9  ;;  %v18531_v39 = vpop.permute.xlu1 %7686  ;;  %20774 = vst [vmem:[#allocation21_spill] sm:$0xff] %v18559_v12 }
 0x4c9   : > { %8668 = vmatmul.mubr.bf16.vlgmr.msra.gmra.mrb[152].mxu0 %v18523_v9  ;;  %8834 = vmatpush1.bf16.msra.mxu1 %v15759_v45  ;;  %20772 = vst [vmem:[#allocation19_spill] sm:$0xff] %v18531_v39  ;;  %v7551_v45 = vmul.f32 %v18543_v60, %v7479_v51  ;;  %v15780_v39 = vld [vmem:[#allocation4 + $0x72c] ss:$20 sps:$4 sm:$0xff]  }
 0x4ca   : > { %8717 = vmatpush1.bf16.msra.mxu0 %v15760_v10  ;;  %v18529_v1 = vpop.permute.xlu0 %7682  ;;  %8835 = vmatprep.subr.bf16.mxu1 %v15761_v47  ;;  %v15768_v10 = vld [vmem:[#allocation4 + $0x6b4] ss:$20 sps:$4 sm:$0xff]   ;;  %v18570_v47 = vadd.f32 %v18559_v12, %v7546_v24 }
 0x4cb   : > { %8718 = vmatprep.subr.bf16.mxu0 %v20676_v2  ;;  %13640 = vmatprep.mubr.msk.bf16.mxu1 %vm1007_vm1, %v18535_v37  ;;  %v18539_v61 = vpop.f32.mrb[160].mxu1  ;;  %v18596_v51 = vadd.f32 %v18559_v12, %v7551_v45  ;;  %v15775_v45 = vld [vmem:[#allocation4 + $0x910] ss:$20 sps:$4 sm:$0xff]  }
 0x4cc   : > { %13646 = vmatprep.mubr.msk.bf16.mxu0 %vm1007_vm1, %v18535_v37  ;;  %v8021_v27 = vpop.f32.mrb[161].mxu1  ;;  %20775 = vst [vmem:[#allocation27_spill] sm:$0xff] %v18570_v47 }
 0x4cd   : > { %8836 = vmatpush1.bf16.msra.mxu1 %v15763_v8  ;;  %v18547_v6 = vpop.f32.mrb[162].mxu1  ;;  %v15769_v27 = vld [vmem:[#allocation4 + $0x8ec] ss:$20 sps:$4 sm:$0xff]   ;;  %20777 = vst [vmem:[#allocation29_spill] sm:$0xff] %v18596_v51 }
 0x4ce   : > { %8719 = vmatpush1.bf16.msra.mxu0 %v15764_v11  ;;  %v18552_v49 = vpop.permute.xlu0 %7688  ;;  %8837 = vmatprep.subr.bf16.mxu1 %v15765_v23  ;;  %v8024_v41 = vpop.f32.mrb[163].mxu1  ;;  %v18578_v11 = vld [vmem:[%s16610_s28 + $0xb4] ss:$8 sps:$4 sm:$0xff]  }
 0x4cf   : > { %20773 = vst [vmem:[#allocation23_spill] sm:$0xff] %v18552_v49  ;;  %v18554_v33 = vpop.permute.xlu1 %7694  ;;  %8720 = vmatprep.subr.bf16.mxu0 %v20676_v2  ;;  %v15771_v23 = vld [vmem:[#allocation4 + $0x8e8] ss:$20 sps:$4 sm:$0xff]  }
 0x4d0   : > { %8597 = vmatmul.mubr.bf16.gmra.mrb[136].mxu1 %v18562_v46 }
 0x4d1   : > { %8678 = vmatmul.mubr.bf16.gmra.mrb[156].mxu0 %v18562_v46  ;;  %8838 = vmatpush1.bf16.msra.mxu1 %v15767_v13  ;;  %v7556_v13 = vmul.f32 %v18543_v60, %v7484_v4 }
 0x4d2   : > { %8721 = vmatpush1.bf16.msra.mxu0 %v15768_v10  ;;  %v7693_v30 = vpop.permute.xlu0 %7692  ;;  %8839 = vmatprep.subr.bf16.mxu1 %v15769_v27  ;;  %v7489_v10 = vmax.f32 %v7444_v16, 0.0  ;;  %v15772_v27 = vld [vmem:[#allocation4 + $0x6dc] ss:$20 sps:$4 sm:$0xff]  }
 0x4d3   : > { %v18574_v8 = vsel %vm7734_vm4, %v7693_v30, %v18554_v33  ;;  %8722 = vmatprep.subr.bf16.mxu0 %v20676_v2  ;;  %13641 = vmatprep.mubr.msk.bf16.mxu1 %vm1007_vm1, %v18578_v11  ;;  %v18582_v18 = vpop.f32.mrb[164].mxu1  ;;  %v7449_v30 = vadd.f32 %v18511_v15, %v18299_v59  ;;  %v18606_v16 = vld [vmem:[%s16610_s28 + $0xb0] ss:$8 sps:$4 sm:$0xff]   ;;  %v18616_v4 = vadd.f32 %v18559_v12, %v7556_v13 }
 0x4d4   : > { %20776 = vst [vmem:[#allocation22_spill] sm:$0xff] %v18574_v8  ;;  %v7699_v24 = vpop.permute.xlu1 %7698  ;;  %13647 = vmatprep.mubr.msk.bf16.mxu0 %vm1007_vm1, %v18578_v11  ;;  %v8029_v35 = vpop.f32.mrb[165].mxu1  ;;  %v15773_v8 = vld [vmem:[#allocation4 + $0x914] ss:$20 sps:$4 sm:$0xff]  }
 0x4d5   : > { %8840 = vmatpush1.bf16.msra.mxu1 %v15771_v23  ;;  %v18588_v41 = vpop.f32.mrb[166].mxu1  ;;  %20779 = vst [vmem:[#allocation83_spill] sm:$0xff] %v18616_v4  ;;  %v15781_v4 = vld [vmem:[#allocation4 + $0x964] ss:$20 sps:$4 sm:$0xff]  }
 0x4d6   : > { %8723 = vmatpush1.bf16.msra.mxu0 %v15772_v27  ;;  %v18593_v29 = vpop.permute.xlu0 %7700  ;;  %8841 = vmatprep.subr.bf16.mxu1 %v15773_v8  ;;  %v8032_v35 = vpop.f32.mrb[167].mxu1  ;;  %v7561_v8 = vmul.f32 %v18543_v60, %v7489_v10  ;;  %v7494_v27 = vmax.f32 %v7449_v30, 0.0  ;;  %v18624_v10 = vld [vmem:[%s16610_s28 + $0xc4] ss:$8 sps:$4 sm:$0xff]  }
 0x4d7   : > { %v18600_v23 = vsel %vm7734_vm4, %v7699_v24, %v18593_v29  ;;  %8724 = vmatprep.subr.bf16.mxu0 %v20676_v2  ;;  %v7454_v24 = vadd.f32 %v18511_v15, %v18310_v43  ;;  %v15776_v35 = vld [vmem:[#allocation4 + $0x704] ss:$20 sps:$4 sm:$0xff]  }
 0x4d8   : > { %20778 = vst [vmem:[#allocation24_spill] sm:$0xff] %v18600_v23  ;;  %v7705_v59 = vpop.permute.xlu1 %7704  ;;  %8607 = vmatmul.mubr.bf16.gmra.mrb[140].mxu1 %v18606_v16  ;;  %v15777_v23 = vld [vmem:[#allocation4 + $0x93c] ss:$20 sps:$4 sm:$0xff]   ;;  %v7566_v25 = vmul.f32 %v18543_v60, %v7494_v27  ;;  %v15785_v27 = vld [vmem:[#allocation4 + $0x98c] ss:$20 sps:$4 sm:$0xff]  }
 0x4d9   : > { %8688 = vmatmul.mubr.bf16.gmra.mrb[160].mxu0 %v18606_v16  ;;  %8842 = vmatpush1.bf16.msra.mxu1 %v15775_v45  ;;  %v7499_v28 = vmax.f32 %v7454_v24, 0.0  ;;  %v7504_v24 = vmax.f32 %v7459_v40, 0.0 }
 0x4da   : > { %8725 = vmatpush1.bf16.msra.mxu0 %v15776_v35  ;;  %v18613_v47 = vpop.permute.xlu0 %7706  ;;  %8843 = vmatprep.subr.bf16.mxu1 %v15777_v23 }
 0x4db   : > { %v18620_v51 = vsel %vm7734_vm4, %v7705_v59, %v18613_v47  ;;  %8726 = vmatprep.subr.bf16.mxu0 %v20676_v2  ;;  %13642 = vmatprep.mubr.msk.bf16.mxu1 %vm1007_vm1, %v18624_v10  ;;  %v18628_v43 = vpop.f32.mrb[168].mxu0  ;;  %v18630_v30 = vpop.f32.mrb[168].mxu1  ;;  %v15779_v59 = vld [vmem:[#allocation4 + $0x938] ss:$20 sps:$4 sm:$0xff]  }
 0x4dc   : > { %20780 = vst [vmem:[#allocation84_spill] sm:$0xff] %v18620_v51  ;;  %v18634_v45 = vpop.permute.xlu1 %7712  ;;  %13648 = vmatprep.mubr.msk.bf16.mxu0 %vm1007_vm1, %v18624_v10  ;;  %v18638_v23 = vpop.f32.mrb[169].mxu0  ;;  %v18644_v51 = vadd.f32 %v18559_v12, %v7561_v8 }
 0x4dd   : > { %8844 = vmatpush1.bf16.msra.mxu1 %v15779_v59  ;;  %v7966_v35 = vpop.f32.mrb[170].mxu0  ;;  %v8037_v36 = vpop.f32.mrb[169].mxu1 }
 0x4de   : > { %8727 = vmatpush1.bf16.msra.mxu0 %v15780_v39  ;;  %v7711_v13 = vpop.permute.xlu0 %7710  ;;  %20781 = vst [vmem:[#allocation85_spill] sm:$0xff] %v18644_v51  ;;  %8845 = vmatprep.subr.bf16.mxu1 %v15781_v4  ;;  %v7967_v49 = vpop.f32.mrb[171].mxu0  ;;  %v18656_v39 = vld [vmem:[%s16610_s28 + $0xc0] ss:$8 sps:$4 sm:$0xff]   ;;  %v7571_v4 = vmul.f32 %v18543_v60, %v7499_v28 }
 0x4df   : > { %v18648_v59 = vsel %vm7734_vm4, %v7711_v13, %v18634_v45  ;;  %8728 = vmatprep.subr.bf16.mxu0 %v20676_v2  ;;  %v8038_v36 = vpop.f32.mrb[170].mxu1  ;;  %v15783_v49 = vld [vmem:[#allocation4 + $0x960] ss:$20 sps:$4 sm:$0xff]   ;;  %v15810_v51 = vld [vmem:[#allocation9] sm:$0x1f] }
 0x4e0   : > { %20782 = vst [vmem:[#allocation86_spill] sm:$0xff] %v18648_v59  ;;  %v18653_v53 = vpop.permute.xlu1 %7718  ;;  %8617 = vmatmul.mubr.bf16.gmra.mrb[144].mxu1 %v18656_v39  ;;  %v8039_v8 = vpop.f32.mrb[171].mxu1  ;;  %v15784_v13 = vld [vmem:[#allocation4 + $0x754] ss:$20 sps:$4 sm:$0xff]   ;;  %v18662_v36 = vadd.f32 %v18559_v12, %v7566_v25 }
 0x4e1   : > { %8698 = vmatmul.mubr.bf16.gmra.mrb[164].mxu0 %v18656_v39  ;;  %8846 = vmatpush1.bf16.msra.mxu1 %v15783_v49  ;;  %v15786_v25 = vld [vmem:[#allocation4 + $0x988] ss:$20 sps:$4 sm:$0xff]  }
 0x4e2   : > { %8729 = vmatpush1.bf16.msra.mxu0 %v15784_v13  ;;  %v7717_v35 = vpop.permute.xlu0 %7716  ;;  %20783 = vst [vmem:[#allocation87_spill] sm:$0xff] %v18662_v36  ;;  %8847 = vmatprep.subr.bf16.mxu1 %v15785_v27  ;;  %v7576_v27 = vmul.f32 %v18543_v60, %v7504_v24  ;;  %v15787_v8 = vld [vmem:[#allocation4 + $0x77c] ss:$20 sps:$4 sm:$0xff]   ;;  %v18679_v13 = vadd.f32 %v18559_v12, %v7571_v4  ;;  %v15790_v4 = vld [vmem:[#allocation4 + $0x7a4] ss:$20 sps:$4 sm:$0xff]  }
 0x4e3   : > { %v18666_v59 = vsel %vm7734_vm4, %v7717_v35, %v18653_v53  ;;  %8730 = vmatprep.subr.bf16.mxu0 %v20676_v2  ;;  %13643 = vmatprep.mubr.msk.bf16.mxu1 %vm1007_vm1, %v17588_v5  ;;  %v15788_v35 = vld [vmem:[#allocation4 + $0x9b4] ss:$20 sps:$4 sm:$0xff]   ;;  %v15789_v24 = vld [vmem:[#allocation4 + $0x9b0] ss:$20 sps:$4 sm:$0xff]  }
 0x4e4   : > { %20784 = vst [vmem:[#allocation88_spill] sm:$0xff] %v18666_v59  ;;  %13649 = vmatprep.mubr.msk.bf16.mxu0 %vm1007_vm1, %v17588_v5  ;;  %v7723_v28 = vpop.permute.xlu1 %7722  ;;  %20785 = vst [vmem:[#allocation89_spill] sm:$0xff] %v18679_v13  ;;  %v18693_v59 = vadd.f32 %v18559_v12, %v7576_v27  ;;  %v15793_v27 = vld [vmem:[#allocation4 + $0x7cc] ss:$20 sps:$4 sm:$0xff]  }
 0x4e5   : > { %8848 = vmatpush1.bf16.msra.mxu1 %v15786_v25  ;;  %v15796_v25 = vld [vmem:[#allocation4 + $0x7f4] ss:$20 sps:$4 sm:$0xff]  }
 0x4e6   : > { %8731 = vmatpush1.bf16.msra.mxu0 %v15787_v8  ;;  %v18676_v49 = vpop.permute.xlu0 %7724  ;;  %8849 = vmatprep.subr.bf16.mxu1 %v15788_v35  ;;  %20787 = vst [vmem:[#allocation91_spill] sm:$0xff] %v18693_v59  ;;  %v20791_v59 = vld [vmem:[#allocation28_spill] sm:$0xff] }
 0x4e7   : > { %v18683_v40 = vsel %vm7734_vm4, %v7723_v28, %v18676_v49  ;;  %8732 = vmatprep.subr.bf16.mxu0 %v20676_v2  ;;  %v15791_v28 = vld [vmem:[#allocation4 + $0x9dc] ss:$20 sps:$4 sm:$0xff]  }
 0x4e8   : > { %20786 = vst [vmem:[#allocation90_spill] sm:$0xff] %v18683_v40  ;;  %8627 = vmatmul.mubr.bf16.gmra.mrb[200].mxu1 %v17599_v22  ;;  %v15797_v40 = vld [vmem:[#allocation4 + $0xa2c] ss:$20 sps:$4 sm:$0xff]  }
 0x4e9   : > { %8708 = vmatmul.mubr.bf16.gmra.mrb[200].mxu0 %v17599_v22  ;;  %8850 = vmatpush1.bf16.msra.mxu1 %v15789_v24  ;;  %v18690_v8 = vpop.permute.xlu1 %7730  ;;  %v7400_v24 = vsub.s32 1, %v18166_v62 }
 0x4ea   : > { %8733 = vmatpush1.bf16.msra.mxu0 %v15790_v4  ;;  %v7729_v35 = vpop.permute.xlu0 %7728  ;;  %8851 = vmatprep.subr.bf16.mxu1 %v15791_v28  ;;  %v15792_v4 = vld [vmem:[#allocation4 + $0x9d8] ss:$20 sps:$4 sm:$0xff]  }
 0x4eb   : > { %v18697_v36 = vsel %vm7734_vm4, %v7729_v35, %v18690_v8  ;;  %8734 = vmatprep.subr.bf16.mxu0 %v20676_v2  ;;  %13650 = vmatprep.mubr.msk.bf16.mxu0 %vm1007_vm1, %v18490_v58  ;;  %v15794_v28 = vld [vmem:[#allocation4 + $0xa04] ss:$20 sps:$4 sm:$0xff]   ;;  %v15795_v35 = vld [vmem:[#allocation4 + $0xa00] ss:$20 sps:$4 sm:$0xff]   ;;  %v15798_v58 = vld [vmem:[#allocation4 + $0xa28] ss:$20 sps:$4 sm:$0xff]  }
 0x4ec   : > { %20788 = vst [vmem:[#allocation92_spill] sm:$0xff] %v18697_v36  ;;  %13656 = vmatprep.mubr.msk.bf16.mxu1 %vm1007_vm1, %v17605_v54  ;;  %v15799_v36 = vld [vmem:[#allocation4 + $0x81c] ss:$20 sps:$4 sm:$0xff]  }
 0x4ed   : > { %8852 = vmatpush1.bf16.msra.mxu1 %v15792_v4  ;;  %v15800_v4 = vld [vmem:[#allocation4 + $0xa54] ss:$20 sps:$4 sm:$0xff]  }
 0x4ee   : > { %8735 = vmatpush1.bf16.msra.mxu0 %v15793_v27  ;;  %8853 = vmatprep.subr.bf16.mxu1 %v15794_v28  ;;  %v15801_v27 = vld [vmem:[#allocation4 + $0xa50] ss:$20 sps:$4 sm:$0xff]   ;;  %v15802_v28 = vld [vmem:[#allocation6] sm:$0x1f] }
 0x4ef   : > { %8736 = vmatprep.subr.bf16.mxu0 %v20676_v2 }
 0x4f1   : > { %8854 = vmatpush1.bf16.msra.mxu1 %v15795_v35  ;;  %v18710_v35 = vrot.slane %v15802_v28, %v7400_v24 }
 0x4f2   : > { %8737 = vmatpush1.bf16.msra.mxu0 %v15796_v25  ;;  %8855 = vmatprep.subr.bf16.mxu1 %v15797_v40  ;;  %v15803_v25 = vld [vmem:[#allocation4 + $0x844] ss:$20 sps:$4 sm:$0xff]  }
 0x4f3   : > { %8738 = vmatprep.subr.bf16.mxu0 %v20676_v2  ;;  %v20789_v40 = vld [vmem:[#allocation30_spill] sm:$0xff] }
 0x4f5   : > { %8856 = vmatpush1.bf16.msra.mxu1 %v15798_v58  ;;  %v7430_v58 = vadd.f32 %v18710_v35, %v18233_v56  ;;  %v15806_v56 = vld [vmem:[#allocation7] sm:$0x1f] }
 0x4f6   : > { %8739 = vmatpush1.bf16.msra.mxu0 %v15799_v36  ;;  %8857 = vmatprep.subr.bf16.mxu1 %v15800_v4  ;;  %v20790_v36 = vld [vmem:[#allocation32_spill] sm:$0xff]  ;;  %v7435_v4 = vadd.f32 %v18710_v35, %v18247_v32 }
 0x4f7   : > { %8740 = vmatprep.subr.bf16.mxu0 %v20676_v2  ;;  %v7475_v28 = vmax.f32 %v7430_v58, 0.0  ;;  %v15807_v32 = vld [vmem:[#allocation4 + $0x878] ss:$20 sps:$4 sm:$0xff]  }
 0x4f8   : > { %v7480_v13 = vmax.f32 %v7435_v4, 0.0 }
 0x4f9   : > { %8858 = vmatpush1.bf16.msra.mxu1 %v15801_v27  ;;  %v15804_v27 = vld [vmem:[#allocation4 + $0x87c] ss:$20 sps:$4 sm:$0xff]  }
 0x4fa   : > { %8741 = vmatpush1.bf16.msra.mxu0 %v15803_v25  ;;  %13655 = vmatprep.subr.msk.bf16.mxu1 %vm1023_vm2, %v20789_v40  ;;  %v15805_v40 = vld [vmem:[#allocation4 + $0x880] ss:$20 sps:$4 sm:$0xff]  }
 0x4fb   : > { %8742 = vmatprep.subr.bf16.mxu0 %v20676_v2 }
 0x4fd   : > { %8860 = vmatpush1.bf16.msra.mxu1 %v20790_v36  ;;  %v18726_v36 = vrot.slane %v15806_v56, %v7400_v24  ;;  %v20794_v56 = vld [vmem:[#allocation17_spill] sm:$0xff] }
 0x4fe   : > { %8743 = vmatpush1.bf16.msra.mxu0 %v20791_v59  ;;  %8995 = vmatprep.subr.bf16.mxu1 %v20676_v2  ;;  %v15808_v59 = vld [vmem:[#allocation4 + $0x8a4] ss:$20 sps:$4 sm:$0xff]  }
 0x4ff   : > { %8914 = vmatprep.subr.bf16.mxu0 %v15804_v27  ;;  %v7547_v58 = vmul.f32 %v18726_v36, %v7475_v28  ;;  %v20793_v27 = vld [vmem:[#allocation57_spill] sm:$0xff]  ;;  %v7552_v4 = vmul.f32 %v18726_v36, %v7480_v13 }
 0x500   : > { %8866 = vmatmul.mubr.bf16.vlgmr.msra.gmra.mrb[132].mxu1 %v17634_v17  ;;  %v18723_v25 = vpop.permute.xlu1 %7684 }
 0x501   : > { %20792 = vst [vmem:[#allocation30_spill] sm:$0xff] %v18723_v25  ;;  %8749 = vmatmul.mubr.bf16.vlgmr.msra.gmra.mrb[204].mxu0 %v18523_v9  ;;  %8996 = vmatpush1.bf16.msra.mxu1 %v15805_v40  ;;  %v7440_v9 = vadd.f32 %v18710_v35, %v18267_v57  ;;  %v15809_v40 = vld [vmem:[#allocation4 + $0x8a8] ss:$20 sps:$4 sm:$0xff]   ;;  %v15812_v57 = vld [vmem:[#allocation4 + $0x8cc] ss:$20 sps:$4 sm:$0xff]  }
 0x502   : > { %8915 = vmatpush1.bf16.msra.mxu0 %v15807_v32  ;;  %8997 = vmatprep.subr.bf16.mxu1 %v20676_v2  ;;  %v7445_v32 = vadd.f32 %v18710_v35, %v20794_v56  ;;  %v20797_v25 = vld [vmem:[#allocation58_spill] sm:$0xff] }
 0x503   : > { %8916 = vmatprep.subr.bf16.mxu0 %v15808_v59  ;;  %13651 = vmatprep.mubr.msk.bf16.mxu0 %vm1007_vm1, %v18535_v37  ;;  %v18739_v59 = vrot.slane %v15810_v51, %v7400_v24  ;;  %v15811_v37 = vld [vmem:[#allocation4 + $0x8a0] ss:$20 sps:$4 sm:$0xff]   ;;  %v7485_v28 = vmax.f32 %v7440_v9, 0.0  ;;  %v15813_v24 = vld [vmem:[#allocation4 + $0x8d0] ss:$20 sps:$4 sm:$0xff]  }
 0x504   : > { %13657 = vmatprep.mubr.msk.bf16.mxu1 %vm1007_vm1, %v20793_v27  ;;  %v18741_v62 = vpop.permute.xlu1 %7690  ;;  %v7490_v56 = vmax.f32 %v7445_v32, 0.0  ;;  %v15815_v32 = vld [vmem:[#allocation4 + $0x8f4] ss:$20 sps:$4 sm:$0xff]   ;;  %v15816_v9 = vld [vmem:[#allocation4 + $0x8f8] ss:$20 sps:$4 sm:$0xff]  }
 0x505   : > { %8998 = vmatpush1.bf16.msra.mxu1 %v15809_v40  ;;  %20795 = vst [vmem:[#allocation32_spill] sm:$0xff] %v18739_v59  ;;  %20796 = vst [vmem:[#allocation28_spill] sm:$0xff] %v18741_v62  ;;  %v18746_v40 = vadd.f32 %v18739_v59, %v7547_v58  ;;  %v18759_v58 = vadd.f32 %v18739_v59, %v7552_v4  ;;  %v7557_v4 = vmul.f32 %v18726_v36, %v7485_v28  ;;  %v20806_v28 = vld [vmem:[#allocation60_spill] sm:$0xff] }
 0x506   : > { %8917 = vmatpush1.bf16.msra.mxu0 %v15811_v37  ;;  %8999 = vmatprep.subr.bf16.mxu1 %v20676_v2  ;;  %v15814_v37 = vld [vmem:[#allocation4 + $0x8c8] ss:$20 sps:$4 sm:$0xff]  }
 0x507   : > { %8918 = vmatprep.subr.bf16.mxu0 %v15812_v57  ;;  %20798 = vst [vmem:[#allocation57_spill] sm:$0xff] %v18746_v40  ;;  %20801 = vst [vmem:[#allocation93_spill] sm:$0xff] %v18759_v58  ;;  %v15821_v58 = vld [vmem:[#allocation4 + $0x944] ss:$20 sps:$4 sm:$0xff]  }
 0x508   : > { %8876 = vmatmul.mubr.bf16.gmra.mrb[136].mxu1 %v20797_v25  ;;  %v18748_v13 = vpop.permute.xlu0 %7696 }
 0x509   : > { %20799 = vst [vmem:[#allocation17_spill] sm:$0xff] %v18748_v13  ;;  %8757 = vmatmul.mubr.bf16.gmra.mrb[208].mxu0 %v18562_v46  ;;  %v18754_v51 = vsel %vm7734_vm4, %v18554_v33, %v18748_v13  ;;  %9000 = vmatpush1.bf16.msra.mxu1 %v15813_v24  ;;  %v20803_v46 = vld [vmem:[#allocation40_spill] sm:$0xff]  ;;  %v18784_v24 = vadd.f32 %v18739_v59, %v7557_v4 }
 0x50a   : > { %20800 = vst [vmem:[#allocation58_spill] sm:$0xff] %v18754_v51  ;;  %8919 = vmatpush1.bf16.msra.mxu0 %v15814_v37  ;;  %v18761_v57 = vpop.permute.xlu1 %7702  ;;  %9001 = vmatprep.subr.bf16.mxu1 %v20676_v2  ;;  %v7450_v62 = vadd.f32 %v18710_v35, %v20803_v46  ;;  %v20805_v37 = vld [vmem:[#allocation59_spill] sm:$0xff]  ;;  %v7562_v46 = vmul.f32 %v18726_v36, %v7490_v56 }
 0x50b   : > { %20802 = vst [vmem:[#allocation94_spill] sm:$0xff] %v18761_v57  ;;  %v18769_v33 = vsel %vm7734_vm4, %v18593_v29, %v18761_v57  ;;  %8920 = vmatprep.subr.bf16.mxu0 %v15815_v32  ;;  %13652 = vmatprep.mubr.msk.bf16.mxu0 %vm1007_vm1, %v18578_v11  ;;  %v7455_v29 = vadd.f32 %v18710_v35, %v18318_v26  ;;  %v15817_v51 = vld [vmem:[#allocation4 + $0x8f0] ss:$20 sps:$4 sm:$0xff]   ;;  %20807 = vst [vmem:[#allocation59_spill] sm:$0xff] %v18784_v24 }
 0x50c   : > { %20804 = vst [vmem:[#allocation40_spill] sm:$0xff] %v18769_v33  ;;  %13658 = vmatprep.mubr.msk.bf16.mxu1 %vm1007_vm1, %v20805_v37  ;;  %v7495_v11 = vmax.f32 %v7450_v62, 0.0  ;;  %v15818_v32 = vld [vmem:[#allocation4 + $0x91c] ss:$20 sps:$4 sm:$0xff]   ;;  %v18797_v4 = vadd.f32 %v18739_v59, %v7562_v46  ;;  %v7460_v46 = vadd.f32 %v18710_v35, %v18345_v55 }
 0x50d   : > { %9002 = vmatpush1.bf16.msra.mxu1 %v15816_v9  ;;  %v7500_v56 = vmax.f32 %v7455_v29, 0.0  ;;  %v15820_v9 = vld [vmem:[#allocation4 + $0x918] ss:$20 sps:$4 sm:$0xff]   ;;  %v15822_v55 = vld [vmem:[#allocation4 + $0x948] ss:$20 sps:$4 sm:$0xff]  }
 0x50e   : > { %8921 = vmatpush1.bf16.msra.mxu0 %v15817_v51  ;;  %9003 = vmatprep.subr.bf16.mxu1 %v20676_v2  ;;  %v15819_v51 = vld [vmem:[#allocation4 + $0x920] ss:$20 sps:$4 sm:$0xff]   ;;  %20810 = vst [vmem:[#allocation96_spill] sm:$0xff] %v18797_v4  ;;  %v7505_v40 = vmax.f32 %v7460_v46, 0.0  ;;  %v15826_v46 = vld [vmem:[#allocation4 + $0x968] ss:$20 sps:$4 sm:$0xff]  }
 0x50f   : > { %8922 = vmatprep.subr.bf16.mxu0 %v15818_v32  ;;  %v20813_v24 = vld [vmem:[#allocation61_spill] sm:$0xff] }
 0x510   : > { %8886 = vmatmul.mubr.bf16.gmra.mrb[140].mxu1 %v20806_v28  ;;  %v18786_v33 = vpop.permute.xlu1 %7708  ;;  %v15824_v4 = vld [vmem:[#allocation4 + $0x96c] ss:$20 sps:$4 sm:$0xff]   ;;  %v16044_v57 = vld [vmem:[#allocation4 + $0xf9c] ss:$20 sps:$4 sm:$0xff]  }
 0x511   : > { %20808 = vst [vmem:[#allocation60_spill] sm:$0xff] %v18786_v33  ;;  %8765 = vmatmul.mubr.bf16.gmra.mrb[212].mxu0 %v18606_v16  ;;  %v18792_v26 = vsel %vm7734_vm4, %v18613_v47, %v18786_v33  ;;  %9004 = vmatpush1.bf16.msra.mxu1 %v15819_v51  ;;  %v7567_v16 = vmul.f32 %v18726_v36, %v7495_v11 }
 0x512   : > { %20809 = vst [vmem:[#allocation95_spill] sm:$0xff] %v18792_v26  ;;  %8923 = vmatpush1.bf16.msra.mxu0 %v15820_v9  ;;  %v18799_v32 = vpop.permute.xlu0 %7714  ;;  %9005 = vmatprep.subr.bf16.mxu1 %v20676_v2 }
 0x513   : > { %20811 = vst [vmem:[#allocation97_spill] sm:$0xff] %v18799_v32  ;;  %v18806_v47 = vsel %vm7734_vm4, %v18634_v45, %v18799_v32  ;;  %v8115_v29 = vpop.f32.mrb[172].mxu1  ;;  %v8196_v51 = vpop.f32.mrb[172].mxu0  ;;  %8924 = vmatprep.subr.bf16.mxu0 %v15821_v58  ;;  %13653 = vmatprep.mubr.msk.bf16.mxu0 %vm1007_vm1, %v18624_v10 }
 0x514   : > { %20812 = vst [vmem:[#allocation98_spill] sm:$0xff] %v18806_v47  ;;  %v18815_v11 = vadd.f32 %v8115_v29, %v18465_v44  ;;  %v18818_v62 = vadd.f32 %v8196_v51, %v18628_v43  ;;  %v8117_v45 = vpop.f32.mrb[173].mxu1  ;;  %v8198_v26 = vpop.f32.mrb[173].mxu0  ;;  %13659 = vmatprep.mubr.msk.bf16.mxu1 %vm1007_vm1, %v20813_v24  ;;  %v7572_v44 = vmul.f32 %v18726_v36, %v7500_v56  ;;  %v15823_v29 = vld [vmem:[#allocation4 + $0x940] ss:$20 sps:$4 sm:$0xff]  }
 0x515   : > { %v18823_v58 = vadd.f32 %v8117_v45, %v18472_v3  ;;  %v18826_v10 = vadd.f32 %v8198_v26, %v18638_v23  ;;  %9006 = vmatpush1.bf16.msra.mxu1 %v15822_v55  ;;  %v8200_v9 = vpop.f32.mrb[174].mxu0  ;;  %v8119_v47 = vpop.f32.mrb[174].mxu1  ;;  %v20814_v3 = vld [vmem:[#allocation62_spill] sm:$0xff]  ;;  %v18832_v23 = vadd.f32 %v18739_v59, %v7567_v16  ;;  %v7577_v45 = vmul.f32 %v18726_v36, %v7505_v40  ;;  %v15841_v55 = vld [vmem:[#allocation4 + $0xa30] ss:$20 sps:$4 sm:$0xff]  }
 0x516   : > { %8925 = vmatpush1.bf16.msra.mxu0 %v15823_v29  ;;  %9007 = vmatprep.subr.bf16.mxu1 %v20676_v2  ;;  %v8201_v43 = vpop.f32.mrb[175].mxu0  ;;  %v8120_v51 = vpop.f32.mrb[175].mxu1  ;;  %v15825_v47 = vld [vmem:[#allocation4 + $0x970] ss:$20 sps:$4 sm:$0xff]   ;;  %v18845_v9 = vadd.f32 %v18739_v59, %v7572_v44  ;;  %v15828_v29 = vld [vmem:[#allocation4 + $0x998] ss:$20 sps:$4 sm:$0xff]  }
 0x517   : > { %8926 = vmatprep.subr.bf16.mxu0 %v15824_v4  ;;  %20815 = vst [vmem:[#allocation61_spill] sm:$0xff] %v18832_v23  ;;  %v20821_v44 = vld [vmem:[#allocation63_spill] sm:$0xff]  ;;  %v20822_v51 = vld [vmem:[#allocation64_spill] sm:$0xff] }
 0x518   : > { %8896 = vmatmul.mubr.bf16.gmra.mrb[144].mxu1 %v20814_v3  ;;  %v18834_v26 = vpop.permute.xlu0 %7720  ;;  %20818 = vst [vmem:[#allocation100_spill] sm:$0xff] %v18845_v9  ;;  %v15829_v43 = vld [vmem:[#allocation4 + $0x990] ss:$20 sps:$4 sm:$0xff]   ;;  %v15843_v4 = vld [vmem:[#allocation4 + $0xa60] ss:$20 sps:$4 sm:$0xff]  }
 0x519   : > { %20816 = vst [vmem:[#allocation62_spill] sm:$0xff] %v18834_v26  ;;  %8773 = vmatmul.mubr.bf16.gmra.mrb[216].mxu0 %v18656_v39  ;;  %v18840_v56 = vsel %vm7734_vm4, %v18653_v53, %v18834_v26  ;;  %9008 = vmatpush1.bf16.msra.mxu1 %v15825_v47  ;;  %v15827_v53 = vld [vmem:[#allocation4 + $0x994] ss:$20 sps:$4 sm:$0xff]   ;;  %v16026_v23 = vld [vmem:[#allocation4 + $0x10ac] ss:$20 sps:$4 sm:$0xff]  }
 0x51a   : > { %20817 = vst [vmem:[#allocation99_spill] sm:$0xff] %v18840_v56  ;;  %8927 = vmatpush1.bf16.msra.mxu0 %v15826_v46  ;;  %v18847_v16 = vpop.permute.xlu1 %7726  ;;  %9009 = vmatprep.subr.bf16.mxu1 %v20676_v2  ;;  %v15831_v46 = vld [vmem:[#allocation4 + $0x9c0] ss:$20 sps:$4 sm:$0xff]   ;;  %v16023_v56 = vld [vmem:[#allocation4 + $0x10a8] ss:$20 sps:$4 sm:$0xff]  }
 0x51b   : > { %20819 = vst [vmem:[#allocation101_spill] sm:$0xff] %v18847_v16  ;;  %v18853_v39 = vsel %vm7734_vm4, %v18676_v49, %v18847_v16  ;;  %8928 = vmatprep.subr.bf16.mxu0 %v15827_v53  ;;  %13654 = vmatprep.mubr.msk.bf16.mxu0 %vm1007_vm1, %v17588_v5  ;;  %v15830_v49 = vld [vmem:[#allocation4 + $0x9bc] ss:$20 sps:$4 sm:$0xff]   ;;  %v18867_v5 = vadd.f32 %v18739_v59, %v7577_v45  ;;  %v15836_v45 = vld [vmem:[#allocation4 + $0xa0c] ss:$20 sps:$4 sm:$0xff]  }
 0x51c   : > { %20820 = vst [vmem:[#allocation102_spill] sm:$0xff] %v18853_v39  ;;  %13660 = vmatprep.mubr.msk.bf16.mxu1 %vm1007_vm1, %v20821_v44  ;;  %v15954_v39 = vld [vmem:[#allocation4 + $0xda4] ss:$20 sps:$4 sm:$0xff]   ;;  %v20849_v16 = vld [vmem:[#allocation65_spill] sm:$0xff] }
 0x51d   : > { %9010 = vmatpush1.bf16.msra.mxu1 %v15828_v29  ;;  %20824 = vst [vmem:[#allocation64_spill] sm:$0xff] %v18867_v5  ;;  %v15832_v29 = vld [vmem:[#allocation4 + $0x9b8] ss:$20 sps:$4 sm:$0xff]  }
 0x51e   : > { %8929 = vmatpush1.bf16.msra.mxu0 %v15829_v43  ;;  %9011 = vmatprep.subr.bf16.mxu1 %v20676_v2  ;;  %v15833_v43 = vld [vmem:[#allocation4 + $0x9e4] ss:$20 sps:$4 sm:$0xff]  }
 0x51f   : > { %8930 = vmatprep.subr.bf16.mxu0 %v15830_v49  ;;  %v15837_v49 = vld [vmem:[#allocation4 + $0xa10] ss:$20 sps:$4 sm:$0xff]  }
 0x520   : > { %8906 = vmatmul.mubr.bf16.gmra.mrb[204].mxu1 %v20822_v51  ;;  %v18864_v47 = vpop.permute.xlu0 %7732 }
 0x521   : > { %20823 = vst [vmem:[#allocation63_spill] sm:$0xff] %v18864_v47  ;;  %8781 = vmatmul.mubr.bf16.gmra.mrb[220].mxu0 %v17599_v22  ;;  %v18873_v40 = vsel %vm7734_vm4, %v18690_v8, %v18864_v47  ;;  %9012 = vmatpush1.bf16.msra.mxu1 %v15831_v46  ;;  %v15834_v22 = vld [vmem:[#allocation4 + $0x9e8] ss:$20 sps:$4 sm:$0xff]   ;;  %v15835_v8 = vld [vmem:[#allocation4 + $0x9e0] ss:$20 sps:$4 sm:$0xff]  }
 0x522   : > { %20825 = vst [vmem:[#allocation103_spill] sm:$0xff] %v18873_v40  ;;  %8931 = vmatpush1.bf16.msra.mxu0 %v15832_v29  ;;  %9013 = vmatprep.subr.bf16.mxu1 %v20676_v2  ;;  %v15838_v46 = vld [vmem:[#allocation4 + $0xa08] ss:$20 sps:$4 sm:$0xff]  }
 0x523   : > { %8932 = vmatprep.subr.bf16.mxu0 %v15833_v43  ;;  %13662 = vmatprep.mubr.msk.bf16.mxu0 %vm1007_vm1, %v17605_v54  ;;  %v15839_v29 = vld [vmem:[#allocation4 + $0xa34] ss:$20 sps:$4 sm:$0xff]  }
 0x524   : > { %13667 = vmatprep.mubr.msk.bf16.mxu1 %vm1007_vm1, %v17605_v54 }
 0x525   : > { %9014 = vmatpush1.bf16.msra.mxu1 %v15834_v22  ;;  %v15840_v22 = vld [vmem:[#allocation4 + $0xa38] ss:$20 sps:$4 sm:$0xff]  }
 0x526   : > { %8933 = vmatpush1.bf16.msra.mxu0 %v15835_v8  ;;  %9015 = vmatprep.subr.bf16.mxu1 %v20676_v2 }
 0x527   : > { %8934 = vmatprep.subr.bf16.mxu0 %v15836_v45 }
 0x529   : > { %9016 = vmatpush1.bf16.msra.mxu1 %v15837_v49 }
 0x52a   : > { %8935 = vmatpush1.bf16.msra.mxu0 %v15838_v46  ;;  %9017 = vmatprep.subr.bf16.mxu1 %v20676_v2  ;;  %v15842_v46 = vld [vmem:[#allocation4 + $0xa5c] ss:$20 sps:$4 sm:$0xff]  }
 0x52b   : > { %8936 = vmatprep.subr.bf16.mxu0 %v15839_v29  ;;  %v15844_v29 = vld [vmem:[#allocation4 + $0xa58] ss:$20 sps:$4 sm:$0xff]  }
 0x52c   : > { %v8237_v43 = vpop.f32.mrb[176].mxu0 }
 0x52d   : > { %v18885_v53 = vadd.f32 %v8237_v43, %v18496_v0  ;;  %v8239_v54 = vpop.f32.mrb[177].mxu0  ;;  %9018 = vmatpush1.bf16.msra.mxu1 %v15840_v22  ;;  %v20826_v0 = vld [vmem:[#allocation31_spill] sm:$0xff]  ;;  %v20827_v22 = vld [vmem:[#allocation36_spill] sm:$0xff] }
 0x52e   : > { %v8240_v8 = vpop.f32.mrb[178].mxu0  ;;  %8937 = vmatpush1.bf16.msra.mxu0 %v15841_v55  ;;  %9019 = vmatprep.subr.bf16.mxu1 %v20676_v2 }
 0x52f   : > { %v18889_v45 = vadd.f32 %v8240_v8, %v18498_v52  ;;  %v8242_v49 = vpop.f32.mrb[179].mxu0  ;;  %8938 = vmatprep.subr.bf16.mxu0 %v15842_v46  ;;  %v20828_v8 = vld [vmem:[#allocation33_spill] sm:$0xff] }
 0x530   : > { %v15845_v49 = vld [vmem:[#allocation4 + $0xa90] ss:$20 sps:$4 sm:$0xff]   ;;  %v15846_v46 = vld [vmem:[#allocation4 + $0xa98] ss:$20 sps:$4 sm:$0xff]  }
 0x531   : > { %9020 = vmatpush1.bf16.msra.mxu1 %v15843_v4 }
 0x532   : > { %8939 = vmatpush1.bf16.msra.mxu0 %v15844_v29  ;;  %9021 = vmatprep.subr.bf16.mxu1 %v20676_v2 }
 0x533   : > { %13661 = vmatprep.subr.msk.bf16.mxu0 %vm1023_vm2, %v20826_v0  ;;  %v15848_v0 = vld [vmem:[#allocation4 + $0xa94] ss:$20 sps:$4 sm:$0xff]  }
 0x534   : > { %v8245_v43 = vpop.f32.mrb[180].mxu0 }
 0x535   : > { %v18895_v55 = vadd.f32 %v8245_v43, %v18507_v42  ;;  %v8247_v54 = vpop.f32.mrb[181].mxu0  ;;  %9022 = vmatpush1.bf16.msra.mxu1 %v20827_v22  ;;  %v15847_v42 = vld [vmem:[#allocation4 + $0xa8c] ss:$20 sps:$4 sm:$0xff]  }
 0x536   : > { %v8248_v52 = vpop.f32.mrb[182].mxu0  ;;  %8941 = vmatpush1.bf16.msra.mxu0 %v20828_v8  ;;  %9112 = vmatprep.subr.bf16.mxu1 %v15845_v49  ;;  %v15849_v43 = vld [vmem:[#allocation4 + $0xab8] ss:$20 sps:$4 sm:$0xff]   ;;  %v15850_v54 = vld [vmem:[#allocation4 + $0xac0] ss:$20 sps:$4 sm:$0xff]  }
 0x537   : > { %v18900_v4 = vadd.f32 %v8248_v52, %v18514_v63  ;;  %9193 = vmatprep.subr.bf16.mxu0 %v15846_v46  ;;  %v8250_v29 = vpop.f32.mrb[183].mxu0  ;;  %v15852_v49 = vld [vmem:[#allocation4 + $0xabc] ss:$20 sps:$4 sm:$0xff]   ;;  %v15853_v46 = vld [vmem:[#allocation4 + $0xae0] ss:$20 sps:$4 sm:$0xff]  }
 0x538   : > { %9028 = vmatmul.mubr.bf16.vlgmr.msra.gmra.mrb[208].mxu1 %v17634_v17 }
 0x539   : > { %8947 = vmatmul.mubr.bf16.vlgmr.msra.gmra.mrb[152].mxu0 %v17634_v17  ;;  %9113 = vmatpush1.bf16.msra.mxu1 %v15847_v42  ;;  %v15851_v17 = vld [vmem:[#allocation4 + $0xab4] ss:$20 sps:$4 sm:$0xff]  }
 0x53a   : > { %9194 = vmatpush1.bf16.msra.mxu0 %v15848_v0  ;;  %9114 = vmatprep.subr.bf16.mxu1 %v15849_v43  ;;  %v15854_v42 = vld [vmem:[#allocation4 + $0xae8] ss:$20 sps:$4 sm:$0xff]  }
 0x53b   : > { %9195 = vmatprep.subr.bf16.mxu0 %v15850_v54  ;;  %13663 = vmatprep.mubr.msk.bf16.mxu0 %vm1007_vm1, %v20793_v27  ;;  %v15857_v43 = vld [vmem:[#allocation4 + $0xb08] ss:$20 sps:$4 sm:$0xff]   ;;  %v15858_v54 = vld [vmem:[#allocation4 + $0xb10] ss:$20 sps:$4 sm:$0xff]  }
 0x53c   : > { %v8253_v63 = vpop.f32.mrb[184].mxu0  ;;  %13668 = vmatprep.mubr.msk.bf16.mxu1 %vm1007_vm1, %v20793_v27  ;;  %v15856_v27 = vld [vmem:[#allocation4 + $0xae4] ss:$20 sps:$4 sm:$0xff]  }
 0x53d   : > { %v18909_v22 = vadd.f32 %v8253_v63, %v18539_v61  ;;  %v8255_v52 = vpop.f32.mrb[185].mxu0  ;;  %9115 = vmatpush1.bf16.msra.mxu1 %v15851_v17  ;;  %v15855_v61 = vld [vmem:[#allocation4 + $0xadc] ss:$20 sps:$4 sm:$0xff]  }
 0x53e   : > { %v8256_v8 = vpop.f32.mrb[186].mxu0  ;;  %9196 = vmatpush1.bf16.msra.mxu0 %v15852_v49  ;;  %9116 = vmatprep.subr.bf16.mxu1 %v15853_v46  ;;  %v15861_v49 = vld [vmem:[#allocation4 + $0xb30] ss:$20 sps:$4 sm:$0xff]  }
 0x53f   : > { %v18912_v29 = vadd.f32 %v8256_v8, %v18547_v6  ;;  %9197 = vmatprep.subr.bf16.mxu0 %v15854_v42  ;;  %v8258_v0 = vpop.f32.mrb[187].mxu0  ;;  %v15860_v8 = vld [vmem:[#allocation4 + $0xb0c] ss:$20 sps:$4 sm:$0xff]  }
 0x540   : > { %9036 = vmatmul.mubr.bf16.gmra.mrb[212].mxu1 %v20797_v25  ;;  %v15862_v42 = vld [vmem:[#allocation4 + $0xb38] ss:$20 sps:$4 sm:$0xff]  }
 0x541   : > { %8957 = vmatmul.mubr.bf16.gmra.mrb[156].mxu0 %v20797_v25  ;;  %9117 = vmatpush1.bf16.msra.mxu1 %v15855_v61  ;;  %v15859_v25 = vld [vmem:[#allocation4 + $0xb04] ss:$20 sps:$4 sm:$0xff]  }
 0x542   : > { %9198 = vmatpush1.bf16.msra.mxu0 %v15856_v27  ;;  %9118 = vmatprep.subr.bf16.mxu1 %v15857_v43  ;;  %v15865_v61 = vld [vmem:[#allocation4 + $0xb58] ss:$20 sps:$4 sm:$0xff]   ;;  %v15866_v43 = vld [vmem:[#allocation4 + $0xb60] ss:$20 sps:$4 sm:$0xff]  }
 0x543   : > { %9199 = vmatprep.subr.bf16.mxu0 %v15858_v54  ;;  %13664 = vmatprep.mubr.msk.bf16.mxu0 %vm1007_vm1, %v20805_v37 }
 0x544   : > { %v8261_v6 = vpop.f32.mrb[188].mxu0  ;;  %13669 = vmatprep.mubr.msk.bf16.mxu1 %vm1007_vm1, %v20805_v37  ;;  %v15864_v37 = vld [vmem:[#allocation4 + $0xb34] ss:$20 sps:$4 sm:$0xff]  }
 0x545   : > { %v18921_v63 = vadd.f32 %v8261_v6, %v18582_v18  ;;  %v8263_v52 = vpop.f32.mrb[189].mxu0  ;;  %9119 = vmatpush1.bf16.msra.mxu1 %v15859_v25  ;;  %v15863_v18 = vld [vmem:[#allocation4 + $0xb2c] ss:$20 sps:$4 sm:$0xff]   ;;  %v15867_v25 = vld [vmem:[#allocation4 + $0xb54] ss:$20 sps:$4 sm:$0xff]  }
 0x546   : > { %v8264_v17 = vpop.f32.mrb[190].mxu0  ;;  %9200 = vmatpush1.bf16.msra.mxu0 %v15860_v8  ;;  %9120 = vmatprep.subr.bf16.mxu1 %v15861_v49  ;;  %v15868_v49 = vld [vmem:[#allocation4 + $0xb5c] ss:$20 sps:$4 sm:$0xff]  }
 0x547   : > { %v18924_v46 = vadd.f32 %v8264_v17, %v18588_v41  ;;  %9201 = vmatprep.subr.bf16.mxu0 %v15862_v42  ;;  %v8266_v0 = vpop.f32.mrb[191].mxu0  ;;  %v15869_v42 = vld [vmem:[#allocation4 + $0xb80] ss:$20 sps:$4 sm:$0xff]  }
 0x548   : > { %9044 = vmatmul.mubr.bf16.gmra.mrb[216].mxu1 %v20806_v28 }
 0x549   : > { %8967 = vmatmul.mubr.bf16.gmra.mrb[160].mxu0 %v20806_v28  ;;  %9121 = vmatpush1.bf16.msra.mxu1 %v15863_v18  ;;  %v15870_v18 = vld [vmem:[#allocation4 + $0xb88] ss:$20 sps:$4 sm:$0xff]  }
 0x54a   : > { %9202 = vmatpush1.bf16.msra.mxu0 %v15864_v37  ;;  %9122 = vmatprep.subr.bf16.mxu1 %v15865_v61  ;;  %v15874_v61 = vld [vmem:[#allocation4 + $0xbb0] ss:$20 sps:$4 sm:$0xff]  }
 0x54b   : > { %v8349_v27 = vpop.f32.mrb[176].mxu1  ;;  %9203 = vmatprep.subr.bf16.mxu0 %v15866_v43  ;;  %13665 = vmatprep.mubr.msk.bf16.mxu0 %vm1007_vm1, %v20813_v24  ;;  %v15876_v43 = vld [vmem:[#allocation4 + $0xbac] ss:$20 sps:$4 sm:$0xff]  }
 0x54c   : > { %v8269_v41 = vpop.f32.mrb[192].mxu0  ;;  %v18931_v54 = vadd.f32 %v8349_v27, %v18815_v11  ;;  %v8351_v6 = vpop.f32.mrb[177].mxu1  ;;  %13670 = vmatprep.mubr.msk.bf16.mxu1 %vm1007_vm1, %v20813_v24  ;;  %v15872_v24 = vld [vmem:[#allocation4 + $0xb84] ss:$20 sps:$4 sm:$0xff]  }
 0x54d   : > { %v18936_v28 = vadd.f32 %v8269_v41, %v18630_v30  ;;  %v18939_v52 = vadd.f32 %v8351_v6, %v18823_v58  ;;  %9123 = vmatpush1.bf16.msra.mxu1 %v15867_v25  ;;  %v8271_v17 = vpop.f32.mrb[193].mxu0  ;;  %v8353_v8 = vpop.f32.mrb[178].mxu1  ;;  %v15871_v30 = vld [vmem:[#allocation4 + $0xb7c] ss:$20 sps:$4 sm:$0xff]   ;;  %v15875_v27 = vld [vmem:[#allocation4 + $0xba4] ss:$20 sps:$4 sm:$0xff]  }
 0x54e   : > { %9204 = vmatpush1.bf16.msra.mxu0 %v15868_v49  ;;  %9124 = vmatprep.subr.bf16.mxu1 %v15869_v42  ;;  %v8272_v11 = vpop.f32.mrb[194].mxu0  ;;  %v8354_v0 = vpop.f32.mrb[179].mxu1  ;;  %v15873_v58 = vld [vmem:[#allocation4 + $0xba8] ss:$20 sps:$4 sm:$0xff]   ;;  %v15877_v41 = vld [vmem:[#allocation4 + $0xbd0] ss:$20 sps:$4 sm:$0xff]  }
 0x54f   : > { %9205 = vmatprep.subr.bf16.mxu0 %v15870_v18  ;;  %v8273_v37 = vpop.f32.mrb[195].mxu0  ;;  %v15879_v6 = vld [vmem:[#allocation4 + $0xbcc] ss:$20 sps:$4 sm:$0xff]   ;;  %v15880_v25 = vld [vmem:[#allocation4 + $0xbd4] ss:$20 sps:$4 sm:$0xff]  }
 0x550   : > { %9052 = vmatmul.mubr.bf16.gmra.mrb[220].mxu1 %v20814_v3  ;;  %v15881_v17 = vld [vmem:[#allocation4 + $0xbf8] ss:$20 sps:$4 sm:$0xff]   ;;  %v15882_v8 = vld [vmem:[#allocation4 + $0xc00] ss:$20 sps:$4 sm:$0xff]   ;;  %v15884_v42 = vld [vmem:[#allocation4 + $0xbfc] ss:$20 sps:$4 sm:$0xff]  }
 0x551   : > { %8977 = vmatmul.mubr.bf16.gmra.mrb[164].mxu0 %v20814_v3  ;;  %9125 = vmatpush1.bf16.msra.mxu1 %v15871_v30  ;;  %v15878_v3 = vld [vmem:[#allocation4 + $0xbd8] ss:$20 sps:$4 sm:$0xff]   ;;  %v15883_v49 = vld [vmem:[#allocation4 + $0xbf4] ss:$20 sps:$4 sm:$0xff]   ;;  %v15887_v0 = vld [vmem:[#allocation4 + $0xc1c] ss:$20 sps:$4 sm:$0xff]  }
 0x552   : > { %9206 = vmatpush1.bf16.msra.mxu0 %v15872_v24  ;;  %9126 = vmatprep.subr.bf16.mxu1 %v15873_v58  ;;  %v15885_v11 = vld [vmem:[#allocation4 + $0xc20] ss:$20 sps:$4 sm:$0xff]   ;;  %v15888_v18 = vld [vmem:[#allocation4 + $0xc24] ss:$20 sps:$4 sm:$0xff]   ;;  %v15889_v37 = vld [vmem:[#allocation4 + $0xc48] ss:$20 sps:$4 sm:$0xff]  }
 0x553   : > { %9207 = vmatprep.subr.bf16.mxu0 %v15874_v61  ;;  %13666 = vmatprep.mubr.msk.bf16.mxu0 %vm1007_vm1, %v20821_v44  ;;  %v15890_v24 = vld [vmem:[#allocation4 + $0xc50] ss:$20 sps:$4 sm:$0xff]  }
 0x554   : > { %13671 = vmatprep.mubr.msk.bf16.mxu1 %vm1007_vm1, %v20821_v44  ;;  %v20829_v44 = vld [vmem:[#allocation68_spill] sm:$0xff] }
 0x555   : > { %9127 = vmatpush1.bf16.msra.mxu1 %v15875_v27 }
 0x556   : > { %9208 = vmatpush1.bf16.msra.mxu0 %v15876_v43  ;;  %9128 = vmatprep.subr.bf16.mxu1 %v15877_v41  ;;  %v15891_v43 = vld [vmem:[#allocation4 + $0xc44] ss:$20 sps:$4 sm:$0xff]  }
 0x557   : > { %9209 = vmatprep.subr.bf16.mxu0 %v15878_v3  ;;  %v15892_v3 = vld [vmem:[#allocation4 + $0xc4c] ss:$20 sps:$4 sm:$0xff]  }
 0x558   : > { %9060 = vmatmul.mubr.bf16.gmra.mrb[224].mxu1 %v20822_v51 }
 0x559   : > { %8987 = vmatmul.mubr.bf16.gmra.mrb[224].mxu0 %v20822_v51  ;;  %9129 = vmatpush1.bf16.msra.mxu1 %v15879_v6  ;;  %v15886_v51 = vld [vmem:[#allocation4 + $0xc28] ss:$20 sps:$4 sm:$0xff]  }
 0x55a   : > { %9210 = vmatpush1.bf16.msra.mxu0 %v15880_v25  ;;  %9130 = vmatprep.subr.bf16.mxu1 %v15881_v17  ;;  %v15893_v25 = vld [vmem:[#allocation4 + $0xc70] ss:$20 sps:$4 sm:$0xff]   ;;  %v15894_v17 = vld [vmem:[#allocation4 + $0xc78] ss:$20 sps:$4 sm:$0xff]  }
 0x55b   : > { %9211 = vmatprep.subr.bf16.mxu0 %v15882_v8  ;;  %13673 = vmatprep.mubr.msk.bf16.mxu1 %vm1007_vm1, %v20829_v44  ;;  %v15895_v8 = vld [vmem:[#allocation4 + $0xc6c] ss:$20 sps:$4 sm:$0xff]  }
 0x55c   : > { %13679 = vmatprep.mubr.msk.bf16.mxu0 %vm1007_vm1, %v20829_v44 }
 0x55d   : > { %9131 = vmatpush1.bf16.msra.mxu1 %v15883_v49  ;;  %v15896_v49 = vld [vmem:[#allocation4 + $0xc74] ss:$20 sps:$4 sm:$0xff]  }
 0x55e   : > { %9212 = vmatpush1.bf16.msra.mxu0 %v15884_v42  ;;  %9132 = vmatprep.subr.bf16.mxu1 %v15885_v11  ;;  %v20831_v11 = vld [vmem:[#allocation35_spill] sm:$0xff] }
 0x55f   : > { %9213 = vmatprep.subr.bf16.mxu0 %v15886_v51 }
 0x561   : > { %9133 = vmatpush1.bf16.msra.mxu1 %v15887_v0 }
 0x562   : > { %9214 = vmatpush1.bf16.msra.mxu0 %v15888_v18  ;;  %9134 = vmatprep.subr.bf16.mxu1 %v15889_v37  ;;  %v20832_v18 = vld [vmem:[#allocation48_spill] sm:$0xff] }
 0x563   : > { %v8471_v30 = vpop.f32.mrb[180].mxu1  ;;  %9215 = vmatprep.subr.bf16.mxu0 %v15890_v24  ;;  %v15897_v24 = vld [vmem:[#allocation4 + $0xcac] ss:$20 sps:$4 sm:$0xff]  }
 0x564   : > { %v18954_v58 = vadd.f32 %v8471_v30, %v18885_v53  ;;  %v8473_v61 = vpop.f32.mrb[181].mxu1  ;;  %v20830_v53 = vld [vmem:[#allocation47_spill] sm:$0xff]  ;;  %v20833_v30 = vld [vmem:[#allocation37_spill] sm:$0xff] }
 0x565   : > { %v8474_v27 = vpop.f32.mrb[182].mxu1  ;;  %9135 = vmatpush1.bf16.msra.mxu1 %v15891_v43  ;;  %v15899_v43 = vld [vmem:[#allocation4 + $0xa9c] ss:$20 sps:$4 sm:$0xff]  }
 0x566   : > { %v18957_v41 = vadd.f32 %v8474_v27, %v18889_v45  ;;  %9216 = vmatpush1.bf16.msra.mxu0 %v15892_v3  ;;  %v8476_v6 = vpop.f32.mrb[183].mxu1  ;;  %9136 = vmatprep.subr.bf16.mxu1 %v15893_v25  ;;  %v20834_v27 = vld [vmem:[#allocation73_spill] sm:$0xff] }
 0x567   : > { %9217 = vmatprep.subr.bf16.mxu0 %v15894_v17  ;;  %v15900_v3 = vld [vmem:[#allocation4 + $0xcd4] ss:$20 sps:$4 sm:$0xff]  }
 0x569   : > { %9137 = vmatpush1.bf16.msra.mxu1 %v15895_v8 }
 0x56a   : > { %9218 = vmatpush1.bf16.msra.mxu0 %v15896_v49  ;;  %13672 = vmatprep.subr.msk.bf16.mxu1 %vm1023_vm2, %v20830_v53  ;;  %v15901_v49 = vld [vmem:[#allocation4 + $0xcd0] ss:$20 sps:$4 sm:$0xff]  }
 0x56b   : > { %v8479_v42 = vpop.f32.mrb[184].mxu1  ;;  %13678 = vmatprep.subr.msk.bf16.mxu0 %vm1023_vm2, %v20831_v11  ;;  %v15903_v11 = vld [vmem:[#allocation4 + $0xcfc] ss:$20 sps:$4 sm:$0xff]  }
 0x56c   : > { %v18964_v45 = vadd.f32 %v8479_v42, %v18895_v55  ;;  %v8481_v51 = vpop.f32.mrb[185].mxu1  ;;  %v15898_v55 = vld [vmem:[#allocation4 + $0xca8] ss:$20 sps:$4 sm:$0xff]   ;;  %v15902_v42 = vld [vmem:[#allocation4 + $0xac4] ss:$20 sps:$4 sm:$0xff]  }
 0x56d   : > { %v8482_v0 = vpop.f32.mrb[186].mxu1  ;;  %9139 = vmatpush1.bf16.msra.mxu1 %v20832_v18  ;;  %v15905_v18 = vld [vmem:[#allocation4 + $0xaec] ss:$20 sps:$4 sm:$0xff]  }
 0x56e   : > { %v18968_v37 = vadd.f32 %v8482_v0, %v18900_v4  ;;  %9220 = vmatpush1.bf16.msra.mxu0 %v20833_v30  ;;  %9448 = vmatprep.subr.bf16.mxu1 %v15897_v24  ;;  %v8484_v61 = vpop.f32.mrb[187].mxu1  ;;  %v20835_v4 = vld [vmem:[#allocation74_spill] sm:$0xff]  ;;  %v20836_v0 = vld [vmem:[#allocation75_spill] sm:$0xff] }
 0x56f   : > { %9274 = vmatprep.subr.bf16.mxu0 %v20676_v2  ;;  %v15906_v30 = vld [vmem:[#allocation4 + $0xd24] ss:$20 sps:$4 sm:$0xff]  }
 0x570   : > { %9145 = vmatmul.mubr.bf16.vlgmr.msra.gmra.mrb[132].mxu1 %v20834_v27 }
 0x571   : > { %9226 = vmatmul.mubr.bf16.vlgmr.msra.gmra.mrb[152].mxu0 %v20834_v27  ;;  %9449 = vmatpush1.bf16.msra.mxu1 %v15898_v55 }
 0x572   : > { %9275 = vmatpush1.bf16.msra.mxu0 %v15899_v43  ;;  %9450 = vmatprep.subr.bf16.mxu1 %v15900_v3  ;;  %v15907_v3 = vld [vmem:[#allocation4 + $0xd20] ss:$20 sps:$4 sm:$0xff]  }
 0x573   : > { %v8487_v6 = vpop.f32.mrb[188].mxu1  ;;  %9276 = vmatprep.subr.bf16.mxu0 %v20676_v2  ;;  %13674 = vmatprep.mubr.msk.bf16.mxu1 %vm1007_vm1, %v20835_v4 }
 0x574   : > { %v18978_v25 = vadd.f32 %v8487_v6, %v18909_v22  ;;  %v8489_v17 = vpop.f32.mrb[189].mxu1  ;;  %13680 = vmatprep.mubr.msk.bf16.mxu0 %vm1007_vm1, %v20835_v4  ;;  %v15904_v22 = vld [vmem:[#allocation4 + $0xcf8] ss:$20 sps:$4 sm:$0xff]  }
 0x575   : > { %v8490_v8 = vpop.f32.mrb[190].mxu1  ;;  %9451 = vmatpush1.bf16.msra.mxu1 %v15901_v49  ;;  %v15908_v17 = vld [vmem:[#allocation4 + $0xb14] ss:$20 sps:$4 sm:$0xff]  }
 0x576   : > { %v18983_v53 = vadd.f32 %v8490_v8, %v18912_v29  ;;  %9277 = vmatpush1.bf16.msra.mxu0 %v15902_v42  ;;  %9452 = vmatprep.subr.bf16.mxu1 %v15903_v11  ;;  %v8492_v51 = vpop.f32.mrb[191].mxu1  ;;  %v20837_v29 = vld [vmem:[#allocation76_spill] sm:$0xff]  ;;  %v20838_v42 = vld [vmem:[#allocation78_spill] sm:$0xff] }
 0x577   : > { %9278 = vmatprep.subr.bf16.mxu0 %v20676_v2  ;;  %v15909_v8 = vld [vmem:[#allocation4 + $0xd4c] ss:$20 sps:$4 sm:$0xff]   ;;  %v15911_v11 = vld [vmem:[#allocation4 + $0xb3c] ss:$20 sps:$4 sm:$0xff]   ;;  %v15912_v51 = vld [vmem:[#allocation4 + $0xd74] ss:$20 sps:$4 sm:$0xff]  }
 0x578   : > { %9155 = vmatmul.mubr.bf16.gmra.mrb[136].mxu1 %v20836_v0 }
 0x579   : > { %9236 = vmatmul.mubr.bf16.gmra.mrb[156].mxu0 %v20836_v0  ;;  %9453 = vmatpush1.bf16.msra.mxu1 %v15904_v22 }
 0x57a   : > { %9279 = vmatpush1.bf16.msra.mxu0 %v15905_v18  ;;  %9454 = vmatprep.subr.bf16.mxu1 %v15906_v30 }
 0x57b   : > { %v8495_v24 = vpop.f32.mrb[192].mxu1  ;;  %9280 = vmatprep.subr.bf16.mxu0 %v20676_v2  ;;  %13675 = vmatprep.mubr.msk.bf16.mxu1 %vm1007_vm1, %v20837_v29 }
 0x57c   : > { %v18992_v61 = vadd.f32 %v8495_v24, %v18921_v63  ;;  %v8497_v55 = vpop.f32.mrb[193].mxu1  ;;  %13681 = vmatprep.mubr.msk.bf16.mxu0 %vm1007_vm1, %v20837_v29  ;;  %v15910_v63 = vld [vmem:[#allocation4 + $0xd48] ss:$20 sps:$4 sm:$0xff]  }
 0x57d   : > { %v8498_v43 = vpop.f32.mrb[194].mxu1  ;;  %9455 = vmatpush1.bf16.msra.mxu1 %v15907_v3  ;;  %v15913_v3 = vld [vmem:[#allocation4 + $0xd70] ss:$20 sps:$4 sm:$0xff]  }
 0x57e   : > { %v18997_v6 = vadd.f32 %v8498_v43, %v18924_v46  ;;  %9281 = vmatpush1.bf16.msra.mxu0 %v15908_v17  ;;  %9456 = vmatprep.subr.bf16.mxu1 %v15909_v8  ;;  %v8500_v49 = vpop.f32.mrb[195].mxu1  ;;  %v20839_v46 = vld [vmem:[#allocation79_spill] sm:$0xff] }
 0x57f   : > { %9282 = vmatprep.subr.bf16.mxu0 %v20676_v2  ;;  %v15914_v49 = vld [vmem:[#allocation4 + $0xb64] ss:$20 sps:$4 sm:$0xff]  }
 0x580   : > { %9165 = vmatmul.mubr.bf16.gmra.mrb[140].mxu1 %v20838_v42 }
 0x581   : > { %9246 = vmatmul.mubr.bf16.gmra.mrb[160].mxu0 %v20838_v42  ;;  %9457 = vmatpush1.bf16.msra.mxu1 %v15910_v63  ;;  %v15915_v63 = vld [vmem:[#allocation4 + $0xd9c] ss:$20 sps:$4 sm:$0xff]  }
 0x582   : > { %9283 = vmatpush1.bf16.msra.mxu0 %v15911_v11  ;;  %9458 = vmatprep.subr.bf16.mxu1 %v15912_v51 }
 0x583   : > { %v8503_v22 = vpop.f32.mrb[196].mxu1  ;;  %9284 = vmatprep.subr.bf16.mxu0 %v20676_v2  ;;  %13676 = vmatprep.mubr.msk.bf16.mxu1 %vm1007_vm1, %v20839_v46 }
 0x584   : > { %v8430_v18 = vpop.f32.mrb[196].mxu0  ;;  %v19006_v30 = vadd.f32 %v8503_v22, %v18936_v28  ;;  %13682 = vmatprep.mubr.msk.bf16.mxu0 %vm1007_vm1, %v20839_v46  ;;  %v8505_v24 = vpop.f32.mrb[197].mxu1  ;;  %v20840_v22 = vld [vmem:[#allocation81_spill] sm:$0xff] }
 0x585   : > { %v19011_v55 = vadd.f32 %v8430_v18, %v18818_v62  ;;  %v8432_v43 = vpop.f32.mrb[197].mxu0  ;;  %9459 = vmatpush1.bf16.msra.mxu1 %v15913_v3  ;;  %v8506_v17 = vpop.f32.mrb[198].mxu1  ;;  %v15916_v62 = vld [vmem:[#allocation4 + $0xd98] ss:$20 sps:$4 sm:$0xff]   ;;  %v15920_v3 = vld [vmem:[#allocation4 + $0xbb4] ss:$20 sps:$4 sm:$0xff]  }
 0x586   : > { %v19014_v8 = vadd.f32 %v8432_v43, %v18826_v10  ;;  %9285 = vmatpush1.bf16.msra.mxu0 %v15914_v49  ;;  %9460 = vmatprep.subr.bf16.mxu1 %v15915_v63  ;;  %v8434_v28 = vpop.f32.mrb[198].mxu0  ;;  %v8507_v11 = vpop.f32.mrb[199].mxu1  ;;  %v15917_v18 = vld [vmem:[#allocation4 + $0xb8c] ss:$20 sps:$4 sm:$0xff]   ;;  %v15918_v10 = vld [vmem:[#allocation4 + $0xdc4] ss:$20 sps:$4 sm:$0xff]  }
 0x587   : > { %9286 = vmatprep.subr.bf16.mxu0 %v20676_v2  ;;  %v8435_v51 = vpop.f32.mrb[199].mxu0  ;;  %v20841_v24 = vld [vmem:[#allocation77_spill] sm:$0xff]  ;;  %v20842_v49 = vld [vmem:[#allocation80_spill] sm:$0xff] }
 0x588   : > { %9175 = vmatmul.mubr.bf16.gmra.mrb[144].mxu1 %v20840_v22  ;;  %v15919_v43 = vld [vmem:[#allocation4 + $0xdc0] ss:$20 sps:$4 sm:$0xff]   ;;  %v19027_v63 = vld [vmem:[%s16610_s28 + $0xdc] ss:$8 sps:$4 sm:$0xff]  }
 0x589   : > { %9256 = vmatmul.mubr.bf16.gmra.mrb[164].mxu0 %v20840_v22  ;;  %9461 = vmatpush1.bf16.msra.mxu1 %v15916_v62  ;;  %v15921_v17 = vld [vmem:[#allocation4 + $0xdec] ss:$20 sps:$4 sm:$0xff]   ;;  %v15922_v28 = vld [vmem:[#allocation4 + $0xde8] ss:$20 sps:$4 sm:$0xff]   ;;  %v15925_v62 = vld [vmem:[#allocation4 + $0xe10] ss:$20 sps:$4 sm:$0xff]  }
 0x58a   : > { %9287 = vmatpush1.bf16.msra.mxu0 %v15917_v18  ;;  %9462 = vmatprep.subr.bf16.mxu1 %v15918_v10  ;;  %v15923_v11 = vld [vmem:[#allocation4 + $0xbdc] ss:$20 sps:$4 sm:$0xff]   ;;  %v15924_v51 = vld [vmem:[#allocation4 + $0xe14] ss:$20 sps:$4 sm:$0xff]   ;;  %v15926_v18 = vld [vmem:[#allocation4 + $0xc04] ss:$20 sps:$4 sm:$0xff]  }
 0x58b   : > { %9288 = vmatprep.subr.bf16.mxu0 %v20676_v2  ;;  %13677 = vmatprep.mubr.msk.bf16.mxu1 %vm1007_vm1, %v20841_v24  ;;  %v15927_v10 = vld [vmem:[#allocation4 + $0xe3c] ss:$20 sps:$4 sm:$0xff]  }
 0x58c   : > { %13683 = vmatprep.mubr.msk.bf16.mxu0 %vm1007_vm1, %v20841_v24 }
 0x58d   : > { %9463 = vmatpush1.bf16.msra.mxu1 %v15919_v43  ;;  %v15928_v43 = vld [vmem:[#allocation4 + $0xe38] ss:$20 sps:$4 sm:$0xff]  }
 0x58e   : > { %9289 = vmatpush1.bf16.msra.mxu0 %v15920_v3  ;;  %9464 = vmatprep.subr.bf16.mxu1 %v15921_v17  ;;  %v15929_v3 = vld [vmem:[#allocation4 + $0xc2c] ss:$20 sps:$4 sm:$0xff]   ;;  %v15930_v17 = vld [vmem:[#allocation4 + $0xe64] ss:$20 sps:$4 sm:$0xff]  }
 0x58f   : > { %9290 = vmatprep.subr.bf16.mxu0 %v20676_v2 }
 0x590   : > { %9185 = vmatmul.mubr.bf16.gmra.mrb[228].mxu1 %v20842_v49 }
 0x591   : > { %9266 = vmatmul.mubr.bf16.gmra.mrb[228].mxu0 %v20842_v49  ;;  %9465 = vmatpush1.bf16.msra.mxu1 %v15922_v28  ;;  %v15932_v28 = vld [vmem:[#allocation4 + $0xc54] ss:$20 sps:$4 sm:$0xff]  }
 0x592   : > { %9291 = vmatpush1.bf16.msra.mxu0 %v15923_v11  ;;  %9466 = vmatprep.subr.bf16.mxu1 %v15924_v51  ;;  %v15933_v11 = vld [vmem:[#allocation4 + $0xe8c] ss:$20 sps:$4 sm:$0xff]   ;;  %v15934_v51 = vld [vmem:[#allocation4 + $0xe88] ss:$20 sps:$4 sm:$0xff]  }
 0x593   : > { %9292 = vmatprep.subr.bf16.mxu0 %v20676_v2  ;;  %13684 = vmatprep.mubr.msk.bf16.mxu0 %vm1007_vm1, %v20829_v44  ;;  %v15931_v44 = vld [vmem:[#allocation4 + $0xe60] ss:$20 sps:$4 sm:$0xff]  }
 0x594   : > { %13700 = vmatprep.mubr.msk.bf16.mxu1 %vm1007_vm1, %v19027_v63 }
 0x595   : > { %9467 = vmatpush1.bf16.msra.mxu1 %v15925_v62  ;;  %v15935_v62 = vld [vmem:[#allocation4 + $0xc7c] ss:$20 sps:$4 sm:$0xff]  }
 0x596   : > { %9293 = vmatpush1.bf16.msra.mxu0 %v15926_v18  ;;  %9468 = vmatprep.subr.bf16.mxu1 %v15927_v10  ;;  %v20843_v18 = vld [vmem:[#allocation50_spill] sm:$0xff] }
 0x597   : > { %9294 = vmatprep.subr.bf16.mxu0 %v20676_v2  ;;  %v19042_v10 = vld [vmem:[%s16610_s28 + $0xd8] ss:$8 sps:$4 sm:$0xff]  }
 0x599   : > { %9469 = vmatpush1.bf16.msra.mxu1 %v15928_v43  ;;  %v20844_v43 = vld [vmem:[#allocation52_spill] sm:$0xff] }
 0x59a   : > { %9295 = vmatpush1.bf16.msra.mxu0 %v15929_v3  ;;  %9470 = vmatprep.subr.bf16.mxu1 %v15930_v17  ;;  %v20845_v3 = vld [vmem:[#allocation49_spill] sm:$0xff] }
 0x59b   : > { %9296 = vmatprep.subr.bf16.mxu0 %v20676_v2  ;;  %v15936_v17 = vld [vmem:[#allocation4 + $0xcb4] ss:$20 sps:$4 sm:$0xff]  }
 0x59d   : > { %9471 = vmatpush1.bf16.msra.mxu1 %v15931_v44  ;;  %v19049_v44 = vld [vmem:[%s16610_s28 + $0xec] ss:$8 sps:$4 sm:$0xff]  }
 0x59e   : > { %9297 = vmatpush1.bf16.msra.mxu0 %v15932_v28  ;;  %9472 = vmatprep.subr.bf16.mxu1 %v15933_v11  ;;  %v15937_v28 = vld [vmem:[#allocation4 + $0xcb8] ss:$20 sps:$4 sm:$0xff]   ;;  %v15938_v11 = vld [vmem:[#allocation4 + $0xcb0] ss:$20 sps:$4 sm:$0xff]  }
 0x59f   : > { %9298 = vmatprep.subr.bf16.mxu0 %v20676_v2 }
 0x5a1   : > { %9473 = vmatpush1.bf16.msra.mxu1 %v15934_v51  ;;  %v15939_v51 = vld [vmem:[#allocation4 + $0xcdc] ss:$20 sps:$4 sm:$0xff]  }
 0x5a2   : > { %9299 = vmatpush1.bf16.msra.mxu0 %v15935_v62  ;;  %13699 = vmatprep.subr.msk.bf16.mxu1 %vm1023_vm2, %v20843_v18  ;;  %v19058_v62 = vld [vmem:[%s16610_s28 + $0xe8] ss:$8 sps:$4 sm:$0xff]   ;;  %v15940_v18 = vld [vmem:[#allocation4 + $0xce0] ss:$20 sps:$4 sm:$0xff]  }
 0x5a3   : > { %9300 = vmatprep.subr.bf16.mxu0 %v20676_v2 }
 0x5a5   : > { %9475 = vmatpush1.bf16.msra.mxu1 %v20844_v43  ;;  %v15942_v43 = vld [vmem:[#allocation4 + $0xd04] ss:$20 sps:$4 sm:$0xff]  }
 0x5a6   : > { %9301 = vmatpush1.bf16.msra.mxu0 %v20845_v3  ;;  %9610 = vmatprep.subr.bf16.mxu1 %v20676_v2  ;;  %v19063_v3 = vld [vmem:[%s16610_s28 + $0xfc] ss:$8 sps:$4 sm:$0xff]  }
 0x5a7   : > { %9529 = vmatprep.subr.bf16.mxu0 %v15936_v17  ;;  %v15944_v17 = vld [vmem:[#allocation4 + $0xd00] ss:$20 sps:$4 sm:$0xff]  }
 0x5a8   : > { %9481 = vmatmul.mubr.bf16.vlgmr.msra.gmra.mrb[132].mxu1 %v19042_v10 }
 0x5a9   : > { %9307 = vmatmul.mubr.bf16.vlgmr.msra.gmra.mrb[232].mxu0 %v20834_v27  ;;  %9611 = vmatpush1.bf16.msra.mxu1 %v15937_v28  ;;  %v15941_v27 = vld [vmem:[#allocation4 + $0xcd8] ss:$20 sps:$4 sm:$0xff]  }
 0x5aa   : > { %9530 = vmatpush1.bf16.msra.mxu0 %v15938_v11  ;;  %9612 = vmatprep.subr.bf16.mxu1 %v20676_v2  ;;  %v15945_v28 = vld [vmem:[#allocation4 + $0xd2c] ss:$20 sps:$4 sm:$0xff]  }
 0x5ab   : > { %9531 = vmatprep.subr.bf16.mxu0 %v15939_v51  ;;  %13685 = vmatprep.mubr.msk.bf16.mxu0 %vm1007_vm1, %v20835_v4  ;;  %v15943_v4 = vld [vmem:[#allocation4 + $0xd08] ss:$20 sps:$4 sm:$0xff]   ;;  %v19072_v11 = vld [vmem:[%s16610_s28 + $0xf8] ss:$8 sps:$4 sm:$0xff]   ;;  %v15946_v51 = vld [vmem:[#allocation4 + $0xd30] ss:$20 sps:$4 sm:$0xff]  }
 0x5ac   : > { %13701 = vmatprep.mubr.msk.bf16.mxu1 %vm1007_vm1, %v19049_v44 }
 0x5ad   : > { %9613 = vmatpush1.bf16.msra.mxu1 %v15940_v18  ;;  %v15948_v18 = vld [vmem:[#allocation4 + $0xd54] ss:$20 sps:$4 sm:$0xff]  }
 0x5ae   : > { %9532 = vmatpush1.bf16.msra.mxu0 %v15941_v27  ;;  %9614 = vmatprep.subr.bf16.mxu1 %v20676_v2  ;;  %v19077_v27 = vld [vmem:[%s16610_s28 + $0x10c] ss:$8 sps:$4 sm:$0xff]  }
 0x5af   : > { %9533 = vmatprep.subr.bf16.mxu0 %v15942_v43  ;;  %v15950_v43 = vld [vmem:[#allocation4 + $0xd50] ss:$20 sps:$4 sm:$0xff]  }
 0x5b0   : > { %9491 = vmatmul.mubr.bf16.gmra.mrb[136].mxu1 %v19058_v62 }
 0x5b1   : > { %9315 = vmatmul.mubr.bf16.gmra.mrb[236].mxu0 %v20836_v0  ;;  %9615 = vmatpush1.bf16.msra.mxu1 %v15943_v4  ;;  %v15947_v0 = vld [vmem:[#allocation4 + $0xd28] ss:$20 sps:$4 sm:$0xff]  }
 0x5b2   : > { %9534 = vmatpush1.bf16.msra.mxu0 %v15944_v17  ;;  %9616 = vmatprep.subr.bf16.mxu1 %v20676_v2  ;;  %v15951_v17 = vld [vmem:[#allocation4 + $0xd7c] ss:$20 sps:$4 sm:$0xff]  }
 0x5b3   : > { %9535 = vmatprep.subr.bf16.mxu0 %v15945_v28  ;;  %13686 = vmatprep.mubr.msk.bf16.mxu0 %vm1007_vm1, %v20837_v29  ;;  %v15949_v29 = vld [vmem:[#allocation4 + $0xd58] ss:$20 sps:$4 sm:$0xff]  }
 0x5b4   : > { %13702 = vmatprep.mubr.msk.bf16.mxu1 %vm1007_vm1, %v19063_v3 }
 0x5b5   : > { %9617 = vmatpush1.bf16.msra.mxu1 %v15946_v51 }
 0x5b6   : > { %9536 = vmatpush1.bf16.msra.mxu0 %v15947_v0  ;;  %9618 = vmatprep.subr.bf16.mxu1 %v20676_v2 }
 0x5b7   : > { %9537 = vmatprep.subr.bf16.mxu0 %v15948_v18 }
 0x5b8   : > { %9501 = vmatmul.mubr.bf16.gmra.mrb[140].mxu1 %v19072_v11 }
 0x5b9   : > { %9323 = vmatmul.mubr.bf16.gmra.mrb[240].mxu0 %v20838_v42  ;;  %9619 = vmatpush1.bf16.msra.mxu1 %v15949_v29  ;;  %v19089_v42 = vld [vmem:[%s16610_s28 + $0x108] ss:$8 sps:$4 sm:$0xff]  }
 0x5ba   : > { %9538 = vmatpush1.bf16.msra.mxu0 %v15950_v43  ;;  %9620 = vmatprep.subr.bf16.mxu1 %v20676_v2 }
 0x5bb   : > { %v8628_v4 = vpop.f32.mrb[200].mxu1  ;;  %9539 = vmatprep.subr.bf16.mxu0 %v15951_v17  ;;  %13687 = vmatprep.mubr.msk.bf16.mxu0 %vm1007_vm1, %v20839_v46  ;;  %v15952_v17 = vld [vmem:[#allocation4 + $0xd80] ss:$20 sps:$4 sm:$0xff]   ;;  %v12773_v46 = vld [vmem:[%s16610_s28 + $0x118] sm:$0xff] }
 0x5bc   : > { %v19084_v28 = vadd.f32 %v8628_v4, %v18931_v54  ;;  %v8709_v51 = vpop.f32.mrb[200].mxu0  ;;  %v8630_v0 = vpop.f32.mrb[201].mxu1  ;;  %13703 = vmatprep.mubr.msk.bf16.mxu1 %vm1007_vm1, %v19077_v27  ;;  %v15953_v4 = vld [vmem:[#allocation4 + $0xd78] ss:$20 sps:$4 sm:$0xff]  }
 0x5bd   : > { %v19092_v18 = vadd.f32 %v8709_v51, %v19011_v55  ;;  %v19095_v29 = vadd.f32 %v8630_v0, %v18939_v52  ;;  %v8711_v43 = vpop.f32.mrb[201].mxu0  ;;  %9621 = vmatpush1.bf16.msra.mxu1 %v15952_v17  ;;  %v8632_v40 = vpop.f32.mrb[202].mxu1  ;;  %v19103_v52 = vcombine.high %v12773_v46, %v12773_v46  ;;  %v15955_v51 = vld [vmem:[#allocation4 + $0xda8] ss:$20 sps:$4 sm:$0xff]   ;;  %v15961_v0 = vld [vmem:[#allocation4 + $0xdf8] ss:$20 sps:$4 sm:$0xff]  }
 0x5be   : > { %v19099_v54 = vadd.f32 %v8711_v43, %v19014_v8  ;;  %9540 = vmatpush1.bf16.msra.mxu0 %v15953_v4  ;;  %9622 = vmatprep.subr.bf16.mxu1 %v20676_v2  ;;  %v8713_v5 = vpop.f32.mrb[202].mxu0  ;;  %v8633_v47 = vpop.f32.mrb[203].mxu1  ;;  %v15956_v40 = vld [vmem:[#allocation4 + $0xda0] ss:$20 sps:$4 sm:$0xff]   ;;  %v15963_v43 = vld [vmem:[#allocation4 + $0xe1c] ss:$20 sps:$4 sm:$0xff]  }
 0x5bf   : > { %9541 = vmatprep.subr.bf16.mxu0 %v15954_v39  ;;  %v8714_v55 = vpop.f32.mrb[203].mxu0  ;;  %v15957_v8 = vld [vmem:[#allocation4 + $0xdcc] ss:$20 sps:$4 sm:$0xff]   ;;  %v19111_v39 = vcombine.low %v12773_v46, %v12773_v46  ;;  %v15958_v47 = vld [vmem:[#allocation4 + $0xdd0] ss:$20 sps:$4 sm:$0xff]  }
 0x5c0   : > { %9511 = vmatmul.mubr.bf16.gmra.mrb[144].mxu1 %v19089_v42  ;;  %v15959_v5 = vld [vmem:[#allocation4 + $0xdc8] ss:$20 sps:$4 sm:$0xff]   ;;  %v15964_v17 = vld [vmem:[#allocation4 + $0xe20] ss:$20 sps:$4 sm:$0xff]   ;;  %v15965_v46 = vld [vmem:[#allocation4 + $0xe18] ss:$20 sps:$4 sm:$0xff]  }
 0x5c1   : > { %9331 = vmatmul.mubr.bf16.gmra.mrb[244].mxu0 %v20840_v22  ;;  %9623 = vmatpush1.bf16.msra.mxu1 %v15955_v51  ;;  %v15960_v22 = vld [vmem:[#allocation4 + $0xdf4] ss:$20 sps:$4 sm:$0xff]   ;;  %v15969_v51 = vld [vmem:[#allocation4 + $0xe6c] ss:$20 sps:$4 sm:$0xff]   ;;  %v9783_v32 = vshll.u32 %v19111_v39, 16 }
 0x5c2   : > { %9542 = vmatpush1.bf16.msra.mxu0 %v15956_v40  ;;  %9624 = vmatprep.subr.bf16.mxu1 %v20676_v2  ;;  %v15967_v4 = vld [vmem:[#allocation4 + $0xe48] ss:$20 sps:$4 sm:$0xff]   ;;  %v15968_v55 = vld [vmem:[#allocation4 + $0xe40] ss:$20 sps:$4 sm:$0xff]  }
 0x5c3   : > { %9543 = vmatprep.subr.bf16.mxu0 %v15957_v8  ;;  %13688 = vmatprep.mubr.msk.bf16.mxu0 %vm1007_vm1, %v20841_v24  ;;  %v15962_v24 = vld [vmem:[#allocation4 + $0xdf0] ss:$20 sps:$4 sm:$0xff]  }
 0x5c4   : > { %13704 = vmatprep.mubr.msk.bf16.mxu1 %vm1007_vm1, %v19103_v52 }
 0x5c5   : > { %9625 = vmatpush1.bf16.msra.mxu1 %v15958_v47 }
 0x5c6   : > { %9544 = vmatpush1.bf16.msra.mxu0 %v15959_v5  ;;  %9626 = vmatprep.subr.bf16.mxu1 %v20676_v2  ;;  %v15970_v5 = vld [vmem:[#allocation4 + $0xe70] ss:$20 sps:$4 sm:$0xff]  }
 0x5c7   : > { %9545 = vmatprep.subr.bf16.mxu0 %v15960_v22 }
 0x5c8   : > { %9521 = vmatmul.mubr.bf16.gmra.mrb[232].mxu1 %v19111_v39 }
 0x5c9   : > { %9339 = vmatmul.mubr.bf16.gmra.mrb[248].mxu0 %v20842_v49  ;;  %9627 = vmatpush1.bf16.msra.mxu1 %v15961_v0  ;;  %v15966_v49 = vld [vmem:[#allocation4 + $0xe44] ss:$20 sps:$4 sm:$0xff]   ;;  %v15971_v0 = vld [vmem:[#allocation4 + $0xe68] ss:$20 sps:$4 sm:$0xff]  }
 0x5ca   : > { %9546 = vmatpush1.bf16.msra.mxu0 %v15962_v24  ;;  %9628 = vmatprep.subr.bf16.mxu1 %v20676_v2 }
 0x5cb   : > { %9547 = vmatprep.subr.bf16.mxu0 %v15963_v43  ;;  %13706 = vmatprep.mubr.msk.bf16.mxu0 %vm1007_vm1, %v19027_v63 }
 0x5cc   : > { %13711 = vmatprep.mubr.msk.bf16.mxu1 %vm1007_vm1, %v19027_v63 }
 0x5cd   : > { %9629 = vmatpush1.bf16.msra.mxu1 %v15964_v17  ;;  %v15972_v17 = vld [vmem:[#allocation4 + $0xe94] ss:$20 sps:$4 sm:$0xff]  }
 0x5ce   : > { %9548 = vmatpush1.bf16.msra.mxu0 %v15965_v46  ;;  %9630 = vmatprep.subr.bf16.mxu1 %v20676_v2  ;;  %v15973_v46 = vld [vmem:[#allocation4 + $0xe98] ss:$20 sps:$4 sm:$0xff]  }
 0x5cf   : > { %9549 = vmatprep.subr.bf16.mxu0 %v15966_v49  ;;  %v15974_v49 = vld [vmem:[#allocation4 + $0xe90] ss:$20 sps:$4 sm:$0xff]  }
 0x5d1   : > { %9631 = vmatpush1.bf16.msra.mxu1 %v15967_v4 }
 0x5d2   : > { %9550 = vmatpush1.bf16.msra.mxu0 %v15968_v55  ;;  %9632 = vmatprep.subr.bf16.mxu1 %v20676_v2 }
 0x5d3   : > { %9551 = vmatprep.subr.bf16.mxu0 %v15969_v51 }
 0x5d4   : > { %v8750_v40 = vpop.f32.mrb[204].mxu0 }
 0x5d5   : > { %v19124_v8 = vadd.f32 %v8750_v40, %v18954_v58  ;;  %v8752_v47 = vpop.f32.mrb[205].mxu0  ;;  %9633 = vmatpush1.bf16.msra.mxu1 %v15970_v5  ;;  %v20846_v58 = vld [vmem:[#allocation51_spill] sm:$0xff] }
 0x5d6   : > { %v8753_v22 = vpop.f32.mrb[206].mxu0  ;;  %9552 = vmatpush1.bf16.msra.mxu0 %v15971_v0  ;;  %9634 = vmatprep.subr.bf16.mxu1 %v20676_v2  ;;  %v20847_v40 = vld [vmem:[#allocation55_spill] sm:$0xff]  ;;  %v20848_v47 = vld [vmem:[#allocation53_spill] sm:$0xff] }
 0x5d7   : > { %v19128_v24 = vadd.f32 %v8753_v22, %v18957_v41  ;;  %v8755_v43 = vpop.f32.mrb[207].mxu0  ;;  %9553 = vmatprep.subr.bf16.mxu0 %v15972_v17  ;;  %v15975_v5 = vld [vmem:[#allocation4 + $0xec8] ss:$20 sps:$4 sm:$0xff]   ;;  %v15976_v0 = vld [vmem:[#allocation4 + $0xed0] ss:$20 sps:$4 sm:$0xff]  }
 0x5d8   : > { %v15978_v17 = vld [vmem:[#allocation4 + $0xecc] ss:$20 sps:$4 sm:$0xff]  }
 0x5d9   : > { %9635 = vmatpush1.bf16.msra.mxu1 %v15973_v46  ;;  %v15979_v46 = vld [vmem:[#allocation4 + $0xef0] ss:$20 sps:$4 sm:$0xff]  }
 0x5da   : > { %9554 = vmatpush1.bf16.msra.mxu0 %v15974_v49  ;;  %9636 = vmatprep.subr.bf16.mxu1 %v20676_v2  ;;  %v15980_v49 = vld [vmem:[#allocation4 + $0xef8] ss:$20 sps:$4 sm:$0xff]  }
 0x5db   : > { %13705 = vmatprep.subr.msk.bf16.mxu0 %vm1023_vm2, %v20846_v58 }
 0x5dc   : > { %v8758_v4 = vpop.f32.mrb[208].mxu0 }
 0x5dd   : > { %v19134_v55 = vadd.f32 %v8758_v4, %v18964_v45  ;;  %v8760_v51 = vpop.f32.mrb[209].mxu0  ;;  %9637 = vmatpush1.bf16.msra.mxu1 %v20847_v40  ;;  %v15977_v45 = vld [vmem:[#allocation4 + $0xec4] ss:$20 sps:$4 sm:$0xff]  }
 0x5de   : > { %v8761_v41 = vpop.f32.mrb[210].mxu0  ;;  %9556 = vmatpush1.bf16.msra.mxu0 %v20848_v47  ;;  %9820 = vmatprep.subr.bf16.mxu1 %v15975_v5  ;;  %v15981_v51 = vld [vmem:[#allocation4 + $0xeec] ss:$20 sps:$4 sm:$0xff]  }
 0x5df   : > { %v19139_v22 = vadd.f32 %v8761_v41, %v18968_v37  ;;  %9901 = vmatprep.subr.bf16.mxu0 %v15976_v0  ;;  %v8763_v43 = vpop.f32.mrb[211].mxu0  ;;  %v15982_v41 = vld [vmem:[#allocation4 + $0xef4] ss:$20 sps:$4 sm:$0xff]   ;;  %v15983_v47 = vld [vmem:[#allocation4 + $0xf18] ss:$20 sps:$4 sm:$0xff]  }
 0x5e0   : > { %9643 = vmatmul.mubr.bf16.vlgmr.msra.gmra.mrb[236].mxu1 %v19042_v10  ;;  %v15984_v0 = vld [vmem:[#allocation4 + $0xf20] ss:$20 sps:$4 sm:$0xff]  }
 0x5e1   : > { %9562 = vmatmul.mubr.bf16.vlgmr.msra.gmra.mrb[152].mxu0 %v19042_v10  ;;  %9821 = vmatpush1.bf16.msra.mxu1 %v15977_v45  ;;  %v15986_v45 = vld [vmem:[#allocation4 + $0xf1c] ss:$20 sps:$4 sm:$0xff]  }
 0x5e2   : > { %9902 = vmatpush1.bf16.msra.mxu0 %v15978_v17  ;;  %9822 = vmatprep.subr.bf16.mxu1 %v15979_v46  ;;  %v15987_v17 = vld [vmem:[#allocation4 + $0xf40] ss:$20 sps:$4 sm:$0xff]   ;;  %v15988_v46 = vld [vmem:[#allocation4 + $0xf48] ss:$20 sps:$4 sm:$0xff]  }
 0x5e3   : > { %9903 = vmatprep.subr.bf16.mxu0 %v15980_v49  ;;  %13707 = vmatprep.mubr.msk.bf16.mxu0 %vm1007_vm1, %v19049_v44 }
 0x5e4   : > { %v8766_v37 = vpop.f32.mrb[212].mxu0  ;;  %13712 = vmatprep.mubr.msk.bf16.mxu1 %vm1007_vm1, %v19049_v44 }
 0x5e5   : > { %v19148_v58 = vadd.f32 %v8766_v37, %v18978_v25  ;;  %v8768_v4 = vpop.f32.mrb[213].mxu0  ;;  %9823 = vmatpush1.bf16.msra.mxu1 %v15981_v51  ;;  %v15985_v25 = vld [vmem:[#allocation4 + $0xf14] ss:$20 sps:$4 sm:$0xff]  }
 0x5e6   : > { %v8769_v40 = vpop.f32.mrb[214].mxu0  ;;  %9904 = vmatpush1.bf16.msra.mxu0 %v15982_v41  ;;  %9824 = vmatprep.subr.bf16.mxu1 %v15983_v47  ;;  %v15989_v4 = vld [vmem:[#allocation4 + $0xf3c] ss:$20 sps:$4 sm:$0xff]  }
 0x5e7   : > { %v19151_v5 = vadd.f32 %v8769_v40, %v18983_v53  ;;  %9905 = vmatprep.subr.bf16.mxu0 %v15984_v0  ;;  %v8771_v43 = vpop.f32.mrb[215].mxu0  ;;  %v15990_v40 = vld [vmem:[#allocation4 + $0xf44] ss:$20 sps:$4 sm:$0xff]   ;;  %v15991_v41 = vld [vmem:[#allocation4 + $0xf68] ss:$20 sps:$4 sm:$0xff]  }
 0x5e8   : > { %9651 = vmatmul.mubr.bf16.gmra.mrb[240].mxu1 %v19058_v62  ;;  %v15992_v0 = vld [vmem:[#allocation4 + $0xf70] ss:$20 sps:$4 sm:$0xff]  }
 0x5e9   : > { %9572 = vmatmul.mubr.bf16.gmra.mrb[156].mxu0 %v19058_v62  ;;  %9825 = vmatpush1.bf16.msra.mxu1 %v15985_v25  ;;  %v15994_v25 = vld [vmem:[#allocation4 + $0xf6c] ss:$20 sps:$4 sm:$0xff]  }
 0x5ea   : > { %9906 = vmatpush1.bf16.msra.mxu0 %v15986_v45  ;;  %9826 = vmatprep.subr.bf16.mxu1 %v15987_v17  ;;  %v15995_v45 = vld [vmem:[#allocation4 + $0xf90] ss:$20 sps:$4 sm:$0xff]  }
 0x5eb   : > { %9907 = vmatprep.subr.bf16.mxu0 %v15988_v46  ;;  %13708 = vmatprep.mubr.msk.bf16.mxu0 %vm1007_vm1, %v19063_v3  ;;  %v15996_v46 = vld [vmem:[#allocation4 + $0xf98] ss:$20 sps:$4 sm:$0xff]  }
 0x5ec   : > { %v8774_v53 = vpop.f32.mrb[216].mxu0  ;;  %13713 = vmatprep.mubr.msk.bf16.mxu1 %vm1007_vm1, %v19063_v3 }
 0x5ed   : > { %v19160_v49 = vadd.f32 %v8774_v53, %v18992_v61  ;;  %v8776_v37 = vpop.f32.mrb[217].mxu0  ;;  %9827 = vmatpush1.bf16.msra.mxu1 %v15989_v4  ;;  %v15993_v61 = vld [vmem:[#allocation4 + $0xf64] ss:$20 sps:$4 sm:$0xff]   ;;  %v9741_v4 = vshll.u32 %v19027_v63, 16 }
 0x5ee   : > { %v8777_v51 = vpop.f32.mrb[218].mxu0  ;;  %9908 = vmatpush1.bf16.msra.mxu0 %v15990_v40  ;;  %9828 = vmatprep.subr.bf16.mxu1 %v15991_v41  ;;  %v15997_v41 = vld [vmem:[#allocation4 + $0xf8c] ss:$20 sps:$4 sm:$0xff]  }
 0x5ef   : > { %v19163_v47 = vadd.f32 %v8777_v51, %v18997_v6  ;;  %9909 = vmatprep.subr.bf16.mxu0 %v15992_v0  ;;  %v8779_v43 = vpop.f32.mrb[219].mxu0 }
 0x5f0   : > { %9659 = vmatmul.mubr.bf16.gmra.mrb[244].mxu1 %v19072_v11 }
 0x5f1   : > { %9582 = vmatmul.mubr.bf16.gmra.mrb[160].mxu0 %v19072_v11  ;;  %9829 = vmatpush1.bf16.msra.mxu1 %v15993_v61  ;;  %v15998_v61 = vld [vmem:[#allocation4 + $0xf94] ss:$20 sps:$4 sm:$0xff]  }
 0x5f2   : > { %9910 = vmatpush1.bf16.msra.mxu0 %v15994_v25  ;;  %9830 = vmatprep.subr.bf16.mxu1 %v15995_v45 }
 0x5f3   : > { %v8907_v17 = vpop.f32.mrb[204].mxu1  ;;  %9911 = vmatprep.subr.bf16.mxu0 %v15996_v46  ;;  %13709 = vmatprep.mubr.msk.bf16.mxu0 %vm1007_vm1, %v19077_v27 }
 0x5f4   : > { %v8782_v6 = vpop.f32.mrb[220].mxu0  ;;  %v19170_v53 = vadd.f32 %v8907_v17, %v19084_v28  ;;  %v8909_v37 = vpop.f32.mrb[205].mxu1  ;;  %13714 = vmatprep.mubr.msk.bf16.mxu1 %vm1007_vm1, %v19077_v27  ;;  %v15999_v28 = vld [vmem:[#allocation4 + $0xfb8] ss:$20 sps:$4 sm:$0xff]   ;;  %v16000_v17 = vld [vmem:[#allocation4 + $0xfc0] ss:$20 sps:$4 sm:$0xff]  }
 0x5f5   : > { %v19176_v51 = vadd.f32 %v8782_v6, %v19006_v30  ;;  %v19179_v40 = vadd.f32 %v8909_v37, %v19095_v29  ;;  %9831 = vmatpush1.bf16.msra.mxu1 %v15997_v41  ;;  %v8784_v0 = vpop.f32.mrb[221].mxu0  ;;  %v8911_v43 = vpop.f32.mrb[206].mxu1  ;;  %v9739_v30 = vshrl.u32 %v19027_v63, 16  ;;  %v9743_v6 = vrot.slane %v9741_v4, 1  ;;  %v16001_v37 = vld [vmem:[#allocation4 + $0xfb4] ss:$20 sps:$4 sm:$0xff]  }
 0x5f6   : > { %9912 = vmatpush1.bf16.msra.mxu0 %v15998_v61  ;;  %9832 = vmatprep.subr.bf16.mxu1 %v15999_v28  ;;  %v8785_v25 = vpop.f32.mrb[222].mxu0  ;;  %v8912_v45 = vpop.f32.mrb[207].mxu1  ;;  %v9745_v29 = vshll.u32 %v19049_v44, 16  ;;  %v16002_v41 = vld [vmem:[#allocation4 + $0xfbc] ss:$20 sps:$4 sm:$0xff]  }
 0x5f7   : > { %9913 = vmatprep.subr.bf16.mxu0 %v16000_v17  ;;  %v8786_v46 = vpop.f32.mrb[223].mxu0  ;;  %v16003_v0 = vld [vmem:[#allocation4 + $0xfe0] ss:$20 sps:$4 sm:$0xff]   ;;  %v16004_v43 = vld [vmem:[#allocation4 + $0xfe8] ss:$20 sps:$4 sm:$0xff]   ;;  %v9744_v61 = vor.u32 %v9743_v6, %v9739_v30 }
 0x5f8   : > { %9667 = vmatmul.mubr.bf16.gmra.mrb[248].mxu1 %v19089_v42  ;;  %v19189_v4 = vrot.slane %v9745_v29, 1  ;;  %v16005_v28 = vld [vmem:[#allocation4 + $0xfdc] ss:$20 sps:$4 sm:$0xff]   ;;  %v16006_v25 = vld [vmem:[#allocation4 + $0xfe4] ss:$20 sps:$4 sm:$0xff]  }
 0x5f9   : > { %9592 = vmatmul.mubr.bf16.gmra.mrb[164].mxu0 %v19089_v42  ;;  %9833 = vmatpush1.bf16.msra.mxu1 %v16001_v37  ;;  %v16007_v45 = vld [vmem:[#allocation4 + $0x1008] ss:$20 sps:$4 sm:$0xff]   ;;  %v16008_v17 = vld [vmem:[#allocation4 + $0x1010] ss:$20 sps:$4 sm:$0xff]   ;;  %v16010_v30 = vld [vmem:[#allocation4 + $0x100c] ss:$20 sps:$4 sm:$0xff]  }
 0x5fa   : > { %9914 = vmatpush1.bf16.msra.mxu0 %v16002_v41  ;;  %9834 = vmatprep.subr.bf16.mxu1 %v16003_v0  ;;  %v19194_v46 = vsel %vm572_vm0, %v9744_v61, %v19189_v4  ;;  %v16009_v37 = vld [vmem:[#allocation4 + $0x1004] ss:$20 sps:$4 sm:$0xff]   ;;  %v16013_v41 = vld [vmem:[#allocation4 + $0x102c] ss:$20 sps:$4 sm:$0xff]   ;;  %v16014_v0 = vld [vmem:[#allocation4 + $0x1034] ss:$20 sps:$4 sm:$0xff]  }
 0x5fb   : > { %9915 = vmatprep.subr.bf16.mxu0 %v16004_v43  ;;  %13710 = vmatprep.mubr.msk.bf16.mxu0 %vm1007_vm1, %v19103_v52  ;;  %v16011_v6 = vld [vmem:[#allocation4 + $0x1030] ss:$20 sps:$4 sm:$0xff]   ;;  %v16012_v29 = vld [vmem:[#allocation4 + $0x1038] ss:$20 sps:$4 sm:$0xff]   ;;  %v16016_v61 = vld [vmem:[#allocation4 + $0x1060] ss:$20 sps:$4 sm:$0xff]  }
 0x5fc   : > { %13715 = vmatprep.mubr.msk.bf16.mxu1 %vm1007_vm1, %v19103_v52  ;;  %v16015_v43 = vld [vmem:[#allocation4 + $0x1058] ss:$20 sps:$4 sm:$0xff]  }
 0x5fd   : > { %9835 = vmatpush1.bf16.msra.mxu1 %v16005_v28  ;;  %v16017_v28 = vld [vmem:[#allocation4 + $0x1054] ss:$20 sps:$4 sm:$0xff]  }
 0x5fe   : > { %9916 = vmatpush1.bf16.msra.mxu0 %v16006_v25  ;;  %9836 = vmatprep.subr.bf16.mxu1 %v16007_v45  ;;  %v9730_v25 = vshll.u32 %v19042_v10, 16  ;;  %v16018_v45 = vld [vmem:[#allocation4 + $0x105c] ss:$20 sps:$4 sm:$0xff]  }
 0x5ff   : > { %9917 = vmatprep.subr.bf16.mxu0 %v16008_v17  ;;  %v16019_v17 = vld [vmem:[#allocation4 + $0x1080] ss:$20 sps:$4 sm:$0xff]  }
 0x600   : > { %9675 = vmatmul.mubr.bf16.gmra.mrb[252].mxu1 %v19111_v39 }
 0x601   : > { %9602 = vmatmul.mubr.bf16.gmra.mrb[252].mxu0 %v19111_v39  ;;  %9837 = vmatpush1.bf16.msra.mxu1 %v16009_v37 }
 0x602   : > { %9918 = vmatpush1.bf16.msra.mxu0 %v16010_v30  ;;  %9838 = vmatprep.subr.bf16.mxu1 %v16011_v6  ;;  %v16020_v30 = vld [vmem:[#allocation4 + $0x1088] ss:$20 sps:$4 sm:$0xff]  }
 0x603   : > { %9919 = vmatprep.subr.bf16.mxu0 %v16012_v29  ;;  %13717 = vmatprep.mubr.msk.bf16.mxu1 %vm1007_vm1, %v19194_v46 }
 0x604   : > { %13723 = vmatprep.mubr.msk.bf16.mxu0 %vm1007_vm1, %v19194_v46 }
 0x605   : > { %9839 = vmatpush1.bf16.msra.mxu1 %v16013_v41 }
 0x606   : > { %9920 = vmatpush1.bf16.msra.mxu0 %v16014_v0  ;;  %9840 = vmatprep.subr.bf16.mxu1 %v16015_v43  ;;  %v16021_v0 = vld [vmem:[#allocation4 + $0x107c] ss:$20 sps:$4 sm:$0xff]   ;;  %v9728_v43 = vshrl.u32 %v19042_v10, 16 }
 0x607   : > { %9921 = vmatprep.subr.bf16.mxu0 %v16016_v61  ;;  %v9732_v61 = vrot.slane %v9730_v25, 1 }
 0x609   : > { %9841 = vmatpush1.bf16.msra.mxu1 %v16017_v28  ;;  %v9735_v28 = vshll.u32 %v19058_v62, 16 }
 0x60a   : > { %9922 = vmatpush1.bf16.msra.mxu0 %v16018_v45  ;;  %9842 = vmatprep.subr.bf16.mxu1 %v16019_v17  ;;  %v16022_v45 = vld [vmem:[#allocation4 + $0x1084] ss:$20 sps:$4 sm:$0xff]  }
 0x60b   : > { %v9029_v37 = vpop.f32.mrb[208].mxu1  ;;  %9923 = vmatprep.subr.bf16.mxu0 %v16020_v30  ;;  %v16024_v30 = vld [vmem:[#allocation4 + $0x10b0] ss:$20 sps:$4 sm:$0xff]   ;;  %v9737_v25 = vrot.slane %v9735_v28, 1 }
 0x60c   : > { %v19203_v6 = vadd.f32 %v9029_v37, %v19124_v8  ;;  %v9031_v29 = vpop.f32.mrb[209].mxu1  ;;  %v9757_v8 = vshrl.u32 %v19049_v44, 16  ;;  %v9760_v37 = vshll.u32 %v19063_v3, 16  ;;  %v20852_v28 = vld [vmem:[#allocation56_spill] sm:$0xff] }
 0x60d   : > { %v9032_v41 = vpop.f32.mrb[210].mxu1  ;;  %9843 = vmatpush1.bf16.msra.mxu1 %v16021_v0  ;;  %v16025_v29 = vld [vmem:[#allocation4 + $0x10a4] ss:$20 sps:$4 sm:$0xff]   ;;  %v9733_v0 = vor.u32 %v9732_v61, %v9728_v43 }
 0x60e   : > { %v19208_v9 = vadd.f32 %v9032_v41, %v19128_v24  ;;  %9924 = vmatpush1.bf16.msra.mxu0 %v16022_v45  ;;  %v9034_v17 = vpop.f32.mrb[211].mxu1  ;;  %9844 = vmatprep.subr.bf16.mxu1 %v16023_v56  ;;  %v20850_v41 = vld [vmem:[#allocation54_spill] sm:$0xff] }
 0x60f   : > { %9925 = vmatprep.subr.bf16.mxu0 %v16024_v30  ;;  %v9759_v17 = vor.u32 %v9757_v8, %v19189_v4  ;;  %v9762_v30 = vrot.slane %v9760_v37, 1  ;;  %v19222_v43 = vsel %vm572_vm0, %v9733_v0, %v9737_v25  ;;  %v9772_v8 = vshrl.u32 %v19063_v3, 16 }
 0x610   : > { %v9775_v37 = vshll.u32 %v19077_v27, 16 }
 0x611   : > { %9845 = vmatpush1.bf16.msra.mxu1 %v16025_v29  ;;  %v20851_v29 = vld [vmem:[#allocation66_spill] sm:$0xff]  ;;  %v19233_v4 = vsel %vm572_vm0, %v9759_v17, %v9762_v30 }
 0x612   : > { %9926 = vmatpush1.bf16.msra.mxu0 %v16026_v23  ;;  %13716 = vmatprep.subr.msk.bf16.mxu1 %vm1023_vm2, %v20849_v16  ;;  %v9749_v23 = vshrl.u32 %v19058_v62, 16  ;;  %v9753_v16 = vshll.u32 %v19072_v11, 16 }
 0x613   : > { %v9037_v24 = vpop.f32.mrb[212].mxu1  ;;  %13722 = vmatprep.subr.msk.bf16.mxu0 %vm1023_vm2, %v20850_v41  ;;  %v16029_v41 = vld [vmem:[#allocation4 + $0xed4] ss:$20 sps:$4 sm:$0xff]  }
 0x614   : > { %v19217_v56 = vadd.f32 %v9037_v24, %v19134_v55  ;;  %v9039_v45 = vpop.f32.mrb[213].mxu1  ;;  %v16027_v55 = vld [vmem:[#allocation4 + $0x10e4] ss:$20 sps:$4 sm:$0xff]   ;;  %v9755_v0 = vrot.slane %v9753_v16, 1  ;;  %v16031_v16 = vld [vmem:[#allocation4 + $0x1108] ss:$20 sps:$4 sm:$0xff]  }
 0x615   : > { %v9040_v26 = vpop.f32.mrb[214].mxu1  ;;  %9847 = vmatpush1.bf16.msra.mxu1 %v20851_v29  ;;  %v16030_v45 = vld [vmem:[#allocation4 + $0x110c] ss:$20 sps:$4 sm:$0xff]  }
 0x616   : > { %v19227_v61 = vadd.f32 %v9040_v26, %v19139_v22  ;;  %9928 = vmatpush1.bf16.msra.mxu0 %v20852_v28  ;;  %10137 = vmatprep.subr.bf16.mxu1 %v16027_v55  ;;  %v9042_v24 = vpop.f32.mrb[215].mxu1  ;;  %v16028_v26 = vld [vmem:[#allocation4 + $0x10e0] ss:$20 sps:$4 sm:$0xff]   ;;  %v9751_v22 = vor.u32 %v9749_v23, %v9737_v25  ;;  %v9774_v55 = vor.u32 %v9772_v8, %v9762_v30  ;;  %v9777_v25 = vrot.slane %v9775_v37, 1 }
 0x617   : > { %9982 = vmatprep.subr.bf16.mxu0 %v20676_v2  ;;  %v9787_v8 = vshrl.u32 %v19077_v27, 16  ;;  %v9790_v37 = vshll.u32 %v19103_v52, 16 }
 0x618   : > { %9853 = vmatmul.mubr.bf16.vlgmr.msra.gmra.mrb[132].mxu1 %v19222_v43  ;;  %v19247_v24 = vsel %vm572_vm0, %v9751_v22, %v9755_v0  ;;  %v19257_v30 = vsel %vm572_vm0, %v9774_v55, %v9777_v25 }
 0x619   : > { %9934 = vmatmul.mubr.bf16.vlgmr.msra.gmra.mrb[152].mxu0 %v19222_v43  ;;  %10138 = vmatpush1.bf16.msra.mxu1 %v16028_v26  ;;  %v9764_v26 = vshrl.u32 %v19072_v11, 16 }
 0x61a   : > { %9983 = vmatpush1.bf16.msra.mxu0 %v16029_v41  ;;  %10139 = vmatprep.subr.bf16.mxu1 %v16030_v45  ;;  %v9768_v41 = vshll.u32 %v19089_v42, 16 }
 0x61b   : > { %v9045_v29 = vpop.f32.mrb[216].mxu1  ;;  %9984 = vmatprep.subr.bf16.mxu0 %v20676_v2  ;;  %13718 = vmatprep.mubr.msk.bf16.mxu1 %vm1007_vm1, %v19233_v4  ;;  %v9766_v22 = vor.u32 %v9764_v26, %v9755_v0  ;;  %v9792_v0 = vrot.slane %v9790_v37, 1 }
 0x61c   : > { %v19242_v17 = vadd.f32 %v9045_v29, %v19148_v58  ;;  %v9047_v28 = vpop.f32.mrb[217].mxu1  ;;  %13724 = vmatprep.mubr.msk.bf16.mxu0 %vm1007_vm1, %v19233_v4  ;;  %v16032_v58 = vld [vmem:[#allocation4 + $0xefc] ss:$20 sps:$4 sm:$0xff]   ;;  %v16033_v29 = vld [vmem:[#allocation4 + $0x1134] ss:$20 sps:$4 sm:$0xff]  }
 0x61d   : > { %v9048_v23 = vpop.f32.mrb[218].mxu1  ;;  %10140 = vmatpush1.bf16.msra.mxu1 %v16031_v16  ;;  %v16035_v16 = vld [vmem:[#allocation4 + $0xf24] ss:$20 sps:$4 sm:$0xff]  }
 0x61e   : > { %v19252_v45 = vadd.f32 %v9048_v23, %v19151_v5  ;;  %9985 = vmatpush1.bf16.msra.mxu0 %v16032_v58  ;;  %10141 = vmatprep.subr.bf16.mxu1 %v16033_v29  ;;  %v9050_v28 = vpop.f32.mrb[219].mxu1  ;;  %v16034_v5 = vld [vmem:[#allocation4 + $0x1130] ss:$20 sps:$4 sm:$0xff]   ;;  %v9770_v23 = vrot.slane %v9768_v41, 1  ;;  %v16037_v41 = vld [vmem:[#allocation4 + $0x1158] ss:$20 sps:$4 sm:$0xff]  }
 0x61f   : > { %9986 = vmatprep.subr.bf16.mxu0 %v20676_v2  ;;  %v16036_v58 = vld [vmem:[#allocation4 + $0x115c] ss:$20 sps:$4 sm:$0xff]  }
 0x620   : > { %9863 = vmatmul.mubr.bf16.gmra.mrb[136].mxu1 %v19247_v24 }
 0x621   : > { %9944 = vmatmul.mubr.bf16.gmra.mrb[156].mxu0 %v19247_v24  ;;  %10142 = vmatpush1.bf16.msra.mxu1 %v16034_v5  ;;  %v9789_v5 = vor.u32 %v9787_v8, %v9777_v25  ;;  %v16040_v8 = vld [vmem:[#allocation4 + $0x1180] ss:$20 sps:$4 sm:$0xff]  }
 0x622   : > { %9987 = vmatpush1.bf16.msra.mxu0 %v16035_v16  ;;  %10143 = vmatprep.subr.bf16.mxu1 %v16036_v58  ;;  %v19271_v16 = vsel %vm572_vm0, %v9766_v22, %v9770_v23  ;;  %v9779_v58 = vshrl.u32 %v19089_v42, 16  ;;  %v9785_v22 = vrot.slane %v9783_v32, 1 }
 0x623   : > { %v9053_v29 = vpop.f32.mrb[220].mxu1  ;;  %9988 = vmatprep.subr.bf16.mxu0 %v20676_v2  ;;  %13719 = vmatprep.mubr.msk.bf16.mxu1 %vm1007_vm1, %v19257_v30  ;;  %v19281_v25 = vsel %vm572_vm0, %v9789_v5, %v9792_v0 }
 0x624   : > { %v19266_v55 = vadd.f32 %v9053_v29, %v19160_v49  ;;  %v9055_v28 = vpop.f32.mrb[221].mxu1  ;;  %13725 = vmatprep.mubr.msk.bf16.mxu0 %vm1007_vm1, %v19257_v30  ;;  %v16038_v49 = vld [vmem:[#allocation4 + $0xf4c] ss:$20 sps:$4 sm:$0xff]   ;;  %v16039_v29 = vld [vmem:[#allocation4 + $0x1184] ss:$20 sps:$4 sm:$0xff]   ;;  %v9781_v37 = vor.u32 %v9779_v58, %v9770_v23 }
 0x625   : > { %v9056_v26 = vpop.f32.mrb[222].mxu1  ;;  %10144 = vmatpush1.bf16.msra.mxu1 %v16037_v41 }
 0x626   : > { %v19276_v33 = vadd.f32 %v9056_v26, %v19163_v47  ;;  %9989 = vmatpush1.bf16.msra.mxu0 %v16038_v49  ;;  %10145 = vmatprep.subr.bf16.mxu1 %v16039_v29  ;;  %v9058_v28 = vpop.f32.mrb[223].mxu1  ;;  %v16041_v47 = vld [vmem:[#allocation4 + $0xf74] ss:$20 sps:$4 sm:$0xff]   ;;  %v16042_v26 = vld [vmem:[#allocation4 + $0x11ac] ss:$20 sps:$4 sm:$0xff]   ;;  %v9797_v49 = vshrl.u32 %v19103_v52, 16 }
 0x627   : > { %9990 = vmatprep.subr.bf16.mxu0 %v20676_v2  ;;  %v16043_v28 = vld [vmem:[#allocation4 + $0x11a8] ss:$20 sps:$4 sm:$0xff]  }
 0x628   : > { %9873 = vmatmul.mubr.bf16.gmra.mrb[140].mxu1 %v19271_v16 }
 0x629   : > { %9954 = vmatmul.mubr.bf16.gmra.mrb[160].mxu0 %v19271_v16  ;;  %10146 = vmatpush1.bf16.msra.mxu1 %v16040_v8  ;;  %v19297_v8 = vsel %vm572_vm0, %v9781_v37, %v9785_v22  ;;  %v16046_v37 = vld [vmem:[#allocation4 + $0x11d0] ss:$20 sps:$4 sm:$0xff]   ;;  %vm12562_vm0 = vsmask.f32 5376 }
 0x62a   : > { %9991 = vmatpush1.bf16.msra.mxu0 %v16041_v47  ;;  %10147 = vmatprep.subr.bf16.mxu1 %v16042_v26 }
 0x62b   : > { %v9061_v41 = vpop.f32.mrb[224].mxu1  ;;  %9992 = vmatprep.subr.bf16.mxu0 %v20676_v2  ;;  %13720 = vmatprep.mubr.msk.bf16.mxu1 %vm1007_vm1, %v19281_v25 }
 0x62c   : > { %v8988_v5 = vpop.f32.mrb[224].mxu0  ;;  %v19289_v29 = vadd.f32 %v9061_v41, %v19176_v51  ;;  %13726 = vmatprep.mubr.msk.bf16.mxu0 %vm1007_vm1, %v19281_v25  ;;  %v9063_v32 = vpop.f32.mrb[225].mxu1  ;;  %v16045_v51 = vld [vmem:[#allocation4 + $0x11d4] ss:$20 sps:$4 sm:$0xff]  }
 0x62d   : > { %v19294_v23 = vadd.f32 %v8988_v5, %v19092_v18  ;;  %v8990_v58 = vpop.f32.mrb[225].mxu0  ;;  %10148 = vmatpush1.bf16.msra.mxu1 %v16043_v28  ;;  %v9064_v47 = vpop.f32.mrb[226].mxu1  ;;  %v19303_v18 = vor.u32 %v9797_v49, %v9792_v0  ;;  %v9794_v32 = vshrl.u32 %v19111_v39, 16  ;;  %v16049_v0 = vld [vmem:[#allocation4 + $0x11f8] ss:$20 sps:$4 sm:$0xff]   ;;  %v10102_v49 = vrot.slane %v19027_v63, 1 }
 0x62e   : > { %v19300_v26 = vadd.f32 %v8990_v58, %v19099_v54  ;;  %9993 = vmatpush1.bf16.msra.mxu0 %v16044_v57  ;;  %10149 = vmatprep.subr.bf16.mxu1 %v16045_v51  ;;  %v8992_v41 = vpop.f32.mrb[226].mxu0  ;;  %v9065_v13 = vpop.f32.mrb[227].mxu1  ;;  %v16047_v54 = vld [vmem:[#allocation4 + $0xfc4] ss:$20 sps:$4 sm:$0xff]   ;;  %v16048_v57 = vld [vmem:[#allocation4 + $0x11fc] ss:$20 sps:$4 sm:$0xff]  }
 0x62f   : > { %9994 = vmatprep.subr.bf16.mxu0 %v20676_v2  ;;  %v8993_v5 = vpop.f32.mrb[227].mxu0  ;;  %v19311_v13 = vor.u32 %v9794_v32, %v9785_v22  ;;  %v10103_v58 = vrot.slane %v19049_v44, 1  ;;  %v16050_v28 = vld [vmem:[#allocation4 + $0xfec] ss:$20 sps:$4 sm:$0xff]   ;;  %v16051_v47 = vld [vmem:[#allocation4 + $0x1224] ss:$20 sps:$4 sm:$0xff]  }
 0x630   : > { %9883 = vmatmul.mubr.bf16.gmra.mrb[144].mxu1 %v19297_v8  ;;  %v16052_v22 = vld [vmem:[#allocation4 + $0x1220] ss:$20 sps:$4 sm:$0xff]   ;;  %v16055_v44 = vld [vmem:[#allocation4 + $0x1248] ss:$20 sps:$4 sm:$0xff]  }
 0x631   : > { %9964 = vmatmul.mubr.bf16.gmra.mrb[164].mxu0 %v19297_v8  ;;  %10150 = vmatpush1.bf16.msra.mxu1 %v16046_v37  ;;  %v19321_v51 = vsel %vm1970_vm3, %v10102_v49, %v10103_v58  ;;  %v16053_v41 = vld [vmem:[#allocation4 + $0x1014] ss:$20 sps:$4 sm:$0xff]   ;;  %v16054_v63 = vld [vmem:[#allocation4 + $0x124c] ss:$20 sps:$4 sm:$0xff]   ;;  %v16056_v5 = vld [vmem:[#allocation4 + $0x103c] ss:$20 sps:$4 sm:$0xff]  }
 0x632   : > { %9995 = vmatpush1.bf16.msra.mxu0 %v16047_v54  ;;  %10151 = vmatprep.subr.bf16.mxu1 %v16048_v57  ;;  %v16057_v32 = vld [vmem:[#allocation4 + $0x1274] ss:$20 sps:$4 sm:$0xff]   ;;  %v16058_v37 = vld [vmem:[#allocation4 + $0x1270] ss:$20 sps:$4 sm:$0xff]  }
 0x633   : > { %9996 = vmatprep.subr.bf16.mxu0 %v20676_v2  ;;  %13721 = vmatprep.mubr.msk.bf16.mxu1 %vm1007_vm1, %v19303_v18  ;;  %v16059_v54 = vld [vmem:[#allocation4 + $0x1064] ss:$20 sps:$4 sm:$0xff]   ;;  %v16060_v57 = vld [vmem:[#allocation4 + $0x129c] ss:$20 sps:$4 sm:$0xff]  }
 0x634   : > { %13727 = vmatprep.mubr.msk.bf16.mxu0 %vm1007_vm1, %v19303_v18  ;;  %v16063_v49 = vld [vmem:[#allocation4 + $0x12c4] ss:$20 sps:$4 sm:$0xff]  }
 0x635   : > { %10152 = vmatpush1.bf16.msra.mxu1 %v16049_v0  ;;  %v16062_v0 = vld [vmem:[#allocation4 + $0x108c] ss:$20 sps:$4 sm:$0xff]  }
 0x636   : > { %9997 = vmatpush1.bf16.msra.mxu0 %v16050_v28  ;;  %10153 = vmatprep.subr.bf16.mxu1 %v16051_v47  ;;  %v16064_v28 = vld [vmem:[#allocation4 + $0x12c0] ss:$20 sps:$4 sm:$0xff]   ;;  %v10099_v47 = vrot.slane %v19042_v10, 1 }
 0x637   : > { %9998 = vmatprep.subr.bf16.mxu0 %v20676_v2  ;;  %v16066_v10 = vld [vmem:[#allocation4 + $0x10ec] ss:$20 sps:$4 sm:$0xff]  }
 0x638   : > { %9893 = vmatmul.mubr.bf16.gmra.mrb[16].mxu1 %v19311_v13 }
 0x639   : > { %9974 = vmatmul.mubr.bf16.gmra.mrb[16].mxu0 %v19311_v13  ;;  %10154 = vmatpush1.bf16.msra.mxu1 %v16052_v22  ;;  %v10100_v22 = vrot.slane %v19058_v62, 1  ;;  %v16067_v62 = vld [vmem:[#allocation4 + $0x10f0] ss:$20 sps:$4 sm:$0xff]  }
 0x63a   : > { %9999 = vmatpush1.bf16.msra.mxu0 %v16053_v41  ;;  %10155 = vmatprep.subr.bf16.mxu1 %v16054_v63  ;;  %v16065_v41 = vld [vmem:[#allocation4 + $0x10b4] ss:$20 sps:$4 sm:$0xff]  }
 0x63b   : > { %10000 = vmatprep.subr.bf16.mxu0 %v20676_v2  ;;  %13728 = vmatprep.mubr.msk.bf16.mxu0 %vm1007_vm1, %v19194_v46  ;;  %v16061_v46 = vld [vmem:[#allocation4 + $0x1298] ss:$20 sps:$4 sm:$0xff]  }
 0x63c   : > { %13734 = vmatprep.mubr.msk.bf16.mxu1 %vm1007_vm1, %v19321_v51  ;;  %v20853_v63 = vld [vmem:[#allocation69_spill] sm:$0xff] }
 0x63d   : > { %10156 = vmatpush1.bf16.msra.mxu1 %v16055_v44  ;;  %v20854_v44 = vld [vmem:[#allocation71_spill] sm:$0xff] }
 0x63e   : > { %10001 = vmatpush1.bf16.msra.mxu0 %v16056_v5  ;;  %10157 = vmatprep.subr.bf16.mxu1 %v16057_v32  ;;  %v19338_v5 = vsel %vm1970_vm3, %v10099_v47, %v10100_v22  ;;  %v10107_v32 = vrot.slane %v19063_v3, 1  ;;  %v16069_v3 = vld [vmem:[#allocation4 + $0x1114] ss:$20 sps:$4 sm:$0xff]   ;;  %v10109_v47 = vrot.slane %v19089_v42, 1 }
 0x63f   : > { %10002 = vmatprep.subr.bf16.mxu0 %v20676_v2  ;;  %v16077_v42 = vld [vmem:[#allocation4 + $0x1160] ss:$20 sps:$4 sm:$0xff]  }
 0x641   : > { %10158 = vmatpush1.bf16.msra.mxu1 %v16058_v37  ;;  %v20855_v37 = vld [vmem:[#allocation67_spill] sm:$0xff] }
 0x642   : > { %10003 = vmatpush1.bf16.msra.mxu0 %v16059_v54  ;;  %10159 = vmatprep.subr.bf16.mxu1 %v16060_v57  ;;  %v19346_v54 = vsel %vm1970_vm3, %v10103_v58, %v10107_v32  ;;  %v10105_v57 = vrot.slane %v19072_v11, 1  ;;  %v10111_v58 = vrot.slane %v19077_v27, 1  ;;  %v16071_v11 = vld [vmem:[#allocation4 + $0x1110] ss:$20 sps:$4 sm:$0xff]  }
 0x643   : > { %10004 = vmatprep.subr.bf16.mxu0 %v20676_v2  ;;  %v16075_v27 = vld [vmem:[#allocation4 + $0x1164] ss:$20 sps:$4 sm:$0xff]  }
 0x645   : > { %10160 = vmatpush1.bf16.msra.mxu1 %v16061_v46  ;;  %v16068_v46 = vld [vmem:[#allocation4 + $0x10e8] ss:$20 sps:$4 sm:$0xff]  }
 0x646   : > { %10005 = vmatpush1.bf16.msra.mxu0 %v16062_v0  ;;  %10161 = vmatprep.subr.bf16.mxu1 %v16063_v49  ;;  %v19355_v0 = vsel %vm1970_vm3, %v10100_v22, %v10105_v57  ;;  %v16072_v49 = vld [vmem:[#allocation4 + $0x113c] ss:$20 sps:$4 sm:$0xff]   ;;  %v16074_v22 = vld [vmem:[#allocation4 + $0x1138] ss:$20 sps:$4 sm:$0xff]  }
 0x647   : > { %10006 = vmatprep.subr.bf16.mxu0 %v20676_v2 }
 0x649   : > { %10162 = vmatpush1.bf16.msra.mxu1 %v16064_v28  ;;  %v19362_v28 = vsel %vm1970_vm3, %v10107_v32, %v10111_v58 }
 0x64a   : > { %10007 = vmatpush1.bf16.msra.mxu0 %v16065_v41  ;;  %13733 = vmatprep.subr.msk.bf16.mxu1 %vm1023_vm2, %v20853_v63  ;;  %v19371_v41 = vsel %vm1970_vm3, %v10105_v57, %v10109_v47  ;;  %v19374_v63 = vrot.slane %v19103_v52, 1  ;;  %v16080_v52 = vld [vmem:[#allocation4 + $0x1188] ss:$20 sps:$4 sm:$0xff]  }
 0x64b   : > { %10008 = vmatprep.subr.bf16.mxu0 %v20676_v2 }
 0x64c   : > { %v19381_v32 = vsel %vm1970_vm3, %v10111_v58, %v19374_v63  ;;  %v16082_v58 = vld [vmem:[#allocation4 + $0x11b8] ss:$20 sps:$4 sm:$0xff]  }
 0x64d   : > { %10164 = vmatpush1.bf16.msra.mxu1 %v20854_v44  ;;  %v16078_v44 = vld [vmem:[#allocation4 + $0x118c] ss:$20 sps:$4 sm:$0xff]  }
 0x64e   : > { %10009 = vmatpush1.bf16.msra.mxu0 %v20855_v37  ;;  %10299 = vmatprep.subr.bf16.mxu1 %v20676_v2  ;;  %v19384_v37 = vrot.slane %v19111_v39, 1 }
 0x64f   : > { %10218 = vmatprep.subr.bf16.mxu0 %v16066_v10 }
 0x650   : > { %10170 = vmatmul.mubr.bf16.vlgmr.msra.gmra.mrb[132].mxu1 %v19338_v5 }
 0x651   : > { %10015 = vmatmul.mubr.bf16.vlgmr.msra.gmra.mrb[20].mxu0 %v19222_v43  ;;  %10300 = vmatpush1.bf16.msra.mxu1 %v16067_v62  ;;  %v16070_v43 = vld [vmem:[#allocation4 + $0x1118] ss:$20 sps:$4 sm:$0xff]   ;;  %v16081_v62 = vld [vmem:[#allocation4 + $0x11b4] ss:$20 sps:$4 sm:$0xff]  }
 0x652   : > { %10219 = vmatpush1.bf16.msra.mxu0 %v16068_v46  ;;  %10301 = vmatprep.subr.bf16.mxu1 %v20676_v2 }
 0x653   : > { %10220 = vmatprep.subr.bf16.mxu0 %v16069_v3  ;;  %13729 = vmatprep.mubr.msk.bf16.mxu0 %vm1007_vm1, %v19233_v4  ;;  %v16073_v4 = vld [vmem:[#allocation4 + $0x1140] ss:$20 sps:$4 sm:$0xff]  }
 0x654   : > { %13735 = vmatprep.mubr.msk.bf16.mxu1 %vm1007_vm1, %v19346_v54 }
 0x655   : > { %10302 = vmatpush1.bf16.msra.mxu1 %v16070_v43 }
 0x656   : > { %10221 = vmatpush1.bf16.msra.mxu0 %v16071_v11  ;;  %10303 = vmatprep.subr.bf16.mxu1 %v20676_v2 }
 0x657   : > { %10222 = vmatprep.subr.bf16.mxu0 %v16072_v49  ;;  %v16083_v49 = vld [vmem:[#allocation4 + $0x11b0] ss:$20 sps:$4 sm:$0xff]  }
 0x658   : > { %10180 = vmatmul.mubr.bf16.gmra.mrb[136].mxu1 %v19355_v0 }
 0x659   : > { %10023 = vmatmul.mubr.bf16.gmra.mrb[24].mxu0 %v19247_v24  ;;  %10304 = vmatpush1.bf16.msra.mxu1 %v16073_v4  ;;  %v16076_v24 = vld [vmem:[#allocation4 + $0x1168] ss:$20 sps:$4 sm:$0xff]  }
 0x65a   : > { %10223 = vmatpush1.bf16.msra.mxu0 %v16074_v22  ;;  %10305 = vmatprep.subr.bf16.mxu1 %v20676_v2  ;;  %v16084_v22 = vld [vmem:[#allocation4 + $0x11dc] ss:$20 sps:$4 sm:$0xff]  }
 0x65b   : > { %10224 = vmatprep.subr.bf16.mxu0 %v16075_v27  ;;  %13730 = vmatprep.mubr.msk.bf16.mxu0 %vm1007_vm1, %v19257_v30  ;;  %v16079_v30 = vld [vmem:[#allocation4 + $0x1190] ss:$20 sps:$4 sm:$0xff]   ;;  %v16085_v27 = vld [vmem:[#allocation4 + $0x11e0] ss:$20 sps:$4 sm:$0xff]  }
 0x65c   : > { %13736 = vmatprep.mubr.msk.bf16.mxu1 %vm1007_vm1, %v19362_v28 }
 0x65d   : > { %10306 = vmatpush1.bf16.msra.mxu1 %v16076_v24  ;;  %v16088_v24 = vld [vmem:[#allocation4 + $0x1208] ss:$20 sps:$4 sm:$0xff]  }
 0x65e   : > { %10225 = vmatpush1.bf16.msra.mxu0 %v16077_v42  ;;  %10307 = vmatprep.subr.bf16.mxu1 %v20676_v2  ;;  %v16089_v42 = vld [vmem:[#allocation4 + $0x1200] ss:$20 sps:$4 sm:$0xff]  }
 0x65f   : > { %10226 = vmatprep.subr.bf16.mxu0 %v16078_v44  ;;  %v16091_v44 = vld [vmem:[#allocation4 + $0x1230] ss:$20 sps:$4 sm:$0xff]  }
 0x660   : > { %10190 = vmatmul.mubr.bf16.gmra.mrb[140].mxu1 %v19371_v41 }
 0x661   : > { %10031 = vmatmul.mubr.bf16.gmra.mrb[28].mxu0 %v19271_v16  ;;  %10308 = vmatpush1.bf16.msra.mxu1 %v16079_v30  ;;  %v16092_v30 = vld [vmem:[#allocation4 + $0x1228] ss:$20 sps:$4 sm:$0xff]  }
 0x662   : > { %10227 = vmatpush1.bf16.msra.mxu0 %v16080_v52  ;;  %10309 = vmatprep.subr.bf16.mxu1 %v20676_v2  ;;  %v16094_v52 = vld [vmem:[#allocation4 + $0x1258] ss:$20 sps:$4 sm:$0xff]  }
 0x663   : > { %v9186_v10 = vpop.f32.mrb[228].mxu1  ;;  %10228 = vmatprep.subr.bf16.mxu0 %v16081_v62  ;;  %13731 = vmatprep.mubr.msk.bf16.mxu0 %vm1007_vm1, %v19281_v25  ;;  %v19402_v25 = vsel %vm1970_vm3, %v10109_v47, %v19384_v37  ;;  %v16086_v47 = vld [vmem:[#allocation4 + $0x11d8] ss:$20 sps:$4 sm:$0xff]   ;;  %v16097_v62 = vld [vmem:[#allocation4 + $0x1280] ss:$20 sps:$4 sm:$0xff]   ;;  %vm20411_vm3 = vmand %vm12561_vm15, %vm12562_vm0 }
 0x664   : > { %v19390_v16 = vadd.f32 %v9186_v10, %v19170_v53  ;;  %v9267_v57 = vpop.f32.mrb[228].mxu0  ;;  %v9188_v46 = vpop.f32.mrb[229].mxu1  ;;  %13737 = vmatprep.mubr.msk.bf16.mxu1 %vm1007_vm1, %v19381_v32  ;;  %v16095_v10 = vld [vmem:[#allocation4 + $0x1250] ss:$20 sps:$4 sm:$0xff]  }
 0x665   : > { %v19395_v39 = vadd.f32 %v9267_v57, %v19294_v23  ;;  %v19398_v3 = vadd.f32 %v9188_v46, %v19179_v40  ;;  %v9269_v43 = vpop.f32.mrb[229].mxu0  ;;  %10310 = vmatpush1.bf16.msra.mxu1 %v16082_v58  ;;  %v9190_v53 = vpop.f32.mrb[230].mxu1  ;;  %v16098_v57 = vld [vmem:[#allocation4 + $0x1278] ss:$20 sps:$4 sm:$0xff]  }
 0x666   : > { %v19405_v11 = vadd.f32 %v9269_v43, %v19300_v26  ;;  %10229 = vmatpush1.bf16.msra.mxu0 %v16083_v49  ;;  %10311 = vmatprep.subr.bf16.mxu1 %v20676_v2  ;;  %v9271_v23 = vpop.f32.mrb[230].mxu0  ;;  %v9191_v4 = vpop.f32.mrb[231].mxu1  ;;  %v16087_v26 = vld [vmem:[#allocation4 + $0x1204] ss:$20 sps:$4 sm:$0xff]   ;;  %v16100_v53 = vld [vmem:[#allocation4 + $0x12a8] ss:$20 sps:$4 sm:$0xff]  }
 0x667   : > { %10230 = vmatprep.subr.bf16.mxu0 %v16084_v22  ;;  %v9272_v40 = vpop.f32.mrb[231].mxu0  ;;  %v16099_v46 = vld [vmem:[#allocation4 + $0x12a4] ss:$20 sps:$4 sm:$0xff]   ;;  %v16101_v23 = vld [vmem:[#allocation4 + $0x12a0] ss:$20 sps:$4 sm:$0xff]  }
 0x668   : > { %10200 = vmatmul.mubr.bf16.gmra.mrb[144].mxu1 %v19402_v25  ;;  %v16102_v40 = vld [vmem:[#allocation4 + $0x12cc] ss:$20 sps:$4 sm:$0xff]  }
 0x669   : > { %10039 = vmatmul.mubr.bf16.gmra.mrb[32].mxu0 %v19297_v8  ;;  %10312 = vmatpush1.bf16.msra.mxu1 %v16085_v27  ;;  %v16090_v8 = vld [vmem:[#allocation4 + $0x122c] ss:$20 sps:$4 sm:$0xff]   ;;  %v16103_v27 = vld [vmem:[#allocation4 + $0x12d0] ss:$20 sps:$4 sm:$0xff]  }
 0x66a   : > { %10231 = vmatpush1.bf16.msra.mxu0 %v16086_v47  ;;  %10313 = vmatprep.subr.bf16.mxu1 %v20676_v2  ;;  %v16104_v47 = vld [vmem:[#allocation4 + $0x12c8] ss:$20 sps:$4 sm:$0xff]  }
 0x66b   : > { %10232 = vmatprep.subr.bf16.mxu0 %v16087_v26  ;;  %13732 = vmatprep.mubr.msk.bf16.mxu0 %vm1007_vm1, %v19303_v18  ;;  %v16093_v18 = vld [vmem:[#allocation4 + $0x1254] ss:$20 sps:$4 sm:$0xff]  }
 0x66c   : > { %13738 = vmatprep.mubr.msk.bf16.mxu1 %vm1007_vm1, %v19374_v63 }
 0x66d   : > { %10314 = vmatpush1.bf16.msra.mxu1 %v16088_v24 }
 0x66e   : > { %10233 = vmatpush1.bf16.msra.mxu0 %v16089_v42  ;;  %10315 = vmatprep.subr.bf16.mxu1 %v20676_v2 }
 0x66f   : > { %10234 = vmatprep.subr.bf16.mxu0 %v16090_v8  ;;  %v20857_v8 = vld [vmem:[#allocation82_spill] sm:$0xff] }
 0x670   : > { %10210 = vmatmul.mubr.bf16.gmra.mrb[20].mxu1 %v19384_v37 }
 0x671   : > { %10047 = vmatmul.mubr.bf16.gmra.mrb[36].mxu0 %v19311_v13  ;;  %10316 = vmatpush1.bf16.msra.mxu1 %v16091_v44  ;;  %v16096_v13 = vld [vmem:[#allocation4 + $0x127c] ss:$20 sps:$4 sm:$0xff]   ;;  %v20858_v44 = vld [vmem:[#allocation72_spill] sm:$0xff] }
 0x672   : > { %10235 = vmatpush1.bf16.msra.mxu0 %v16092_v30  ;;  %10317 = vmatprep.subr.bf16.mxu1 %v20676_v2 }
 0x673   : > { %10236 = vmatprep.subr.bf16.mxu0 %v16093_v18  ;;  %13740 = vmatprep.mubr.msk.bf16.mxu0 %vm1007_vm1, %v19321_v51 }
 0x674   : > { %13745 = vmatprep.mubr.msk.bf16.mxu1 %vm1007_vm1, %v19321_v51 }
 0x675   : > { %10318 = vmatpush1.bf16.msra.mxu1 %v16094_v52 }
 0x676   : > { %10237 = vmatpush1.bf16.msra.mxu0 %v16095_v10  ;;  %10319 = vmatprep.subr.bf16.mxu1 %v20676_v2 }
 0x677   : > { %10238 = vmatprep.subr.bf16.mxu0 %v16096_v13 }
 0x679   : > { %10320 = vmatpush1.bf16.msra.mxu1 %v16097_v62 }
 0x67a   : > { %10239 = vmatpush1.bf16.msra.mxu0 %v16098_v57  ;;  %10321 = vmatprep.subr.bf16.mxu1 %v20676_v2 }
 0x67b   : > { %10240 = vmatprep.subr.bf16.mxu0 %v16099_v46 }
 0x67c   : > { %v9308_v43 = vpop.f32.mrb[232].mxu0 }
 0x67d   : > { %v19426_v58 = vadd.f32 %v9308_v43, %v19203_v6  ;;  %v9310_v51 = vpop.f32.mrb[233].mxu0  ;;  %10322 = vmatpush1.bf16.msra.mxu1 %v16100_v53  ;;  %v20856_v6 = vld [vmem:[#allocation70_spill] sm:$0xff] }
 0x67e   : > { %v9311_v49 = vpop.f32.mrb[234].mxu0  ;;  %10241 = vmatpush1.bf16.msra.mxu0 %v16101_v23  ;;  %10323 = vmatprep.subr.bf16.mxu1 %v20676_v2 }
 0x67f   : > { %v19430_v4 = vadd.f32 %v9311_v49, %v19208_v9  ;;  %v9313_v22 = vpop.f32.mrb[235].mxu0  ;;  %10242 = vmatprep.subr.bf16.mxu0 %v16102_v40 }
 0x681   : > { %10324 = vmatpush1.bf16.msra.mxu1 %v16103_v27 }
 0x682   : > { %10243 = vmatpush1.bf16.msra.mxu0 %v16104_v47  ;;  %10325 = vmatprep.subr.bf16.mxu1 %v20676_v2 }
 0x683   : > { %13739 = vmatprep.subr.msk.bf16.mxu0 %vm1023_vm2, %v20856_v6  ;;  %vm20406_vm2 = vmand %vm12558_vm13, %vm12559_vm14 }
 0x684   : > { %v9316_v26 = vpop.f32.mrb[236].mxu0 }
 0x685   : > { %v9360_v24 = vadd.f32 %v9316_v26, %v19217_v56  ;;  %v9318_v42 = vpop.f32.mrb[237].mxu0  ;;  %10326 = vmatpush1.bf16.msra.mxu1 %v20857_v8 }
 0x686   : > { %v9319_v9 = vpop.f32.mrb[238].mxu0  ;;  %10245 = vmatpush1.bf16.msra.mxu0 %v20858_v44 }
 0x687   : > { %v9365_v30 = vadd.f32 %v9319_v9, %v19227_v61  ;;  %v9321_v18 = vpop.f32.mrb[239].mxu0 }
 0x688   : > { %10332 = vmatmul.mubr.bf16.vlgmr.msra.gmra.mrb[24].mxu1 %v19338_v5 }
 0x689   : > { %10251 = vmatmul.mubr.bf16.vlgmr.msra.gmra.mrb[152].mxu0 %v19338_v5  ;;  %13746 = vmatprep.mubr.msk.bf16.mxu1 %vm1007_vm1, %v19346_v54 }
 0x68a   : > { %13741 = vmatprep.mubr.msk.bf16.mxu0 %vm1007_vm1, %v19346_v54 }
 0x68c   : > { %v9324_v2 = vpop.f32.mrb[240].mxu0 }
 0x68d   : > { %v9370_v56 = vadd.f32 %v9324_v2, %v19242_v17  ;;  %v9326_v52 = vpop.f32.mrb[241].mxu0 }
 0x68e   : > { %v9327_v10 = vpop.f32.mrb[242].mxu0 }
 0x68f   : > { %v9375_v13 = vadd.f32 %v9327_v10, %v19252_v45  ;;  %v9329_v62 = vpop.f32.mrb[243].mxu0 }
 0x690   : > { %10340 = vmatmul.mubr.bf16.gmra.mrb[28].mxu1 %v19355_v0 }
 0x691   : > { %10261 = vmatmul.mubr.bf16.gmra.mrb[156].mxu0 %v19355_v0  ;;  %13747 = vmatprep.mubr.msk.bf16.mxu1 %vm1007_vm1, %v19362_v28 }
 0x692   : > { %13742 = vmatprep.mubr.msk.bf16.mxu0 %vm1007_vm1, %v19362_v28 }
 0x694   : > { %v9332_v61 = vpop.f32.mrb[244].mxu0 }
 0x695   : > { %v9380_v5 = vadd.f32 %v9332_v61, %v19266_v55  ;;  %v9334_v54 = vpop.f32.mrb[245].mxu0 }
 0x696   : > { %v9335_v17 = vpop.f32.mrb[246].mxu0 }
 0x697   : > { %v9385_v57 = vadd.f32 %v9335_v17, %v19276_v33  ;;  %v9337_v46 = vpop.f32.mrb[247].mxu0 }
 0x698   : > { %10348 = vmatmul.mubr.bf16.gmra.mrb[32].mxu1 %v19371_v41 }
 0x699   : > { %10271 = vmatmul.mubr.bf16.gmra.mrb[160].mxu0 %v19371_v41  ;;  %13748 = vmatprep.mubr.msk.bf16.mxu1 %vm1007_vm1, %v19381_v32 }
 0x69a   : > { %13743 = vmatprep.mubr.msk.bf16.mxu0 %vm1007_vm1, %v19381_v32 }
 0x69b   : > { %v9522_v45 = vpop.f32.mrb[232].mxu1 }
 0x69c   : > { %v9340_v0 = vpop.f32.mrb[248].mxu0  ;;  %v9722_v28 = vadd.f32 %v9522_v45, %v19390_v16  ;;  %v9524_v55 = vpop.f32.mrb[233].mxu1 }
 0x69d   : > { %v9390_v43 = vadd.f32 %v9340_v0, %v19289_v29  ;;  %v9723_v33 = vadd.f32 %v9524_v55, %v19398_v3  ;;  %v9342_v51 = vpop.f32.mrb[249].mxu0  ;;  %v9526_v53 = vpop.f32.mrb[234].mxu1 }
 0x69e   : > { %v9343_v49 = vpop.f32.mrb[250].mxu0  ;;  %v9527_v23 = vpop.f32.mrb[235].mxu1 }
 0x69f   : > { %v9344_v41 = vpop.f32.mrb[251].mxu0 }
 0x6a0   : > { %10356 = vmatmul.mubr.bf16.gmra.mrb[36].mxu1 %v19402_v25 }
 0x6a1   : > { %10281 = vmatmul.mubr.bf16.gmra.mrb[164].mxu0 %v19402_v25  ;;  %13749 = vmatprep.mubr.msk.bf16.mxu1 %vm1007_vm1, %v19374_v63 }
 0x6a2   : > { %13744 = vmatprep.mubr.msk.bf16.mxu0 %vm1007_vm1, %v19374_v63  ;;  %vm12568_vm1 = vcmask 189440  }
 0x6a8   : > { %10364 = vmatmul.mubr.bf16.gmra.mrb[40].mxu1 %v19384_v37 }
 0x6a9   : > { %10291 = vmatmul.mubr.bf16.gmra.mrb[40].mxu0 %v19384_v37 }
 0x6b3   : > { %v9644_v29 = vpop.f32.mrb[236].mxu1 }
 0x6b4   : > { %v9686_v32 = vadd.f32 %v9644_v29, %v19426_v58  ;;  %v9646_v16 = vpop.f32.mrb[237].mxu1 }
 0x6b5   : > { %v9647_v3 = vpop.f32.mrb[238].mxu1 }
 0x6b6   : > { %v9691_v22 = vadd.f32 %v9647_v3, %v19430_v4  ;;  %v9649_v40 = vpop.f32.mrb[239].mxu1 }
 0x6bb   : > { %v9652_v27 = vpop.f32.mrb[240].mxu1 }
 0x6bc   : > { %v9696_v25 = vadd.f32 %v9652_v27, %v9360_v24  ;;  %v9654_v47 = vpop.f32.mrb[241].mxu1 }
 0x6bd   : > { %v9655_v6 = vpop.f32.mrb[242].mxu1 }
 0x6be   : > { %v9701_v26 = vadd.f32 %v9655_v6, %v9365_v30  ;;  %v9657_v42 = vpop.f32.mrb[243].mxu1 }
 0x6c3   : > { %v9660_v8 = vpop.f32.mrb[244].mxu1 }
 0x6c4   : > { %v9706_v63 = vadd.f32 %v9660_v8, %v9370_v56  ;;  %v9662_v9 = vpop.f32.mrb[245].mxu1 }
 0x6c5   : > { %v9663_v44 = vpop.f32.mrb[246].mxu1 }
 0x6c6   : > { %v9711_v18 = vadd.f32 %v9663_v44, %v9375_v13  ;;  %v9665_v37 = vpop.f32.mrb[247].mxu1 }
 0x6cb   : > { %v9668_v2 = vpop.f32.mrb[248].mxu1 }
 0x6cc   : > { %v9716_v52 = vadd.f32 %v9668_v2, %v9380_v5  ;;  %v9670_v58 = vpop.f32.mrb[249].mxu1 }
 0x6cd   : > { %v9671_v10 = vpop.f32.mrb[250].mxu1 }
 0x6ce   : > { %v19474_v62 = vadd.f32 %v9671_v10, %v9385_v57  ;;  %v9673_v4 = vpop.f32.mrb[251].mxu1 }
 0x6d3   : > { %v9676_v61 = vpop.f32.mrb[252].mxu1 }
 0x6d4   : > { %v9603_v54 = vpop.f32.mrb[252].mxu0  ;;  %v19476_v24 = vadd.f32 %v9676_v61, %v9390_v43  ;;  %v9678_v17 = vpop.f32.mrb[253].mxu1 }
 0x6d5   : > { %v9724_v30 = vadd.f32 %v9603_v54, %v19395_v39  ;;  %v9605_v46 = vpop.f32.mrb[253].mxu0  ;;  %v9679_v56 = vpop.f32.mrb[254].mxu1 }
 0x6d6   : > { %v9725_v45 = vadd.f32 %v9605_v46, %v19405_v11  ;;  %v9607_v13 = vpop.f32.mrb[254].mxu0  ;;  %v9680_v0 = vpop.f32.mrb[255].mxu1 }
 0x6d7   : > { %v9608_v55 = vpop.f32.mrb[255].mxu0 }
 0x70b   : > { %v9894_v5 = vpop.f32.mrb[16].mxu1 }
 0x70c   : > { %v10094_v51 = vadd.f32 %v9894_v5, %v9722_v28  ;;  %v9975_v53 = vpop.f32.mrb[16].mxu0  ;;  %v9896_v57 = vpop.f32.mrb[17].mxu1 }
 0x70d   : > { %v19480_v49 = vadd.f32 %v9975_v53, %v9724_v30  ;;  %v10095_v23 = vadd.f32 %v9896_v57, %v9723_v33  ;;  %v9977_v41 = vpop.f32.mrb[17].mxu0  ;;  %v9898_v43 = vpop.f32.mrb[18].mxu1 }
 0x70e   : > { %v19482_v29 = vadd.f32 %v9977_v41, %v9725_v45  ;;  %v9979_v16 = vpop.f32.mrb[18].mxu0  ;;  %v9899_v39 = vpop.f32.mrb[19].mxu1 }
 0x70f   : > { %v9980_v3 = vpop.f32.mrb[19].mxu0 }
 0x723   : > { %v19484_v40 = vpop.f32.mrb[132].mxu1 }
 0x724   : > { %v10016_v11 = vpop.f32.mrb[20].mxu0  ;;  %v19486_v27 = vpop.f32.mrb[133].mxu1 }
 0x725   : > { %v10058_v47 = vadd.f32 %v10016_v11, %v9686_v32  ;;  %v10018_v6 = vpop.f32.mrb[21].mxu0  ;;  %v19488_v28 = vpop.f32.mrb[134].mxu1 }
 0x726   : > { %v10019_v42 = vpop.f32.mrb[22].mxu0  ;;  %v19490_v8 = vpop.f32.mrb[135].mxu1 }
 0x727   : > { %v10063_v33 = vadd.f32 %v10019_v42, %v9691_v22  ;;  %v10021_v9 = vpop.f32.mrb[23].mxu0 }
 0x72b   : > { %v19492_v44 = vpop.f32.mrb[136].mxu1 }
 0x72c   : > { %v10024_v37 = vpop.f32.mrb[24].mxu0  ;;  %v19494_v2 = vpop.f32.mrb[137].mxu1 }
 0x72d   : > { %v19496_v58 = vadd.f32 %v10024_v37, %v9696_v25  ;;  %v10026_v10 = vpop.f32.mrb[25].mxu0  ;;  %v19498_v4 = vpop.f32.mrb[138].mxu1 }
 0x72e   : > { %v10027_v61 = vpop.f32.mrb[26].mxu0  ;;  %v19500_v32 = vpop.f32.mrb[139].mxu1 }
 0x72f   : > { %v19502_v54 = vadd.f32 %v10027_v61, %v9701_v26  ;;  %v10029_v17 = vpop.f32.mrb[27].mxu0 }
 0x733   : > { %v19504_v30 = vpop.f32.mrb[140].mxu1 }
 0x734   : > { %v10032_v22 = vpop.f32.mrb[28].mxu0  ;;  %v19506_v46 = vpop.f32.mrb[141].mxu1 }
 0x735   : > { %v19508_v56 = vadd.f32 %v10032_v22, %v9706_v63  ;;  %v10034_v45 = vpop.f32.mrb[29].mxu0  ;;  %v19510_v13 = vpop.f32.mrb[142].mxu1 }
 0x736   : > { %v10035_v25 = vpop.f32.mrb[30].mxu0  ;;  %v19512_v0 = vpop.f32.mrb[143].mxu1 }
 0x737   : > { %v19514_v55 = vadd.f32 %v10035_v25, %v9711_v18  ;;  %v10037_v5 = vpop.f32.mrb[31].mxu0 }
 0x73b   : > { %v19516_v53 = vpop.f32.mrb[144].mxu1 }
 0x73c   : > { %v10040_v26 = vpop.f32.mrb[32].mxu0  ;;  %v19518_v57 = vpop.f32.mrb[145].mxu1 }
 0x73d   : > { %v19520_v41 = vadd.f32 %v10040_v26, %v9716_v52  ;;  %v10042_v43 = vpop.f32.mrb[33].mxu0  ;;  %v19522_v16 = vpop.f32.mrb[146].mxu1 }
 0x73e   : > { %v10043_v63 = vpop.f32.mrb[34].mxu0  ;;  %v19524_v39 = vpop.f32.mrb[147].mxu1 }
 0x73f   : > { %v19527_v3 = vadd.f32 %v10043_v63, %v19474_v62  ;;  %v10045_v11 = vpop.f32.mrb[35].mxu0 }
 0x743   : > { %v10211_v18 = vpop.f32.mrb[20].mxu1 }
 0x744   : > { %v10048_v6 = vpop.f32.mrb[36].mxu0  ;;  %v19529_v42 = vadd.f32 %v10211_v18, %v10094_v51  ;;  %v10213_v9 = vpop.f32.mrb[21].mxu1 }
 0x745   : > { %v19532_v37 = vadd.f32 %v10048_v6, %v19476_v24  ;;  %v19534_v52 = vadd.f32 %v10213_v9, %v10095_v23  ;;  %v10050_v10 = vpop.f32.mrb[37].mxu0  ;;  %v10215_v61 = vpop.f32.mrb[22].mxu1 }
 0x746   : > { %v10051_v17 = vpop.f32.mrb[38].mxu0  ;;  %v10216_v22 = vpop.f32.mrb[23].mxu1 }
 0x747   : > { %20859 = vst [vmem:[#allocation31_spill] sm:$0xff] %v19534_v52  ;;  %v10052_v45 = vpop.f32.mrb[39].mxu0 }
 0x75b   : > { %v10333_v25 = vpop.f32.mrb[24].mxu1 }
 0x75c   : > { %v10252_v5 = vpop.f32.mrb[152].mxu0  ;;  %v10375_v62 = vadd.f32 %v10333_v25, %v10058_v47  ;;  %v10335_v26 = vpop.f32.mrb[25].mxu1 }
 0x75d   : > { %v10418_v43 = vadd.f32 %v10252_v5, %v18182_v7  ;;  %v10254_v63 = vpop.f32.mrb[153].mxu0  ;;  %v10336_v51 = vpop.f32.mrb[26].mxu1 }
 0x75e   : > { %v10420_v11 = vadd.f32 %v10375_v62, %v18397_v48  ;;  %v10419_v24 = vadd.f32 %v10254_v63, %v18187_v19  ;;  %v10256_v18 = vpop.f32.mrb[154].mxu0  ;;  %v10380_v23 = vadd.f32 %v10336_v51, %v10063_v33  ;;  %v10338_v6 = vpop.f32.mrb[27].mxu1 }
 0x75f   : > { %v10463_v9 = vmax.f32 %v10418_v43, 0.0  ;;  %v10423_v10 = vadd.f32 %v10256_v18, %v18182_v7  ;;  %v10258_v61 = vpop.f32.mrb[155].mxu0 }
 0x760   : > { %v10465_v17 = vmax.f32 %v10420_v11, 0.0  ;;  %v10464_v22 = vmax.f32 %v10419_v24, 0.0  ;;  %v10425_v47 = vadd.f32 %v10380_v23, %v18397_v48  ;;  %v10424_v45 = vadd.f32 %v10258_v61, %v18187_v19 }
 0x761   : > { %v10508_v25 = vmul.f32 %v10463_v9, %v18197_v21  ;;  %v10468_v5 = vmax.f32 %v10423_v10, 0.0 }
 0x762   : > { %v10509_v62 = vmul.f32 %v10464_v22, %v18205_v20  ;;  %v10510_v26 = vmul.f32 %v10465_v17, %v18404_v50  ;;  %v10470_v63 = vmax.f32 %v10425_v47, 0.0  ;;  %v10469_v33 = vmax.f32 %v10424_v45, 0.0 }
 0x763   : > { %v10341_v51 = vpop.f32.mrb[28].mxu1  ;;  %v19546_v43 = vadd.f32 %v10508_v25, %v18213_v38  ;;  %v10513_v11 = vmul.f32 %v10468_v5, %v18197_v21 }
 0x764   : > { %v10262_v24 = vpop.f32.mrb[156].mxu0  ;;  %v10385_v18 = vadd.f32 %v10341_v51, %v19496_v58  ;;  %v10343_v23 = vpop.f32.mrb[29].mxu1  ;;  %v10554_v6 = vadd.f32 %v10509_v62, %v18218_v34  ;;  %v10515_v58 = vmul.f32 %v10470_v63, %v18404_v50  ;;  %v10514_v25 = vmul.f32 %v10469_v33, %v18205_v20 }
 0x765   : > { %v10428_v9 = vadd.f32 %v10262_v24, %v18182_v7  ;;  %10623 = vrot.lane.b32.xlu1 %v19546_v43, %s16333_s29  ;;  %v10264_v10 = vpop.f32.mrb[157].mxu0  ;;  %v10344_v61 = vpop.f32.mrb[30].mxu1  ;;  %v10555_v51 = vadd.f32 %v10510_v26, %v18411_v14 }
 0x766   : > { %v10429_v17 = vadd.f32 %v10264_v10, %v18187_v19  ;;  %v10390_v22 = vadd.f32 %v10344_v61, %v19502_v54  ;;  %10625 = vrot.lane.b32.xlu0 %v10554_v6, %s16333_s29  ;;  %v10266_v47 = vpop.f32.mrb[158].mxu0  ;;  %v10346_v45 = vpop.f32.mrb[31].mxu1  ;;  %v10430_v23 = vadd.f32 %v10385_v18, %v18397_v48  ;;  %v19563_v10 = vadd.f32 %v10513_v11, %v18213_v38 }
 0x767   : > { %v10433_v5 = vadd.f32 %v10266_v47, %v18182_v7  ;;  %v10268_v62 = vpop.f32.mrb[159].mxu0  ;;  %v10473_v24 = vmax.f32 %v10428_v9, 0.0  ;;  %v10559_v9 = vadd.f32 %v10514_v25, %v18218_v34 }
 0x768   : > { %v10474_v52 = vmax.f32 %v10429_v17, 0.0  ;;  %20860 = vst [vmem:[#allocation36_spill] sm:$0xff] %v19563_v10  ;;  %v10435_v54 = vadd.f32 %v10390_v22, %v18397_v48  ;;  %v10434_v6 = vadd.f32 %v10268_v62, %v18187_v19  ;;  %v10475_v61 = vmax.f32 %v10430_v23, 0.0 }
 0x769   : > { %10627 = vrot.lane.b32.xlu1 %v10555_v51, %s16333_s29  ;;  %v10478_v33 = vmax.f32 %v10433_v5, 0.0  ;;  %v10518_v18 = vmul.f32 %v10473_v24, %v18197_v21  ;;  %v10560_v22 = vadd.f32 %v10515_v58, %v18411_v14 }
 0x76a   : > { %10629 = vrot.lane.b32.xlu0 %v19563_v10, %s16333_s29  ;;  %v10519_v63 = vmul.f32 %v10474_v52, %v18205_v20  ;;  %v10480_v52 = vmax.f32 %v10435_v54, 0.0  ;;  %v10479_v23 = vmax.f32 %v10434_v6, 0.0  ;;  %v10520_v58 = vmul.f32 %v10475_v61, %v18404_v50 }
 0x76b   : > { %v10349_v26 = vpop.f32.mrb[32].mxu1  ;;  %v10523_v24 = vmul.f32 %v10478_v33, %v18197_v21  ;;  %v19584_v54 = vadd.f32 %v10518_v18, %v18213_v38 }
 0x76c   : > { %v10272_v11 = vpop.f32.mrb[160].mxu0  ;;  %v10395_v17 = vadd.f32 %v10349_v26, %v19508_v56  ;;  %v10351_v47 = vpop.f32.mrb[33].mxu1  ;;  %v10564_v26 = vadd.f32 %v10519_v63, %v18218_v34  ;;  %v10525_v33 = vmul.f32 %v10480_v52, %v18404_v50  ;;  %v10524_v6 = vmul.f32 %v10479_v23, %v18205_v20 }
 0x76d   : > { %v10274_v45 = vpop.f32.mrb[161].mxu0  ;;  %10631 = vrot.lane.b32.xlu1 %v10559_v9, %s16333_s29  ;;  %v10352_v51 = vpop.f32.mrb[34].mxu1  ;;  %v10438_v10 = vadd.f32 %v10272_v11, %v18182_v7  ;;  %v19593_v61 = vadd.f32 %v10523_v24, %v18213_v38 }
 0x76e   : > { %v10276_v5 = vpop.f32.mrb[162].mxu0  ;;  %v10400_v62 = vadd.f32 %v10352_v51, %v19514_v55  ;;  %10633 = vrot.lane.b32.xlu0 %v10560_v22, %s16333_s29  ;;  %v10354_v25 = vpop.f32.mrb[35].mxu1  ;;  %v10439_v9 = vadd.f32 %v10274_v45, %v18187_v19  ;;  %v10440_v55 = vadd.f32 %v10395_v17, %v18397_v48  ;;  %v10565_v17 = vadd.f32 %v10520_v58, %v18411_v14 }
 0x76f   : > { %v10278_v56 = vpop.f32.mrb[163].mxu0  ;;  %v10483_v11 = vmax.f32 %v10438_v10, 0.0  ;;  %20861 = vst [vmem:[#allocation33_spill] sm:$0xff] %v19593_v61  ;;  %v10443_v18 = vadd.f32 %v10276_v5, %v18182_v7  ;;  %v10570_v58 = vadd.f32 %v10525_v33, %v18411_v14 }
 0x770   : > { %v10484_v47 = vmax.f32 %v10439_v9, 0.0  ;;  %v10485_v23 = vmax.f32 %v10440_v55, 0.0  ;;  %v10445_v9 = vadd.f32 %v10400_v62, %v18397_v48  ;;  %v10569_v55 = vadd.f32 %v10524_v6, %v18218_v34 }
 0x771   : > { %10637 = vrot.lane.b32.xlu1 %v10564_v26, %s16333_s29  ;;  %v10528_v5 = vmul.f32 %v10483_v11, %v18197_v21 }
 0x772   : > { %10635 = vrot.lane.b32.xlu0 %v19584_v54, %s16333_s29 }
 0x773   : > { %v10357_v63 = vpop.f32.mrb[36].mxu1 }
 0x774   : > { %v10282_v22 = vpop.f32.mrb[164].mxu0  ;;  %v10405_v45 = vadd.f32 %v10357_v63, %v19520_v41  ;;  %v10359_v51 = vpop.f32.mrb[37].mxu1  ;;  %v10444_v41 = vadd.f32 %v10278_v56, %v18187_v19  ;;  %v19613_v56 = vadd.f32 %v10528_v5, %v18213_v38 }
 0x775   : > { %v10284_v25 = vpop.f32.mrb[165].mxu0  ;;  %10641 = vrot.lane.b32.xlu1 %v19593_v61, %s16333_s29  ;;  %v10360_v52 = vpop.f32.mrb[38].mxu1  ;;  %v10529_v51 = vmul.f32 %v10484_v47, %v18205_v20  ;;  %v10488_v61 = vmax.f32 %v10443_v18, 0.0  ;;  %v10448_v47 = vadd.f32 %v10282_v22, %v18182_v7 }
 0x776   : > { %v10286_v10 = vpop.f32.mrb[166].mxu0  ;;  %v10410_v26 = vadd.f32 %v10360_v52, %v19527_v3  ;;  %10639 = vrot.lane.b32.xlu0 %v10565_v17, %s16333_s29  ;;  %v10362_v24 = vpop.f32.mrb[39].mxu1  ;;  %v10530_v3 = vmul.f32 %v10485_v23, %v18404_v50  ;;  %v10490_v17 = vmax.f32 %v10445_v9, 0.0  ;;  %v10489_v11 = vmax.f32 %v10444_v41, 0.0 }
 0x777   : > { %v10288_v63 = vpop.f32.mrb[167].mxu0  ;;  %v10449_v62 = vadd.f32 %v10284_v25, %v18187_v19  ;;  %v10533_v33 = vmul.f32 %v10488_v61, %v18197_v21  ;;  %v10574_v24 = vadd.f32 %v10529_v51, %v18218_v34 }
 0x778   : > { %v10534_v22 = vmul.f32 %v10489_v11, %v18205_v20  ;;  %v10575_v51 = vadd.f32 %v10530_v3, %v18411_v14 }
 0x779   : > { %10645 = vrot.lane.b32.xlu1 %v10570_v58, %s16333_s29 }
 0x77a   : > { %10643 = vrot.lane.b32.xlu0 %v10569_v55, %s16333_s29  ;;  %v10494_v55 = vmax.f32 %v10449_v62, 0.0  ;;  %v10579_v3 = vadd.f32 %v10534_v22, %v18218_v34 }
 0x77b   : > { %v10365_v52 = vpop.f32.mrb[40].mxu1 }
 0x77c   : > { %v10292_v18 = vpop.f32.mrb[40].mxu0  ;;  %v10415_v6 = vadd.f32 %v10365_v52, %v19532_v37  ;;  %v10367_v23 = vpop.f32.mrb[41].mxu1  ;;  %v10453_v37 = vadd.f32 %v10286_v10, %v18182_v7  ;;  %v10455_v10 = vadd.f32 %v10410_v26, %v18397_v48 }
 0x77d   : > { %v10413_v58 = vadd.f32 %v10292_v18, %v19480_v49  ;;  %v10294_v9 = vpop.f32.mrb[41].mxu0  ;;  %10647 = vrot.lane.b32.xlu1 %v19613_v56, %s16333_s29  ;;  %v10368_v25 = vpop.f32.mrb[42].mxu1  ;;  %v10535_v49 = vmul.f32 %v10490_v17, %v18404_v50  ;;  %v10493_v18 = vmax.f32 %v10448_v47, 0.0  ;;  %v10450_v23 = vadd.f32 %v10405_v45, %v18397_v48 }
 0x77e   : > { %v10414_v5 = vadd.f32 %v10294_v9, %v19482_v29  ;;  %10649 = vrot.lane.b32.xlu0 %v10574_v24, %s16333_s29  ;;  %v10296_v61 = vpop.f32.mrb[42].mxu0  ;;  %v10369_v41 = vpop.f32.mrb[43].mxu1  ;;  %v19630_v25 = vadd.f32 %v10533_v33, %v18213_v38  ;;  %v10539_v29 = vmul.f32 %v10494_v55, %v18205_v20  ;;  %v10498_v11 = vmax.f32 %v10453_v37, 0.0 }
 0x77f   : > { %v10297_v52 = vpop.f32.mrb[43].mxu0  ;;  %v10538_v17 = vmul.f32 %v10493_v18, %v18197_v21  ;;  %v10495_v62 = vmax.f32 %v10450_v23, 0.0  ;;  %v10454_v45 = vadd.f32 %v10288_v63, %v18187_v19  ;;  %v10580_v33 = vadd.f32 %v10535_v49, %v18411_v14 }
 0x780   : > { %v10543_v47 = vmul.f32 %v10498_v11, %v18197_v21  ;;  %v10500_v24 = vmax.f32 %v10455_v10, 0.0  ;;  %v10458_v9 = vadd.f32 %v10413_v58, %v18182_v7  ;;  %v10584_v26 = vadd.f32 %v10539_v29, %v18218_v34 }
 0x781   : > { %10651 = vrot.lane.b32.xlu1 %v10575_v51, %s16333_s29  ;;  %v10540_v61 = vmul.f32 %v10495_v62, %v18404_v50  ;;  %v10499_v41 = vmax.f32 %v10454_v45, 0.0  ;;  %v10459_v22 = vadd.f32 %v10414_v5, %v18187_v19  ;;  %v19649_v63 = vadd.f32 %v10538_v17, %v18213_v38  ;;  %v20866_v17 = vld [vmem:[#allocation25_spill] sm:$0xff]  ;;  %v20867_v62 = vld [vmem:[#allocation26_spill] sm:$0xff] }
 0x782   : > { %10653 = vrot.lane.b32.xlu0 %v19630_v25, %s16333_s29  ;;  %v10545_v55 = vmul.f32 %v10500_v24, %v18404_v50  ;;  %v10503_v37 = vmax.f32 %v10458_v9, 0.0  ;;  %v10460_v7 = vadd.f32 %v10415_v6, %v18397_v48  ;;  %v19657_v58 = vadd.f32 %v10543_v47, %v18213_v38 }
 0x783   : > { %v10544_v51 = vmul.f32 %v10499_v41, %v18205_v20  ;;  %v10504_v52 = vmax.f32 %v10459_v22, 0.0  ;;  %v10585_v19 = vadd.f32 %v10540_v61, %v18411_v14  ;;  %v10416_v41 = vadd.f32 %v19484_v40, %v18511_v15 }
 0x784   : > { %20862 = vst [vmem:[#allocation68_spill] sm:$0xff] %v19657_v58  ;;  %v10548_v5 = vmul.f32 %v10503_v37, %v18197_v21  ;;  %v10505_v49 = vmax.f32 %v10460_v7, 0.0  ;;  %v10590_v18 = vadd.f32 %v10545_v55, %v18411_v14  ;;  %v20864_v21 = vld [vmem:[#allocation16_spill] sm:$0xff]  ;;  %v19697_v22 = vsel %vm7734_vm4, %v18519_v31, %v18529_v1  ;;  %v20868_v55 = vld [vmem:[#allocation23_spill] sm:$0xff] }
 0x785   : > { %10655 = vrot.lane.b32.xlu1 %v10579_v3, %s16333_s29  ;;  %v10549_v48 = vmul.f32 %v10504_v52, %v18205_v20  ;;  %v10589_v6 = vadd.f32 %v10544_v51, %v18218_v34  ;;  %v7419_v10 = vadd.f32 %v18511_v15, %v20864_v21  ;;  %v20865_v3 = vld [vmem:[#allocation14_spill] sm:$0xff]  ;;  %v20869_v37 = vld [vmem:[#allocation19_spill] sm:$0xff]  ;;  %v10417_v40 = vadd.f32 %v19486_v27, %v18710_v35 }
 0x786   : > { %10657 = vrot.lane.b32.xlu0 %v10580_v33, %s16333_s29  ;;  %v10550_v23 = vmul.f32 %v10505_v49, %v18404_v50  ;;  %v19672_v29 = vadd.f32 %v10548_v5, %v18213_v38  ;;  %v7420_v50 = vadd.f32 %v18710_v35, %v20865_v3  ;;  %v7424_v38 = vadd.f32 %v18511_v15, %v20866_v17  ;;  %v20870_v5 = vld [vmem:[#allocation30_spill] sm:$0xff] }
 0x787   : > { %v10594_v11 = vadd.f32 %v10549_v48, %v18218_v34  ;;  %v7425_v34 = vadd.f32 %v18710_v35, %v20867_v62  ;;  %v7464_v45 = vmax.f32 %v7419_v10, 0.0  ;;  %v19702_v7 = vsel %vm7734_vm4, %v20869_v37, %v20868_v55 }
 0x788   : > { %20863 = vst [vmem:[#allocation47_spill] sm:$0xff] %v19672_v29  ;;  %v10595_v20 = vadd.f32 %v10550_v23, %v18411_v14  ;;  %v7465_v33 = vmax.f32 %v7420_v50, 0.0  ;;  %v7469_v47 = vmax.f32 %v7424_v38, 0.0  ;;  %v19718_v31 = vsel %vm7734_vm4, %v18529_v1, %v20870_v5 }
 0x789   : > { %10661 = vrot.lane.b32.xlu1 %v10584_v26, %s16333_s29  ;;  %v7470_v24 = vmax.f32 %v7425_v34, 0.0  ;;  %v7536_v14 = vmul.f32 %v18543_v60, %v7464_v45  ;;  %v10422_v1 = vadd.f32 %v19490_v8, %v18710_v35  ;;  %v10426_v10 = vadd.f32 %v19492_v44, %v18511_v15  ;;  %v20873_v8 = vld [vmem:[#allocation18_spill] sm:$0xff]  ;;  %v20874_v34 = vld [vmem:[#allocation17_spill] sm:$0xff]  ;;  %v20875_v45 = vld [vmem:[#allocation20_spill] sm:$0xff] }
 0x78a   : > { %10659 = vrot.lane.b32.xlu0 %v19649_v63, %s16333_s29  ;;  %v7537_v9 = vmul.f32 %v18726_v36, %v7465_v33  ;;  %v7541_v26 = vmul.f32 %v18543_v60, %v7469_v47  ;;  %v10427_v3 = vadd.f32 %v19494_v2, %v18710_v35  ;;  %v10462_v62 = vmax.f32 %v10417_v40, 0.0  ;;  %v20876_v44 = vld [vmem:[#allocation94_spill] sm:$0xff]  ;;  %v20878_v2 = vld [vmem:[#allocation60_spill] sm:$0xff] }
 0x78b   : > { %v7542_v61 = vmul.f32 %v18726_v36, %v7470_v24  ;;  %v19705_v51 = vadd.f32 %v18559_v12, %v7536_v14  ;;  %v20877_v47 = vld [vmem:[#allocation38_spill] sm:$0xff]  ;;  %v20879_v14 = vld [vmem:[#allocation39_spill] sm:$0xff]  ;;  %v10467_v37 = vmax.f32 %v10422_v1, 0.0  ;;  %v10432_v38 = vadd.f32 %v19500_v32, %v18710_v35 }
 0x78c   : > { %v19708_v52 = vadd.f32 %v18559_v12, %v7541_v26  ;;  %v20880_v26 = vld [vmem:[#allocation97_spill] sm:$0xff]  ;;  %v10471_v33 = vmax.f32 %v10426_v10, 0.0  ;;  %v10472_v50 = vmax.f32 %v10427_v3, 0.0  ;;  %v10507_v24 = vmul.f32 %v10462_v62, %v18726_v36 }
 0x78d   : > { %10665 = vrot.lane.b32.xlu1 %v19657_v58, %s16333_s29  ;;  %v19721_v49 = vadd.f32 %v18739_v59, %v7542_v61  ;;  %v20881_v61 = vld [vmem:[#allocation41_spill] sm:$0xff]  ;;  %v10442_v10 = vadd.f32 %v19512_v0, %v18710_v35  ;;  %v10446_v3 = vadd.f32 %v19516_v53, %v18511_v15 }
 0x78e   : > { %10663 = vrot.lane.b32.xlu0 %v10585_v19, %s16333_s29  ;;  %v19711_v19 = vadd.f32 %v18739_v59, %v7537_v9  ;;  %v10517_v32 = vmul.f32 %v10472_v50, %v18726_v36  ;;  %v10552_v1 = vadd.f32 %v10507_v24, %v18739_v59  ;;  %v10452_v50 = vadd.f32 %v19524_v39, %v18710_v35 }
 0x78f   : > { %v10487_v53 = vmax.f32 %v10442_v10, 0.0  ;;  %v10491_v9 = vmax.f32 %v10446_v3, 0.0 }
 0x790   : > { %v19796_v10 = vadd.f32 %v10517_v32, %v18739_v59  ;;  %v10497_v40 = vmax.f32 %v10452_v50, 0.0 }
 0x791   : > { %10669 = vrot.lane.b32.xlu1 %v10590_v18, %s16333_s29  ;;  %v20871_v18 = vld [vmem:[#allocation28_spill] sm:$0xff] }
 0x792   : > { %10667 = vrot.lane.b32.xlu0 %v10589_v6, %s16333_s29  ;;  %v19726_v48 = vsel %vm7734_vm4, %v20868_v55, %v20871_v18  ;;  %v10421_v6 = vadd.f32 %v19488_v28, %v18511_v15  ;;  %v10431_v28 = vadd.f32 %v19498_v4, %v18511_v15 }
 0x794   : > { %v10466_v4 = vmax.f32 %v10421_v6, 0.0  ;;  %v10476_v21 = vmax.f32 %v10431_v28, 0.0  ;;  %v10436_v6 = vadd.f32 %v19504_v30, %v18511_v15  ;;  %v10512_v28 = vmul.f32 %v10467_v37, %v18726_v36 }
 0x795   : > { %10671 = vrot.lane.b32.xlu1 %v19672_v29, %s16333_s29  ;;  %v10477_v30 = vmax.f32 %v10432_v38, 0.0  ;;  %v10451_v38 = vadd.f32 %v19522_v16, %v18511_v15 }
 0x796   : > { %10673 = vrot.lane.b32.xlu0 %v10594_v11, %s16333_s29  ;;  %v10461_v11 = vmax.f32 %v10416_v41, 0.0  ;;  %v10437_v41 = vadd.f32 %v19506_v46, %v18710_v35  ;;  %v10511_v23 = vmul.f32 %v10466_v4, %v18543_v60  ;;  %v10447_v46 = vadd.f32 %v19518_v57, %v18710_v35 }
 0x797   : > { %v10521_v4 = vmul.f32 %v10476_v21, %v18543_v60  ;;  %v10481_v27 = vmax.f32 %v10436_v6, 0.0  ;;  %v16334_v21 = vmov 1983009808  }
 0x798   : > { %v10506_v55 = vmul.f32 %v10461_v11, %v18543_v60  ;;  %v10441_v11 = vadd.f32 %v19510_v13, %v18511_v15  ;;  %v10516_v13 = vmul.f32 %v10471_v33, %v18543_v60  ;;  %v10482_v29 = vmax.f32 %v10437_v41, 0.0 }
 0x799   : > { %10675 = vrot.lane.b32.xlu1 %v10595_v20, %s16333_s29  ;;  %v20872_v20 = vld [vmem:[#allocation34_spill] sm:$0xff]  ;;  %v10556_v57 = vadd.f32 %v10511_v23, %v18559_v12  ;;  %v10492_v37 = vmax.f32 %v10447_v46, 0.0  ;;  %v10807_v6 = vunpack.c.l.s4 %v16334_v21  ;;  %v19799_v16 = vadd.f32 %v10521_v4, %v18559_v12 }
 0x79a   : > { %v10551_v62 = vadd.f32 %v10506_v55, %v18559_v12  ;;  %v10486_v0 = vmax.f32 %v10441_v11, 0.0  ;;  %v10522_v55 = vmul.f32 %v10477_v30, %v18726_v36  ;;  %v10557_v11 = vadd.f32 %v10512_v28, %v18739_v59 }
 0x79b   : > { %v19793_v24 = vadd.f32 %v10516_v13, %v18559_v12  ;;  %v10526_v23 = vmul.f32 %v10481_v27, %v18543_v60  ;;  %v10527_v3 = vmul.f32 %v10482_v29, %v18726_v36  ;;  %v10532_v46 = vmul.f32 %v10487_v53, %v18726_v36 }
 0x79c   : > { %v10531_v39 = vmul.f32 %v10486_v0, %v18543_v60  ;;  %v10536_v28 = vmul.f32 %v10491_v9, %v18543_v60  ;;  %v10496_v13 = vmax.f32 %v10451_v38, 0.0  ;;  %v10537_v32 = vmul.f32 %v10492_v37, %v18726_v36 }
 0x79d   : > { %v10808_v17 = vunpack.c.0.s8 %v10807_v6  ;;  %v19809_v58 = vadd.f32 %v10522_v55, %v18739_v59  ;;  %v10456_v29 = vadd.f32 %v19529_v42, %v18511_v15  ;;  %v20886_v27 = vmax.f32 %v19705_v51, %v19697_v22 }
 0x79e   : > { %v19819_v37 = vadd.f32 %v10526_v23, %v18559_v12  ;;  %v19822_v50 = vadd.f32 %v10527_v3, %v18739_v59  ;;  %v19825_v55 = vadd.f32 %v10531_v39, %v18559_v12  ;;  %v10541_v15 = vmul.f32 %v10496_v13, %v18543_v60  ;;  %v20891_v39 = vld [vmem:[#allocation31_spill] sm:$0xff] }
 0x79f   : > { %v20887_v42 = vmax.f32 %v20872_v20, %v20870_v5  ;;  %v19832_v51 = vadd.f32 %v10532_v46, %v18739_v59  ;;  %v19847_v5 = vadd.f32 %v10537_v32, %v18739_v59  ;;  %v10501_v20 = vmax.f32 %v10456_v29, 0.0 }
 0x7a0   : > { %v19858_v29 = vadd.f32 %v10541_v15, %v18559_v12 }
 0x7a2   : > { %20894 = vst [vmem:[#allocation37_spill] sm:$0xff] %v19858_v29 }
 0x7d7   : > { %v10624_v33 = vpop.permute.xlu1 %10623 }
 0x7d8   : > { %v10626_v41 = vpop.permute.xlu0 %10625 }
 0x7d9   : > { %v10677_v30 = vsel %vm7734_vm4, %v10624_v33, %v10626_v41  ;;  %v20889_v33 = vld [vmem:[#allocation15_spill] sm:$0xff] }
 0x7da   : > { %v10722_v21 = vmax.f32 %v10551_v62, %v10677_v30  ;;  %v19841_v6 = vsub.s32 %v10808_v17, %v20889_v33  ;;  %v19851_v30 = vadd.f32 %v20891_v39, %v18710_v35 }
 0x7db   : > { %v10628_v4 = vpop.permute.xlu1 %10627 }
 0x7dc   : > { %v10749_v0 = vmax.f32 %v20886_v27, %v10722_v21  ;;  %v10678_v53 = vsel %vm7734_vm4, %v10626_v41, %v10628_v4  ;;  %v10724_v9 = vmax.f32 %v19546_v43, %v10628_v4  ;;  %v10630_v62 = vpop.permute.xlu0 %10629  ;;  %v19835_v43 = vadd.f32 %v10536_v28, %v18559_v12  ;;  %20892 = vst [vmem:[#allocation48_spill] sm:$0xff] %v19851_v30  ;;  %v20893_v27 = vld [vmem:[#allocation36_spill] sm:$0xff] }
 0x7dd   : > { %v10723_v38 = vmax.f32 %v10552_v1, %v10678_v53  ;;  %v19838_v1 = vmul.f32 %v10497_v40, %v18726_v36  ;;  %v20890_v41 = vmax.f32 %v19711_v19, %v19718_v31 }
 0x7de   : > { %v10751_v22 = vmax.f32 %v20887_v42, %v10724_v9  ;;  %v20898_v42 = vmax.f32 %v20873_v8, %v20871_v18 }
 0x7df   : > { %20888 = vst [vmem:[#allocation35_spill] sm:$0xff] %v19838_v1  ;;  %v10750_v23 = vmax.f32 %v20890_v41, %v10723_v38  ;;  %v10632_v3 = vpop.permute.xlu1 %10631  ;;  %v20897_v38 = vmax.f32 %v19721_v49, %v19726_v48 }
 0x7e0   : > { %v10805_v46 = vcombine.high %v10751_v22, %v10751_v22  ;;  %v10679_v40 = vsel %vm7734_vm4, %v10630_v62, %v10632_v3  ;;  %v10634_v28 = vpop.permute.xlu0 %10633  ;;  %v10826_v9 = vrot.slane %v10751_v22, %v19841_v6  ;;  %v19867_v62 = vmul.f32 %v10501_v20, %v18543_v60 }
 0x7e1   : > { %v10803_v13 = vcombine.low %v10749_v0, %v10750_v23  ;;  %v10804_v17 = vcombine.high %v10749_v0, %v10750_v23  ;;  %v10725_v21 = vmax.f32 %v10556_v57, %v10679_v40  ;;  %v10680_v4 = vsel %vm7734_vm4, %v10632_v3, %v10634_v28 }
 0x7e2   : > { %v10833_v19 = vrot.slane %v10805_v46, %v19841_v6  ;;  %v10726_v31 = vmax.f32 %v10557_v11, %v10680_v4  ;;  %v10727_v32 = vmax.f32 %v20893_v27, %v10634_v28  ;;  %v20895_v0 = vmax.f32 %v19708_v52, %v19702_v7  ;;  %20896 = vst [vmem:[#allocation73_spill] sm:$0xff] %v19867_v62 }
 0x7e3   : > { %v10812_v35 = vrot.slane %v10803_v13, %v19841_v6  ;;  %v10819_v53 = vrot.slane %v10804_v17, %v19841_v6  ;;  %v19876_v39 = vpop.permute.xlu1 %10637 }
 0x7e4   : > { %v10752_v57 = vmax.f32 %v20895_v0, %v10725_v21  ;;  %v10753_v15 = vmax.f32 %v20897_v38, %v10726_v31  ;;  %v10754_v33 = vmax.f32 %v20898_v42, %v10727_v32  ;;  %v10636_v7 = vpop.permute.xlu0 %10635 }
 0x7e5   : > { %v10834_v41 = vcombine.low %v10812_v35, %v10826_v9  ;;  %v10835_v23 = vcombine.high %v10812_v35, %v10826_v9  ;;  %v10836_v22 = vcombine.low %v10819_v53, %v10833_v19  ;;  %v10837_v3 = vcombine.high %v10819_v53, %v10833_v19  ;;  %v20899_v9 = vld [vmem:[#allocation45_spill] sm:$0xff] }
 0x7e6   : > { %v10838_v52 = vcombine.low %v10752_v57, %v10753_v15  ;;  %v10839_v60 = vcombine.high %v10752_v57, %v10753_v15  ;;  %v10840_v20 = vcombine.high %v10754_v33, %v10754_v33  ;;  %v10861_v46 = vrot.slane %v10754_v33, %v19841_v6  ;;  %v20900_v57 = vld [vmem:[#allocation13_spill] sm:$0xff]  ;;  %v20901_v15 = vld [vmem:[#allocation42_spill] sm:$0xff] }
 0x7e7   : > { %v13750_v40 = vrot.slane %v10834_v41, 9  ;;  %v13751_v28 = vrot.slane %v10835_v23, 9  ;;  %v13752_v49 = vrot.slane %v10836_v22, 9  ;;  %v13753_v48 = vrot.slane %v10837_v3, 9 }
 0x7e8   : > { %v10847_v13 = vrot.slane %v10838_v52, %v19841_v6  ;;  %v10854_v18 = vrot.slane %v10839_v60, %v19841_v6  ;;  %v10868_v8 = vrot.slane %v10840_v20, %v19841_v6  ;;  %v19884_v17 = vsel %vm7734_vm4, %v10636_v7, %v19876_v39 }
 0x7e9   : > { %v11257_v21 = vmax.f32 %v10834_v41, %v13750_v40  ;;  %v11258_v4 = vmax.f32 %v10835_v23, %v13751_v28  ;;  %v11259_v19 = vmax.f32 %v10836_v22, %v13752_v49  ;;  %v11260_v31 = vmax.f32 %v10837_v3, %v13753_v48 }
 0x7ea   : > { %v19886_v27 = vcombine.low %v10847_v13, %v10861_v46  ;;  %v19888_v32 = vcombine.high %v10847_v13, %v10861_v46  ;;  %v19890_v35 = vcombine.low %v10854_v18, %v10868_v8  ;;  %v19892_v53 = vcombine.high %v10854_v18, %v10868_v8 }
 0x7eb   : > { %v11330_v0 = vrot.slane %v11257_v21, %v20899_v9  ;;  %v11334_v38 = vrot.slane %v11257_v21, %v20900_v57  ;;  %v11338_v42 = vrot.slane %v11257_v21, %v20901_v15  ;;  %v11342_v33 = vrot.slane %v11258_v4, %v20899_v9 }
 0x7ec   : > { %v11346_v41 = vrot.slane %v11258_v4, %v20900_v57  ;;  %v11350_v23 = vrot.slane %v11258_v4, %v20901_v15  ;;  %v11354_v22 = vrot.slane %v11259_v19, %v20899_v9  ;;  %v11358_v3 = vrot.slane %v11259_v19, %v20900_v57 }
 0x7ed   : > { %v11362_v7 = vrot.slane %v11259_v19, %v20901_v15  ;;  %v11366_v52 = vrot.slane %v11260_v31, %v20899_v9  ;;  %v11370_v60 = vrot.slane %v11260_v31, %v20900_v57  ;;  %v11374_v20 = vrot.slane %v11260_v31, %v20901_v15 }
 0x7ee   : > { %v13858_v46 = vpack.c.bf16 %v11334_v38, %v11330_v0  ;;  %v13859_v40 = vpack.c.bf16 %v11338_v42, %v11338_v42  ;;  %v13860_v28 = vpack.c.bf16 %v11346_v41, %v11342_v33  ;;  %v13861_v49 = vpack.c.bf16 %v11350_v23, %v11350_v23 }
 0x7ef   : > { %v13862_v48 = vpack.c.bf16 %v11358_v3, %v11354_v22  ;;  %v13863_v13 = vpack.c.bf16 %v11362_v7, %v11362_v7  ;;  %v13864_v18 = vpack.c.bf16 %v11370_v60, %v11366_v52  ;;  %v13865_v8 = vpack.c.bf16 %v11374_v20, %v11374_v20 }
 0x7f0   : > { %v12237_v21 = vunpack.c.l.b16 %v13858_v46  ;;  %v12238_v4 = vunpack.c.h.b16 %v13858_v46  ;;  %v12239_v11 = vunpack.c.l.b16 %v13859_v40  ;;  %v12240_v62 = vunpack.c.l.b16 %v13860_v28 }
 0x7f1   : > { %v12241_v12 = vunpack.c.h.b16 %v13860_v28  ;;  %v12242_v19 = vunpack.c.l.b16 %v13861_v49  ;;  %v12243_v29 = vunpack.c.l.b16 %v13862_v48  ;;  %v12244_v1 = vunpack.c.h.b16 %v13862_v48 }
 0x7f2   : > { %v12245_v59 = vunpack.c.l.b16 %v13863_v13  ;;  %v12246_v30 = vunpack.c.l.b16 %v13864_v18  ;;  %v12247_v31 = vunpack.c.h.b16 %v13864_v18  ;;  %v12248_v0 = vunpack.c.l.b16 %v13865_v8 }
 0x7f3   : > { %v12342_v38 = vrot.slane %v12240_v62, 7  ;;  %v12345_v42 = vrot.slane %v12243_v29, 6  ;;  %v12363_v33 = vrot.slane %v12241_v12, 7  ;;  %v12365_v41 = vrot.slane %v12244_v1, 6 }
 0x7f4   : > { %v12348_v23 = vrot.slane %v12246_v30, 5  ;;  %v12367_v22 = vrot.slane %v12247_v31, 5  ;;  %v12377_v3 = vrot.slane %v12242_v19, 7  ;;  %v12379_v7 = vrot.slane %v12245_v59, 6  ;;  %v19915_v59 = vpop.permute.xlu0 %10639 }
 0x7f5   : > { %v12344_v52 = vsel %vm12343_vm5, %v12342_v38, %v12237_v21  ;;  %v12364_v60 = vsel %vm12343_vm5, %v12363_v33, %v12238_v4  ;;  %v12381_v20 = vrot.slane %v12248_v0, 5  ;;  %v13754_v46 = vrot.slane %v19886_v27, 9  ;;  %v19939_v4 = vpop.permute.xlu1 %10641 }
 0x7f6   : > { %v12347_v62 = vsel %vm12346_vm6, %v12345_v42, %v12344_v52  ;;  %v12366_v29 = vsel %vm12346_vm6, %v12365_v41, %v12364_v60  ;;  %v12378_v12 = vsel %vm12343_vm5, %v12377_v3, %v12239_v11  ;;  %v13755_v1 = vrot.slane %v19888_v32, 9 }
 0x7f7   : > { %v19918_v30 = vsel %vm12349_vm7, %v12348_v23, %v12347_v62  ;;  %v19921_v40 = vsel %vm12349_vm7, %v12367_v22, %v12366_v29  ;;  %v12380_v28 = vsel %vm12346_vm6, %v12379_v7, %v12378_v12  ;;  %v13756_v49 = vrot.slane %v19890_v35, 9 }
 0x7f8   : > { %v19926_v48 = vsel %vm12349_vm7, %v12381_v20, %v12380_v28  ;;  %v13757_v11 = vrot.slane %v19892_v53, 9  ;;  %v11261_v13 = vmax.f32 %v19886_v27, %v13754_v46  ;;  %v11262_v18 = vmax.f32 %v19888_v32, %v13755_v1 }
 0x7f9   : > { %v11263_v8 = vmax.f32 %v19890_v35, %v13756_v49  ;;  %v19944_v19 = vsel %vm7734_vm4, %v19876_v39, %v19915_v59 }
 0x7fa   : > { %v11264_v32 = vmax.f32 %v19892_v53, %v13757_v11  ;;  %v11378_v35 = vrot.slane %v11261_v13, %v20899_v9  ;;  %v11382_v31 = vrot.slane %v11261_v13, %v20900_v57  ;;  %v11386_v0 = vrot.slane %v11261_v13, %v20901_v15  ;;  %v10646_v11 = vpop.permute.xlu1 %10645 }
 0x7fb   : > { %v11390_v39 = vrot.slane %v11262_v18, %v20899_v9  ;;  %v11394_v38 = vrot.slane %v11262_v18, %v20900_v57  ;;  %v11398_v42 = vrot.slane %v11262_v18, %v20901_v15  ;;  %v11402_v33 = vrot.slane %v11263_v8, %v20899_v9 }
 0x7fc   : > { %v11406_v41 = vrot.slane %v11263_v8, %v20900_v57  ;;  %v11410_v53 = vrot.slane %v11263_v8, %v20901_v15  ;;  %v11414_v23 = vrot.slane %v11264_v32, %v20899_v9  ;;  %v11418_v22 = vrot.slane %v11264_v32, %v20900_v57 }
 0x7fd   : > { %v11422_v3 = vrot.slane %v11264_v32, %v20901_v15  ;;  %v13866_v7 = vpack.c.bf16 %v11382_v31, %v11378_v35  ;;  %v13867_v52 = vpack.c.bf16 %v11386_v0, %v11386_v0  ;;  %v13868_v60 = vpack.c.bf16 %v11394_v38, %v11390_v39 }
 0x7fe   : > { %v13869_v20 = vpack.c.bf16 %v11398_v42, %v11398_v42  ;;  %v13870_v46 = vpack.c.bf16 %v11406_v41, %v11402_v33  ;;  %v13871_v62 = vpack.c.bf16 %v11410_v53, %v11410_v53  ;;  %v13872_v29 = vpack.c.bf16 %v11418_v22, %v11414_v23 }
 0x7ff   : > { %v13873_v12 = vpack.c.bf16 %v11422_v3, %v11422_v3  ;;  %v12249_v1 = vunpack.c.l.b16 %v13866_v7  ;;  %v12250_v28 = vunpack.c.h.b16 %v13866_v7  ;;  %v12251_v49 = vunpack.c.l.b16 %v13867_v52 }
 0x800   : > { %v12252_v13 = vunpack.c.l.b16 %v13868_v60  ;;  %v12253_v18 = vunpack.c.h.b16 %v13868_v60  ;;  %v12254_v8 = vunpack.c.l.b16 %v13869_v20  ;;  %v12255_v27 = vunpack.c.l.b16 %v13870_v46  ;;  %v10644_v60 = vpop.permute.xlu0 %10643 }
 0x801   : > { %v12256_v21 = vunpack.c.h.b16 %v13870_v46  ;;  %v12257_v32 = vunpack.c.l.b16 %v13871_v62  ;;  %v12258_v35 = vunpack.c.l.b16 %v13872_v29  ;;  %v12259_v31 = vunpack.c.h.b16 %v13872_v29 }
 0x802   : > { %v12260_v0 = vunpack.c.l.b16 %v13873_v12  ;;  %v12351_v39 = vrot.slane %v12249_v1, 4  ;;  %v12354_v38 = vrot.slane %v12252_v13, 3  ;;  %v12357_v42 = vrot.slane %v12255_v27, 2  ;;  %v10648_v27 = vpop.permute.xlu1 %10647 }
 0x803   : > { %v12360_v33 = vrot.slane %v12258_v35, 1  ;;  %v12369_v41 = vrot.slane %v12250_v28, 4  ;;  %v12371_v53 = vrot.slane %v12253_v18, 3  ;;  %v12373_v23 = vrot.slane %v12256_v21, 2  ;;  %v20903_v28 = vld [vmem:[#allocation27_spill] sm:$0xff] }
 0x804   : > { %v12353_v22 = vsel %vm12352_vm8, %v12351_v39, %v19918_v30  ;;  %v12375_v3 = vrot.slane %v12259_v31, 1  ;;  %v12383_v7 = vrot.slane %v12251_v49, 4  ;;  %v12385_v52 = vrot.slane %v12254_v8, 3  ;;  %v20904_v49 = vld [vmem:[#allocation22_spill] sm:$0xff]  ;;  %v20909_v39 = vld [vmem:[#allocation33_spill] sm:$0xff] }
 0x805   : > { %v12356_v20 = vsel %vm12355_vm9, %v12354_v38, %v12353_v22  ;;  %v12370_v46 = vsel %vm12352_vm8, %v12369_v41, %v19921_v40  ;;  %v12387_v62 = vrot.slane %v12257_v32, 2  ;;  %v12389_v29 = vrot.slane %v12260_v0, 1 }
 0x806   : > { %v12359_v12 = vsel %vm12358_vm10, %v12357_v42, %v12356_v20  ;;  %v12372_v21 = vsel %vm12355_vm9, %v12371_v53, %v12370_v46  ;;  %v12384_v30 = vsel %vm12352_vm8, %v12383_v7, %v19926_v48  ;;  %v20902_v1 = vmax.f32 %v19793_v24, %v19884_v17  ;;  %v20910_v42 = vld [vmem:[#allocation57_spill] sm:$0xff] }
 0x807   : > { %v20905_v13 = vmax.f32 %v20903_v28, %v20904_v49  ;;  %v12362_v8 = vsel %vm12361_vm11, %v12360_v33, %v12359_v12  ;;  %v12374_v40 = vsel %vm12358_vm10, %v12373_v23, %v12372_v21  ;;  %v12386_v32 = vsel %vm12355_vm9, %v12385_v52, %v12384_v30  ;;  %v20911_v33 = vld [vmem:[#allocation58_spill] sm:$0xff]  ;;  %v20914_v30 = vld [vmem:[#allocation29_spill] sm:$0xff] }
 0x808   : > { %v10729_v35 = vmax.f32 %v19796_v10, %v19944_v19  ;;  %v12376_v24 = vsel %vm12361_vm11, %v12375_v3, %v12374_v40  ;;  %v12388_v17 = vsel %vm12358_vm10, %v12387_v62, %v12386_v32  ;;  %v20907_v48 = vmax.f32 %v19584_v54, %v19915_v59  ;;  %v10650_v59 = vpop.permute.xlu0 %10649  ;;  %v20018_v62 = vpop.permute.xlu1 %10651  ;;  %v20917_v49 = vld [vmem:[#allocation93_spill] sm:$0xff] }
 0x809   : > { %v10755_v18 = vmax.f32 %v20905_v13, %v20902_v1  ;;  %v20908_v31 = vmax.f32 %v20875_v45, %v20874_v34  ;;  %v10733_v38 = vmax.f32 %v20909_v39, %v10646_v11  ;;  %v12390_v10 = vsel %vm12361_vm11, %v12389_v29, %v12388_v17  ;;  %v20915_v1 = vld [vmem:[#allocation24_spill] sm:$0xff] }
 0x80a   : > { %v12529_v19 = vpack.c.b16 %v12376_v24, %v12362_v8  ;;  %v20912_v41 = vmax.f32 %v20910_v42, %v20911_v33  ;;  %v10683_v23 = vsel %vm7734_vm4, %v19939_v4, %v10644_v60  ;;  %v12530_v22 = vpack.c.b16 %v12390_v10, %v12390_v10  ;;  %v20918_v13 = vld [vmem:[#allocation40_spill] sm:$0xff] }
 0x80b   : > { %v10757_v0 = vmax.f32 %v20908_v31, %v20907_v48  ;;  %v20913_v34 = vmax.f32 %v20877_v47, %v20876_v44  ;;  %v10684_v20 = vsel %vm7734_vm4, %v10644_v60, %v10646_v11  ;;  %v10731_v46 = vmax.f32 %v19799_v16, %v10683_v23  ;;  %v20921_v39 = vld [vmem:[#allocation84_spill] sm:$0xff] }
 0x80c   : > { %v10756_v53 = vmax.f32 %v20912_v41, %v10729_v35  ;;  %12549 = vst [vmem:[%s19994_s26] sm:$0xff] %v12529_v19  ;;  %12551 = vst.msk [vmem:[%s19994_s26 + $0x8] sm:$0xf] %vm12550_vm12, %v12530_v22  ;;  %v10732_v44 = vmax.f32 %v19809_v58, %v10684_v20  ;;  %v20916_v11 = vmax.f32 %v20914_v30, %v20915_v1  ;;  %v20923_v22 = vld [vmem:[#allocation59_spill] sm:$0xff] }
 0x80d   : > { %v10875_v3 = vcombine.high %v10757_v0, %v10757_v0  ;;  %v10896_v54 = vrot.slane %v10757_v0, %v19841_v6  ;;  %v10760_v45 = vmax.f32 %v20913_v34, %v10733_v38  ;;  %v10685_v16 = vsel %vm7734_vm4, %v10648_v27, %v10650_v59  ;;  %v20920_v0 = vld [vmem:[#allocation83_spill] sm:$0xff] }
 0x80e   : > { %v10873_v7 = vcombine.low %v10755_v18, %v10756_v53  ;;  %v10874_v52 = vcombine.high %v10755_v18, %v10756_v53  ;;  %v10758_v60 = vmax.f32 %v20916_v11, %v10731_v46  ;;  %v20919_v18 = vmax.f32 %v20917_v49, %v20918_v13 }
 0x80f   : > { %v10903_v4 = vrot.slane %v10875_v3, %v19841_v6  ;;  %v10910_v29 = vcombine.high %v10760_v45, %v10760_v45  ;;  %v10931_v12 = vrot.slane %v10760_v45, %v19841_v6  ;;  %v10734_v40 = vmax.f32 %v19819_v37, %v10685_v16  ;;  %v20924_v3 = vld [vmem:[#allocation95_spill] sm:$0xff] }
 0x810   : > { %v10882_v47 = vrot.slane %v10873_v7, %v19841_v6  ;;  %v10889_v21 = vrot.slane %v10874_v52, %v19841_v6  ;;  %v10759_v8 = vmax.f32 %v20919_v18, %v10732_v44  ;;  %v10686_v58 = vsel %vm7734_vm4, %v10650_v59, %v20018_v62 }
 0x811   : > { %v10938_v28 = vrot.slane %v10910_v29, %v19841_v6  ;;  %v20922_v27 = vmax.f32 %v20920_v0, %v20921_v39  ;;  %v10735_v10 = vmax.f32 %v19822_v50, %v10686_v58  ;;  %v10736_v23 = vmax.f32 %v19613_v56, %v20018_v62 }
 0x812   : > { %v10904_v32 = vcombine.low %v10882_v47, %v10896_v54  ;;  %v10905_v35 = vcombine.high %v10882_v47, %v10896_v54  ;;  %v10906_v24 = vcombine.low %v10889_v21, %v10903_v4  ;;  %v10907_v17 = vcombine.high %v10889_v21, %v10903_v4 }
 0x813   : > { %v10908_v48 = vcombine.low %v10758_v60, %v10759_v8  ;;  %v10909_v31 = vcombine.high %v10758_v60, %v10759_v8  ;;  %v20041_v38 = vmax.f32 %v20922_v27, %v10734_v40  ;;  %v20925_v54 = vmax.f32 %v20923_v22, %v20924_v3 }
 0x814   : > { %v13758_v19 = vrot.slane %v10904_v32, 9  ;;  %v13759_v42 = vrot.slane %v10905_v35, 9  ;;  %v13760_v33 = vrot.slane %v10906_v24, 9  ;;  %v13761_v37 = vrot.slane %v10907_v17, 9 }
 0x815   : > { %v10917_v41 = vrot.slane %v10908_v48, %v19841_v6  ;;  %v10924_v53 = vrot.slane %v10909_v31, %v19841_v6  ;;  %v20051_v34 = vmax.f32 %v20925_v54, %v10735_v10 }
 0x816   : > { %v11265_v45 = vmax.f32 %v10904_v32, %v13758_v19  ;;  %v11266_v59 = vmax.f32 %v10905_v35, %v13759_v42  ;;  %v11267_v7 = vmax.f32 %v10906_v24, %v13760_v33  ;;  %v11268_v50 = vmax.f32 %v10907_v17, %v13761_v37 }
 0x817   : > { %v10939_v52 = vcombine.low %v10917_v41, %v10931_v12  ;;  %v10940_v20 = vcombine.high %v10917_v41, %v10931_v12  ;;  %v10941_v46 = vcombine.low %v10924_v53, %v10938_v28  ;;  %v10942_v4 = vcombine.high %v10924_v53, %v10938_v28 }
 0x818   : > { %v11426_v29 = vrot.slane %v11265_v45, %v20899_v9  ;;  %v11430_v44 = vrot.slane %v11265_v45, %v20900_v57  ;;  %v11434_v47 = vrot.slane %v11265_v45, %v20901_v15  ;;  %v11438_v21 = vrot.slane %v11266_v59, %v20899_v9 }
 0x819   : > { %v11442_v30 = vrot.slane %v11266_v59, %v20900_v57  ;;  %v11446_v1 = vrot.slane %v11266_v59, %v20901_v15  ;;  %v11450_v11 = vrot.slane %v11267_v7, %v20899_v9  ;;  %v11454_v60 = vrot.slane %v11267_v7, %v20900_v57 }
 0x81a   : > { %v11458_v12 = vrot.slane %v11267_v7, %v20901_v15  ;;  %v11462_v16 = vrot.slane %v11268_v50, %v20899_v9  ;;  %v11466_v28 = vrot.slane %v11268_v50, %v20900_v57  ;;  %v11470_v49 = vrot.slane %v11268_v50, %v20901_v15 }
 0x81b   : > { %v13874_v13 = vpack.c.bf16 %v11430_v44, %v11426_v29  ;;  %v13875_v18 = vpack.c.bf16 %v11434_v47, %v11434_v47  ;;  %v13876_v8 = vpack.c.bf16 %v11442_v30, %v11438_v21  ;;  %v13877_v40 = vpack.c.bf16 %v11446_v1, %v11446_v1 }
 0x81c   : > { %v13878_v58 = vpack.c.bf16 %v11454_v60, %v11450_v11  ;;  %v13879_v32 = vpack.c.bf16 %v11458_v12, %v11458_v12  ;;  %v13880_v35 = vpack.c.bf16 %v11466_v28, %v11462_v16  ;;  %v13881_v24 = vpack.c.bf16 %v11470_v49, %v11470_v49 }
 0x81d   : > { %v12261_v17 = vunpack.c.l.b16 %v13874_v13  ;;  %v12262_v48 = vunpack.c.h.b16 %v13874_v13  ;;  %v12263_v31 = vunpack.c.l.b16 %v13875_v18  ;;  %v12264_v0 = vunpack.c.l.b16 %v13876_v8 }
 0x81e   : > { %v12265_v39 = vunpack.c.h.b16 %v13876_v8  ;;  %v12266_v27 = vunpack.c.l.b16 %v13877_v40  ;;  %v12267_v10 = vunpack.c.l.b16 %v13878_v58  ;;  %v12268_v19 = vunpack.c.h.b16 %v13878_v58 }
 0x81f   : > { %v12269_v42 = vunpack.c.l.b16 %v13879_v32  ;;  %v12270_v33 = vunpack.c.l.b16 %v13880_v35  ;;  %v12271_v37 = vunpack.c.h.b16 %v13880_v35  ;;  %v12272_v41 = vunpack.c.l.b16 %v13881_v24 }
 0x820   : > { %v12391_v53 = vrot.slane %v12264_v0, 7  ;;  %v12393_v22 = vrot.slane %v12267_v10, 6  ;;  %v12405_v3 = vrot.slane %v12265_v39, 7  ;;  %v12407_v54 = vrot.slane %v12268_v19, 6 }
 0x821   : > { %v12395_v45 = vrot.slane %v12270_v33, 5  ;;  %v12409_v59 = vrot.slane %v12271_v37, 5  ;;  %v12419_v7 = vrot.slane %v12266_v27, 7  ;;  %v12421_v50 = vrot.slane %v12269_v42, 6 }
 0x822   : > { %v12392_v29 = vsel %vm12343_vm5, %v12391_v53, %v12261_v17  ;;  %v12406_v44 = vsel %vm12343_vm5, %v12405_v3, %v12262_v48  ;;  %v12423_v47 = vrot.slane %v12272_v41, 5  ;;  %v13762_v21 = vrot.slane %v10939_v52, 9  ;;  %v10654_v53 = vpop.permute.xlu0 %10653 }
 0x823   : > { %v12394_v30 = vsel %vm12346_vm6, %v12393_v22, %v12392_v29  ;;  %v12408_v1 = vsel %vm12346_vm6, %v12407_v54, %v12406_v44  ;;  %v12420_v11 = vsel %vm12343_vm5, %v12419_v7, %v12263_v31  ;;  %v13763_v60 = vrot.slane %v10940_v20, 9 }
 0x824   : > { %v12396_v12 = vsel %vm12349_vm7, %v12395_v45, %v12394_v30  ;;  %v12410_v16 = vsel %vm12349_vm7, %v12409_v59, %v12408_v1  ;;  %v12422_v28 = vsel %vm12346_vm6, %v12421_v50, %v12420_v11  ;;  %v13764_v49 = vrot.slane %v10941_v46, 9 }
 0x825   : > { %v12424_v13 = vsel %vm12349_vm7, %v12423_v47, %v12422_v28  ;;  %v13765_v18 = vrot.slane %v10942_v4, 9  ;;  %v11269_v8 = vmax.f32 %v10939_v52, %v13762_v21  ;;  %v11270_v40 = vmax.f32 %v10940_v20, %v13763_v60 }
 0x826   : > { %v11271_v58 = vmax.f32 %v10941_v46, %v13764_v49  ;;  %v20926_v32 = vmax.f32 %v20879_v14, %v20878_v2  ;;  %v10943_v24 = vcombine.low %v20041_v38, %v20051_v34  ;;  %v10944_v17 = vcombine.high %v20041_v38, %v20051_v34 }
 0x827   : > { %v11272_v48 = vmax.f32 %v10942_v4, %v13765_v18  ;;  %v11474_v31 = vrot.slane %v11269_v8, %v20899_v9  ;;  %v11478_v52 = vrot.slane %v11269_v8, %v20900_v57  ;;  %v11482_v20 = vrot.slane %v11269_v8, %v20901_v15 }
 0x828   : > { %v20080_v35 = vmax.f32 %v20926_v32, %v10736_v23  ;;  %v11486_v56 = vrot.slane %v11270_v40, %v20899_v9  ;;  %v11490_v62 = vrot.slane %v11270_v40, %v20900_v57  ;;  %v11494_v2 = vrot.slane %v11270_v40, %v20901_v15 }
 0x829   : > { %v11498_v14 = vrot.slane %v11271_v58, %v20899_v9  ;;  %v11502_v23 = vrot.slane %v11271_v58, %v20900_v57  ;;  %v11506_v46 = vrot.slane %v11271_v58, %v20901_v15  ;;  %v11510_v4 = vrot.slane %v11272_v48, %v20899_v9 }
 0x82a   : > { %v11514_v0 = vrot.slane %v11272_v48, %v20900_v57  ;;  %v11518_v39 = vrot.slane %v11272_v48, %v20901_v15  ;;  %v13882_v27 = vpack.c.bf16 %v11478_v52, %v11474_v31  ;;  %v13883_v10 = vpack.c.bf16 %v11482_v20, %v11482_v20  ;;  %v10656_v52 = vpop.permute.xlu1 %10655  ;;  %v10658_v20 = vpop.permute.xlu0 %10657 }
 0x82b   : > { %v13884_v19 = vpack.c.bf16 %v11490_v62, %v11486_v56  ;;  %v13885_v42 = vpack.c.bf16 %v11494_v2, %v11494_v2  ;;  %v13886_v33 = vpack.c.bf16 %v11502_v23, %v11498_v14  ;;  %v13887_v37 = vpack.c.bf16 %v11506_v46, %v11506_v46 }
 0x82c   : > { %v13888_v41 = vpack.c.bf16 %v11514_v0, %v11510_v4  ;;  %v13889_v22 = vpack.c.bf16 %v11518_v39, %v11518_v39  ;;  %v12273_v3 = vunpack.c.l.b16 %v13882_v27  ;;  %v12274_v54 = vunpack.c.h.b16 %v13882_v27 }
 0x82d   : > { %v12275_v45 = vunpack.c.l.b16 %v13883_v10  ;;  %v12276_v59 = vunpack.c.l.b16 %v13884_v19  ;;  %v12277_v7 = vunpack.c.h.b16 %v13884_v19  ;;  %v12278_v50 = vunpack.c.l.b16 %v13885_v42 }
 0x82e   : > { %v12279_v29 = vunpack.c.l.b16 %v13886_v33  ;;  %v12280_v44 = vunpack.c.h.b16 %v13886_v33  ;;  %v12281_v47 = vunpack.c.l.b16 %v13887_v37  ;;  %v12282_v21 = vunpack.c.l.b16 %v13888_v41  ;;  %v10660_v38 = vpop.permute.xlu0 %10659 }
 0x82f   : > { %v12283_v30 = vunpack.c.h.b16 %v13888_v41  ;;  %v12284_v1 = vunpack.c.l.b16 %v13889_v22  ;;  %v12397_v11 = vrot.slane %v12273_v3, 4  ;;  %v12399_v60 = vrot.slane %v12276_v59, 3  ;;  %v20122_v59 = vpop.permute.xlu1 %10661 }
 0x830   : > { %v12401_v28 = vrot.slane %v12279_v29, 2  ;;  %v12403_v49 = vrot.slane %v12282_v21, 1  ;;  %v12411_v18 = vrot.slane %v12274_v54, 4  ;;  %v12413_v8 = vrot.slane %v12277_v7, 3 }
 0x831   : > { %v12415_v40 = vrot.slane %v12280_v44, 2  ;;  %v12398_v58 = vsel %vm12352_vm8, %v12397_v11, %v12396_v12  ;;  %v12417_v32 = vrot.slane %v12283_v30, 1  ;;  %v12425_v48 = vrot.slane %v12275_v45, 4  ;;  %v20928_v44 = vld [vmem:[#allocation86_spill] sm:$0xff] }
 0x832   : > { %v12427_v31 = vrot.slane %v12278_v50, 3  ;;  %v12400_v56 = vsel %vm12355_vm9, %v12399_v60, %v12398_v58  ;;  %v12412_v62 = vsel %vm12352_vm8, %v12411_v18, %v12410_v16  ;;  %v12429_v2 = vrot.slane %v12281_v47, 2  ;;  %v20931_v18 = vld [vmem:[#allocation96_spill] sm:$0xff] }
 0x833   : > { %v12431_v14 = vrot.slane %v12284_v1, 1  ;;  %v12402_v23 = vsel %vm12358_vm10, %v12401_v28, %v12400_v56  ;;  %v12414_v46 = vsel %vm12355_vm9, %v12413_v8, %v12412_v62  ;;  %v12426_v4 = vsel %vm12352_vm8, %v12425_v48, %v12424_v13  ;;  %v20932_v8 = vld [vmem:[#allocation98_spill] sm:$0xff] }
 0x834   : > { %v10945_v12 = vcombine.high %v20080_v35, %v20080_v35  ;;  %v12404_v0 = vsel %vm12361_vm11, %v12403_v49, %v12402_v23  ;;  %v12416_v39 = vsel %vm12358_vm10, %v12415_v40, %v12414_v46  ;;  %v12428_v27 = vsel %vm12355_vm9, %v12427_v31, %v12426_v4 }
 0x835   : > { %v10952_v16 = vrot.slane %v10943_v24, %v19841_v6  ;;  %v12418_v10 = vsel %vm12361_vm11, %v12417_v32, %v12416_v39  ;;  %v12430_v19 = vsel %vm12358_vm10, %v12429_v2, %v12428_v27  ;;  %v10959_v13 = vrot.slane %v10944_v17, %v19841_v6 }
 0x836   : > { %v10966_v42 = vrot.slane %v20080_v35, %v19841_v6  ;;  %v12432_v33 = vsel %vm12361_vm11, %v12431_v14, %v12430_v19  ;;  %v12531_v37 = vpack.c.b16 %v12418_v10, %v12404_v0  ;;  %v10973_v41 = vrot.slane %v10945_v12, %v19841_v6 }
 0x837   : > { %v10687_v24 = vsel %vm7734_vm4, %v10654_v53, %v10656_v52  ;;  %v12532_v22 = vpack.c.b16 %v12432_v33, %v12432_v33  ;;  %v10688_v35 = vsel %vm7734_vm4, %v10656_v52, %v10658_v20  ;;  %v10739_v7 = vmax.f32 %v19630_v25, %v10658_v20  ;;  %v20927_v53 = vld [vmem:[#allocation85_spill] sm:$0xff] }
 0x838   : > { %v10974_v3 = vcombine.low %v10952_v16, %v10966_v42  ;;  %v10975_v54 = vcombine.high %v10952_v16, %v10966_v42  ;;  %v10737_v45 = vmax.f32 %v19825_v55, %v10687_v24  ;;  %12552 = vst [vmem:[%s19994_s26 + $0xc] sm:$0xff] %v12531_v37  ;;  %v10976_v34 = vcombine.low %v10959_v13, %v10973_v41 }
 0x839   : > { %v10977_v17 = vcombine.high %v10959_v13, %v10973_v41  ;;  %12553 = vst.msk [vmem:[%s19994_s26 + $0x14] sm:$0xf] %vm12550_vm12, %v12532_v22  ;;  %v20929_v47 = vmax.f32 %v20927_v53, %v20928_v44  ;;  %v10738_v55 = vmax.f32 %v19832_v51, %v10688_v35  ;;  %v20930_v11 = vmax.f32 %v20881_v61, %v20880_v26 }
 0x83a   : > { %v13766_v50 = vrot.slane %v10974_v3, 9  ;;  %v13767_v29 = vrot.slane %v10975_v54, 9  ;;  %v13768_v30 = vrot.slane %v10976_v34, 9  ;;  %v20142_v25 = vsel %vm7734_vm4, %v10660_v38, %v20122_v59 }
 0x83b   : > { %v20132_v21 = vmax.f32 %v20929_v47, %v10737_v45  ;;  %v13769_v1 = vrot.slane %v10977_v17, 9  ;;  %v20138_v60 = vmax.f32 %v20930_v11, %v10739_v7  ;;  %v20933_v40 = vmax.f32 %v20931_v18, %v20932_v8 }
 0x83c   : > { %v11273_v28 = vmax.f32 %v10974_v3, %v13766_v50  ;;  %v11274_v49 = vmax.f32 %v10975_v54, %v13767_v29  ;;  %v10740_v51 = vmax.f32 %v19835_v43, %v20142_v25  ;;  %v11275_v32 = vmax.f32 %v10976_v34, %v13768_v30  ;;  %v10666_v34 = vpop.permute.xlu1 %10665  ;;  %v10664_v29 = vpop.permute.xlu0 %10663  ;;  %v20937_v43 = vld [vmem:[#allocation68_spill] sm:$0xff] }
 0x83d   : > { %v20147_v58 = vmax.f32 %v20933_v40, %v10738_v55  ;;  %v11276_v48 = vmax.f32 %v10977_v17, %v13769_v1  ;;  %v10980_v26 = vcombine.high %v20138_v60, %v20138_v60  ;;  %v11001_v61 = vrot.slane %v20138_v60, %v19841_v6 }
 0x83e   : > { %v11522_v31 = vrot.slane %v11273_v28, %v20899_v9  ;;  %v11526_v52 = vrot.slane %v11273_v28, %v20900_v57  ;;  %v11530_v20 = vrot.slane %v11273_v28, %v20901_v15  ;;  %v11534_v56 = vrot.slane %v11274_v49, %v20899_v9 }
 0x83f   : > { %v11538_v62 = vrot.slane %v11274_v49, %v20900_v57  ;;  %v11542_v2 = vrot.slane %v11274_v49, %v20901_v15  ;;  %v11546_v14 = vrot.slane %v11275_v32, %v20899_v9  ;;  %v11550_v23 = vrot.slane %v11275_v32, %v20900_v57 }
 0x840   : > { %v11554_v46 = vrot.slane %v11275_v32, %v20901_v15  ;;  %v11558_v4 = vrot.slane %v11276_v48, %v20899_v9  ;;  %v11562_v12 = vrot.slane %v11276_v48, %v20900_v57  ;;  %v11566_v0 = vrot.slane %v11276_v48, %v20901_v15 }
 0x841   : > { %v13890_v39 = vpack.c.bf16 %v11526_v52, %v11522_v31  ;;  %v13891_v27 = vpack.c.bf16 %v11530_v20, %v11530_v20  ;;  %v13892_v16 = vpack.c.bf16 %v11538_v62, %v11534_v56  ;;  %v13893_v10 = vpack.c.bf16 %v11542_v2, %v11542_v2  ;;  %v20184_v2 = vpop.permute.xlu1 %10669 }
 0x842   : > { %v13894_v19 = vpack.c.bf16 %v11550_v23, %v11546_v14  ;;  %v13895_v13 = vpack.c.bf16 %v11554_v46, %v11554_v46  ;;  %v13896_v42 = vpack.c.bf16 %v11562_v12, %v11558_v4  ;;  %v13897_v33 = vpack.c.bf16 %v11566_v0, %v11566_v0  ;;  %v20199_v0 = vpop.permute.xlu0 %10667 }
 0x843   : > { %v12285_v37 = vunpack.c.l.b16 %v13890_v39  ;;  %v12286_v41 = vunpack.c.h.b16 %v13890_v39  ;;  %v12287_v24 = vunpack.c.l.b16 %v13891_v27  ;;  %v12288_v22 = vunpack.c.l.b16 %v13892_v16 }
 0x844   : > { %v12289_v3 = vunpack.c.h.b16 %v13892_v16  ;;  %v12290_v54 = vunpack.c.l.b16 %v13893_v10  ;;  %v12291_v45 = vunpack.c.l.b16 %v13894_v19  ;;  %v12292_v38 = vunpack.c.h.b16 %v13894_v19 }
 0x845   : > { %v12293_v17 = vunpack.c.l.b16 %v13895_v13  ;;  %v12294_v35 = vunpack.c.l.b16 %v13896_v42  ;;  %v12295_v7 = vunpack.c.h.b16 %v13896_v42  ;;  %v12296_v50 = vunpack.c.l.b16 %v13897_v33 }
 0x846   : > { %v12433_v53 = vrot.slane %v12288_v22, 7  ;;  %v12435_v44 = vrot.slane %v12291_v45, 6  ;;  %v12447_v47 = vrot.slane %v12289_v3, 7  ;;  %v12449_v55 = vrot.slane %v12292_v38, 6  ;;  %v20941_v22 = vld [vmem:[#allocation61_spill] sm:$0xff]  ;;  %v20942_v3 = vld [vmem:[#allocation99_spill] sm:$0xff] }
 0x847   : > { %v12437_v30 = vrot.slane %v12294_v35, 5  ;;  %v12451_v1 = vrot.slane %v12295_v7, 5  ;;  %v12461_v11 = vrot.slane %v12290_v54, 7  ;;  %v12463_v60 = vrot.slane %v12293_v17, 6  ;;  %v20944_v45 = vld [vmem:[#allocation44_spill] sm:$0xff]  ;;  %v20945_v38 = vld [vmem:[#allocation101_spill] sm:$0xff] }
 0x848   : > { %v12434_v28 = vsel %vm12343_vm5, %v12433_v53, %v12285_v37  ;;  %v12448_v49 = vsel %vm12343_vm5, %v12447_v47, %v12286_v41  ;;  %v12465_v18 = vrot.slane %v12296_v50, 5  ;;  %v10978_v8 = vcombine.low %v20132_v21, %v20147_v58  ;;  %v20939_v37 = vld [vmem:[#allocation62_spill] sm:$0xff] }
 0x849   : > { %v12436_v40 = vsel %vm12346_vm6, %v12435_v44, %v12434_v28  ;;  %v12450_v32 = vsel %vm12346_vm6, %v12449_v55, %v12448_v49  ;;  %v12462_v48 = vsel %vm12343_vm5, %v12461_v11, %v12287_v24  ;;  %v10979_v31 = vcombine.high %v20132_v21, %v20147_v58  ;;  %v20934_v21 = vld [vmem:[#allocation87_spill] sm:$0xff]  ;;  %v20935_v58 = vld [vmem:[#allocation88_spill] sm:$0xff] }
 0x84a   : > { %v20177_v52 = vsel %vm12349_vm7, %v12437_v30, %v12436_v40  ;;  %v20180_v20 = vsel %vm12349_vm7, %v12451_v1, %v12450_v32  ;;  %v12464_v56 = vsel %vm12346_vm6, %v12463_v60, %v12462_v48  ;;  %v10987_v62 = vrot.slane %v10978_v8, %v19841_v6 }
 0x84b   : > { %v20187_v14 = vsel %vm12349_vm7, %v12465_v18, %v12464_v56  ;;  %v10994_v23 = vrot.slane %v10979_v31, %v19841_v6  ;;  %v11008_v46 = vrot.slane %v10980_v26, %v19841_v6  ;;  %v20936_v4 = vmax.f32 %v20934_v21, %v20935_v58 }
 0x84c   : > { %v11009_v39 = vcombine.low %v10987_v62, %v11001_v61  ;;  %v11010_v27 = vcombine.high %v10987_v62, %v11001_v61  ;;  %v10690_v16 = vsel %vm7734_vm4, %v20122_v59, %v10664_v29  ;;  %v10742_v10 = vmax.f32 %v19649_v63, %v10664_v29 }
 0x84d   : > { %v20197_v12 = vmax.f32 %v20936_v4, %v10740_v51  ;;  %v11011_v19 = vcombine.low %v10994_v23, %v11008_v46  ;;  %v11012_v13 = vcombine.high %v10994_v23, %v11008_v46  ;;  %v10741_v26 = vmax.f32 %v19847_v5, %v10690_v16  ;;  %v20938_v51 = vld [vmem:[#allocation43_spill] sm:$0xff] }
 0x84e   : > { %v10745_v25 = vmax.f32 %v20937_v43, %v20184_v2  ;;  %v13770_v42 = vrot.slane %v11009_v39, 9  ;;  %v13771_v33 = vrot.slane %v11010_v27, 9  ;;  %v20940_v41 = vmax.f32 %v20938_v51, %v20939_v37 }
 0x84f   : > { %v20214_v61 = vsel %vm7734_vm4, %v10666_v34, %v20199_v0  ;;  %v13772_v59 = vrot.slane %v11011_v19, 9  ;;  %v13773_v63 = vrot.slane %v11012_v13, 9  ;;  %v20943_v54 = vmax.f32 %v20941_v22, %v20942_v3 }
 0x850   : > { %v20210_v24 = vmax.f32 %v20940_v41, %v10742_v10  ;;  %v20946_v17 = vmax.f32 %v20944_v45, %v20945_v38  ;;  %v11277_v7 = vmax.f32 %v11009_v39, %v13770_v42  ;;  %v11278_v50 = vmax.f32 %v11010_v27, %v13771_v33 }
 0x851   : > { %v20219_v5 = vmax.f32 %v20943_v54, %v10741_v26  ;;  %v11279_v53 = vmax.f32 %v11011_v19, %v13772_v59  ;;  %v11280_v44 = vmax.f32 %v11012_v13, %v13773_v63 }
 0x852   : > { %v20224_v35 = vmax.f32 %v20946_v17, %v10745_v25  ;;  %v11015_v29 = vcombine.high %v20210_v24, %v20210_v24  ;;  %v20230_v34 = vrot.slane %v20210_v24, %v19841_v6  ;;  %v11570_v30 = vrot.slane %v11277_v7, %v20899_v9 }
 0x853   : > { %v11013_v47 = vcombine.low %v20197_v12, %v20219_v5  ;;  %v11014_v55 = vcombine.high %v20197_v12, %v20219_v5  ;;  %v11574_v1 = vrot.slane %v11277_v7, %v20900_v57  ;;  %v11578_v11 = vrot.slane %v11277_v7, %v20901_v15 }
 0x854   : > { %v11582_v60 = vrot.slane %v11278_v50, %v20899_v9  ;;  %v11586_v28 = vrot.slane %v11278_v50, %v20900_v57  ;;  %v11590_v49 = vrot.slane %v11278_v50, %v20901_v15  ;;  %v11594_v18 = vrot.slane %v11279_v53, %v20899_v9 }
 0x855   : > { %v11598_v8 = vrot.slane %v11279_v53, %v20900_v57  ;;  %v11602_v40 = vrot.slane %v11279_v53, %v20901_v15  ;;  %v11606_v32 = vrot.slane %v11280_v44, %v20899_v9  ;;  %v11610_v48 = vrot.slane %v11280_v44, %v20900_v57 }
 0x856   : > { %v11614_v31 = vrot.slane %v11280_v44, %v20901_v15  ;;  %v13898_v56 = vpack.c.bf16 %v11574_v1, %v11570_v30  ;;  %v13899_v62 = vpack.c.bf16 %v11578_v11, %v11578_v11  ;;  %v13900_v23 = vpack.c.bf16 %v11586_v28, %v11582_v60 }
 0x857   : > { %v13901_v46 = vpack.c.bf16 %v11590_v49, %v11590_v49  ;;  %v13902_v21 = vpack.c.bf16 %v11598_v8, %v11594_v18  ;;  %v13903_v58 = vpack.c.bf16 %v11602_v40, %v11602_v40  ;;  %v13904_v4 = vpack.c.bf16 %v11610_v48, %v11606_v32 }
 0x858   : > { %v13905_v12 = vpack.c.bf16 %v11614_v31, %v11614_v31  ;;  %v12297_v39 = vunpack.c.l.b16 %v13898_v56  ;;  %v12298_v27 = vunpack.c.h.b16 %v13898_v56  ;;  %v12299_v16 = vunpack.c.l.b16 %v13899_v62  ;;  %v20949_v62 = vld [vmem:[#allocation32_spill] sm:$0xff] }
 0x859   : > { %v12300_v10 = vunpack.c.l.b16 %v13900_v23  ;;  %v12301_v19 = vunpack.c.h.b16 %v13900_v23  ;;  %v12302_v13 = vunpack.c.l.b16 %v13901_v46  ;;  %v12303_v26 = vunpack.c.l.b16 %v13902_v21  ;;  %v20950_v23 = vld [vmem:[#allocation35_spill] sm:$0xff] }
 0x85a   : > { %v12304_v43 = vunpack.c.h.b16 %v13902_v21  ;;  %v12305_v25 = vunpack.c.l.b16 %v13903_v58  ;;  %v12306_v42 = vunpack.c.l.b16 %v13904_v4  ;;  %v12307_v33 = vunpack.c.h.b16 %v13904_v4  ;;  %v10672_v4 = vpop.permute.xlu1 %10671 }
 0x85b   : > { %v12308_v51 = vunpack.c.l.b16 %v13905_v12  ;;  %v12439_v37 = vrot.slane %v12297_v39, 4  ;;  %v12441_v41 = vrot.slane %v12300_v10, 3  ;;  %v12443_v59 = vrot.slane %v12303_v26, 2  ;;  %v20281_v12 = vpop.permute.xlu0 %10673  ;;  %v20953_v10 = vld [vmem:[#allocation73_spill] sm:$0xff] }
 0x85c   : > { %v12453_v63 = vrot.slane %v12298_v27, 4  ;;  %v12445_v22 = vrot.slane %v12306_v42, 1  ;;  %v12455_v3 = vrot.slane %v12301_v19, 3  ;;  %v12457_v54 = vrot.slane %v12304_v43, 2 }
 0x85d   : > { %v12459_v5 = vrot.slane %v12307_v33, 1  ;;  %v12440_v45 = vsel %vm12352_vm8, %v12439_v37, %v20177_v52  ;;  %v12467_v17 = vrot.slane %v12299_v16, 4  ;;  %v12469_v7 = vrot.slane %v12302_v13, 3  ;;  %v20952_v16 = vld [vmem:[#allocation21_spill] sm:$0xff]  ;;  %v20955_v33 = vld [vmem:[#allocation90_spill] sm:$0xff] }
 0x85e   : > { %v12454_v38 = vsel %vm12352_vm8, %v12453_v63, %v20180_v20  ;;  %v12442_v50 = vsel %vm12355_vm9, %v12441_v41, %v12440_v45  ;;  %v12471_v44 = vrot.slane %v12305_v25, 2  ;;  %v12473_v30 = vrot.slane %v12308_v51, 1 }
 0x85f   : > { %v12456_v53 = vsel %vm12355_vm9, %v12455_v3, %v12454_v38  ;;  %v12444_v1 = vsel %vm12358_vm10, %v12443_v59, %v12442_v50  ;;  %v12468_v60 = vsel %vm12352_vm8, %v12467_v17, %v20187_v14  ;;  %v11022_v52 = vrot.slane %v11013_v47, %v19841_v6  ;;  %v20947_v47 = vld [vmem:[#allocation48_spill] sm:$0xff] }
 0x860   : > { %v12458_v11 = vsel %vm12358_vm10, %v12457_v54, %v12456_v53  ;;  %v12446_v20 = vsel %vm12361_vm11, %v12445_v22, %v12444_v1  ;;  %v12470_v49 = vsel %vm12355_vm9, %v12469_v7, %v12468_v60  ;;  %v11029_v18 = vrot.slane %v11014_v55, %v19841_v6 }
 0x861   : > { %v12460_v28 = vsel %vm12361_vm11, %v12459_v5, %v12458_v11  ;;  %v12472_v8 = vsel %vm12358_vm10, %v12471_v44, %v12470_v49  ;;  %v11043_v32 = vrot.slane %v11015_v29, %v19841_v6  ;;  %v11044_v14 = vcombine.low %v11022_v52, %v20230_v34 }
 0x862   : > { %v12533_v40 = vpack.c.b16 %v12460_v28, %v12446_v20  ;;  %v20948_v48 = vmax.f32 %v20947_v47, 0.0  ;;  %v12474_v56 = vsel %vm12361_vm11, %v12473_v30, %v12472_v8  ;;  %v11045_v55 = vcombine.high %v11022_v52, %v20230_v34  ;;  %v20951_v34 = vld [vmem:[#allocation37_spill] sm:$0xff] }
 0x863   : > { %v20278_v46 = vadd.f32 %v20950_v23, %v20949_v62  ;;  %v12534_v21 = vpack.c.b16 %v12474_v56, %v12474_v56  ;;  %v11046_v24 = vcombine.low %v11029_v18, %v11043_v32  ;;  %v11047_v29 = vcombine.high %v11029_v18, %v11043_v32 }
 0x864   : > { %v20272_v31 = vmul.f32 %v20948_v48, %v18726_v36  ;;  %12554 = vst [vmem:[%s19994_s26 + $0x18] sm:$0xff] %v12533_v40  ;;  %v13774_v58 = vrot.slane %v11044_v14, 9  ;;  %v13775_v39 = vrot.slane %v11045_v55, 9  ;;  %v20286_v36 = vsel %vm7734_vm4, %v20199_v0, %v20184_v2  ;;  %v20954_v0 = vld [vmem:[#allocation89_spill] sm:$0xff] }
 0x865   : > { %v10743_v27 = vmax.f32 %v20951_v34, %v20214_v61  ;;  %v20292_v19 = vadd.f32 %v20953_v10, %v20952_v16  ;;  %12555 = vst.msk [vmem:[%s19994_s26 + $0x20] sm:$0xf] %vm12550_vm12, %v12534_v21  ;;  %v13776_v13 = vrot.slane %v11046_v24, 9  ;;  %v13777_v26 = vrot.slane %v11047_v29, 9 }
 0x866   : > { %v11281_v43 = vmax.f32 %v11044_v14, %v13774_v58  ;;  %v11050_v25 = vcombine.high %v20224_v35, %v20224_v35  ;;  %v11282_v42 = vmax.f32 %v11045_v55, %v13775_v39  ;;  %v10744_v2 = vmax.f32 %v20278_v46, %v20286_v36 }
 0x867   : > { %v20956_v51 = vmax.f32 %v20954_v0, %v20955_v33  ;;  %v10693_v37 = vsel %vm7734_vm4, %v10672_v4, %v20281_v12  ;;  %v11283_v41 = vmax.f32 %v11046_v24, %v13776_v13  ;;  %v11284_v59 = vmax.f32 %v11047_v29, %v13777_v26 }
 0x868   : > { %v11618_v63 = vrot.slane %v11281_v43, %v20899_v9  ;;  %v11622_v22 = vrot.slane %v11281_v43, %v20900_v57  ;;  %v11626_v3 = vrot.slane %v11281_v43, %v20901_v15  ;;  %v11630_v54 = vrot.slane %v11282_v42, %v20899_v9 }
 0x869   : > { %v20303_v61 = vmax.f32 %v20956_v51, %v10743_v27  ;;  %v11634_v5 = vrot.slane %v11282_v42, %v20900_v57  ;;  %v11638_v45 = vrot.slane %v11282_v42, %v20901_v15  ;;  %v11642_v38 = vrot.slane %v11283_v41, %v20899_v9 }
 0x86a   : > { %v11646_v17 = vrot.slane %v11283_v41, %v20900_v57  ;;  %v11650_v7 = vrot.slane %v11283_v41, %v20901_v15  ;;  %v11654_v50 = vrot.slane %v11284_v59, %v20899_v9  ;;  %v11658_v53 = vrot.slane %v11284_v59, %v20900_v57  ;;  %v20957_v41 = vld [vmem:[#allocation100_spill] sm:$0xff] }
 0x86b   : > { %v11662_v44 = vrot.slane %v11284_v59, %v20901_v15  ;;  %v13906_v30 = vpack.c.bf16 %v11622_v22, %v11618_v63  ;;  %v13907_v1 = vpack.c.bf16 %v11626_v3, %v11626_v3  ;;  %v13908_v11 = vpack.c.bf16 %v11634_v5, %v11630_v54  ;;  %v20958_v59 = vld [vmem:[#allocation102_spill] sm:$0xff]  ;;  %v10676_v3 = vpop.permute.xlu1 %10675 }
 0x86c   : > { %v13909_v60 = vpack.c.bf16 %v11638_v45, %v11638_v45  ;;  %v13910_v52 = vpack.c.bf16 %v11646_v17, %v11642_v38  ;;  %v13911_v20 = vpack.c.bf16 %v11650_v7, %v11650_v7  ;;  %v13912_v28 = vpack.c.bf16 %v11658_v53, %v11654_v50  ;;  %v20960_v45 = vld [vmem:[#allocation63_spill] sm:$0xff]  ;;  %v20961_v38 = vld [vmem:[#allocation46_spill] sm:$0xff] }
 0x86d   : > { %v13913_v49 = vpack.c.bf16 %v11662_v44, %v11662_v44  ;;  %v12309_v18 = vunpack.c.l.b16 %v13906_v30  ;;  %v12310_v8 = vunpack.c.h.b16 %v13906_v30  ;;  %v12311_v40 = vunpack.c.l.b16 %v13907_v1  ;;  %v20963_v30 = vld [vmem:[#allocation92_spill] sm:$0xff] }
 0x86e   : > { %v12312_v32 = vunpack.c.l.b16 %v13908_v11  ;;  %v12313_v14 = vunpack.c.h.b16 %v13908_v11  ;;  %v12314_v47 = vunpack.c.l.b16 %v13909_v60  ;;  %v12315_v48 = vunpack.c.l.b16 %v13910_v52 }
 0x86f   : > { %v12316_v56 = vunpack.c.h.b16 %v13910_v52  ;;  %v12317_v55 = vunpack.c.l.b16 %v13911_v20  ;;  %v12318_v23 = vunpack.c.l.b16 %v13912_v28  ;;  %v12319_v46 = vunpack.c.h.b16 %v13912_v28 }
 0x870   : > { %v12320_v21 = vunpack.c.l.b16 %v13913_v49  ;;  %v12475_v24 = vrot.slane %v12312_v32, 7  ;;  %v12489_v29 = vrot.slane %v12313_v14, 7  ;;  %v12477_v58 = vrot.slane %v12315_v48, 6  ;;  %v20967_v32 = vld [vmem:[#allocation103_spill] sm:$0xff] }
 0x871   : > { %v12479_v4 = vrot.slane %v12318_v23, 5  ;;  %v12491_v39 = vrot.slane %v12316_v56, 6  ;;  %v12503_v36 = vrot.slane %v12314_v47, 7  ;;  %v12493_v16 = vrot.slane %v12319_v46, 5 }
 0x872   : > { %v12476_v34 = vsel %vm12343_vm5, %v12475_v24, %v12309_v18  ;;  %v12490_v27 = vsel %vm12343_vm5, %v12489_v29, %v12310_v8  ;;  %v12505_v10 = vrot.slane %v12317_v55, 6  ;;  %v12507_v42 = vrot.slane %v12320_v21, 5 }
 0x873   : > { %v12478_v13 = vsel %vm12346_vm6, %v12477_v58, %v12476_v34  ;;  %v12492_v26 = vsel %vm12346_vm6, %v12491_v39, %v12490_v27  ;;  %v12504_v43 = vsel %vm12343_vm5, %v12503_v36, %v12311_v40  ;;  %v20959_v63 = vmax.f32 %v20957_v41, %v20958_v59  ;;  %v20966_v40 = vld [vmem:[#allocation64_spill] sm:$0xff] }
 0x874   : > { %v20325_v0 = vsel %vm12349_vm7, %v12479_v4, %v12478_v13  ;;  %v20328_v33 = vsel %vm12349_vm7, %v12493_v16, %v12492_v26  ;;  %v12506_v51 = vsel %vm12346_vm6, %v12505_v10, %v12504_v43  ;;  %v10746_v5 = vmax.f32 %v20292_v19, %v10693_v37  ;;  %v20965_v37 = vld [vmem:[#allocation47_spill] sm:$0xff] }
 0x875   : > { %v10771_v22 = vmax.f32 %v20959_v63, %v10744_v2  ;;  %v20335_v54 = vsel %vm12349_vm7, %v12507_v42, %v12506_v51  ;;  %v7806_v17 = vmax.f32 %v20961_v38, %v20960_v45  ;;  %v10592_v53 = vadd.f32 %v20272_v31, %v20949_v62  ;;  %v20962_v2 = vld [vmem:[#allocation91_spill] sm:$0xff]  ;;  %vm12569_vm7 = vmand %vm12568_vm1, %vm12559_vm14 }
 0x876   : > { %v11071_v44 = vrot.slane %v20224_v35, %v19841_v6  ;;  %v20964_v1 = vmax.f32 %v20962_v2, %v20963_v30  ;;  %v10694_v19 = vsel %vm7734_vm4, %v20281_v12, %v10676_v3  ;;  %v10748_v60 = vmax.f32 %v20965_v37, %v10676_v3  ;;  %vm12564_vm4 = vmor %vm20411_vm3, %vm20406_vm2 }
 0x877   : > { %v11048_v7 = vcombine.low %v20303_v61, %v10771_v22  ;;  %v11049_v50 = vcombine.high %v20303_v61, %v10771_v22  ;;  %v11078_v61 = vrot.slane %v11050_v25, %v19841_v6  ;;  %v10747_v62 = vmax.f32 %v10592_v53, %v10694_v19 }
 0x878   : > { %v10773_v11 = vmax.f32 %v20964_v1, %v10746_v5  ;;  %v10775_v20 = vmax.f32 %v7806_v17, %v10748_v60  ;;  %v20968_v12 = vmax.f32 %v20966_v40, %v20967_v32 }
 0x879   : > { %v11057_v52 = vrot.slane %v11048_v7, %v19841_v6  ;;  %v11064_v31 = vrot.slane %v11049_v50, %v19841_v6 }
 0x87a   : > { %v10774_v14 = vmax.f32 %v20968_v12, %v10747_v62  ;;  %v11085_v47 = vcombine.high %v10775_v20, %v10775_v20  ;;  %v11106_v39 = vrot.slane %v10775_v20, %v19841_v6 }
 0x87b   : > { %v11079_v28 = vcombine.low %v11057_v52, %v11071_v44  ;;  %v11080_v49 = vcombine.high %v11057_v52, %v11071_v44  ;;  %v11081_v18 = vcombine.low %v11064_v31, %v11078_v61  ;;  %v11082_v8 = vcombine.high %v11064_v31, %v11078_v61 }
 0x87c   : > { %v11083_v25 = vcombine.low %v10773_v11, %v10774_v14  ;;  %v11084_v23 = vcombine.high %v10773_v11, %v10774_v14  ;;  %v11113_v36 = vrot.slane %v11085_v47, %v19841_v6 }
 0x87d   : > { %v13778_v48 = vrot.slane %v11079_v28, 9  ;;  %v13779_v56 = vrot.slane %v11080_v49, 9  ;;  %v13780_v55 = vrot.slane %v11081_v18, 9  ;;  %v13781_v35 = vrot.slane %v11082_v8, 9 }
 0x87e   : > { %v11092_v58 = vrot.slane %v11083_v25, %v19841_v6  ;;  %v11099_v4 = vrot.slane %v11084_v23, %v19841_v6 }
 0x87f   : > { %v11285_v46 = vmax.f32 %v11079_v28, %v13778_v48  ;;  %v11286_v21 = vmax.f32 %v11080_v49, %v13779_v56  ;;  %v11287_v24 = vmax.f32 %v11081_v18, %v13780_v55  ;;  %v11288_v29 = vmax.f32 %v11082_v8, %v13781_v35 }
 0x881   : > { %v11666_v34 = vrot.slane %v11285_v46, %v20899_v9  ;;  %v11670_v27 = vrot.slane %v11285_v46, %v20900_v57  ;;  %v11674_v16 = vrot.slane %v11285_v46, %v20901_v15  ;;  %v11678_v10 = vrot.slane %v11286_v21, %v20899_v9 }
 0x882   : > { %v11682_v13 = vrot.slane %v11286_v21, %v20900_v57  ;;  %v11686_v26 = vrot.slane %v11286_v21, %v20901_v15  ;;  %v11690_v43 = vrot.slane %v11287_v24, %v20899_v9  ;;  %v11694_v42 = vrot.slane %v11287_v24, %v20900_v57 }
 0x883   : > { %v11698_v51 = vrot.slane %v11287_v24, %v20901_v15  ;;  %v11702_v6 = vrot.slane %v11288_v29, %v20899_v9  ;;  %v11706_v41 = vrot.slane %v11288_v29, %v20900_v57  ;;  %v11710_v59 = vrot.slane %v11288_v29, %v20901_v15 }
 0x884   : > { %v13914_v63 = vpack.c.bf16 %v11670_v27, %v11666_v34  ;;  %v13915_v22 = vpack.c.bf16 %v11674_v16, %v11674_v16  ;;  %v13916_v3 = vpack.c.bf16 %v11682_v13, %v11678_v10  ;;  %v13917_v5 = vpack.c.bf16 %v11686_v26, %v11686_v26 }
 0x885   : > { %v13918_v45 = vpack.c.bf16 %v11694_v42, %v11690_v43  ;;  %v13919_v38 = vpack.c.bf16 %v11698_v51, %v11698_v51  ;;  %v13920_v17 = vpack.c.bf16 %v11706_v41, %v11702_v6  ;;  %v13921_v7 = vpack.c.bf16 %v11710_v59, %v11710_v59 }
 0x886   : > { %v12321_v50 = vunpack.c.l.b16 %v13914_v63  ;;  %v12322_v53 = vunpack.c.h.b16 %v13914_v63  ;;  %v12323_v44 = vunpack.c.l.b16 %v13915_v22  ;;  %v12324_v2 = vunpack.c.l.b16 %v13916_v3 }
 0x887   : > { %v12325_v30 = vunpack.c.h.b16 %v13916_v3  ;;  %v12326_v1 = vunpack.c.l.b16 %v13917_v5  ;;  %v12327_v11 = vunpack.c.l.b16 %v13918_v45  ;;  %v12328_v19 = vunpack.c.h.b16 %v13918_v45 }
 0x888   : > { %v12329_v37 = vunpack.c.l.b16 %v13919_v38  ;;  %v12330_v60 = vunpack.c.l.b16 %v13920_v17  ;;  %v12331_v61 = vunpack.c.h.b16 %v13920_v17  ;;  %v12332_v52 = vunpack.c.l.b16 %v13921_v7 }
 0x889   : > { %v12481_v31 = vrot.slane %v12321_v50, 4  ;;  %v12483_v62 = vrot.slane %v12324_v2, 3  ;;  %v12485_v20 = vrot.slane %v12327_v11, 2  ;;  %v12495_v28 = vrot.slane %v12322_v53, 4 }
 0x88a   : > { %v12487_v49 = vrot.slane %v12330_v60, 1  ;;  %v12497_v18 = vrot.slane %v12325_v30, 3  ;;  %v12499_v8 = vrot.slane %v12328_v19, 2  ;;  %v12501_v40 = vrot.slane %v12331_v61, 1 }
 0x88b   : > { %v12482_v32 = vsel %vm12352_vm8, %v12481_v31, %v20325_v0  ;;  %v12496_v12 = vsel %vm12352_vm8, %v12495_v28, %v20328_v33  ;;  %v12509_v14 = vrot.slane %v12323_v44, 4  ;;  %v12511_v47 = vrot.slane %v12326_v1, 3 }
 0x88c   : > { %v12484_v48 = vsel %vm12355_vm9, %v12483_v62, %v12482_v32  ;;  %v12498_v56 = vsel %vm12355_vm9, %v12497_v18, %v12496_v12  ;;  %v12513_v55 = vrot.slane %v12329_v37, 2  ;;  %v12515_v35 = vrot.slane %v12332_v52, 1 }
 0x88d   : > { %v12486_v25 = vsel %vm12358_vm10, %v12485_v20, %v12484_v48  ;;  %v12500_v23 = vsel %vm12358_vm10, %v12499_v8, %v12498_v56  ;;  %v12510_v46 = vsel %vm12352_vm8, %v12509_v14, %v20335_v54  ;;  %v11114_v0 = vcombine.low %v11092_v58, %v11106_v39  ;;  %v12565_v8 = vld [vmem:[%s19994_s26 + $0x30] sm:$0x33] }
 0x88e   : > { %v12488_v21 = vsel %vm12361_vm11, %v12487_v49, %v12486_v25  ;;  %v12502_v33 = vsel %vm12361_vm11, %v12501_v40, %v12500_v23  ;;  %v12512_v24 = vsel %vm12355_vm9, %v12511_v47, %v12510_v46  ;;  %v11115_v29 = vcombine.high %v11092_v58, %v11106_v39  ;;  %v12570_v40 = vld [vmem:[%s19994_s26 + $0x38] sm:$0x3] }
 0x88f   : > { %v12514_v34 = vsel %vm12358_vm10, %v12513_v55, %v12512_v24  ;;  %v12535_v27 = vpack.c.b16 %v12502_v33, %v12488_v21  ;;  %v11116_v16 = vcombine.low %v11099_v4, %v11113_v36  ;;  %v13782_v10 = vrot.slane %v11114_v0, 9 }
 0x890   : > { %v12516_v13 = vsel %vm12361_vm11, %v12515_v35, %v12514_v34  ;;  %v13783_v26 = vrot.slane %v11115_v29, 9 }
 0x891   : > { %v12536_v43 = vpack.c.b16 %v12516_v13, %v12516_v13  ;;  %12556 = vst [vmem:[%s19994_s26 + $0x24] sm:$0xff] %v12535_v27  ;;  %v13784_v54 = vrot.slane %v11116_v16, 9  ;;  %v11289_v42 = vmax.f32 %v11114_v0, %v13782_v10 }
 0x892   : > { %v11290_v51 = vmax.f32 %v11115_v29, %v13783_v26 }
 0x893   : > { %12557 = vst.msk [vmem:[%s19994_s26 + $0x2c] sm:$0xf] %vm12550_vm12, %v12536_v43  ;;  %v11291_v6 = vmax.f32 %v11116_v16, %v13784_v54  ;;  %v11714_v58 = vrot.slane %v11289_v42, %v20899_v9  ;;  %v11718_v39 = vrot.slane %v11289_v42, %v20900_v57  ;;  %v11722_v4 = vrot.slane %v11289_v42, %v20901_v15 }
 0x894   : > { %v11726_v36 = vrot.slane %v11290_v51, %v20899_v9  ;;  %v11730_v41 = vrot.slane %v11290_v51, %v20900_v57  ;;  %v11734_v59 = vrot.slane %v11290_v51, %v20901_v15 }
 0x895   : > { %v11738_v63 = vrot.slane %v11291_v6, %v20899_v9  ;;  %v11742_v22 = vrot.slane %v11291_v6, %v20900_v57  ;;  %v11746_v3 = vrot.slane %v11291_v6, %v20901_v15  ;;  %v13922_v5 = vpack.c.bf16 %v11718_v39, %v11714_v58 }
 0x896   : > { %v13923_v45 = vpack.c.bf16 %v11722_v4, %v11722_v4  ;;  %v13924_v38 = vpack.c.bf16 %v11730_v41, %v11726_v36  ;;  %v13925_v17 = vpack.c.bf16 %v11734_v59, %v11734_v59 }
 0x897   : > { %v13926_v7 = vpack.c.bf16 %v11742_v22, %v11738_v63  ;;  %v13927_v50 = vpack.c.bf16 %v11746_v3, %v11746_v3  ;;  %v12333_v44 = vunpack.c.l.b16 %v13922_v5  ;;  %v12334_v30 = vunpack.c.h.b16 %v13922_v5 }
 0x898   : > { %v12336_v9 = vunpack.c.l.b16 %v13924_v38  ;;  %v12337_v2 = vunpack.c.h.b16 %v13924_v38  ;;  %v12338_v57 = vunpack.c.l.b16 %v13925_v17  ;;  %v12335_v37 = vunpack.c.l.b16 %v13923_v45 }
 0x899   : > { %v12339_v1 = vunpack.c.l.b16 %v13926_v7  ;;  %v12340_v11 = vunpack.c.h.b16 %v13926_v7  ;;  %v12341_v19 = vunpack.c.l.b16 %v13927_v50 }
 0x89a   : > { %v12517_v60 = vrot.slane %v12336_v9, 7  ;;  %v12521_v61 = vrot.slane %v12337_v2, 7  ;;  %v12525_v52 = vrot.slane %v12338_v57, 7 }
 0x89b   : > { %v12519_v31 = vrot.slane %v12339_v1, 6  ;;  %v12523_v62 = vrot.slane %v12340_v11, 6  ;;  %v12527_v20 = vrot.slane %v12341_v19, 6 }
 0x89c   : > { %v12518_v28 = vsel %vm12343_vm5, %v12517_v60, %v12333_v44  ;;  %v12522_v49 = vsel %vm12343_vm5, %v12521_v61, %v12334_v30  ;;  %v12526_v18 = vsel %vm12343_vm5, %v12525_v52, %v12335_v37 }
 0x89d   : > { %v12520_v32 = vsel %vm12346_vm6, %v12519_v31, %v12518_v28  ;;  %v12524_v12 = vsel %vm12346_vm6, %v12523_v62, %v12522_v49  ;;  %v12528_v14 = vsel %vm12346_vm6, %v12527_v20, %v12526_v18 }
 0x89e   : > { %v12537_v47 = vpack.c.b16 %v12524_v12, %v12520_v32  ;;  %v12538_v48 = vpack.c.b16 %v12528_v14, %v12528_v14 }
 0x8a0   : > { %v12566_v56 = vsel %vm12564_vm4, %v12537_v47, %v12565_v8  ;;  %v12571_v55 = vsel %vm12569_vm7, %v12538_v48, %v12570_v40 }
 0x8a1   : > { %12567 = vst [vmem:[%s19994_s26 + $0x30] sm:$0x33] %v12566_v56  ;;  %12572 = vst [vmem:[%s19994_s26 + $0x38] sm:$0x3] %v12571_v55 }
 0x8a2 PF: > { %s20_s25 = sadd.s32 1, %s16321_s25   ;;  %s20973_s18 = smov %s16297_s19 }
 0x8a3   : > { %p17_p4 = scmp.ge.s32.totalorder %s20_s25, 48   ;;  %s20974_s19 = smov %s16301_s20 }
 0x8a4   : > { %s20975_s20 = smov %s16559_s9  ;;  %s20976_s21 = smov %s16313_s23 }
 0x8a5   : > { %s20977_s22 = smov %s16317_s24  ;;  %s20978_s23 = smov %s20981_s17 }
 0x8a6   : > { %s20979_s24 = smov %s20985_s8  ;;  %19 = sbr.rel (!%p17_p4) target bundleno = 9 (0x9), region = 108 }
 0x8ad   :  { %12602 = vsyncpa [#allocation3], 1 }
 0x8ae   :  { %12604 = vsyncpa [#allocation3 + $0x1], 1 }
 0x8af   :  { %12605 = vsyncpa [#allocation5], 1 }
 0x8b0   :  { %12606 = vsyncpa [#allocation8], 1 }

</bundles_post_ra>
